<compile_context>
chip_gen: v7x
topology: tpu7x:2x2x1
jax: 0.10.0
libtpu: 0.0.40
codegen_flags: <defaults>
</compile_context>

<pallas_src>
import functools

import jax
import jax.numpy as jnp
from jax.experimental import pallas as pl
from jax.experimental.pallas import tpu as pltpu

PADL = 8  # sublane-tile-aligned left margin inside the padded VMEM scratch buffers


# ------------------------------ fused kernel --------------------------------

def _net_kernel(x_ref, w1_ref, b1_ref, w2_ref, b2_ref, w3_ref, b3_ref,
                w4_ref, b4_ref, w5_ref, b5_ref, o_ref, pb2, pb4, pb5, *, H, W):
    HW = H * W
    f32 = jnp.float32

    def spatial_conv(x, pbuf, w_ref, b_ref, *, k, pad, relu):
        """x: (H*W, Cin) f32.  w_ref: (k, k*Cin, Cout) (BN folded).  b_ref: (1, Cout)."""
        cin = x.shape[-1]
        cout = w_ref.shape[-1]
        # Pad once into a VMEM scratch: image at rows [pad, pad+H), columns
        # [PADL, PADL+W) (tile-aligned), zeros elsewhere provide the "same" border.
        pbuf[...] = jnp.zeros_like(pbuf)
        pbuf[pad:pad + H, PADL:PADL + W, :] = x.reshape(H, W, cin)
        acc = b_ref[...] + jnp.zeros((HW, cout), f32)
        for dy in range(k):  # k matmuls, dx taps merged into the contraction dim
            taps = [pbuf[dy:dy + H, PADL - pad + dx:PADL - pad + dx + W, :]
                    for dx in range(k)]
            patch = jnp.concatenate(taps, axis=-1).reshape(HW, k * cin)
            acc = acc + jnp.dot(patch, w_ref[dy], preferred_element_type=f32)
        return jnp.maximum(acc, 0.0) if relu else jax.nn.sigmoid(acc)

    # L1: Conv 5x5, 1->32. Input arrives im2col'ed -> single (HW,25)x(25,32) matmul.
    x1 = jnp.maximum(
        jnp.dot(x_ref[0], w1_ref[...], preferred_element_type=f32) + b1_ref[...], 0.0)
    # L2: Conv 3x3, 32->64.
    x2 = spatial_conv(x1, pb2, w2_ref, b2_ref, k=3, pad=1, relu=True)
    # L3: Conv 1x1, 64->64 -> plain matmul.
    x3 = jnp.maximum(
        jnp.dot(x2, w3_ref[...], preferred_element_type=f32) + b3_ref[...], 0.0)
    # L4: ConvTranspose 3x3 (stride 1) rewritten as Conv 3x3, 64->32.
    x4 = spatial_conv(x3, pb4, w4_ref, b4_ref, k=3, pad=1, relu=True)
    # L5: ConvTranspose 5x5 (stride 1) rewritten as Conv 5x5, 32->1, then Sigmoid.
    x5 = spatial_conv(x4, pb5, w5_ref, b5_ref, k=5, pad=2, relu=False)
    o_ref[...] = x5.reshape(1, HW, 1)


# --------------------------- parameter preparation ---------------------------

def _fold_bn(w_hwio, b, scale, shift):
    """Fold inference-mode BN (scale/shift) into conv weights and bias."""
    w = (w_hwio * scale.reshape(1, 1, 1, -1)).astype(jnp.float32)
    bb = (b * scale + shift).astype(jnp.float32)
    return w, bb


def _prep_params(p):
    q = {}
    # L1: (5,5,1,32) -> (25, 32); rows ordered dy*5+dx to match wrapper im2col.
    w, b = _fold_bn(p["w1"], p["b1"], p["s1"], p["sh1"])
    q["w1"], q["b1"] = w.reshape(25, 32), b.reshape(1, 32)
    # L2: (3,3,32,64) -> (3, 96, 64); per-dy rows ordered dx*Cin+c.
    w, b = _fold_bn(p["w2"], p["b2"], p["s2"], p["sh2"])
    q["w2"], q["b2"] = w.reshape(3, 96, 64), b.reshape(1, 64)
    # L3: (1,1,64,64) -> (64, 64).
    w, b = _fold_bn(p["w3"], p["b3"], p["s3"], p["sh3"])
    q["w3"], q["b3"] = w.reshape(64, 64), b.reshape(1, 64)
    # L4: (3,3,64,32) -> (3, 192, 32).
    w, b = _fold_bn(p["w4"], p["b4"], p["s4"], p["sh4"])
    q["w4"], q["b4"] = w.reshape(3, 192, 32), b.reshape(1, 32)
    # L5: (5,5,32,1) -> (5, 160, 1)  (no BN after the last layer: s5=1, sh5=0).
    w, b = _fold_bn(p["w5"], p["b5"], p["s5"], p["sh5"])
    q["w5"], q["b5"] = w.reshape(5, 160, 1), b.reshape(1, 1)
    return q


# ------------------------------- wrapper -------------------------------------

def network_forward(x_nchw, params):
    N, C, H, W = x_nchw.shape
    assert C == 1 and H % 8 == 0 and W % 8 == 0
    q = _prep_params(params)

    x = jnp.transpose(x_nchw, (0, 2, 3, 1)).astype(jnp.float32)[..., 0]   # (N, H, W)
    # Wrapper-side im2col for layer 1 (Cin=1): columns ordered dy*5+dx -> (N, H*W, 25).
    xp = jnp.pad(x, ((0, 0), (2, 2), (2, 2)))
    cols = [xp[:, dy:dy + H, dx:dx + W] for dy in range(5) for dx in range(5)]
    x_col = jnp.stack(cols, axis=-1).reshape(N, H * W, 25)

    kern = functools.partial(_net_kernel, H=H, W=W)
    out = pl.pallas_call(
        kern,
        out_shape=jax.ShapeDtypeStruct((N, H * W, 1), jnp.float32),
        grid_spec=pltpu.PrefetchScalarGridSpec(
            num_scalar_prefetch=0,
            grid=(N,),
            in_specs=[
                pl.BlockSpec((1, H * W, 25), lambda n: (n, 0, 0)),
                pl.BlockSpec(q["w1"].shape, lambda n: (0, 0)),
                pl.BlockSpec(q["b1"].shape, lambda n: (0, 0)),
                pl.BlockSpec(q["w2"].shape, lambda n: (0, 0, 0)),
                pl.BlockSpec(q["b2"].shape, lambda n: (0, 0)),
                pl.BlockSpec(q["w3"].shape, lambda n: (0, 0)),
                pl.BlockSpec(q["b3"].shape, lambda n: (0, 0)),
                pl.BlockSpec(q["w4"].shape, lambda n: (0, 0, 0)),
                pl.BlockSpec(q["b4"].shape, lambda n: (0, 0)),
                pl.BlockSpec(q["w5"].shape, lambda n: (0, 0, 0)),
                pl.BlockSpec(q["b5"].shape, lambda n: (0, 0)),
            ],
            out_specs=pl.BlockSpec((1, H * W, 1), lambda n: (n, 0, 0)),
            scratch_shapes=[
                pltpu.VMEM((H + 2, PADL + W + 1, 32), jnp.float32),  # L2 padded input
                pltpu.VMEM((H + 2, PADL + W + 1, 64), jnp.float32),  # L4 padded input
                pltpu.VMEM((H + 4, PADL + W + 2, 32), jnp.float32),  # L5 padded input
            ],
        ),
        compiler_params=pltpu.CompilerParams(
            dimension_semantics=("parallel",)),
    )(x_col, q["w1"], q["b1"], q["w2"], q["b2"], q["w3"], q["b3"],
      q["w4"], q["b4"], q["w5"], q["b5"])
    return jnp.transpose(out.reshape(N, H, W, 1), (0, 3, 1, 2))          # -> NCHW


# ---------------- deterministic parameter construction -----------------------

def _bn_fold(key, c, eps=1e-5):
    k1, k2, k3, k4 = jax.random.split(key, 4)
    gamma = 1.0 + 0.1 * jax.random.normal(k1, (c,), jnp.float32)
    beta = 0.1 * jax.random.normal(k2, (c,), jnp.float32)
    mean = 0.1 * jax.random.normal(k3, (c,), jnp.float32)
    var = 1.0 + 0.1 * jax.random.uniform(k4, (c,), jnp.float32)
    scale = gamma / jnp.sqrt(var + eps)
    shift = beta - mean * scale
    return scale, shift


def make_params(key):
    ks = jax.random.split(key, 16)
    p = {}
    # Conv2d(1 -> 32, k=5) : torch weight OIHW (32,1,5,5) -> HWIO
    w1 = 0.1 * jax.random.normal(ks[0], (32, 1, 5, 5), jnp.float32)
    p["w1"] = jnp.transpose(w1, (2, 3, 1, 0))
    p["b1"] = 0.1 * jax.random.normal(ks[1], (32,), jnp.float32)
    p["s1"], p["sh1"] = _bn_fold(ks[2], 32)
    # Conv2d(32 -> 64, k=3)
    w2 = 0.1 * jax.random.normal(ks[3], (64, 32, 3, 3), jnp.float32)
    p["w2"] = jnp.transpose(w2, (2, 3, 1, 0))
    p["b2"] = 0.1 * jax.random.normal(ks[4], (64,), jnp.float32)
    p["s2"], p["sh2"] = _bn_fold(ks[5], 64)
    # Conv2d(64 -> 64, k=1)
    w3 = 0.1 * jax.random.normal(ks[6], (64, 64, 1, 1), jnp.float32)
    p["w3"] = jnp.transpose(w3, (2, 3, 1, 0))
    p["b3"] = 0.1 * jax.random.normal(ks[7], (64,), jnp.float32)
    p["s3"], p["sh3"] = _bn_fold(ks[8], 64)
    # ConvTranspose2d(64 -> 32, k=3, p=1): torch weight (Cin=64, Cout=32, 3, 3)
    # equivalent conv: flip spatial, swap channel axes -> HWIO, pad = k-1-p = 1
    wt4 = 0.1 * jax.random.normal(ks[9], (64, 32, 3, 3), jnp.float32)
    p["w4"] = jnp.transpose(wt4[:, :, ::-1, ::-1], (2, 3, 0, 1))
    p["b4"] = 0.1 * jax.random.normal(ks[10], (32,), jnp.float32)
    p["s4"], p["sh4"] = _bn_fold(ks[11], 32)
    # ConvTranspose2d(32 -> 1, k=5, p=2): equivalent conv pad = k-1-p = 2
    wt5 = 0.1 * jax.random.normal(ks[12], (32, 1, 5, 5), jnp.float32)
    p["w5"] = jnp.transpose(wt5[:, :, ::-1, ::-1], (2, 3, 0, 1))
    p["b5"] = 0.1 * jax.random.normal(ks[13], (1,), jnp.float32)
    p["s5"] = jnp.ones((1,), jnp.float32)
    p["sh5"] = jnp.zeros((1,), jnp.float32)
    return p


# ----------------------------- reference (plain JAX) -------------------------

def _ref_layer(x, w_hwio, b, s, sh, pad, act):
    y = jax.lax.conv_general_dilated(
        x, w_hwio, window_strides=(1, 1),
        padding=[(pad, pad), (pad, pad)],
        dimension_numbers=("NHWC", "HWIO", "NHWC"))
    y = (y + b) * s + sh
    return jnp.maximum(y, 0.0) if act == "relu" else jax.nn.sigmoid(y)


def network_ref(x_nchw, p):
    x = jnp.transpose(x_nchw, (0, 2, 3, 1)).astype(jnp.float32)
    x = _ref_layer(x, p["w1"], p["b1"], p["s1"], p["sh1"], 2, "relu")
    x = _ref_layer(x, p["w2"], p["b2"], p["s2"], p["sh2"], 1, "relu")
    x = _ref_layer(x, p["w3"], p["b3"], p["s3"], p["sh3"], 0, "relu")
    x = _ref_layer(x, p["w4"], p["b4"], p["s4"], p["sh4"], 1, "relu")
    x = _ref_layer(x, p["w5"], p["b5"], p["s5"], p["sh5"], 2, "sigmoid")
    return jnp.transpose(x, (0, 3, 1, 2))


if __name__ == "__main__":
    key = jax.random.PRNGKey(0)
    kx, kp = jax.random.split(key)
    x = jax.random.uniform(kx, (2, 1, 16, 16), jnp.float32)  # NCHW, 1-channel image
    params = make_params(kp)

    fwd = jax.jit(network_forward)
    ref_fn = jax.jit(network_ref)

    out = jax.block_until_ready(fwd(x, params))
    ref = jax.block_until_ready(ref_fn(x, params))

    assert out.shape == (2, 1, 16, 16), out.shape
    err = float(jnp.max(jnp.abs(out - ref)))
    assert err < 2e-4, err
    print("KERNEL_OK")
</pallas_src>

<mosaic_0001>
module attributes {stable_mosaic.version = 11 : i64} {
  func.func @_net_kernel(%arg0: i32, %arg1: memref<1x256x25xf32, #tpu.memory_space<vmem>>, %arg2: memref<25x32xf32, #tpu.memory_space<vmem>>, %arg3: memref<1x32xf32, #tpu.memory_space<vmem>>, %arg4: memref<3x96x64xf32, #tpu.memory_space<vmem>>, %arg5: memref<1x64xf32, #tpu.memory_space<vmem>>, %arg6: memref<64x64xf32, #tpu.memory_space<vmem>>, %arg7: memref<1x64xf32, #tpu.memory_space<vmem>>, %arg8: memref<3x192x32xf32, #tpu.memory_space<vmem>>, %arg9: memref<1x32xf32, #tpu.memory_space<vmem>>, %arg10: memref<5x160x1xf32, #tpu.memory_space<vmem>>, %arg11: memref<1x1xf32, #tpu.memory_space<vmem>>, %arg12: memref<1x256x1xf32, #tpu.memory_space<vmem>>, %arg13: memref<18x25x32xf32, #tpu.memory_space<vmem>>, %arg14: memref<18x25x64xf32, #tpu.memory_space<vmem>>, %arg15: memref<20x26x32xf32, #tpu.memory_space<vmem>>) attributes {dimension_semantics = [#tpu.dimension_semantics<parallel>], iteration_bounds = array<i64: 2>, scalar_prefetch = 0 : i64, scratch_operands = 3 : i64, tpu.core_type = #tpu.core_type<tc>, window_params = [{transform_indices = @transform_0, window_bounds = array<i64: 1, 256, 25>}, {pipeline_mode = #tpu.pipeline_mode<synchronous>, transform_indices = @transform_1, window_bounds = array<i64: 25, 32>}, {pipeline_mode = #tpu.pipeline_mode<synchronous>, transform_indices = @transform_2, window_bounds = array<i64: 1, 32>}, {pipeline_mode = #tpu.pipeline_mode<synchronous>, transform_indices = @transform_3, window_bounds = array<i64: 3, 96, 64>}, {pipeline_mode = #tpu.pipeline_mode<synchronous>, transform_indices = @transform_4, window_bounds = array<i64: 1, 64>}, {pipeline_mode = #tpu.pipeline_mode<synchronous>, transform_indices = @transform_5, window_bounds = array<i64: 64, 64>}, {pipeline_mode = #tpu.pipeline_mode<synchronous>, transform_indices = @transform_6, window_bounds = array<i64: 1, 64>}, {pipeline_mode = #tpu.pipeline_mode<synchronous>, transform_indices = @transform_7, window_bounds = array<i64: 3, 192, 32>}, {pipeline_mode = #tpu.pipeline_mode<synchronous>, transform_indices = @transform_8, window_bounds = array<i64: 1, 32>}, {pipeline_mode = #tpu.pipeline_mode<synchronous>, transform_indices = @transform_9, window_bounds = array<i64: 5, 160, 1>}, {pipeline_mode = #tpu.pipeline_mode<synchronous>, transform_indices = @transform_10, window_bounds = array<i64: 1, 1>}, {transform_indices = @transform_11, window_bounds = array<i64: 1, 256, 1>}]} {
    %c0 = arith.constant 0 : index
    %c0_0 = arith.constant 0 : index
    %c0_1 = arith.constant 0 : index
    %0 = vector.load %arg1[%c0, %c0_0, %c0_1] : memref<1x256x25xf32, #tpu.memory_space<vmem>>, vector<1x256x25xf32>
    %1 = vector.shape_cast %0 : vector<1x256x25xf32> to vector<256x25xf32>
    %c0_2 = arith.constant 0 : index
    %c0_3 = arith.constant 0 : index
    %2 = vector.load %arg2[%c0_2, %c0_3] : memref<25x32xf32, #tpu.memory_space<vmem>>, vector<25x32xf32>
    %cst = arith.constant dense<0.000000e+00> : vector<256x32xf32>
    %3 = tpu.matmul %1, %2, %cst {dimension_numbers = #tpu.dot_dimension_numbers<[1], [0], [0], [1], [0, 0, 1, 1], [], []>} : vector<256x25xf32>, vector<25x32xf32>, vector<256x32xf32> -> vector<256x32xf32>
    %c0_4 = arith.constant 0 : index
    %c0_5 = arith.constant 0 : index
    %4 = vector.load %arg3[%c0_4, %c0_5] : memref<1x32xf32, #tpu.memory_space<vmem>>, vector<1x32xf32>
    %5 = vector.broadcast %4 : vector<1x32xf32> to vector<256x32xf32>
    %6 = arith.addf %3, %5 : vector<256x32xf32>
    %cst_6 = arith.constant 0.000000e+00 : f32
    %7 = vector.broadcast %cst_6 : f32 to vector<256x32xf32>
    %8 = arith.maximumf %6, %7 : vector<256x32xf32>
    %cst_7 = arith.constant 0.000000e+00 : f32
    %9 = vector.broadcast %cst_7 : f32 to vector<18x25x32xf32>
    %c0_8 = arith.constant 0 : index
    %c0_9 = arith.constant 0 : index
    %c0_10 = arith.constant 0 : index
    %10 = vector.load %arg13[%c0_8, %c0_9, %c0_10] : memref<18x25x32xf32, #tpu.memory_space<vmem>>, vector<18x25x32xf32>
    tpu.vector_store %arg13[%c0_8, %c0_9, %c0_10], %9 {strides = array<i32>} : memref<18x25x32xf32, #tpu.memory_space<vmem>>, vector<18x25x32xf32>,
    %11 = vector.shape_cast %8 : vector<256x32xf32> to vector<16x16x32xf32>
    %c1 = arith.constant 1 : index
    %c8 = arith.constant 8 : index
    %c0_11 = arith.constant 0 : index
    %12 = vector.load %arg13[%c1, %c8, %c0_11] : memref<18x25x32xf32, #tpu.memory_space<vmem>>, vector<16x16x32xf32>
    tpu.vector_store %arg13[%c1, %c8, %c0_11], %11 {strides = array<i32>} : memref<18x25x32xf32, #tpu.memory_space<vmem>>, vector<16x16x32xf32>,
    %c0_12 = arith.constant 0 : index
    %c0_13 = arith.constant 0 : index
    %13 = vector.load %arg5[%c0_12, %c0_13] : memref<1x64xf32, #tpu.memory_space<vmem>>, vector<1x64xf32>
    %cst_14 = arith.constant 0.000000e+00 : f32
    %14 = vector.broadcast %cst_14 : f32 to vector<256x64xf32>
    %15 = vector.broadcast %13 : vector<1x64xf32> to vector<256x64xf32>
    %16 = arith.addf %15, %14 : vector<256x64xf32>
    %c0_15 = arith.constant 0 : index
    %c7 = arith.constant 7 : index
    %c0_16 = arith.constant 0 : index
    %17 = vector.load %arg13[%c0_15, %c7, %c0_16] : memref<18x25x32xf32, #tpu.memory_space<vmem>>, vector<16x16x32xf32>
    %c0_17 = arith.constant 0 : index
    %c8_18 = arith.constant 8 : index
    %c0_19 = arith.constant 0 : index
    %18 = vector.load %arg13[%c0_17, %c8_18, %c0_19] : memref<18x25x32xf32, #tpu.memory_space<vmem>>, vector<16x16x32xf32>
    %c0_20 = arith.constant 0 : index
    %c9 = arith.constant 9 : index
    %c0_21 = arith.constant 0 : index
    %19 = vector.load %arg13[%c0_20, %c9, %c0_21] : memref<18x25x32xf32, #tpu.memory_space<vmem>>, vector<16x16x32xf32>
    %20 = tpu.concatenate %17, %18, %19 in 2 : vector<16x16x32xf32>, vector<16x16x32xf32>, vector<16x16x32xf32> -> vector<16x16x96xf32>
    %21 = vector.shape_cast %20 : vector<16x16x96xf32> to vector<256x96xf32>
    %c0_22 = arith.constant 0 : index
    %c0_23 = arith.constant 0 : index
    %c0_24 = arith.constant 0 : index
    %22 = vector.load %arg4[%c0_22, %c0_23, %c0_24] : memref<3x96x64xf32, #tpu.memory_space<vmem>>, vector<1x96x64xf32>
    %23 = vector.shape_cast %22 : vector<1x96x64xf32> to vector<96x64xf32>
    %cst_25 = arith.constant dense<0.000000e+00> : vector<256x64xf32>
    %24 = tpu.matmul %21, %23, %cst_25 {dimension_numbers = #tpu.dot_dimension_numbers<[1], [0], [0], [1], [0, 0, 1, 1], [], []>} : vector<256x96xf32>, vector<96x64xf32>, vector<256x64xf32> -> vector<256x64xf32>
    %25 = arith.addf %16, %24 : vector<256x64xf32>
    %c1_26 = arith.constant 1 : index
    %c7_27 = arith.constant 7 : index
    %c0_28 = arith.constant 0 : index
    %26 = vector.load %arg13[%c1_26, %c7_27, %c0_28] : memref<18x25x32xf32, #tpu.memory_space<vmem>>, vector<16x16x32xf32>
    %c1_29 = arith.constant 1 : index
    %c8_30 = arith.constant 8 : index
    %c0_31 = arith.constant 0 : index
    %27 = vector.load %arg13[%c1_29, %c8_30, %c0_31] : memref<18x25x32xf32, #tpu.memory_space<vmem>>, vector<16x16x32xf32>
    %c1_32 = arith.constant 1 : index
    %c9_33 = arith.constant 9 : index
    %c0_34 = arith.constant 0 : index
    %28 = vector.load %arg13[%c1_32, %c9_33, %c0_34] : memref<18x25x32xf32, #tpu.memory_space<vmem>>, vector<16x16x32xf32>
    %29 = tpu.concatenate %26, %27, %28 in 2 : vector<16x16x32xf32>, vector<16x16x32xf32>, vector<16x16x32xf32> -> vector<16x16x96xf32>
    %30 = vector.shape_cast %29 : vector<16x16x96xf32> to vector<256x96xf32>
    %c1_35 = arith.constant 1 : index
    %c0_36 = arith.constant 0 : index
    %c0_37 = arith.constant 0 : index
    %31 = vector.load %arg4[%c1_35, %c0_36, %c0_37] : memref<3x96x64xf32, #tpu.memory_space<vmem>>, vector<1x96x64xf32>
    %32 = vector.shape_cast %31 : vector<1x96x64xf32> to vector<96x64xf32>
    %cst_38 = arith.constant dense<0.000000e+00> : vector<256x64xf32>
    %33 = tpu.matmul %30, %32, %cst_38 {dimension_numbers = #tpu.dot_dimension_numbers<[1], [0], [0], [1], [0, 0, 1, 1], [], []>} : vector<256x96xf32>, vector<96x64xf32>, vector<256x64xf32> -> vector<256x64xf32>
    %34 = arith.addf %25, %33 : vector<256x64xf32>
    %c2 = arith.constant 2 : index
    %c7_39 = arith.constant 7 : index
    %c0_40 = arith.constant 0 : index
    %35 = vector.load %arg13[%c2, %c7_39, %c0_40] : memref<18x25x32xf32, #tpu.memory_space<vmem>>, vector<16x16x32xf32>
    %c2_41 = arith.constant 2 : index
    %c8_42 = arith.constant 8 : index
    %c0_43 = arith.constant 0 : index
    %36 = vector.load %arg13[%c2_41, %c8_42, %c0_43] : memref<18x25x32xf32, #tpu.memory_space<vmem>>, vector<16x16x32xf32>
    %c2_44 = arith.constant 2 : index
    %c9_45 = arith.constant 9 : index
    %c0_46 = arith.constant 0 : index
    %37 = vector.load %arg13[%c2_44, %c9_45, %c0_46] : memref<18x25x32xf32, #tpu.memory_space<vmem>>, vector<16x16x32xf32>
    %38 = tpu.concatenate %35, %36, %37 in 2 : vector<16x16x32xf32>, vector<16x16x32xf32>, vector<16x16x32xf32> -> vector<16x16x96xf32>
    %39 = vector.shape_cast %38 : vector<16x16x96xf32> to vector<256x96xf32>
    %c2_47 = arith.constant 2 : index
    %c0_48 = arith.constant 0 : index
    %c0_49 = arith.constant 0 : index
    %40 = vector.load %arg4[%c2_47, %c0_48, %c0_49] : memref<3x96x64xf32, #tpu.memory_space<vmem>>, vector<1x96x64xf32>
    %41 = vector.shape_cast %40 : vector<1x96x64xf32> to vector<96x64xf32>
    %cst_50 = arith.constant dense<0.000000e+00> : vector<256x64xf32>
    %42 = tpu.matmul %39, %41, %cst_50 {dimension_numbers = #tpu.dot_dimension_numbers<[1], [0], [0], [1], [0, 0, 1, 1], [], []>} : vector<256x96xf32>, vector<96x64xf32>, vector<256x64xf32> -> vector<256x64xf32>
    %43 = arith.addf %34, %42 : vector<256x64xf32>
    %cst_51 = arith.constant 0.000000e+00 : f32
    %44 = vector.broadcast %cst_51 : f32 to vector<256x64xf32>
    %45 = arith.maximumf %43, %44 : vector<256x64xf32>
    %c0_52 = arith.constant 0 : index
    %c0_53 = arith.constant 0 : index
    %46 = vector.load %arg6[%c0_52, %c0_53] : memref<64x64xf32, #tpu.memory_space<vmem>>, vector<64x64xf32>
    %cst_54 = arith.constant dense<0.000000e+00> : vector<256x64xf32>
    %47 = tpu.matmul %45, %46, %cst_54 {dimension_numbers = #tpu.dot_dimension_numbers<[1], [0], [0], [1], [0, 0, 1, 1], [], []>} : vector<256x64xf32>, vector<64x64xf32>, vector<256x64xf32> -> vector<256x64xf32>
    %c0_55 = arith.constant 0 : index
    %c0_56 = arith.constant 0 : index
    %48 = vector.load %arg7[%c0_55, %c0_56] : memref<1x64xf32, #tpu.memory_space<vmem>>, vector<1x64xf32>
    %49 = vector.broadcast %48 : vector<1x64xf32> to vector<256x64xf32>
    %50 = arith.addf %47, %49 : vector<256x64xf32>
    %cst_57 = arith.constant 0.000000e+00 : f32
    %51 = vector.broadcast %cst_57 : f32 to vector<256x64xf32>
    %52 = arith.maximumf %50, %51 : vector<256x64xf32>
    %cst_58 = arith.constant 0.000000e+00 : f32
    %53 = vector.broadcast %cst_58 : f32 to vector<18x25x64xf32>
    %c0_59 = arith.constant 0 : index
    %c0_60 = arith.constant 0 : index
    %c0_61 = arith.constant 0 : index
    %54 = vector.load %arg14[%c0_59, %c0_60, %c0_61] : memref<18x25x64xf32, #tpu.memory_space<vmem>>, vector<18x25x64xf32>
    tpu.vector_store %arg14[%c0_59, %c0_60, %c0_61], %53 {strides = array<i32>} : memref<18x25x64xf32, #tpu.memory_space<vmem>>, vector<18x25x64xf32>,
    %55 = vector.shape_cast %52 : vector<256x64xf32> to vector<16x16x64xf32>
    %c1_62 = arith.constant 1 : index
    %c8_63 = arith.constant 8 : index
    %c0_64 = arith.constant 0 : index
    %56 = vector.load %arg14[%c1_62, %c8_63, %c0_64] : memref<18x25x64xf32, #tpu.memory_space<vmem>>, vector<16x16x64xf32>
    tpu.vector_store %arg14[%c1_62, %c8_63, %c0_64], %55 {strides = array<i32>} : memref<18x25x64xf32, #tpu.memory_space<vmem>>, vector<16x16x64xf32>,
    %c0_65 = arith.constant 0 : index
    %c0_66 = arith.constant 0 : index
    %57 = vector.load %arg9[%c0_65, %c0_66] : memref<1x32xf32, #tpu.memory_space<vmem>>, vector<1x32xf32>
    %cst_67 = arith.constant 0.000000e+00 : f32
    %58 = vector.broadcast %cst_67 : f32 to vector<256x32xf32>
    %59 = vector.broadcast %57 : vector<1x32xf32> to vector<256x32xf32>
    %60 = arith.addf %59, %58 : vector<256x32xf32>
    %c0_68 = arith.constant 0 : index
    %c7_69 = arith.constant 7 : index
    %c0_70 = arith.constant 0 : index
    %61 = vector.load %arg14[%c0_68, %c7_69, %c0_70] : memref<18x25x64xf32, #tpu.memory_space<vmem>>, vector<16x16x64xf32>
    %c0_71 = arith.constant 0 : index
    %c8_72 = arith.constant 8 : index
    %c0_73 = arith.constant 0 : index
    %62 = vector.load %arg14[%c0_71, %c8_72, %c0_73] : memref<18x25x64xf32, #tpu.memory_space<vmem>>, vector<16x16x64xf32>
    %c0_74 = arith.constant 0 : index
    %c9_75 = arith.constant 9 : index
    %c0_76 = arith.constant 0 : index
    %63 = vector.load %arg14[%c0_74, %c9_75, %c0_76] : memref<18x25x64xf32, #tpu.memory_space<vmem>>, vector<16x16x64xf32>
    %64 = tpu.concatenate %61, %62, %63 in 2 : vector<16x16x64xf32>, vector<16x16x64xf32>, vector<16x16x64xf32> -> vector<16x16x192xf32>
    %65 = vector.shape_cast %64 : vector<16x16x192xf32> to vector<256x192xf32>
    %c0_77 = arith.constant 0 : index
    %c0_78 = arith.constant 0 : index
    %c0_79 = arith.constant 0 : index
    %66 = vector.load %arg8[%c0_77, %c0_78, %c0_79] : memref<3x192x32xf32, #tpu.memory_space<vmem>>, vector<1x192x32xf32>
    %67 = vector.shape_cast %66 : vector<1x192x32xf32> to vector<192x32xf32>
    %cst_80 = arith.constant dense<0.000000e+00> : vector<256x32xf32>
    %68 = tpu.matmul %65, %67, %cst_80 {dimension_numbers = #tpu.dot_dimension_numbers<[1], [0], [0], [1], [0, 0, 1, 1], [], []>} : vector<256x192xf32>, vector<192x32xf32>, vector<256x32xf32> -> vector<256x32xf32>
    %69 = arith.addf %60, %68 : vector<256x32xf32>
    %c1_81 = arith.constant 1 : index
    %c7_82 = arith.constant 7 : index
    %c0_83 = arith.constant 0 : index
    %70 = vector.load %arg14[%c1_81, %c7_82, %c0_83] : memref<18x25x64xf32, #tpu.memory_space<vmem>>, vector<16x16x64xf32>
    %c1_84 = arith.constant 1 : index
    %c8_85 = arith.constant 8 : index
    %c0_86 = arith.constant 0 : index
    %71 = vector.load %arg14[%c1_84, %c8_85, %c0_86] : memref<18x25x64xf32, #tpu.memory_space<vmem>>, vector<16x16x64xf32>
    %c1_87 = arith.constant 1 : index
    %c9_88 = arith.constant 9 : index
    %c0_89 = arith.constant 0 : index
    %72 = vector.load %arg14[%c1_87, %c9_88, %c0_89] : memref<18x25x64xf32, #tpu.memory_space<vmem>>, vector<16x16x64xf32>
    %73 = tpu.concatenate %70, %71, %72 in 2 : vector<16x16x64xf32>, vector<16x16x64xf32>, vector<16x16x64xf32> -> vector<16x16x192xf32>
    %74 = vector.shape_cast %73 : vector<16x16x192xf32> to vector<256x192xf32>
    %c1_90 = arith.constant 1 : index
    %c0_91 = arith.constant 0 : index
    %c0_92 = arith.constant 0 : index
    %75 = vector.load %arg8[%c1_90, %c0_91, %c0_92] : memref<3x192x32xf32, #tpu.memory_space<vmem>>, vector<1x192x32xf32>
    %76 = vector.shape_cast %75 : vector<1x192x32xf32> to vector<192x32xf32>
    %cst_93 = arith.constant dense<0.000000e+00> : vector<256x32xf32>
    %77 = tpu.matmul %74, %76, %cst_93 {dimension_numbers = #tpu.dot_dimension_numbers<[1], [0], [0], [1], [0, 0, 1, 1], [], []>} : vector<256x192xf32>, vector<192x32xf32>, vector<256x32xf32> -> vector<256x32xf32>
    %78 = arith.addf %69, %77 : vector<256x32xf32>
    %c2_94 = arith.constant 2 : index
    %c7_95 = arith.constant 7 : index
    %c0_96 = arith.constant 0 : index
    %79 = vector.load %arg14[%c2_94, %c7_95, %c0_96] : memref<18x25x64xf32, #tpu.memory_space<vmem>>, vector<16x16x64xf32>
    %c2_97 = arith.constant 2 : index
    %c8_98 = arith.constant 8 : index
    %c0_99 = arith.constant 0 : index
    %80 = vector.load %arg14[%c2_97, %c8_98, %c0_99] : memref<18x25x64xf32, #tpu.memory_space<vmem>>, vector<16x16x64xf32>
    %c2_100 = arith.constant 2 : index
    %c9_101 = arith.constant 9 : index
    %c0_102 = arith.constant 0 : index
    %81 = vector.load %arg14[%c2_100, %c9_101, %c0_102] : memref<18x25x64xf32, #tpu.memory_space<vmem>>, vector<16x16x64xf32>
    %82 = tpu.concatenate %79, %80, %81 in 2 : vector<16x16x64xf32>, vector<16x16x64xf32>, vector<16x16x64xf32> -> vector<16x16x192xf32>
    %83 = vector.shape_cast %82 : vector<16x16x192xf32> to vector<256x192xf32>
    %c2_103 = arith.constant 2 : index
    %c0_104 = arith.constant 0 : index
    %c0_105 = arith.constant 0 : index
    %84 = vector.load %arg8[%c2_103, %c0_104, %c0_105] : memref<3x192x32xf32, #tpu.memory_space<vmem>>, vector<1x192x32xf32>
    %85 = vector.shape_cast %84 : vector<1x192x32xf32> to vector<192x32xf32>
    %cst_106 = arith.constant dense<0.000000e+00> : vector<256x32xf32>
    %86 = tpu.matmul %83, %85, %cst_106 {dimension_numbers = #tpu.dot_dimension_numbers<[1], [0], [0], [1], [0, 0, 1, 1], [], []>} : vector<256x192xf32>, vector<192x32xf32>, vector<256x32xf32> -> vector<256x32xf32>
    %87 = arith.addf %78, %86 : vector<256x32xf32>
    %cst_107 = arith.constant 0.000000e+00 : f32
    %88 = vector.broadcast %cst_107 : f32 to vector<256x32xf32>
    %89 = arith.maximumf %87, %88 : vector<256x32xf32>
    %cst_108 = arith.constant 0.000000e+00 : f32
    %90 = vector.broadcast %cst_108 : f32 to vector<20x26x32xf32>
    %c0_109 = arith.constant 0 : index
    %c0_110 = arith.constant 0 : index
    %c0_111 = arith.constant 0 : index
    %91 = vector.load %arg15[%c0_109, %c0_110, %c0_111] : memref<20x26x32xf32, #tpu.memory_space<vmem>>, vector<20x26x32xf32>
    tpu.vector_store %arg15[%c0_109, %c0_110, %c0_111], %90 {strides = array<i32>} : memref<20x26x32xf32, #tpu.memory_space<vmem>>, vector<20x26x32xf32>,
    %92 = vector.shape_cast %89 : vector<256x32xf32> to vector<16x16x32xf32>
    %c2_112 = arith.constant 2 : index
    %c8_113 = arith.constant 8 : index
    %c0_114 = arith.constant 0 : index
    %93 = vector.load %arg15[%c2_112, %c8_113, %c0_114] : memref<20x26x32xf32, #tpu.memory_space<vmem>>, vector<16x16x32xf32>
    tpu.vector_store %arg15[%c2_112, %c8_113, %c0_114], %92 {strides = array<i32>} : memref<20x26x32xf32, #tpu.memory_space<vmem>>, vector<16x16x32xf32>,
    %c0_115 = arith.constant 0 : index
    %c0_116 = arith.constant 0 : index
    %94 = vector.load %arg11[%c0_115, %c0_116] : memref<1x1xf32, #tpu.memory_space<vmem>>, vector<1x1xf32>
    %cst_117 = arith.constant 0.000000e+00 : f32
    %95 = vector.broadcast %cst_117 : f32 to vector<256x1xf32>
    %96 = vector.broadcast %94 : vector<1x1xf32> to vector<256x1xf32>
    %97 = arith.addf %96, %95 : vector<256x1xf32>
    %c0_118 = arith.constant 0 : index
    %c6 = arith.constant 6 : index
    %c0_119 = arith.constant 0 : index
    %98 = vector.load %arg15[%c0_118, %c6, %c0_119] : memref<20x26x32xf32, #tpu.memory_space<vmem>>, vector<16x16x32xf32>
    %c0_120 = arith.constant 0 : index
    %c7_121 = arith.constant 7 : index
    %c0_122 = arith.constant 0 : index
    %99 = vector.load %arg15[%c0_120, %c7_121, %c0_122] : memref<20x26x32xf32, #tpu.memory_space<vmem>>, vector<16x16x32xf32>
    %c0_123 = arith.constant 0 : index
    %c8_124 = arith.constant 8 : index
    %c0_125 = arith.constant 0 : index
    %100 = vector.load %arg15[%c0_123, %c8_124, %c0_125] : memref<20x26x32xf32, #tpu.memory_space<vmem>>, vector<16x16x32xf32>
    %c0_126 = arith.constant 0 : index
    %c9_127 = arith.constant 9 : index
    %c0_128 = arith.constant 0 : index
    %101 = vector.load %arg15[%c0_126, %c9_127, %c0_128] : memref<20x26x32xf32, #tpu.memory_space<vmem>>, vector<16x16x32xf32>
    %c0_129 = arith.constant 0 : index
    %c10 = arith.constant 10 : index
    %c0_130 = arith.constant 0 : index
    %102 = vector.load %arg15[%c0_129, %c10, %c0_130] : memref<20x26x32xf32, #tpu.memory_space<vmem>>, vector<16x16x32xf32>
    %103 = tpu.concatenate %98, %99, %100, %101, %102 in 2 : vector<16x16x32xf32>, vector<16x16x32xf32>, vector<16x16x32xf32>, vector<16x16x32xf32>, vector<16x16x32xf32> -> vector<16x16x160xf32>
    %104 = vector.shape_cast %103 : vector<16x16x160xf32> to vector<256x160xf32>
    %c0_131 = arith.constant 0 : index
    %c0_132 = arith.constant 0 : index
    %c0_133 = arith.constant 0 : index
    %105 = vector.load %arg10[%c0_131, %c0_132, %c0_133] : memref<5x160x1xf32, #tpu.memory_space<vmem>>, vector<1x160x1xf32>
    %106 = vector.shape_cast %105 : vector<1x160x1xf32> to vector<160x1xf32>
    %cst_134 = arith.constant dense<0.000000e+00> : vector<256x1xf32>
    %107 = tpu.matmul %104, %106, %cst_134 {dimension_numbers = #tpu.dot_dimension_numbers<[1], [0], [0], [1], [0, 0, 1, 1], [], []>} : vector<256x160xf32>, vector<160x1xf32>, vector<256x1xf32> -> vector<256x1xf32>
    %108 = arith.addf %97, %107 : vector<256x1xf32>
    %c1_135 = arith.constant 1 : index
    %c6_136 = arith.constant 6 : index
    %c0_137 = arith.constant 0 : index
    %109 = vector.load %arg15[%c1_135, %c6_136, %c0_137] : memref<20x26x32xf32, #tpu.memory_space<vmem>>, vector<16x16x32xf32>
    %c1_138 = arith.constant 1 : index
    %c7_139 = arith.constant 7 : index
    %c0_140 = arith.constant 0 : index
    %110 = vector.load %arg15[%c1_138, %c7_139, %c0_140] : memref<20x26x32xf32, #tpu.memory_space<vmem>>, vector<16x16x32xf32>
    %c1_141 = arith.constant 1 : index
    %c8_142 = arith.constant 8 : index
    %c0_143 = arith.constant 0 : index
    %111 = vector.load %arg15[%c1_141, %c8_142, %c0_143] : memref<20x26x32xf32, #tpu.memory_space<vmem>>, vector<16x16x32xf32>
    %c1_144 = arith.constant 1 : index
    %c9_145 = arith.constant 9 : index
    %c0_146 = arith.constant 0 : index
    %112 = vector.load %arg15[%c1_144, %c9_145, %c0_146] : memref<20x26x32xf32, #tpu.memory_space<vmem>>, vector<16x16x32xf32>
    %c1_147 = arith.constant 1 : index
    %c10_148 = arith.constant 10 : index
    %c0_149 = arith.constant 0 : index
    %113 = vector.load %arg15[%c1_147, %c10_148, %c0_149] : memref<20x26x32xf32, #tpu.memory_space<vmem>>, vector<16x16x32xf32>
    %114 = tpu.concatenate %109, %110, %111, %112, %113 in 2 : vector<16x16x32xf32>, vector<16x16x32xf32>, vector<16x16x32xf32>, vector<16x16x32xf32>, vector<16x16x32xf32> -> vector<16x16x160xf32>
    %115 = vector.shape_cast %114 : vector<16x16x160xf32> to vector<256x160xf32>
    %c1_150 = arith.constant 1 : index
    %c0_151 = arith.constant 0 : index
    %c0_152 = arith.constant 0 : index
    %116 = vector.load %arg10[%c1_150, %c0_151, %c0_152] : memref<5x160x1xf32, #tpu.memory_space<vmem>>, vector<1x160x1xf32>
    %117 = vector.shape_cast %116 : vector<1x160x1xf32> to vector<160x1xf32>
    %cst_153 = arith.constant dense<0.000000e+00> : vector<256x1xf32>
    %118 = tpu.matmul %115, %117, %cst_153 {dimension_numbers = #tpu.dot_dimension_numbers<[1], [0], [0], [1], [0, 0, 1, 1], [], []>} : vector<256x160xf32>, vector<160x1xf32>, vector<256x1xf32> -> vector<256x1xf32>
    %119 = arith.addf %108, %118 : vector<256x1xf32>
    %c2_154 = arith.constant 2 : index
    %c6_155 = arith.constant 6 : index
    %c0_156 = arith.constant 0 : index
    %120 = vector.load %arg15[%c2_154, %c6_155, %c0_156] : memref<20x26x32xf32, #tpu.memory_space<vmem>>, vector<16x16x32xf32>
    %c2_157 = arith.constant 2 : index
    %c7_158 = arith.constant 7 : index
    %c0_159 = arith.constant 0 : index
    %121 = vector.load %arg15[%c2_157, %c7_158, %c0_159] : memref<20x26x32xf32, #tpu.memory_space<vmem>>, vector<16x16x32xf32>
    %c2_160 = arith.constant 2 : index
    %c8_161 = arith.constant 8 : index
    %c0_162 = arith.constant 0 : index
    %122 = vector.load %arg15[%c2_160, %c8_161, %c0_162] : memref<20x26x32xf32, #tpu.memory_space<vmem>>, vector<16x16x32xf32>
    %c2_163 = arith.constant 2 : index
    %c9_164 = arith.constant 9 : index
    %c0_165 = arith.constant 0 : index
    %123 = vector.load %arg15[%c2_163, %c9_164, %c0_165] : memref<20x26x32xf32, #tpu.memory_space<vmem>>, vector<16x16x32xf32>
    %c2_166 = arith.constant 2 : index
    %c10_167 = arith.constant 10 : index
    %c0_168 = arith.constant 0 : index
    %124 = vector.load %arg15[%c2_166, %c10_167, %c0_168] : memref<20x26x32xf32, #tpu.memory_space<vmem>>, vector<16x16x32xf32>
    %125 = tpu.concatenate %120, %121, %122, %123, %124 in 2 : vector<16x16x32xf32>, vector<16x16x32xf32>, vector<16x16x32xf32>, vector<16x16x32xf32>, vector<16x16x32xf32> -> vector<16x16x160xf32>
    %126 = vector.shape_cast %125 : vector<16x16x160xf32> to vector<256x160xf32>
    %c2_169 = arith.constant 2 : index
    %c0_170 = arith.constant 0 : index
    %c0_171 = arith.constant 0 : index
    %127 = vector.load %arg10[%c2_169, %c0_170, %c0_171] : memref<5x160x1xf32, #tpu.memory_space<vmem>>, vector<1x160x1xf32>
    %128 = vector.shape_cast %127 : vector<1x160x1xf32> to vector<160x1xf32>
    %cst_172 = arith.constant dense<0.000000e+00> : vector<256x1xf32>
    %129 = tpu.matmul %126, %128, %cst_172 {dimension_numbers = #tpu.dot_dimension_numbers<[1], [0], [0], [1], [0, 0, 1, 1], [], []>} : vector<256x160xf32>, vector<160x1xf32>, vector<256x1xf32> -> vector<256x1xf32>
    %130 = arith.addf %119, %129 : vector<256x1xf32>
    %c3 = arith.constant 3 : index
    %c6_173 = arith.constant 6 : index
    %c0_174 = arith.constant 0 : index
    %131 = vector.load %arg15[%c3, %c6_173, %c0_174] : memref<20x26x32xf32, #tpu.memory_space<vmem>>, vector<16x16x32xf32>
    %c3_175 = arith.constant 3 : index
    %c7_176 = arith.constant 7 : index
    %c0_177 = arith.constant 0 : index
    %132 = vector.load %arg15[%c3_175, %c7_176, %c0_177] : memref<20x26x32xf32, #tpu.memory_space<vmem>>, vector<16x16x32xf32>
    %c3_178 = arith.constant 3 : index
    %c8_179 = arith.constant 8 : index
    %c0_180 = arith.constant 0 : index
    %133 = vector.load %arg15[%c3_178, %c8_179, %c0_180] : memref<20x26x32xf32, #tpu.memory_space<vmem>>, vector<16x16x32xf32>
    %c3_181 = arith.constant 3 : index
    %c9_182 = arith.constant 9 : index
    %c0_183 = arith.constant 0 : index
    %134 = vector.load %arg15[%c3_181, %c9_182, %c0_183] : memref<20x26x32xf32, #tpu.memory_space<vmem>>, vector<16x16x32xf32>
    %c3_184 = arith.constant 3 : index
    %c10_185 = arith.constant 10 : index
    %c0_186 = arith.constant 0 : index
    %135 = vector.load %arg15[%c3_184, %c10_185, %c0_186] : memref<20x26x32xf32, #tpu.memory_space<vmem>>, vector<16x16x32xf32>
    %136 = tpu.concatenate %131, %132, %133, %134, %135 in 2 : vector<16x16x32xf32>, vector<16x16x32xf32>, vector<16x16x32xf32>, vector<16x16x32xf32>, vector<16x16x32xf32> -> vector<16x16x160xf32>
    %137 = vector.shape_cast %136 : vector<16x16x160xf32> to vector<256x160xf32>
    %c3_187 = arith.constant 3 : index
    %c0_188 = arith.constant 0 : index
    %c0_189 = arith.constant 0 : index
    %138 = vector.load %arg10[%c3_187, %c0_188, %c0_189] : memref<5x160x1xf32, #tpu.memory_space<vmem>>, vector<1x160x1xf32>
    %139 = vector.shape_cast %138 : vector<1x160x1xf32> to vector<160x1xf32>
    %cst_190 = arith.constant dense<0.000000e+00> : vector<256x1xf32>
    %140 = tpu.matmul %137, %139, %cst_190 {dimension_numbers = #tpu.dot_dimension_numbers<[1], [0], [0], [1], [0, 0, 1, 1], [], []>} : vector<256x160xf32>, vector<160x1xf32>, vector<256x1xf32> -> vector<256x1xf32>
    %141 = arith.addf %130, %140 : vector<256x1xf32>
    %c4 = arith.constant 4 : index
    %c6_191 = arith.constant 6 : index
    %c0_192 = arith.constant 0 : index
    %142 = vector.load %arg15[%c4, %c6_191, %c0_192] : memref<20x26x32xf32, #tpu.memory_space<vmem>>, vector<16x16x32xf32>
    %c4_193 = arith.constant 4 : index
    %c7_194 = arith.constant 7 : index
    %c0_195 = arith.constant 0 : index
    %143 = vector.load %arg15[%c4_193, %c7_194, %c0_195] : memref<20x26x32xf32, #tpu.memory_space<vmem>>, vector<16x16x32xf32>
    %c4_196 = arith.constant 4 : index
    %c8_197 = arith.constant 8 : index
    %c0_198 = arith.constant 0 : index
    %144 = vector.load %arg15[%c4_196, %c8_197, %c0_198] : memref<20x26x32xf32, #tpu.memory_space<vmem>>, vector<16x16x32xf32>
    %c4_199 = arith.constant 4 : index
    %c9_200 = arith.constant 9 : index
    %c0_201 = arith.constant 0 : index
    %145 = vector.load %arg15[%c4_199, %c9_200, %c0_201] : memref<20x26x32xf32, #tpu.memory_space<vmem>>, vector<16x16x32xf32>
    %c4_202 = arith.constant 4 : index
    %c10_203 = arith.constant 10 : index
    %c0_204 = arith.constant 0 : index
    %146 = vector.load %arg15[%c4_202, %c10_203, %c0_204] : memref<20x26x32xf32, #tpu.memory_space<vmem>>, vector<16x16x32xf32>
    %147 = tpu.concatenate %142, %143, %144, %145, %146 in 2 : vector<16x16x32xf32>, vector<16x16x32xf32>, vector<16x16x32xf32>, vector<16x16x32xf32>, vector<16x16x32xf32> -> vector<16x16x160xf32>
    %148 = vector.shape_cast %147 : vector<16x16x160xf32> to vector<256x160xf32>
    %c4_205 = arith.constant 4 : index
    %c0_206 = arith.constant 0 : index
    %c0_207 = arith.constant 0 : index
    %149 = vector.load %arg10[%c4_205, %c0_206, %c0_207] : memref<5x160x1xf32, #tpu.memory_space<vmem>>, vector<1x160x1xf32>
    %150 = vector.shape_cast %149 : vector<1x160x1xf32> to vector<160x1xf32>
    %cst_208 = arith.constant dense<0.000000e+00> : vector<256x1xf32>
    %151 = tpu.matmul %148, %150, %cst_208 {dimension_numbers = #tpu.dot_dimension_numbers<[1], [0], [0], [1], [0, 0, 1, 1], [], []>} : vector<256x160xf32>, vector<160x1xf32>, vector<256x1xf32> -> vector<256x1xf32>
    %152 = arith.addf %141, %151 : vector<256x1xf32>
    %153 = arith.negf %152 : vector<256x1xf32>
    %154 = math.exp %153 : vector<256x1xf32>
    %cst_209 = arith.constant 1.000000e+00 : f32
    %155 = vector.broadcast %cst_209 : f32 to vector<256x1xf32>
    %156 = arith.addf %155, %154 : vector<256x1xf32>
    %157 = arith.divf %155, %156 : vector<256x1xf32>
    %158 = vector.shape_cast %157 : vector<256x1xf32> to vector<1x256x1xf32>
    %c0_210 = arith.constant 0 : index
    %c0_211 = arith.constant 0 : index
    %c0_212 = arith.constant 0 : index
    %159 = vector.load %arg12[%c0_210, %c0_211, %c0_212] : memref<1x256x1xf32, #tpu.memory_space<vmem>>, vector<1x256x1xf32>
    tpu.vector_store %arg12[%c0_210, %c0_211, %c0_212], %158 {strides = array<i32>} : memref<1x256x1xf32, #tpu.memory_space<vmem>>, vector<1x256x1xf32>,
    return
  }
  func.func @transform_0(%arg0: i32) -> (i32, i32, i32) {
    %c0_i32 = arith.constant 0 : i32
    %c0_i32_0 = arith.constant 0 : i32
    %c0_i32_1 = arith.constant 0 : i32
    return %arg0, %c0_i32, %c0_i32_0 : i32, i32, i32
  }
  func.func @transform_1(%arg0: i32) -> (i32, i32) {
    %c0_i32 = arith.constant 0 : i32
    %c0_i32_0 = arith.constant 0 : i32
    %c0_i32_1 = arith.constant 0 : i32
    return %c0_i32, %c0_i32_0 : i32, i32
  }
  func.func @transform_2(%arg0: i32) -> (i32, i32) {
    %c0_i32 = arith.constant 0 : i32
    %c0_i32_0 = arith.constant 0 : i32
    %c0_i32_1 = arith.constant 0 : i32
    return %c0_i32, %c0_i32_0 : i32, i32
  }
  func.func @transform_3(%arg0: i32) -> (i32, i32, i32) {
    %c0_i32 = arith.constant 0 : i32
    %c0_i32_0 = arith.constant 0 : i32
    %c0_i32_1 = arith.constant 0 : i32
    %c0_i32_2 = arith.constant 0 : i32
    return %c0_i32, %c0_i32_0, %c0_i32_1 : i32, i32, i32
  }
  func.func @transform_4(%arg0: i32) -> (i32, i32) {
    %c0_i32 = arith.constant 0 : i32
    %c0_i32_0 = arith.constant 0 : i32
    %c0_i32_1 = arith.constant 0 : i32
    return %c0_i32, %c0_i32_0 : i32, i32
  }
  func.func @transform_5(%arg0: i32) -> (i32, i32) {
    %c0_i32 = arith.constant 0 : i32
    %c0_i32_0 = arith.constant 0 : i32
    %c0_i32_1 = arith.constant 0 : i32
    return %c0_i32, %c0_i32_0 : i32, i32
  }
  func.func @transform_6(%arg0: i32) -> (i32, i32) {
    %c0_i32 = arith.constant 0 : i32
    %c0_i32_0 = arith.constant 0 : i32
    %c0_i32_1 = arith.constant 0 : i32
    return %c0_i32, %c0_i32_0 : i32, i32
  }
  func.func @transform_7(%arg0: i32) -> (i32, i32, i32) {
    %c0_i32 = arith.constant 0 : i32
    %c0_i32_0 = arith.constant 0 : i32
    %c0_i32_1 = arith.constant 0 : i32
    %c0_i32_2 = arith.constant 0 : i32
    return %c0_i32, %c0_i32_0, %c0_i32_1 : i32, i32, i32
  }
  func.func @transform_8(%arg0: i32) -> (i32, i32) {
    %c0_i32 = arith.constant 0 : i32
    %c0_i32_0 = arith.constant 0 : i32
    %c0_i32_1 = arith.constant 0 : i32
    return %c0_i32, %c0_i32_0 : i32, i32
  }
  func.func @transform_9(%arg0: i32) -> (i32, i32, i32) {
    %c0_i32 = arith.constant 0 : i32
    %c0_i32_0 = arith.constant 0 : i32
    %c0_i32_1 = arith.constant 0 : i32
    %c0_i32_2 = arith.constant 0 : i32
    return %c0_i32, %c0_i32_0, %c0_i32_1 : i32, i32, i32
  }
  func.func @transform_10(%arg0: i32) -> (i32, i32) {
    %c0_i32 = arith.constant 0 : i32
    %c0_i32_0 = arith.constant 0 : i32
    %c0_i32_1 = arith.constant 0 : i32
    return %c0_i32, %c0_i32_0 : i32, i32
  }
  func.func @transform_11(%arg0: i32) -> (i32, i32, i32) {
    %c0_i32 = arith.constant 0 : i32
    %c0_i32_0 = arith.constant 0 : i32
    %c0_i32_1 = arith.constant 0 : i32
    return %arg0, %c0_i32, %c0_i32_0 : i32, i32, i32
  }
}

</mosaic_0001>

<bundles_post_ra>
// kernel: network_forward.1
= control target key start
LH: loop header
LB: loop body
LE: loop exit
PB: predicated region body
PF: predicated region fallthrough
CT: control target
= control target key end

     0   :  { %s14902_s19 = smov 0   ;;  %s20209_s0 = inlined_call_operand.vmem [shape: f32[2,256,25], index: 0, kind: input, shape index: {}]   ;;  %s20210_s1 = inlined_call_operand.vmem [shape: f32[25,32], index: 1, kind: input, shape index: {}]   ;;  %s20211_s2 = inlined_call_operand.vmem [shape: f32[1,32], index: 2, kind: input, shape index: {}]   ;;  %s20212_s3 = inlined_call_operand.vmem [shape: f32[3,96,64], index: 3, kind: input, shape index: {}]   ;;  %s20213_s4 = inlined_call_operand.vmem [shape: f32[1,64], index: 4, kind: input, shape index: {}]   ;;  %s20214_s5 = inlined_call_operand.vmem [shape: f32[64,64], index: 5, kind: input, shape index: {}]   ;;  %s20215_s6 = inlined_call_operand.vmem [shape: f32[1,64], index: 6, kind: input, shape index: {}]   ;;  %s20216_s7 = inlined_call_operand.vmem [shape: f32[3,192,32], index: 7, kind: input, shape index: {}]   ;;  %s20217_s8 = inlined_call_operand.vmem [shape: f32[1,32], index: 8, kind: input, shape index: {}]   ;;  %s20218_s9 = inlined_call_operand.vmem [shape: f32[5,160,1], index: 9, kind: input, shape index: {}]   ;;  %s20219_s10 = inlined_call_operand.<no memory space> [shape: f32[1,1], index: 10, kind: input, shape index: {}]   ;;  %s20220_s11 = inlined_call_operand.vmem [shape: f32[2,256,1], index: 11, kind: output, shape index: {}]  }
   0x1   :  { %v16_v0 = vstv %s20219_s10 }
   0x2   :  { %17 = vst [vmem:[#allocation5] sm:$0x1] %v16_v0 }
   0x3 LB: > { %s11175_s20 = sadd.s32 4294967295, %s14831_s19   ;;  %p11179_p0 = scmp.ge.s32.totalorder %s14831_s19, 1  ;;  %s14831_s19 = sphi %s14902_s19, %s23_s19  }
   0x4   : > { %p339_p1 = scmp.lt.s32.totalorder %s14831_s19, 3 }
   0x6   : > { %p340_p2 = pnand %p11179_p0, %p339_p1 }
   0x8   : > { %343 = sbr.rel (%p340_p2) target bundleno = 2568 (0xa08), region = 64 }
   0xf   : > { %v421_v1 = vld [vmem:[%s20210_s1] sm:$0xff]  ;;  %v422_v2 = vld [vmem:[%s20210_s1 + $0x8] sm:$0xff]  ;;  %v423_v3 = vld [vmem:[%s20210_s1 + $0x10] sm:$0xff]  ;;  %vm529_vm0 = vcmask 1040384   ;;  %p379_p3 = scmp.lt.s32.totalorder %s11175_s20, 1  ;;  %vm14833_vm1 = vmmov 1  }
  0x10   : > { %v12338_v4 = vpack.c.bf16 %v422_v2, %v421_v1  ;;  %v424_v5 = vld [vmem:[%s20210_s1 + $0x18] sm:$0x1]  ;;  %vm12343_vm2 = vmpackc.low %vm529_vm0, %vm14833_vm1  ;;  %vm432_vm3 = vcmask 203776   ;;  %vm790_vm4 = vcmask 261120   ;;  %v20221_v37 = vmov 0.0   ;;  %s14835_s13 = smov 32  }
  0x11   : > { %v12342_v6 = vpack.c.bf16 %v424_v5, %v423_v3  ;;  %s20489_s20 = smov (!%p379_p3, %s11175_s20), 1  ;;  %798 = vst.msk [vmem:[#allocation2 + $0x30] sm:$0xff] %vm790_vm4, %v20221_v37  ;;  %791 = vst.msk [vmem:[#allocation2] sm:$0xff] %vm790_vm4, %v20221_v37  ;;  %vm794_vm5 = vcmask 253952   ;;  %s14836_s14 = smov 64   ;;  %v1322_v44 = vld [vmem:[%s20212_s3] sm:$0xff] }
  0x12   : > { %12339 = vmatprep.subr.bf16.mxu0 %v12338_v4  ;;  %s11792_s28 = sshll.u32 %s20489_s20, 8  ;;  %792 = vst.msk [vmem:[#allocation2 + $0x8] sm:$0xff] %vm790_vm4, %v20221_v37  ;;  %793 = vst.msk [vmem:[#allocation2 + $0x10] sm:$0xff] %vm790_vm4, %v20221_v37  ;;  %v1323_v45 = vld [vmem:[%s20212_s3 + $0x8] sm:$0xff]  ;;  %v1324_v47 = vld [vmem:[%s20212_s3 + $0x10] sm:$0xff]  ;;  %vm1289_vm6 = vcmask 523264  }
  0x13   : > { %12341 = vmatpush3.bf16.msra.mxu0 %v12338_v4  ;;  %s14930_s12 = scalar_lea.vmem %s20209_s0, %s11792_s28  ;;  %796 = vst.msk [vmem:[#allocation2 + $0x20] sm:$0xff] %vm790_vm4, %v20221_v37  ;;  %797 = vst.msk [vmem:[#allocation2 + $0x28] sm:$0xff] %vm790_vm4, %v20221_v37  ;;  %v12348_v46 = vpack.c.bf16 %v1323_v45, %v1322_v44  ;;  %v1325_v48 = vld [vmem:[%s20212_s3 + $0x18] sm:$0xff]  ;;  %v1326_v50 = vld [vmem:[%s20212_s3 + $0x20] sm:$0xff]  ;;  %vm1334_vm7 = vcmask 785408   ;;  %vm3656_vm8 = vcmask 516096  }
  0x14   : > { %12344 = vmatprep.subr.msk.bf16.mxu0 %vm12343_vm2, %v12342_v6  ;;  %v389_v7 = vld [vmem:[%s14930_s12] sm:$0xff]  ;;  %v390_v8 = vld [vmem:[%s14930_s12 + $0x8] sm:$0xff]  ;;  %v391_v9 = vld [vmem:[%s14930_s12 + $0x10] sm:$0xff]  ;;  %800 = vst.msk [vmem:[#allocation2 + $0x40] sm:$0xff] %vm790_vm4, %v20221_v37  ;;  %v12352_v49 = vpack.c.bf16 %v1325_v48, %v1324_v47  ;;  %vm5704_vm9 = vcmask 254976   ;;  %s14838_s30 = smov 96  }
  0x15   : > { %12010 = vmatprep.mubr.msk.f32.mxu0 %vm432_vm3, %v389_v7  ;;  %v392_v10 = vld [vmem:[%s14930_s12 + $0x18] sm:$0xff]  ;;  %v393_v11 = vld [vmem:[%s14930_s12 + $0x20] sm:$0xff]  ;;  %v394_v12 = vld [vmem:[%s14930_s12 + $0x28] sm:$0xff]  ;;  %801 = vst.msk [vmem:[#allocation2 + $0x48] sm:$0xff] %vm790_vm4, %v20221_v37  ;;  %12694 = vmatprep.subr.bf16.mxu1 %v12348_v46  ;;  %vm11087_vm10 = vcmask 7168  }
  0x16   : > { %v395_v13 = vld [vmem:[%s14930_s12 + $0x30] sm:$0xff]  ;;  %v396_v14 = vld [vmem:[%s14930_s12 + $0x38] sm:$0xff]  ;;  %v397_v15 = vld [vmem:[%s14930_s12 + $0x40] sm:$0xff]  ;;  %802 = vst.msk [vmem:[#allocation2 + $0x50] sm:$0xff] %vm790_vm4, %v20221_v37  ;;  %12700 = vmatpush3.bf16.msra.mxu1 %v12348_v46 }
  0x17   : > { %12347 = vmatpush3.bf16.msk.msra.mxu0 %vm12343_vm2, %v12342_v6  ;;  %v398_v16 = vld [vmem:[%s14930_s12 + $0x48] sm:$0xff]  ;;  %v399_v17 = vld [vmem:[%s14930_s12 + $0x50] sm:$0xff]  ;;  %v400_v18 = vld [vmem:[%s14930_s12 + $0x58] sm:$0xff]  ;;  %804 = vst.msk [vmem:[#allocation2 + $0x60] sm:$0xff] %vm790_vm4, %v20221_v37  ;;  %12695 = vmatprep.subr.bf16.mxu1 %v12352_v49 }
  0x18   : > { %v401_v19 = vld [vmem:[%s14930_s12 + $0x60] sm:$0xff]  ;;  %v402_v20 = vld [vmem:[%s14930_s12 + $0x68] sm:$0xff]  ;;  %v403_v21 = vld [vmem:[%s14930_s12 + $0x70] sm:$0xff]  ;;  %805 = vst.msk [vmem:[#allocation2 + $0x68] sm:$0xff] %vm790_vm4, %v20221_v37  ;;  %12349 = vmatprep.subr.bf16.mxu0 %v12348_v46 }
  0x19   : > { %v404_v22 = vld [vmem:[%s14930_s12 + $0x78] sm:$0xff]  ;;  %v405_v23 = vld [vmem:[%s14930_s12 + $0x80] sm:$0xff]  ;;  %v406_v24 = vld [vmem:[%s14930_s12 + $0x88] sm:$0xff]  ;;  %806 = vst.msk [vmem:[#allocation2 + $0x70] sm:$0xff] %vm790_vm4, %v20221_v37 }
  0x1a   : > { %12011 = vmatmul.mubr.msk.f32.vlgmr.msra.gmra.mrb[0].mxu0 %vm432_vm3, %v390_v8  ;;  %v407_v25 = vld [vmem:[%s14930_s12 + $0x90] sm:$0xff]  ;;  %v408_v26 = vld [vmem:[%s14930_s12 + $0x98] sm:$0xff]  ;;  %v409_v27 = vld [vmem:[%s14930_s12 + $0xa0] sm:$0xff]  ;;  %808 = vst.msk [vmem:[#allocation2 + $0x80] sm:$0xff] %vm790_vm4, %v20221_v37  ;;  %12701 = vmatpush3.bf16.msra.mxu1 %v12352_v49 }
  0x1b   : > { %12013 = vmatprep.mubr.msk.f32.mxu0 %vm432_vm3, %v391_v9  ;;  %v410_v28 = vld [vmem:[%s14930_s12 + $0xa8] sm:$0xff]  ;;  %v411_v29 = vld [vmem:[%s14930_s12 + $0xb0] sm:$0xff]  ;;  %v412_v30 = vld [vmem:[%s14930_s12 + $0xb8] sm:$0xff]  ;;  %809 = vst.msk [vmem:[#allocation2 + $0x88] sm:$0xff] %vm790_vm4, %v20221_v37  ;;  %12351 = vmatpush3.bf16.msra.mxu0 %v12348_v46 }
  0x1c   : > { %v413_v31 = vld [vmem:[%s14930_s12 + $0xc0] sm:$0xff]  ;;  %v414_v32 = vld [vmem:[%s14930_s12 + $0xc8] sm:$0xff]  ;;  %v415_v33 = vld [vmem:[%s14930_s12 + $0xd0] sm:$0xff]  ;;  %810 = vst.msk [vmem:[#allocation2 + $0x90] sm:$0xff] %vm790_vm4, %v20221_v37  ;;  %12353 = vmatprep.subr.bf16.mxu0 %v12352_v49 }
  0x1d   : > { %v416_v34 = vld [vmem:[%s14930_s12 + $0xd8] sm:$0xff]  ;;  %v417_v35 = vld [vmem:[%s14930_s12 + $0xe0] sm:$0xff]  ;;  %v418_v36 = vld [vmem:[%s14930_s12 + $0xe8] sm:$0xff]  ;;  %812 = vst.msk [vmem:[#allocation2 + $0xa0] sm:$0xff] %vm790_vm4, %v20221_v37 }
  0x1e   : > { %12014 = vmatmul.mubr.msk.f32.gmra.mrb[2].mxu0 %vm432_vm3, %v392_v10  ;;  %813 = vst.msk [vmem:[#allocation2 + $0xa8] sm:$0xff] %vm790_vm4, %v20221_v37  ;;  %814 = vst.msk [vmem:[#allocation2 + $0xb0] sm:$0xff] %vm790_vm4, %v20221_v37  ;;  %v937_v38 = vld [vmem:[#allocation2 + $0x8] sm:$0xff]  ;;  %v938_v39 = vld [vmem:[#allocation2 + $0x10] sm:$0xff] }
  0x1f   : > { %12016 = vmatprep.mubr.msk.f32.mxu0 %vm432_vm3, %v393_v11  ;;  %816 = vst.msk [vmem:[#allocation2 + $0xc0] sm:$0xff] %vm790_vm4, %v20221_v37  ;;  %817 = vst.msk [vmem:[#allocation2 + $0xc8] sm:$0xff] %vm790_vm4, %v20221_v37  ;;  %1033 = vrot.lane.b32.xlu1 %v937_v38, %s14835_s13  ;;  %v969_v40 = vld [vmem:[#allocation2 + $0x9] sm:$0xff]  ;;  %v420_v43 = vld [vmem:[%s14930_s12 + $0xf8] sm:$0xff] }
  0x20   : > { %818 = vst.msk [vmem:[#allocation2 + $0xd0] sm:$0xff] %vm790_vm4, %v20221_v37  ;;  %820 = vst.msk [vmem:[#allocation2 + $0xe0] sm:$0xff] %vm790_vm4, %v20221_v37  ;;  %1161 = vrot.lane.b32.xlu0 %v969_v40, %s14836_s14  ;;  %v419_v42 = vld [vmem:[%s14930_s12 + $0xf0] sm:$0xff]  ;;  %12355 = vmatpush3.bf16.msra.mxu0 %v12352_v49  ;;  %v1327_v51 = vld [vmem:[%s20212_s3 + $0x28] sm:$0xff] }
  0x21   : > { %821 = vst.msk [vmem:[#allocation2 + $0xe8] sm:$0xff] %vm790_vm4, %v20221_v37  ;;  %822 = vst.msk [vmem:[#allocation2 + $0xf0] sm:$0xff] %vm790_vm4, %v20221_v37  ;;  %v12356_v52 = vpack.c.bf16 %v1327_v51, %v1326_v50  ;;  %v1328_v54 = vld [vmem:[%s20212_s3 + $0x30] sm:$0xff]  ;;  %v1329_v55 = vld [vmem:[%s20212_s3 + $0x38] sm:$0xff] }
  0x22   : > { %12017 = vmatmul.mubr.msk.f32.gmra.mrb[4].mxu0 %vm432_vm3, %v394_v12  ;;  %824 = vst.msk [vmem:[#allocation2 + $0x100] sm:$0xff] %vm790_vm4, %v20221_v37  ;;  %825 = vst.msk [vmem:[#allocation2 + $0x108] sm:$0xff] %vm790_vm4, %v20221_v37  ;;  %v905_v56 = vld [vmem:[#allocation2 + $0x7] sm:$0xff]  ;;  %v12360_v57 = vpack.c.bf16 %v1329_v55, %v1328_v54  ;;  %v15301_v63 = vld [vmem:[#allocation2 + $0xf] sm:$0xff] }
  0x23   : > { %12019 = vmatprep.mubr.msk.f32.mxu0 %vm432_vm3, %v395_v13  ;;  %826 = vst.msk [vmem:[#allocation2 + $0x110] sm:$0xff] %vm790_vm4, %v20221_v37  ;;  %828 = vst.msk [vmem:[#allocation2 + $0x120] sm:$0xff] %vm790_vm4, %v20221_v37  ;;  %1035 = vrot.lane.b32.xlu1 %v938_v39, %s14835_s13  ;;  %v1330_v59 = vld [vmem:[%s20212_s3 + $0x40] sm:$0xff]  ;;  %v1331_v60 = vld [vmem:[%s20212_s3 + $0x48] sm:$0xff] }
  0x24   : > { %829 = vst.msk [vmem:[#allocation2 + $0x128] sm:$0xff] %vm790_vm4, %v20221_v37  ;;  %830 = vst.msk [vmem:[#allocation2 + $0x130] sm:$0xff] %vm790_vm4, %v20221_v37  ;;  %12357 = vmatprep.subr.bf16.mxu0 %v12356_v52  ;;  %12696 = vmatprep.subr.bf16.mxu1 %v12356_v52  ;;  %v15299_v62 = vpack.c.bf16 %v1331_v60, %v1330_v59  ;;  %v1332_v2 = vld [vmem:[%s20212_s3 + $0x50] sm:$0xff]  ;;  %v1333_v3 = vld [vmem:[%s20212_s3 + $0x58] sm:$0xff] }
  0x25   : > { %832 = vst.msk [vmem:[#allocation2 + $0x140] sm:$0xff] %vm790_vm4, %v20221_v37  ;;  %833 = vst.msk [vmem:[#allocation2 + $0x148] sm:$0xff] %vm790_vm4, %v20221_v37  ;;  %12359 = vmatpush3.bf16.msra.mxu0 %v12356_v52  ;;  %12702 = vmatpush3.bf16.msra.mxu1 %v12356_v52  ;;  %v12368_v5 = vpack.c.bf16 %v1333_v3, %v1332_v2  ;;  %v15429_v6 = vld [vmem:[%s20211_s2] ss:$0 sm:$0xff] }
  0x26   : > { %12020 = vmatmul.mubr.msk.f32.gmra.mrb[6].mxu0 %vm432_vm3, %v396_v14  ;;  %834 = vst.msk [vmem:[#allocation2 + $0x150] sm:$0xff] %vm790_vm4, %v20221_v37  ;;  %836 = vst.msk [vmem:[#allocation2 + $0x160] sm:$0xff] %vm790_vm4, %v20221_v37  ;;  %12361 = vmatprep.subr.bf16.mxu0 %v12360_v57 }
  0x27   : > { %12022 = vmatprep.mubr.msk.f32.mxu0 %vm432_vm3, %v397_v15  ;;  %837 = vst.msk [vmem:[#allocation2 + $0x168] sm:$0xff] %vm790_vm4, %v20221_v37  ;;  %838 = vst.msk [vmem:[#allocation2 + $0x170] sm:$0xff] %vm790_vm4, %v20221_v37  ;;  %12697 = vmatprep.subr.bf16.mxu1 %v12360_v57 }
  0x28   : > { %840 = vst.msk [vmem:[#allocation2 + $0x180] sm:$0xff] %vm790_vm4, %v20221_v37  ;;  %841 = vst.msk [vmem:[#allocation2 + $0x188] sm:$0xff] %vm790_vm4, %v20221_v37 }
  0x29   : > { %842 = vst.msk [vmem:[#allocation2 + $0x190] sm:$0xff] %vm790_vm4, %v20221_v37  ;;  %844 = vst.msk [vmem:[#allocation2 + $0x1a0] sm:$0xff] %vm790_vm4, %v20221_v37  ;;  %12363 = vmatpush3.bf16.msra.mxu0 %v12360_v57  ;;  %12703 = vmatpush3.bf16.msra.mxu1 %v12360_v57 }
  0x2a   : > { %12023 = vmatmul.mubr.msk.f32.gmra.mrb[8].mxu0 %vm432_vm3, %v398_v16  ;;  %845 = vst.msk [vmem:[#allocation2 + $0x1a8] sm:$0xff] %vm790_vm4, %v20221_v37  ;;  %846 = vst.msk [vmem:[#allocation2 + $0x1b0] sm:$0xff] %vm790_vm4, %v20221_v37  ;;  %12365 = vmatprep.subr.bf16.mxu0 %v15299_v62 }
  0x2b   : > { %12025 = vmatprep.mubr.msk.f32.mxu0 %vm432_vm3, %v399_v17  ;;  %848 = vst.msk [vmem:[#allocation2 + $0x1c0] sm:$0xff] %vm790_vm4, %v20221_v37  ;;  %849 = vst.msk [vmem:[#allocation2 + $0x1c8] sm:$0xff] %vm790_vm4, %v20221_v37  ;;  %12698 = vmatprep.subr.bf16.mxu1 %v15299_v62 }
  0x2c   : > { %850 = vst.msk [vmem:[#allocation2 + $0x1d0] sm:$0xff] %vm790_vm4, %v20221_v37  ;;  %852 = vst.msk [vmem:[#allocation2 + $0x1e0] sm:$0xff] %vm790_vm4, %v20221_v37 }
  0x2d   : > { %853 = vst.msk [vmem:[#allocation2 + $0x1e8] sm:$0xff] %vm790_vm4, %v20221_v37  ;;  %854 = vst.msk [vmem:[#allocation2 + $0x1f0] sm:$0xff] %vm790_vm4, %v20221_v37  ;;  %12367 = vmatpush3.bf16.msra.mxu0 %v15299_v62  ;;  %12704 = vmatpush3.bf16.msra.mxu1 %v15299_v62 }
  0x2e   : > { %12026 = vmatmul.mubr.msk.f32.gmra.mrb[10].mxu0 %vm432_vm3, %v400_v18  ;;  %856 = vst.msk [vmem:[#allocation2 + $0x200] sm:$0xff] %vm790_vm4, %v20221_v37  ;;  %857 = vst.msk [vmem:[#allocation2 + $0x208] sm:$0xff] %vm790_vm4, %v20221_v37  ;;  %12369 = vmatprep.subr.bf16.mxu0 %v12368_v5 }
  0x2f   : > { %12028 = vmatprep.mubr.msk.f32.mxu0 %vm432_vm3, %v401_v19  ;;  %858 = vst.msk [vmem:[#allocation2 + $0x210] sm:$0xff] %vm790_vm4, %v20221_v37  ;;  %860 = vst.msk [vmem:[#allocation2 + $0x220] sm:$0xff] %vm790_vm4, %v20221_v37  ;;  %12699 = vmatprep.subr.bf16.mxu1 %v12368_v5 }
  0x30   : > { %861 = vst.msk [vmem:[#allocation2 + $0x228] sm:$0xff] %vm790_vm4, %v20221_v37  ;;  %862 = vst.msk [vmem:[#allocation2 + $0x230] sm:$0xff] %vm790_vm4, %v20221_v37 }
  0x31   : > { %5701 = vst.msk [vmem:[#allocation4] sm:$0xff] %vm790_vm4, %v20221_v37  ;;  %5702 = vst.msk [vmem:[#allocation4 + $0x8] sm:$0xff] %vm790_vm4, %v20221_v37  ;;  %12371 = vmatpush3.bf16.msra.mxu0 %v12368_v5  ;;  %12705 = vmatpush3.bf16.msra.mxu1 %v12368_v5 }
  0x32   : > { %12029 = vmatmul.mubr.msk.f32.gmra.mrb[12].mxu0 %vm432_vm3, %v402_v20  ;;  %5703 = vst.msk [vmem:[#allocation4 + $0x10] sm:$0xff] %vm790_vm4, %v20221_v37  ;;  %5706 = vst.msk [vmem:[#allocation4 + $0x20] sm:$0xff] %vm790_vm4, %v20221_v37 }
  0x33   : > { %12031 = vmatprep.mubr.msk.f32.mxu0 %vm432_vm3, %v403_v21  ;;  %5707 = vst.msk [vmem:[#allocation4 + $0x28] sm:$0xff] %vm790_vm4, %v20221_v37  ;;  %5708 = vst.msk [vmem:[#allocation4 + $0x30] sm:$0xff] %vm790_vm4, %v20221_v37 }
  0x34   : > { %5710 = vst.msk [vmem:[#allocation4 + $0x40] sm:$0xff] %vm790_vm4, %v20221_v37  ;;  %5711 = vst.msk [vmem:[#allocation4 + $0x48] sm:$0xff] %vm790_vm4, %v20221_v37 }
  0x35   : > { %5712 = vst.msk [vmem:[#allocation4 + $0x50] sm:$0xff] %vm790_vm4, %v20221_v37  ;;  %5714 = vst.msk [vmem:[#allocation4 + $0x60] sm:$0xff] %vm790_vm4, %v20221_v37 }
  0x36   : > { %12032 = vmatmul.mubr.msk.f32.gmra.mrb[14].mxu0 %vm432_vm3, %v404_v22  ;;  %5715 = vst.msk [vmem:[#allocation4 + $0x68] sm:$0xff] %vm790_vm4, %v20221_v37  ;;  %5716 = vst.msk [vmem:[#allocation4 + $0x70] sm:$0xff] %vm790_vm4, %v20221_v37 }
  0x37   : > { %12034 = vmatprep.mubr.msk.f32.mxu0 %vm432_vm3, %v405_v23  ;;  %5718 = vst.msk [vmem:[#allocation4 + $0x80] sm:$0xff] %vm790_vm4, %v20221_v37  ;;  %5719 = vst.msk [vmem:[#allocation4 + $0x88] sm:$0xff] %vm790_vm4, %v20221_v37 }
  0x38   : > { %5720 = vst.msk [vmem:[#allocation4 + $0x90] sm:$0xff] %vm790_vm4, %v20221_v37  ;;  %5722 = vst.msk [vmem:[#allocation4 + $0xa0] sm:$0xff] %vm790_vm4, %v20221_v37 }
  0x39   : > { %5723 = vst.msk [vmem:[#allocation4 + $0xa8] sm:$0xff] %vm790_vm4, %v20221_v37  ;;  %5724 = vst.msk [vmem:[#allocation4 + $0xb0] sm:$0xff] %vm790_vm4, %v20221_v37 }
  0x3a   : > { %12035 = vmatmul.mubr.msk.f32.gmra.mrb[16].mxu0 %vm432_vm3, %v406_v24  ;;  %5726 = vst.msk [vmem:[#allocation4 + $0xc0] sm:$0xff] %vm790_vm4, %v20221_v37  ;;  %5727 = vst.msk [vmem:[#allocation4 + $0xc8] sm:$0xff] %vm790_vm4, %v20221_v37 }
  0x3b   : > { %12037 = vmatprep.mubr.msk.f32.mxu0 %vm432_vm3, %v407_v25  ;;  %5728 = vst.msk [vmem:[#allocation4 + $0xd0] sm:$0xff] %vm790_vm4, %v20221_v37  ;;  %5730 = vst.msk [vmem:[#allocation4 + $0xe0] sm:$0xff] %vm790_vm4, %v20221_v37 }
  0x3c   : > { %5731 = vst.msk [vmem:[#allocation4 + $0xe8] sm:$0xff] %vm790_vm4, %v20221_v37  ;;  %5732 = vst.msk [vmem:[#allocation4 + $0xf0] sm:$0xff] %vm790_vm4, %v20221_v37 }
  0x3d   : > { %5734 = vst.msk [vmem:[#allocation4 + $0x100] sm:$0xff] %vm790_vm4, %v20221_v37  ;;  %5735 = vst.msk [vmem:[#allocation4 + $0x108] sm:$0xff] %vm790_vm4, %v20221_v37 }
  0x3e   : > { %12038 = vmatmul.mubr.msk.f32.gmra.mrb[18].mxu0 %vm432_vm3, %v408_v26  ;;  %5736 = vst.msk [vmem:[#allocation4 + $0x110] sm:$0xff] %vm790_vm4, %v20221_v37  ;;  %5738 = vst.msk [vmem:[#allocation4 + $0x120] sm:$0xff] %vm790_vm4, %v20221_v37 }
  0x3f   : > { %12040 = vmatprep.mubr.msk.f32.mxu0 %vm432_vm3, %v409_v27  ;;  %5739 = vst.msk [vmem:[#allocation4 + $0x128] sm:$0xff] %vm790_vm4, %v20221_v37  ;;  %5740 = vst.msk [vmem:[#allocation4 + $0x130] sm:$0xff] %vm790_vm4, %v20221_v37 }
  0x40   : > { %5742 = vst.msk [vmem:[#allocation4 + $0x140] sm:$0xff] %vm790_vm4, %v20221_v37  ;;  %5743 = vst.msk [vmem:[#allocation4 + $0x148] sm:$0xff] %vm790_vm4, %v20221_v37 }
  0x41   : > { %5744 = vst.msk [vmem:[#allocation4 + $0x150] sm:$0xff] %vm790_vm4, %v20221_v37  ;;  %5746 = vst.msk [vmem:[#allocation4 + $0x160] sm:$0xff] %vm790_vm4, %v20221_v37 }
  0x42   : > { %12041 = vmatmul.mubr.msk.f32.gmra.mrb[20].mxu0 %vm432_vm3, %v410_v28  ;;  %5747 = vst.msk [vmem:[#allocation4 + $0x168] sm:$0xff] %vm790_vm4, %v20221_v37  ;;  %5748 = vst.msk [vmem:[#allocation4 + $0x170] sm:$0xff] %vm790_vm4, %v20221_v37 }
  0x43   : > { %12043 = vmatprep.mubr.msk.f32.mxu0 %vm432_vm3, %v411_v29  ;;  %5750 = vst.msk [vmem:[#allocation4 + $0x180] sm:$0xff] %vm790_vm4, %v20221_v37  ;;  %5751 = vst.msk [vmem:[#allocation4 + $0x188] sm:$0xff] %vm790_vm4, %v20221_v37 }
  0x44   : > { %5752 = vst.msk [vmem:[#allocation4 + $0x190] sm:$0xff] %vm790_vm4, %v20221_v37  ;;  %5754 = vst.msk [vmem:[#allocation4 + $0x1a0] sm:$0xff] %vm790_vm4, %v20221_v37 }
  0x45   : > { %5755 = vst.msk [vmem:[#allocation4 + $0x1a8] sm:$0xff] %vm790_vm4, %v20221_v37  ;;  %5756 = vst.msk [vmem:[#allocation4 + $0x1b0] sm:$0xff] %vm790_vm4, %v20221_v37 }
  0x46   : > { %12044 = vmatmul.mubr.msk.f32.gmra.mrb[22].mxu0 %vm432_vm3, %v412_v30  ;;  %5758 = vst.msk [vmem:[#allocation4 + $0x1c0] sm:$0xff] %vm790_vm4, %v20221_v37  ;;  %5759 = vst.msk [vmem:[#allocation4 + $0x1c8] sm:$0xff] %vm790_vm4, %v20221_v37 }
  0x47   : > { %12046 = vmatprep.mubr.msk.f32.mxu0 %vm432_vm3, %v413_v31  ;;  %5760 = vst.msk [vmem:[#allocation4 + $0x1d0] sm:$0xff] %vm790_vm4, %v20221_v37  ;;  %5762 = vst.msk [vmem:[#allocation4 + $0x1e0] sm:$0xff] %vm790_vm4, %v20221_v37 }
  0x48   : > { %5763 = vst.msk [vmem:[#allocation4 + $0x1e8] sm:$0xff] %vm790_vm4, %v20221_v37  ;;  %5764 = vst.msk [vmem:[#allocation4 + $0x1f0] sm:$0xff] %vm790_vm4, %v20221_v37 }
  0x49   : > { %5766 = vst.msk [vmem:[#allocation4 + $0x200] sm:$0xff] %vm790_vm4, %v20221_v37  ;;  %5767 = vst.msk [vmem:[#allocation4 + $0x208] sm:$0xff] %vm790_vm4, %v20221_v37 }
  0x4a   : > { %12047 = vmatmul.mubr.msk.f32.gmra.mrb[24].mxu0 %vm432_vm3, %v414_v32  ;;  %5768 = vst.msk [vmem:[#allocation4 + $0x210] sm:$0xff] %vm790_vm4, %v20221_v37  ;;  %5770 = vst.msk [vmem:[#allocation4 + $0x220] sm:$0xff] %vm790_vm4, %v20221_v37 }
  0x4b   : > { %12049 = vmatprep.mubr.msk.f32.mxu0 %vm432_vm3, %v415_v33  ;;  %5771 = vst.msk [vmem:[#allocation4 + $0x228] sm:$0xff] %vm790_vm4, %v20221_v37  ;;  %5772 = vst.msk [vmem:[#allocation4 + $0x230] sm:$0xff] %vm790_vm4, %v20221_v37 }
  0x4c   : > { %5774 = vst.msk [vmem:[#allocation4 + $0x240] sm:$0xff] %vm790_vm4, %v20221_v37  ;;  %5775 = vst.msk [vmem:[#allocation4 + $0x248] sm:$0xff] %vm790_vm4, %v20221_v37 }
  0x4d   : > { %5776 = vst.msk [vmem:[#allocation4 + $0x250] sm:$0xff] %vm790_vm4, %v20221_v37  ;;  %5778 = vst.msk [vmem:[#allocation4 + $0x260] sm:$0xff] %vm790_vm4, %v20221_v37 }
  0x4e   : > { %12050 = vmatmul.mubr.msk.f32.gmra.mrb[26].mxu0 %vm432_vm3, %v416_v34  ;;  %5779 = vst.msk [vmem:[#allocation4 + $0x268] sm:$0xff] %vm790_vm4, %v20221_v37  ;;  %5780 = vst.msk [vmem:[#allocation4 + $0x270] sm:$0xff] %vm790_vm4, %v20221_v37 }
  0x4f   : > { %12052 = vmatprep.mubr.msk.f32.mxu0 %vm432_vm3, %v417_v35  ;;  %795 = vst.msk [vmem:[#allocation2 + $0x18] sm:$0x1] %vm794_vm5, %v20221_v37  ;;  %799 = vst.msk [vmem:[#allocation2 + $0x38] sm:$0x1] %vm794_vm5, %v20221_v37 }
  0x50   : > { %803 = vst.msk [vmem:[#allocation2 + $0x58] sm:$0x1] %vm794_vm5, %v20221_v37  ;;  %807 = vst.msk [vmem:[#allocation2 + $0x78] sm:$0x1] %vm794_vm5, %v20221_v37 }
  0x51   : > { %811 = vst.msk [vmem:[#allocation2 + $0x98] sm:$0x1] %vm794_vm5, %v20221_v37  ;;  %815 = vst.msk [vmem:[#allocation2 + $0xb8] sm:$0x1] %vm794_vm5, %v20221_v37 }
  0x52   : > { %12053 = vmatmul.mubr.msk.f32.gmra.mrb[28].mxu0 %vm432_vm3, %v418_v36  ;;  %819 = vst.msk [vmem:[#allocation2 + $0xd8] sm:$0x1] %vm794_vm5, %v20221_v37  ;;  %823 = vst.msk [vmem:[#allocation2 + $0xf8] sm:$0x1] %vm794_vm5, %v20221_v37 }
  0x53   : > { %827 = vst.msk [vmem:[#allocation2 + $0x118] sm:$0x1] %vm794_vm5, %v20221_v37  ;;  %831 = vst.msk [vmem:[#allocation2 + $0x138] sm:$0x1] %vm794_vm5, %v20221_v37  ;;  %12055 = vmatprep.mubr.msk.f32.mxu0 %vm432_vm3, %v419_v42 }
  0x54   : > { %835 = vst.msk [vmem:[#allocation2 + $0x158] sm:$0x1] %vm794_vm5, %v20221_v37  ;;  %839 = vst.msk [vmem:[#allocation2 + $0x178] sm:$0x1] %vm794_vm5, %v20221_v37 }
  0x55   : > { %843 = vst.msk [vmem:[#allocation2 + $0x198] sm:$0x1] %vm794_vm5, %v20221_v37  ;;  %847 = vst.msk [vmem:[#allocation2 + $0x1b8] sm:$0x1] %vm794_vm5, %v20221_v37 }
  0x56   : > { %851 = vst.msk [vmem:[#allocation2 + $0x1d8] sm:$0x1] %vm794_vm5, %v20221_v37  ;;  %855 = vst.msk [vmem:[#allocation2 + $0x1f8] sm:$0x1] %vm794_vm5, %v20221_v37  ;;  %v970_v41 = vld [vmem:[#allocation2 + $0x11] sm:$0xff]  ;;  %12056 = vmatmul.mubr.msk.f32.gmra.mrb[30].mxu0 %vm432_vm3, %v420_v43 }
  0x57   : > { %859 = vst.msk [vmem:[#allocation2 + $0x218] sm:$0x1] %vm794_vm5, %v20221_v37  ;;  %863 = vst.msk [vmem:[#allocation2 + $0x238] sm:$0x1] %vm794_vm5, %v20221_v37  ;;  %1163 = vrot.lane.b32.xlu1 %v970_v41, %s14836_s14 }
  0x58   : > { %3653 = vst.msk [vmem:[#allocation3] sm:$0xff] %vm1289_vm6, %v20221_v37  ;;  %3654 = vst.msk [vmem:[#allocation3 + $0x8] sm:$0xff] %vm1289_vm6, %v20221_v37 }
  0x59   : > { %3655 = vst.msk [vmem:[#allocation3 + $0x10] sm:$0xff] %vm1289_vm6, %v20221_v37  ;;  %3658 = vst.msk [vmem:[#allocation3 + $0x20] sm:$0xff] %vm1289_vm6, %v20221_v37 }
  0x5a   : > { %3659 = vst.msk [vmem:[#allocation3 + $0x28] sm:$0xff] %vm1289_vm6, %v20221_v37  ;;  %3660 = vst.msk [vmem:[#allocation3 + $0x30] sm:$0xff] %vm1289_vm6, %v20221_v37 }
  0x5b   : > { %3662 = vst.msk [vmem:[#allocation3 + $0x40] sm:$0xff] %vm1289_vm6, %v20221_v37  ;;  %3663 = vst.msk [vmem:[#allocation3 + $0x48] sm:$0xff] %vm1289_vm6, %v20221_v37 }
  0x5c   : > { %3664 = vst.msk [vmem:[#allocation3 + $0x50] sm:$0xff] %vm1289_vm6, %v20221_v37  ;;  %3666 = vst.msk [vmem:[#allocation3 + $0x60] sm:$0xff] %vm1289_vm6, %v20221_v37 }
  0x5d   : > { %3667 = vst.msk [vmem:[#allocation3 + $0x68] sm:$0xff] %vm1289_vm6, %v20221_v37  ;;  %3668 = vst.msk [vmem:[#allocation3 + $0x70] sm:$0xff] %vm1289_vm6, %v20221_v37 }
  0x5e   : > { %3670 = vst.msk [vmem:[#allocation3 + $0x80] sm:$0xff] %vm1289_vm6, %v20221_v37  ;;  %3671 = vst.msk [vmem:[#allocation3 + $0x88] sm:$0xff] %vm1289_vm6, %v20221_v37 }
  0x5f   : > { %3672 = vst.msk [vmem:[#allocation3 + $0x90] sm:$0xff] %vm1289_vm6, %v20221_v37  ;;  %3674 = vst.msk [vmem:[#allocation3 + $0xa0] sm:$0xff] %vm1289_vm6, %v20221_v37 }
  0x60   : > { %3675 = vst.msk [vmem:[#allocation3 + $0xa8] sm:$0xff] %vm1289_vm6, %v20221_v37  ;;  %3676 = vst.msk [vmem:[#allocation3 + $0xb0] sm:$0xff] %vm1289_vm6, %v20221_v37 }
  0x61   : > { %3678 = vst.msk [vmem:[#allocation3 + $0xc0] sm:$0xff] %vm1289_vm6, %v20221_v37  ;;  %3679 = vst.msk [vmem:[#allocation3 + $0xc8] sm:$0xff] %vm1289_vm6, %v20221_v37 }
  0x62   : > { %3680 = vst.msk [vmem:[#allocation3 + $0xd0] sm:$0xff] %vm1289_vm6, %v20221_v37  ;;  %3682 = vst.msk [vmem:[#allocation3 + $0xe0] sm:$0xff] %vm1289_vm6, %v20221_v37 }
  0x63   : > { %3683 = vst.msk [vmem:[#allocation3 + $0xe8] sm:$0xff] %vm1289_vm6, %v20221_v37  ;;  %3684 = vst.msk [vmem:[#allocation3 + $0xf0] sm:$0xff] %vm1289_vm6, %v20221_v37 }
  0x64   : > { %3686 = vst.msk [vmem:[#allocation3 + $0x100] sm:$0xff] %vm1289_vm6, %v20221_v37  ;;  %3687 = vst.msk [vmem:[#allocation3 + $0x108] sm:$0xff] %vm1289_vm6, %v20221_v37 }
  0x65   : > { %3688 = vst.msk [vmem:[#allocation3 + $0x110] sm:$0xff] %vm1289_vm6, %v20221_v37  ;;  %3690 = vst.msk [vmem:[#allocation3 + $0x120] sm:$0xff] %vm1289_vm6, %v20221_v37 }
  0x66   : > { %3691 = vst.msk [vmem:[#allocation3 + $0x128] sm:$0xff] %vm1289_vm6, %v20221_v37  ;;  %3692 = vst.msk [vmem:[#allocation3 + $0x130] sm:$0xff] %vm1289_vm6, %v20221_v37 }
  0x67   : > { %3694 = vst.msk [vmem:[#allocation3 + $0x140] sm:$0xff] %vm1289_vm6, %v20221_v37  ;;  %3695 = vst.msk [vmem:[#allocation3 + $0x148] sm:$0xff] %vm1289_vm6, %v20221_v37 }
  0x68   : > { %3696 = vst.msk [vmem:[#allocation3 + $0x150] sm:$0xff] %vm1289_vm6, %v20221_v37  ;;  %3698 = vst.msk [vmem:[#allocation3 + $0x160] sm:$0xff] %vm1289_vm6, %v20221_v37 }
  0x69   : > { %3699 = vst.msk [vmem:[#allocation3 + $0x168] sm:$0xff] %vm1289_vm6, %v20221_v37  ;;  %3700 = vst.msk [vmem:[#allocation3 + $0x170] sm:$0xff] %vm1289_vm6, %v20221_v37 }
  0x6a   : > { %3702 = vst.msk [vmem:[#allocation3 + $0x180] sm:$0xff] %vm1289_vm6, %v20221_v37  ;;  %3703 = vst.msk [vmem:[#allocation3 + $0x188] sm:$0xff] %vm1289_vm6, %v20221_v37 }
  0x6b   : > { %3704 = vst.msk [vmem:[#allocation3 + $0x190] sm:$0xff] %vm1289_vm6, %v20221_v37  ;;  %3706 = vst.msk [vmem:[#allocation3 + $0x1a0] sm:$0xff] %vm1289_vm6, %v20221_v37 }
  0x6c   : > { %3707 = vst.msk [vmem:[#allocation3 + $0x1a8] sm:$0xff] %vm1289_vm6, %v20221_v37  ;;  %3708 = vst.msk [vmem:[#allocation3 + $0x1b0] sm:$0xff] %vm1289_vm6, %v20221_v37 }
  0x6d   : > { %3710 = vst.msk [vmem:[#allocation3 + $0x1c0] sm:$0xff] %vm1289_vm6, %v20221_v37  ;;  %3711 = vst.msk [vmem:[#allocation3 + $0x1c8] sm:$0xff] %vm1289_vm6, %v20221_v37 }
  0x6e   : > { %3712 = vst.msk [vmem:[#allocation3 + $0x1d0] sm:$0xff] %vm1289_vm6, %v20221_v37  ;;  %3714 = vst.msk [vmem:[#allocation3 + $0x1e0] sm:$0xff] %vm1289_vm6, %v20221_v37 }
  0x6f   : > { %3715 = vst.msk [vmem:[#allocation3 + $0x1e8] sm:$0xff] %vm1289_vm6, %v20221_v37  ;;  %3716 = vst.msk [vmem:[#allocation3 + $0x1f0] sm:$0xff] %vm1289_vm6, %v20221_v37 }
  0x70   : > { %3718 = vst.msk [vmem:[#allocation3 + $0x200] sm:$0xff] %vm1289_vm6, %v20221_v37  ;;  %3719 = vst.msk [vmem:[#allocation3 + $0x208] sm:$0xff] %vm1289_vm6, %v20221_v37 }
  0x71   : > { %3720 = vst.msk [vmem:[#allocation3 + $0x210] sm:$0xff] %vm1289_vm6, %v20221_v37  ;;  %3722 = vst.msk [vmem:[#allocation3 + $0x220] sm:$0xff] %vm1289_vm6, %v20221_v37 }
  0x72   : > { %3723 = vst.msk [vmem:[#allocation3 + $0x228] sm:$0xff] %vm1289_vm6, %v20221_v37  ;;  %3724 = vst.msk [vmem:[#allocation3 + $0x230] sm:$0xff] %vm1289_vm6, %v20221_v37 }
  0x91   : > { %v1034_v53 = vpop.permute.xlu1 %1033 }
  0x92   : > { %v15289_v58 = vsel %vm790_vm4, %v905_v56, %v1034_v53  ;;  %v1162_v0 = vpop.permute.xlu0 %1161 }
  0x93   : > { %v1290_v1 = vsel %vm1289_vm6, %v15289_v58, %v1162_v0 }
  0x94   : > { %12082 = vmatprep.mubr.msk.f32.mxu0 %vm1334_vm7, %v1290_v1 }
  0x95   : > { %v15297_v61 = vpop.permute.xlu1 %1035 }
  0x96   : > { %v1258_v4 = vsel %vm790_vm4, %v15301_v63, %v15297_v61 }
  0xc9   : > { %v1164_v7 = vpop.permute.xlu1 %1163 }
  0xca   : > { %v1291_v9 = vsel %vm1289_vm6, %v1258_v4, %v1164_v7 }
  0xcb   : > { %12083 = vmatmul.mubr.msk.f32.vlgmr.msra.gmra.mrb[32].mxu0 %vm1334_vm7, %v1291_v9 }
  0xed   : > { %v12012_v8 = vpop.f32.mrb[0].mxu0 }
  0xee   : > { %v605_v10 = vadd.f32 %v12012_v8, %v15429_v6  ;;  %v599_v11 = vpop.f32.mrb[1].mxu0 }
  0xef   : > { %v600_v12 = vadd.f32 %v15429_v6, %v599_v11 }
  0xf0   : > { %v759_v13 = vmax.f32 %v605_v10, 0.0 }
  0xf1   : > { %v758_v14 = vmax.f32 %v600_v12, 0.0  ;;  %v12015_v15 = vpop.f32.mrb[2].mxu0 }
  0xf2   : > { %866 = vst.msk [vmem:[#allocation2 + $0x30] sm:$0xff] %vm790_vm4, %v759_v13  ;;  %v615_v16 = vadd.f32 %v12015_v15, %v15429_v6  ;;  %v609_v17 = vpop.f32.mrb[3].mxu0 }
  0xf3   : > { %865 = vst.msk [vmem:[#allocation2 + $0x28] sm:$0xff] %vm790_vm4, %v758_v14  ;;  %v610_v18 = vadd.f32 %v15429_v6, %v609_v17 }
  0xf4   : > { %v761_v19 = vmax.f32 %v615_v16, 0.0 }
  0xf5   : > { %v760_v20 = vmax.f32 %v610_v18, 0.0  ;;  %v12018_v21 = vpop.f32.mrb[4].mxu0 }
  0xf6   : > { %868 = vst.msk [vmem:[#allocation2 + $0x50] sm:$0xff] %vm790_vm4, %v761_v19  ;;  %v625_v22 = vadd.f32 %v12018_v21, %v15429_v6  ;;  %v619_v23 = vpop.f32.mrb[5].mxu0 }
  0xf7   : > { %867 = vst.msk [vmem:[#allocation2 + $0x48] sm:$0xff] %vm790_vm4, %v760_v20  ;;  %v620_v24 = vadd.f32 %v15429_v6, %v619_v23 }
  0xf8   : > { %v763_v25 = vmax.f32 %v625_v22, 0.0 }
  0xf9   : > { %v1721_v26 = vld [vmem:[#allocation2 + $0x30] sm:$0xff]  ;;  %v762_v27 = vmax.f32 %v620_v24, 0.0  ;;  %v12021_v28 = vpop.f32.mrb[6].mxu0 }
  0xfa   : > { %1818 = vrot.lane.b32.xlu1 %v1721_v26, %s14835_s13  ;;  %v1720_v29 = vld [vmem:[#allocation2 + $0x28] sm:$0xff]  ;;  %870 = vst.msk [vmem:[#allocation2 + $0x70] sm:$0xff] %vm790_vm4, %v763_v25  ;;  %v635_v30 = vadd.f32 %v12021_v28, %v15429_v6  ;;  %v629_v31 = vpop.f32.mrb[7].mxu0  ;;  %v1753_v34 = vld [vmem:[#allocation2 + $0x31] sm:$0xff] }
  0xfb   : > { %1816 = vrot.lane.b32.xlu0 %v1720_v29, %s14835_s13  ;;  %869 = vst.msk [vmem:[#allocation2 + $0x68] sm:$0xff] %vm790_vm4, %v762_v27  ;;  %v630_v32 = vadd.f32 %v15429_v6, %v629_v31  ;;  %v1752_v38 = vld [vmem:[#allocation2 + $0x29] sm:$0xff] }
  0xfc   : > { %v765_v33 = vmax.f32 %v635_v30, 0.0 }
  0xfd   : > { %v764_v35 = vmax.f32 %v630_v32, 0.0  ;;  %v12024_v36 = vpop.f32.mrb[8].mxu0  ;;  %v15466_v53 = vld [vmem:[#allocation2 + $0x50] sm:$0xff] }
  0xfe   : > { %1946 = vrot.lane.b32.xlu1 %v1753_v34, %s14836_s14  ;;  %872 = vst.msk [vmem:[#allocation2 + $0x90] sm:$0xff] %vm790_vm4, %v765_v33  ;;  %v645_v39 = vadd.f32 %v12024_v36, %v15429_v6  ;;  %v639_v40 = vpop.f32.mrb[9].mxu0  ;;  %v1722_v55 = vld [vmem:[#allocation2 + $0x48] sm:$0xff]  ;;  %v15477_v63 = vld [vmem:[#allocation2 + $0x51] sm:$0xff] }
  0xff   : > { %1944 = vrot.lane.b32.xlu0 %v1752_v38, %s14836_s14  ;;  %871 = vst.msk [vmem:[#allocation2 + $0x88] sm:$0xff] %vm790_vm4, %v764_v35  ;;  %v640_v41 = vadd.f32 %v15429_v6, %v639_v40  ;;  %v15481_v2 = vld [vmem:[#allocation2 + $0x49] sm:$0xff] }
 0x100   : > { %v767_v42 = vmax.f32 %v645_v39, 0.0 }
 0x101   : > { %v766_v43 = vmax.f32 %v640_v41, 0.0  ;;  %v12027_v44 = vpop.f32.mrb[10].mxu0  ;;  %v15502_v18 = vld [vmem:[#allocation2 + $0x70] sm:$0xff] }
 0x102   : > { %1039 = vrot.lane.b32.xlu1 %v1721_v26, %s14835_s13  ;;  %874 = vst.msk [vmem:[#allocation2 + $0xb0] sm:$0xff] %vm790_vm4, %v767_v42  ;;  %v655_v45 = vadd.f32 %v12027_v44, %v15429_v6  ;;  %v649_v46 = vpop.f32.mrb[11].mxu0  ;;  %v15511_v25 = vld [vmem:[#allocation2 + $0x71] sm:$0xff]  ;;  %v15515_v27 = vld [vmem:[#allocation2 + $0x68] sm:$0xff] }
 0x103   : > { %1037 = vrot.lane.b32.xlu0 %v1720_v29, %s14835_s13  ;;  %873 = vst.msk [vmem:[#allocation2 + $0xa8] sm:$0xff] %vm790_vm4, %v766_v43  ;;  %v650_v47 = vadd.f32 %v15429_v6, %v649_v46 }
 0x104   : > { %v769_v48 = vmax.f32 %v655_v45, 0.0 }
 0x105   : > { %v768_v49 = vmax.f32 %v650_v47, 0.0  ;;  %v12030_v50 = vpop.f32.mrb[12].mxu0  ;;  %v15541_v47 = vld [vmem:[#allocation2 + $0x90] sm:$0xff] }
 0x106   : > { %1167 = vrot.lane.b32.xlu1 %v1753_v34, %s14836_s14  ;;  %876 = vst.msk [vmem:[#allocation2 + $0xd0] sm:$0xff] %vm790_vm4, %v769_v48  ;;  %v665_v51 = vadd.f32 %v12030_v50, %v15429_v6  ;;  %v659_v52 = vpop.f32.mrb[13].mxu0 }
 0x107   : > { %1165 = vrot.lane.b32.xlu0 %v1752_v38, %s14836_s14  ;;  %875 = vst.msk [vmem:[#allocation2 + $0xc8] sm:$0xff] %vm790_vm4, %v768_v49  ;;  %v660_v54 = vadd.f32 %v15429_v6, %v659_v52  ;;  %v15527_v38 = vld [vmem:[#allocation2 + $0x69] sm:$0xff] }
 0x108   : > { %v771_v56 = vmax.f32 %v665_v51, 0.0  ;;  %v15550_v51 = vld [vmem:[#allocation2 + $0x91] sm:$0xff]  ;;  %v15553_v52 = vld [vmem:[#allocation2 + $0x88] sm:$0xff] }
 0x109   : > { %v770_v57 = vmax.f32 %v660_v54, 0.0  ;;  %v12033_v58 = vpop.f32.mrb[14].mxu0  ;;  %v15559_v54 = vld [vmem:[#allocation2 + $0xb0] sm:$0xff] }
 0x10a   : > { %1822 = vrot.lane.b32.xlu1 %v15466_v53, %s14835_s13  ;;  %878 = vst.msk [vmem:[#allocation2 + $0xf0] sm:$0xff] %vm790_vm4, %v771_v56  ;;  %v675_v59 = vadd.f32 %v12033_v58, %v15429_v6  ;;  %v669_v60 = vpop.f32.mrb[15].mxu0  ;;  %v15567_v56 = vld [vmem:[#allocation2 + $0xb1] sm:$0xff] }
 0x10b   : > { %1820 = vrot.lane.b32.xlu0 %v1722_v55, %s14835_s13  ;;  %877 = vst.msk [vmem:[#allocation2 + $0xe8] sm:$0xff] %vm790_vm4, %v770_v57  ;;  %v670_v61 = vadd.f32 %v15429_v6, %v669_v60  ;;  %v15569_v57 = vld [vmem:[#allocation2 + $0xa8] sm:$0xff] }
 0x10c   : > { %v773_v62 = vmax.f32 %v675_v59, 0.0  ;;  %v15579_v59 = vld [vmem:[#allocation2 + $0xa9] sm:$0xff] }
 0x10d   : > { %v772_v0 = vmax.f32 %v670_v61, 0.0  ;;  %v12036_v1 = vpop.f32.mrb[16].mxu0  ;;  %v15575_v58 = vld [vmem:[#allocation2 + $0xd0] sm:$0xff] }
 0x10e   : > { %1950 = vrot.lane.b32.xlu1 %v15477_v63, %s14836_s14  ;;  %880 = vst.msk [vmem:[#allocation2 + $0x110] sm:$0xff] %vm790_vm4, %v773_v62  ;;  %v685_v3 = vadd.f32 %v12036_v1, %v15429_v6  ;;  %v679_v4 = vpop.f32.mrb[17].mxu0  ;;  %v15583_v60 = vld [vmem:[#allocation2 + $0xd1] sm:$0xff]  ;;  %v15585_v61 = vld [vmem:[#allocation2 + $0xc8] sm:$0xff] }
 0x10f   : > { %1948 = vrot.lane.b32.xlu0 %v15481_v2, %s14836_s14  ;;  %879 = vst.msk [vmem:[#allocation2 + $0x108] sm:$0xff] %vm790_vm4, %v772_v0  ;;  %v680_v5 = vadd.f32 %v15429_v6, %v679_v4  ;;  %v15592_v0 = vld [vmem:[#allocation2 + $0xc9] sm:$0xff] }
 0x110   : > { %v775_v7 = vmax.f32 %v685_v3, 0.0 }
 0x111   : > { %v774_v8 = vmax.f32 %v680_v5, 0.0  ;;  %v12039_v9 = vpop.f32.mrb[18].mxu0  ;;  %v1733_v62 = vld [vmem:[#allocation2 + $0xf0] sm:$0xff] }
 0x112   : > { %2601 = vrot.lane.b32.xlu1 %v15466_v53, %s14835_s13  ;;  %882 = vst.msk [vmem:[#allocation2 + $0x130] sm:$0xff] %vm790_vm4, %v775_v7  ;;  %v695_v10 = vadd.f32 %v12039_v9, %v15429_v6  ;;  %v689_v11 = vpop.f32.mrb[19].mxu0  ;;  %v1765_v1 = vld [vmem:[#allocation2 + $0xf1] sm:$0xff]  ;;  %v1732_v3 = vld [vmem:[#allocation2 + $0xe8] sm:$0xff] }
 0x113   : > { %2599 = vrot.lane.b32.xlu0 %v1722_v55, %s14835_s13  ;;  %881 = vst.msk [vmem:[#allocation2 + $0x128] sm:$0xff] %vm790_vm4, %v774_v8  ;;  %v690_v12 = vadd.f32 %v15429_v6, %v689_v11  ;;  %v1764_v5 = vld [vmem:[#allocation2 + $0xe9] sm:$0xff] }
 0x114   : > { %v777_v13 = vmax.f32 %v695_v10, 0.0 }
 0x115   : > { %v776_v14 = vmax.f32 %v690_v12, 0.0  ;;  %v12042_v15 = vpop.f32.mrb[20].mxu0  ;;  %v1735_v4 = vld [vmem:[#allocation2 + $0x110] sm:$0xff] }
 0x116   : > { %2729 = vrot.lane.b32.xlu1 %v15477_v63, %s14836_s14  ;;  %884 = vst.msk [vmem:[#allocation2 + $0x150] sm:$0xff] %vm790_vm4, %v777_v13  ;;  %v705_v16 = vadd.f32 %v12042_v15, %v15429_v6  ;;  %v699_v17 = vpop.f32.mrb[21].mxu0  ;;  %v1767_v7 = vld [vmem:[#allocation2 + $0x111] sm:$0xff]  ;;  %v1734_v8 = vld [vmem:[#allocation2 + $0x108] sm:$0xff] }
 0x117   : > { %2727 = vrot.lane.b32.xlu0 %v15481_v2, %s14836_s14  ;;  %883 = vst.msk [vmem:[#allocation2 + $0x148] sm:$0xff] %vm790_vm4, %v776_v14  ;;  %v700_v19 = vadd.f32 %v15429_v6, %v699_v17  ;;  %v1766_v10 = vld [vmem:[#allocation2 + $0x109] sm:$0xff] }
 0x118   : > { %v779_v20 = vmax.f32 %v705_v16, 0.0 }
 0x119   : > { %v778_v21 = vmax.f32 %v700_v19, 0.0  ;;  %v12045_v22 = vpop.f32.mrb[22].mxu0  ;;  %v1737_v9 = vld [vmem:[#allocation2 + $0x130] sm:$0xff] }
 0x11a   : > { %1826 = vrot.lane.b32.xlu1 %v15502_v18, %s14835_s13  ;;  %886 = vst.msk [vmem:[#allocation2 + $0x170] sm:$0xff] %vm790_vm4, %v779_v20  ;;  %v715_v23 = vadd.f32 %v12045_v22, %v15429_v6  ;;  %v709_v24 = vpop.f32.mrb[23].mxu0  ;;  %v1769_v11 = vld [vmem:[#allocation2 + $0x131] sm:$0xff]  ;;  %v1736_v12 = vld [vmem:[#allocation2 + $0x128] sm:$0xff] }
 0x11b   : > { %1041 = vrot.lane.b32.xlu0 %v1722_v55, %s14835_s13  ;;  %885 = vst.msk [vmem:[#allocation2 + $0x168] sm:$0xff] %vm790_vm4, %v778_v21  ;;  %v710_v26 = vadd.f32 %v15429_v6, %v709_v24  ;;  %v15563_v55 = vld [vmem:[#allocation2 + $0x89] sm:$0xff] }
 0x11c   : > { %v781_v28 = vmax.f32 %v715_v23, 0.0  ;;  %v1768_v14 = vld [vmem:[#allocation2 + $0x129] sm:$0xff] }
 0x11d   : > { %v780_v29 = vmax.f32 %v710_v26, 0.0  ;;  %v12048_v30 = vpop.f32.mrb[24].mxu0  ;;  %v990_v13 = vld [vmem:[#allocation2 + $0x151] sm:$0xff] }
 0x11e   : > { %1954 = vrot.lane.b32.xlu1 %v15511_v25, %s14836_s14  ;;  %888 = vst.msk [vmem:[#allocation2 + $0x190] sm:$0xff] %vm790_vm4, %v781_v28  ;;  %v725_v31 = vadd.f32 %v12048_v30, %v15429_v6  ;;  %v719_v32 = vpop.f32.mrb[25].mxu0  ;;  %v1739_v15 = vld [vmem:[#allocation2 + $0x150] sm:$0xff]  ;;  %v957_v20 = vld [vmem:[#allocation2 + $0x148] sm:$0xff] }
 0x11f   : > { %1824 = vrot.lane.b32.xlu0 %v15515_v27, %s14835_s13  ;;  %887 = vst.msk [vmem:[#allocation2 + $0x188] sm:$0xff] %vm790_vm4, %v780_v29  ;;  %v720_v33 = vadd.f32 %v15429_v6, %v719_v32  ;;  %v989_v23 = vld [vmem:[#allocation2 + $0x149] sm:$0xff] }
 0x120   : > { %v783_v34 = vmax.f32 %v725_v31, 0.0 }
 0x121   : > { %v782_v35 = vmax.f32 %v720_v33, 0.0  ;;  %v12051_v36 = vpop.f32.mrb[26].mxu0  ;;  %v960_v26 = vld [vmem:[#allocation2 + $0x170] sm:$0xff] }
 0x122   : > { %2605 = vrot.lane.b32.xlu1 %v15502_v18, %s14835_s13  ;;  %890 = vst.msk [vmem:[#allocation2 + $0x1b0] sm:$0xff] %vm790_vm4, %v783_v34  ;;  %v735_v39 = vadd.f32 %v12051_v36, %v15429_v6  ;;  %v729_v40 = vpop.f32.mrb[27].mxu0  ;;  %v992_v28 = vld [vmem:[#allocation2 + $0x171] sm:$0xff]  ;;  %v959_v30 = vld [vmem:[#allocation2 + $0x168] sm:$0xff] }
 0x123   : > { %1952 = vrot.lane.b32.xlu0 %v15527_v38, %s14836_s14  ;;  %889 = vst.msk [vmem:[#allocation2 + $0x1a8] sm:$0xff] %vm790_vm4, %v782_v35  ;;  %v730_v41 = vadd.f32 %v15429_v6, %v729_v40  ;;  %v991_v33 = vld [vmem:[#allocation2 + $0x169] sm:$0xff] }
 0x124   : > { %v785_v42 = vmax.f32 %v735_v39, 0.0  ;;  %v15634_v39 = vld [vmem:[#allocation2 + $0x27] sm:$0xff] }
 0x125   : > { %v784_v43 = vmax.f32 %v730_v41, 0.0  ;;  %v12054_v44 = vpop.f32.mrb[28].mxu0  ;;  %v962_v36 = vld [vmem:[#allocation2 + $0x190] sm:$0xff] }
 0x126   : > { %2733 = vrot.lane.b32.xlu1 %v15511_v25, %s14836_s14  ;;  %892 = vst.msk [vmem:[#allocation2 + $0x1d0] sm:$0xff] %vm790_vm4, %v785_v42  ;;  %v745_v45 = vadd.f32 %v12054_v44, %v15429_v6  ;;  %v739_v46 = vpop.f32.mrb[29].mxu0  ;;  %v15636_v41 = vld [vmem:[#allocation2 + $0x2f] sm:$0xff] }
 0x127   : > { %2603 = vrot.lane.b32.xlu0 %v15515_v27, %s14835_s13  ;;  %891 = vst.msk [vmem:[#allocation2 + $0x1c8] sm:$0xff] %vm790_vm4, %v784_v43  ;;  %v740_v48 = vadd.f32 %v15429_v6, %v739_v46 }
 0x128   : > { %v787_v49 = vmax.f32 %v745_v45, 0.0 }
 0x129   : > { %v786_v50 = vmax.f32 %v740_v48, 0.0  ;;  %v12057_v16 = vpop.f32.mrb[30].mxu0  ;;  %v994_v48 = vld [vmem:[#allocation2 + $0x191] sm:$0xff] }
 0x12a   : > { %1830 = vrot.lane.b32.xlu1 %v15541_v47, %s14835_s13  ;;  %894 = vst.msk [vmem:[#allocation2 + $0x1f0] sm:$0xff] %vm790_vm4, %v787_v49  ;;  %v755_v17 = vadd.f32 %v12057_v16, %v15429_v6  ;;  %v749_v21 = vpop.f32.mrb[31].mxu0 }
 0x12b   : > { %2731 = vrot.lane.b32.xlu0 %v15527_v38, %s14836_s14  ;;  %893 = vst.msk [vmem:[#allocation2 + $0x1e8] sm:$0xff] %vm790_vm4, %v786_v50  ;;  %v750_v22 = vadd.f32 %v15429_v6, %v749_v21  ;;  %v961_v50 = vld [vmem:[#allocation2 + $0x188] sm:$0xff]  ;;  %v11251_v21 = vld [vmem:[%s20212_s3 + $0x60] sm:$0xff] }
 0x12c   : > { %v789_v19 = vmax.f32 %v755_v17, 0.0  ;;  %v995_v17 = vld [vmem:[#allocation2 + $0x1a9] sm:$0xff] }
 0x12d   : > { %v788_v24 = vmax.f32 %v750_v22, 0.0  ;;  %v11252_v22 = vld [vmem:[%s20212_s3 + $0x68] sm:$0xff] }
 0x12e   : > { %1958 = vrot.lane.b32.xlu1 %v15550_v51, %s14836_s14  ;;  %896 = vst.msk [vmem:[#allocation2 + $0x210] sm:$0xff] %vm790_vm4, %v789_v19 }
 0x12f   : > { %1828 = vrot.lane.b32.xlu0 %v15553_v52, %s14835_s13  ;;  %895 = vst.msk [vmem:[#allocation2 + $0x208] sm:$0xff] %vm790_vm4, %v788_v24  ;;  %v15696_v24 = vpack.c.bf16 %v11252_v22, %v11251_v21 }
 0x131   : > { %12373 = vmatprep.subr.bf16.mxu1 %v15696_v24 }
 0x132   : > { %1834 = vrot.lane.b32.xlu1 %v15559_v54, %s14835_s13 }
 0x133   : > { %1956 = vrot.lane.b32.xlu0 %v15563_v55, %s14836_s14 }
 0x136   : > { %1962 = vrot.lane.b32.xlu1 %v15567_v56, %s14836_s14 }
 0x137   : > { %1832 = vrot.lane.b32.xlu0 %v15569_v57, %s14835_s13 }
 0x13a   : > { %1838 = vrot.lane.b32.xlu1 %v15575_v58, %s14835_s13 }
 0x13b   : > { %1960 = vrot.lane.b32.xlu0 %v15579_v59, %s14836_s14 }
 0x13e   : > { %1966 = vrot.lane.b32.xlu1 %v15583_v60, %s14836_s14 }
 0x13f   : > { %1836 = vrot.lane.b32.xlu0 %v15585_v61, %s14835_s13 }
 0x142   : > { %1842 = vrot.lane.b32.xlu1 %v1733_v62, %s14835_s13 }
 0x143   : > { %1964 = vrot.lane.b32.xlu0 %v15592_v0, %s14836_s14 }
 0x146   : > { %1970 = vrot.lane.b32.xlu1 %v1765_v1, %s14836_s14 }
 0x147   : > { %1840 = vrot.lane.b32.xlu0 %v1732_v3, %s14835_s13 }
 0x14a   : > { %1846 = vrot.lane.b32.xlu1 %v1735_v4, %s14835_s13  ;;  %v993_v4 = vld [vmem:[#allocation2 + $0x189] sm:$0xff] }
 0x14b   : > { %1968 = vrot.lane.b32.xlu0 %v1764_v5, %s14836_s14 }
 0x14e   : > { %1974 = vrot.lane.b32.xlu1 %v1767_v7, %s14836_s14 }
 0x14f   : > { %1844 = vrot.lane.b32.xlu0 %v1734_v8, %s14835_s13  ;;  %v964_v8 = vld [vmem:[#allocation2 + $0x1b0] sm:$0xff] }
 0x152   : > { %1850 = vrot.lane.b32.xlu1 %v1737_v9, %s14835_s13 }
 0x153   : > { %1972 = vrot.lane.b32.xlu0 %v1766_v10, %s14836_s14 }
 0x156   : > { %1978 = vrot.lane.b32.xlu1 %v1769_v11, %s14836_s14  ;;  %v996_v11 = vld [vmem:[#allocation2 + $0x1b1] sm:$0xff] }
 0x157   : > { %1848 = vrot.lane.b32.xlu0 %v1736_v12, %s14835_s13 }
 0x15a   : > { %1203 = vrot.lane.b32.xlu1 %v990_v13, %s14836_s14 }
 0x15b   : > { %1976 = vrot.lane.b32.xlu0 %v1768_v14, %s14836_s14 }
 0x15e   : > { %1854 = vrot.lane.b32.xlu1 %v1739_v15, %s14835_s13 }
 0x15f   : > { %1075 = vrot.lane.b32.xlu0 %v1739_v15, %s14835_s13 }
 0x162   : > { %1982 = vrot.lane.b32.xlu1 %v990_v13, %s14836_s14  ;;  %v963_v13 = vld [vmem:[#allocation2 + $0x1a8] sm:$0xff] }
 0x163   : > { %1073 = vrot.lane.b32.xlu0 %v957_v20, %s14835_s13 }
 0x166   : > { %1201 = vrot.lane.b32.xlu1 %v989_v23, %s14836_s14 }
 0x167   : > { %1852 = vrot.lane.b32.xlu0 %v957_v20, %s14835_s13 }
 0x16a   : > { %1079 = vrot.lane.b32.xlu1 %v960_v26, %s14835_s13 }
 0x16b   : > { %1980 = vrot.lane.b32.xlu0 %v989_v23, %s14836_s14  ;;  %v966_v23 = vld [vmem:[#allocation2 + $0x1d0] sm:$0xff] }
 0x16c   : > { %v15620_v29 = vpop.permute.xlu1 %1818 }
 0x16d   : > { %v15622_v31 = vpop.permute.xlu0 %1816 }
 0x16e   : > { %1207 = vrot.lane.b32.xlu1 %v992_v28, %s14836_s14 }
 0x16f   : > { %1077 = vrot.lane.b32.xlu0 %v959_v30, %s14835_s13 }
 0x170   : > { %v15626_v6 = vpop.permute.xlu1 %1946 }
 0x171   : > { %v15628_v32 = vpop.permute.xlu0 %1944 }
 0x172   : > { %1858 = vrot.lane.b32.xlu1 %v960_v26, %s14835_s13 }
 0x173   : > { %1205 = vrot.lane.b32.xlu0 %v991_v33, %s14836_s14 }
 0x174   : > { %v1040_v34 = vpop.permute.xlu1 %1039 }
 0x175   : > { %v1038_v35 = vpop.permute.xlu0 %1037  ;;  %v1260_v44 = vsel %vm790_vm4, %v15636_v41, %v1040_v34  ;;  %v965_v34 = vld [vmem:[#allocation2 + $0x1c8] sm:$0xff] }
 0x176   : > { %1986 = vrot.lane.b32.xlu1 %v992_v28, %s14836_s14  ;;  %v1259_v42 = vsel %vm790_vm4, %v15634_v39, %v1038_v35 }
 0x177   : > { %1856 = vrot.lane.b32.xlu0 %v959_v30, %s14835_s13  ;;  %v998_v30 = vld [vmem:[#allocation2 + $0x1d1] sm:$0xff] }
 0x178   : > { %v1168_v40 = vpop.permute.xlu1 %1167 }
 0x179   : > { %v1166_v43 = vpop.permute.xlu0 %1165  ;;  %v1293_v46 = vsel %vm1289_vm6, %v1260_v44, %v1168_v40 }
 0x17a   : > { %v1292_v45 = vsel %vm1289_vm6, %v1259_v42, %v1166_v43  ;;  %1083 = vrot.lane.b32.xlu1 %v962_v36, %s14835_s13  ;;  %v997_v42 = vld [vmem:[#allocation2 + $0x1c9] sm:$0xff] }
 0x17b   : > { %1984 = vrot.lane.b32.xlu0 %v991_v33, %s14836_s14  ;;  %12085 = vmatprep.mubr.msk.f32.mxu0 %vm1334_vm7, %v1292_v45  ;;  %v15723_v45 = vld [vmem:[#allocation2 + $0x1f0] sm:$0xff] }
 0x17c   : > { %v15647_v49 = vpop.permute.xlu1 %1822  ;;  %12086 = vmatmul.mubr.msk.f32.gmra.mrb[34].mxu0 %vm1334_vm7, %v1293_v46  ;;  %20292 = vst [vmem:[#allocation14_spill] sm:$0xff] %v15723_v45 }
 0x17d   : > { %v15650_v62 = vpop.permute.xlu0 %1820 }
 0x17e   : > { %1211 = vrot.lane.b32.xlu1 %v994_v48, %s14836_s14 }
 0x17f   : > { %1081 = vrot.lane.b32.xlu0 %v961_v50, %s14835_s13 }
 0x180   : > { %v15654_v1 = vpop.permute.xlu1 %1950 }
 0x181   : > { %v15656_v3 = vpop.permute.xlu0 %1948 }
 0x182   : > { %1862 = vrot.lane.b32.xlu1 %v962_v36, %s14835_s13 }
 0x183   : > { %1209 = vrot.lane.b32.xlu0 %v993_v4, %s14836_s14 }
 0x184   : > { %v15660_v5 = vpop.permute.xlu1 %2601 }
 0x185   : > { %20284 = vst [vmem:[#allocation6_spill] sm:$0xff] %v15660_v5  ;;  %v15662_v7 = vpop.permute.xlu0 %2599 }
 0x186   : > { %20285 = vst [vmem:[#allocation7_spill] sm:$0xff] %v15662_v7  ;;  %1990 = vrot.lane.b32.xlu1 %v994_v48, %s14836_s14 }
 0x187   : > { %1860 = vrot.lane.b32.xlu0 %v961_v50, %s14835_s13  ;;  %v15732_v50 = vld [vmem:[#allocation2 + $0x1f1] sm:$0xff] }
 0x188   : > { %v15666_v9 = vpop.permute.xlu1 %2729  ;;  %20293 = vst [vmem:[#allocation15_spill] sm:$0xff] %v15732_v50 }
 0x189   : > { %20286 = vst [vmem:[#allocation8_spill] sm:$0xff] %v15666_v9  ;;  %v15668_v10 = vpop.permute.xlu0 %2727 }
 0x18a   : > { %20287 = vst [vmem:[#allocation9_spill] sm:$0xff] %v15668_v10  ;;  %1087 = vrot.lane.b32.xlu1 %v964_v8, %s14835_s13 }
 0x18b   : > { %1988 = vrot.lane.b32.xlu0 %v993_v4, %s14836_s14 }
 0x18c   : > { %v15672_v12 = vpop.permute.xlu1 %1826 }
 0x18d   : > { %v15674_v14 = vpop.permute.xlu0 %1041 }
 0x18e   : > { %1215 = vrot.lane.b32.xlu1 %v996_v11, %s14836_s14 }
 0x18f   : > { %1085 = vrot.lane.b32.xlu0 %v963_v13, %s14835_s13 }
 0x190   : > { %v15678_v15 = vpop.permute.xlu1 %1954 }
 0x191   : > { %v15680_v16 = vpop.permute.xlu0 %1824 }
 0x192   : > { %1866 = vrot.lane.b32.xlu1 %v964_v8, %s14835_s13 }
 0x193   : > { %1213 = vrot.lane.b32.xlu0 %v995_v17, %s14836_s14 }
 0x194   : > { %v15684_v19 = vpop.permute.xlu1 %2605 }
 0x195   : > { %20288 = vst [vmem:[#allocation10_spill] sm:$0xff] %v15684_v19  ;;  %v15686_v20 = vpop.permute.xlu0 %1952 }
 0x196   : > { %1994 = vrot.lane.b32.xlu1 %v996_v11, %s14836_s14 }
 0x197   : > { %1864 = vrot.lane.b32.xlu0 %v963_v13, %s14835_s13  ;;  %v15744_v13 = vld [vmem:[#allocation2 + $0x1e8] sm:$0xff] }
 0x198   : > { %v15698_v26 = vpop.permute.xlu1 %2733 }
 0x199   : > { %20289 = vst [vmem:[#allocation11_spill] sm:$0xff] %v15698_v26  ;;  %v15700_v28 = vpop.permute.xlu0 %2603 }
 0x19a   : > { %20290 = vst [vmem:[#allocation12_spill] sm:$0xff] %v15700_v28  ;;  %1091 = vrot.lane.b32.xlu1 %v966_v23, %s14835_s13 }
 0x19b   : > { %1992 = vrot.lane.b32.xlu0 %v995_v17, %s14836_s14 }
 0x19c   : > { %v15705_v33 = vpop.permute.xlu1 %1830 }
 0x19d   : > { %v15707_v35 = vpop.permute.xlu0 %2731 }
 0x19e   : > { %20291 = vst [vmem:[#allocation13_spill] sm:$0xff] %v15707_v35  ;;  %1219 = vrot.lane.b32.xlu1 %v998_v30, %s14836_s14  ;;  %v15786_v37 = vpop.f32.mrb[32].mxu0 }
 0x19f   : > { %1089 = vrot.lane.b32.xlu0 %v965_v34, %s14835_s13  ;;  %20294 = vst [vmem:[#allocation16_spill] sm:$0xff] %v15786_v37  ;;  %v15790_v19 = vpop.f32.mrb[33].mxu0  ;;  %v15820_v37 = vld [vmem:[#allocation2 + $0x14f] sm:$0xff] }
 0x1a0   : > { %v15711_v36 = vpop.permute.xlu1 %1958  ;;  %20295 = vst [vmem:[#allocation17_spill] sm:$0xff] %v15790_v19  ;;  %20298 = vst [vmem:[#allocation20_spill] sm:$0xff] %v15820_v37 }
 0x1a1   : > { %v15713_v40 = vpop.permute.xlu0 %1828 }
 0x1a2   : > { %1870 = vrot.lane.b32.xlu1 %v966_v23, %s14835_s13 }
 0x1a3   : > { %1217 = vrot.lane.b32.xlu0 %v997_v42, %s14836_s14 }
 0x1a4   : > { %v15717_v43 = vpop.permute.xlu1 %1834 }
 0x1a5   : > { %v15719_v44 = vpop.permute.xlu0 %1956 }
 0x1a6   : > { %1998 = vrot.lane.b32.xlu1 %v998_v30, %s14836_s14 }
 0x1a7   : > { %1868 = vrot.lane.b32.xlu0 %v965_v34, %s14835_s13 }
 0x1a8   : > { %v15725_v46 = vpop.permute.xlu1 %1962 }
 0x1a9   : > { %v15727_v48 = vpop.permute.xlu0 %1832 }
 0x1aa   : > { %1095 = vrot.lane.b32.xlu1 %v15723_v45, %s14835_s13 }
 0x1ab   : > { %1996 = vrot.lane.b32.xlu0 %v997_v42, %s14836_s14 }
 0x1ac   : > { %v15734_v4 = vpop.permute.xlu1 %1838 }
 0x1ad   : > { %v15736_v8 = vpop.permute.xlu0 %1960 }
 0x1ae   : > { %1223 = vrot.lane.b32.xlu1 %v15732_v50, %s14836_s14 }
 0x1af   : > { %1169 = vrot.lane.b32.xlu0 %v15481_v2, %s14836_s14  ;;  %v15758_v2 = vld [vmem:[#allocation2 + $0x1e9] sm:$0xff] }
 0x1b0   : > { %v15742_v11 = vpop.permute.xlu1 %1966 }
 0x1b1   : > { %v15746_v17 = vpop.permute.xlu0 %1836 }
 0x1b2   : > { %1043 = vrot.lane.b32.xlu1 %v15466_v53, %s14835_s13 }
 0x1b3   : > { %1093 = vrot.lane.b32.xlu0 %v15744_v13, %s14835_s13 }
 0x1b4   : > { %v15752_v21 = vpop.permute.xlu1 %1842 }
 0x1b5   : > { %v15754_v22 = vpop.permute.xlu0 %1964 }
 0x1b6   : > { %1171 = vrot.lane.b32.xlu1 %v15477_v63, %s14836_s14 }
 0x1b7   : > { %1221 = vrot.lane.b32.xlu0 %v15758_v2, %s14836_s14 }
 0x1b8   : > { %v15762_v23 = vpop.permute.xlu1 %1970 }
 0x1b9   : > { %v15764_v30 = vpop.permute.xlu0 %1840 }
 0x1ba   : > { %1874 = vrot.lane.b32.xlu1 %v15723_v45, %s14835_s13 }
 0x1bb   : > { %2607 = vrot.lane.b32.xlu0 %v15553_v52, %s14835_s13 }
 0x1bc   : > { %v15770_v53 = vpop.permute.xlu1 %1846 }
 0x1bd   : > { %v15772_v34 = vpop.permute.xlu0 %1968 }
 0x1be   : > { %2002 = vrot.lane.b32.xlu1 %v15732_v50, %s14836_s14 }
 0x1bf   : > { %2735 = vrot.lane.b32.xlu0 %v15563_v55, %s14836_s14 }
 0x1c0   : > { %v15778_v63 = vpop.permute.xlu1 %1974 }
 0x1c1   : > { %v15780_v42 = vpop.permute.xlu0 %1844 }
 0x1c2   : > { %2609 = vrot.lane.b32.xlu1 %v15541_v47, %s14835_s13 }
 0x1c3   : > { %1045 = vrot.lane.b32.xlu0 %v15515_v27, %s14835_s13 }
 0x1c4   : > { %v15788_v26 = vpop.permute.xlu1 %1850 }
 0x1c5   : > { %v15792_v35 = vpop.permute.xlu0 %1972 }
 0x1c6   : > { %2737 = vrot.lane.b32.xlu1 %v15550_v51, %s14836_s14 }
 0x1c7   : > { %1173 = vrot.lane.b32.xlu0 %v15527_v38, %s14836_s14 }
 0x1c8   : > { %v15798_v28 = vpop.permute.xlu1 %1978 }
 0x1c9   : > { %v15800_v9 = vpop.permute.xlu0 %1848 }
 0x1ca   : > { %1047 = vrot.lane.b32.xlu1 %v15502_v18, %s14835_s13 }
 0x1cb   : > { %2611 = vrot.lane.b32.xlu0 %v15569_v57, %s14835_s13 }
 0x1cc   : > { %v1204_v27 = vpop.permute.xlu1 %1203 }
 0x1cd   : > { %v15806_v19 = vpop.permute.xlu0 %1976 }
 0x1ce   : > { %1175 = vrot.lane.b32.xlu1 %v15511_v25, %s14836_s14  ;;  %v11253_v25 = vld [vmem:[%s20212_s3 + $0x70] sm:$0xff] }
 0x1cf   : > { %2739 = vrot.lane.b32.xlu0 %v15579_v59, %s14836_s14  ;;  %v11254_v59 = vld [vmem:[%s20212_s3 + $0x78] sm:$0xff] }
 0x1d0   : > { %v15812_v38 = vpop.permute.xlu1 %1854  ;;  %v12376_v50 = vpack.c.bf16 %v11254_v59, %v11253_v25  ;;  %v11257_v25 = vld [vmem:[%s20212_s3 + $0x90] sm:$0xff] }
 0x1d1   : > { %20296 = vst [vmem:[#allocation18_spill] sm:$0xff] %v15812_v38  ;;  %v1076_v51 = vpop.permute.xlu0 %1075 }
 0x1d2   : > { %2613 = vrot.lane.b32.xlu1 %v15559_v54, %s14835_s13  ;;  %v1278_v54 = vsel %vm790_vm4, %v15820_v37, %v1076_v51  ;;  %v2552_v37 = vld [vmem:[#allocation2 + $0x151] sm:$0xff] }
 0x1d3   : > { %1049 = vrot.lane.b32.xlu0 %v15553_v52, %s14835_s13  ;;  %v15832_v52 = vld [vmem:[#allocation2 + $0x147] sm:$0xff]  ;;  %v1311_v51 = vsel %vm1289_vm6, %v1278_v54, %v1204_v27 }
 0x1d4   : > { %v15818_v18 = vpop.permute.xlu1 %1982 }
 0x1d5   : > { %20297 = vst [vmem:[#allocation19_spill] sm:$0xff] %v15818_v18  ;;  %v1074_v57 = vpop.permute.xlu0 %1073 }
 0x1d6   : > { %2741 = vrot.lane.b32.xlu1 %v15567_v56, %s14836_s14  ;;  %v1277_v5 = vsel %vm790_vm4, %v15832_v52, %v1074_v57  ;;  %v11256_v57 = vld [vmem:[%s20212_s3 + $0x88] sm:$0xff] }
 0x1d7   : > { %1177 = vrot.lane.b32.xlu0 %v15563_v55, %s14836_s14  ;;  %v11255_v55 = vld [vmem:[%s20212_s3 + $0x80] sm:$0xff] }
 0x1d8   : > { %v1202_v56 = vpop.permute.xlu1 %1201  ;;  %v12380_v27 = vpack.c.bf16 %v11256_v57, %v11255_v55  ;;  %v11260_v55 = vld [vmem:[%s20212_s3 + $0xa8] sm:$0xff] }
 0x1d9   : > { %v15838_v10 = vpop.permute.xlu0 %1852  ;;  %v1310_v7 = vsel %vm1289_vm6, %v1277_v5, %v1202_v56  ;;  %v947_v56 = vld [vmem:[#allocation2 + $0xa8] sm:$0xff] }
 0x1da   : > { %1051 = vrot.lane.b32.xlu1 %v15541_v47, %s14835_s13  ;;  %12112 = vmatprep.mubr.msk.f32.mxu1 %vm1334_vm7, %v1310_v7  ;;  %v978_v7 = vld [vmem:[#allocation2 + $0x91] sm:$0xff] }
 0x1db   : > { %2615 = vrot.lane.b32.xlu0 %v15585_v61, %s14835_s13  ;;  %12113 = vmatmul.mubr.msk.f32.vlgmr.msra.gmra.mrb[0].mxu1 %vm1334_vm7, %v1311_v51  ;;  %v11258_v61 = vld [vmem:[%s20212_s3 + $0x98] sm:$0xff]  ;;  %v11259_v51 = vld [vmem:[%s20212_s3 + $0xa0] sm:$0xff]  ;;  %v15879_v57 = vld [vmem:[#allocation2 + $0x16f] sm:$0xff] }
 0x1dc   : > { %v1080_v5 = vpop.permute.xlu1 %1079  ;;  %12375 = vmatpush3.bf16.msra.mxu1 %v15696_v24  ;;  %v12384_v54 = vpack.c.bf16 %v11258_v61, %v11257_v25  ;;  %20301 = vst [vmem:[#allocation23_spill] sm:$0xff] %v15879_v57 }
 0x1dd   : > { %v15855_v47 = vpop.permute.xlu0 %1980  ;;  %12377 = vmatprep.subr.bf16.mxu1 %v12376_v50  ;;  %v1280_v25 = vsel %vm790_vm4, %v15879_v57, %v1080_v5  ;;  %v11262_v5 = vld [vmem:[%s20212_s3 + $0xb8] sm:$0xff]  ;;  %v2516_v57 = vld [vmem:[#allocation2 + $0x110] sm:$0xff] }
 0x1de   : > { %1179 = vrot.lane.b32.xlu1 %v978_v7, %s14836_s14 }
 0x1df   : > { %2743 = vrot.lane.b32.xlu0 %v15592_v0, %s14836_s14  ;;  %v15875_v0 = vld [vmem:[#allocation2 + $0x167] sm:$0xff] }
 0x1e0   : > { %v1208_v59 = vpop.permute.xlu1 %1207  ;;  %12379 = vmatpush3.bf16.msra.mxu1 %v12376_v50  ;;  %20299 = vst [vmem:[#allocation21_spill] sm:$0xff] %v15875_v0 }
 0x1e1   : > { %v1078_v24 = vpop.permute.xlu0 %1077  ;;  %12381 = vmatprep.subr.bf16.mxu1 %v12380_v27  ;;  %v1313_v45 = vsel %vm1289_vm6, %v1280_v25, %v1208_v59  ;;  %v11295_v59 = vld [vmem:[%s20212_s3 + $0xc0] sm:$0xff] }
 0x1e2   : > { %2617 = vrot.lane.b32.xlu1 %v15575_v58, %s14835_s13  ;;  %v1279_v58 = vsel %vm790_vm4, %v15875_v0, %v1078_v24  ;;  %v11261_v24 = vld [vmem:[%s20212_s3 + $0xb0] sm:$0xff] }
 0x1e3   : > { %1053 = vrot.lane.b32.xlu0 %v947_v56, %s14835_s13  ;;  %v12388_v56 = vpack.c.bf16 %v11260_v55, %v11259_v51  ;;  %v11296_v51 = vld [vmem:[%s20212_s3 + $0xc8] sm:$0xff]  ;;  %v15915_v55 = vld [vmem:[#allocation2 + $0x211] sm:$0xff] }
 0x1e4   : > { %v15877_v50 = vpop.permute.xlu1 %1858  ;;  %12383 = vmatpush3.bf16.msra.mxu1 %v12380_v27  ;;  %v15892_v27 = vld [vmem:[#allocation2 + $0x210] sm:$0xff]  ;;  %20305 = vst [vmem:[#allocation27_spill] sm:$0xff] %v15915_v55  ;;  %v15920_v25 = vpack.c.bf16 %v11296_v51, %v11295_v59 }
 0x1e5   : > { %20300 = vst [vmem:[#allocation22_spill] sm:$0xff] %v15877_v50  ;;  %v1206_v7 = vpop.permute.xlu0 %1205  ;;  %12385 = vmatprep.subr.bf16.mxu1 %v12384_v54  ;;  %20302 = vst [vmem:[#allocation24_spill] sm:$0xff] %v15892_v27  ;;  %v15934_v51 = vld [vmem:[#allocation2 + $0x18f] sm:$0xff] }
 0x1e6   : > { %v1312_v61 = vsel %vm1289_vm6, %v1279_v58, %v1206_v7  ;;  %2745 = vrot.lane.b32.xlu1 %v15583_v60, %s14836_s14  ;;  %v948_v7 = vld [vmem:[#allocation2 + $0xb0] sm:$0xff]  ;;  %20310 = vst [vmem:[#allocation32_spill] sm:$0xff] %v15934_v51 }
 0x1e7   : > { %1872 = vrot.lane.b32.xlu0 %v15744_v13, %s14835_s13  ;;  %12115 = vmatprep.mubr.msk.f32.mxu1 %vm1334_vm7, %v1312_v61  ;;  %v12392_v13 = vpack.c.bf16 %v11262_v5, %v11261_v24  ;;  %v980_v24 = vld [vmem:[#allocation2 + $0xb1] sm:$0xff]  ;;  %v15925_v5 = vld [vmem:[#allocation2 + $0x208] sm:$0xff] }
 0x1e8   : > { %v15900_v58 = vpop.permute.xlu1 %1986  ;;  %12116 = vmatmul.mubr.msk.f32.gmra.mrb[2].mxu1 %vm1334_vm7, %v1313_v45  ;;  %20307 = vst [vmem:[#allocation29_spill] sm:$0xff] %v15925_v5 }
 0x1e9   : > { %20303 = vst [vmem:[#allocation25_spill] sm:$0xff] %v15900_v58  ;;  %v15903_v60 = vpop.permute.xlu0 %1856  ;;  %12387 = vmatpush3.bf16.msra.mxu1 %v12384_v54  ;;  %v15942_v58 = vld [vmem:[#allocation2 + $0x209] sm:$0xff] }
 0x1ea   : > { %20304 = vst [vmem:[#allocation26_spill] sm:$0xff] %v15903_v60  ;;  %1878 = vrot.lane.b32.xlu1 %v15892_v27, %s14835_s13  ;;  %12389 = vmatprep.subr.bf16.mxu1 %v12388_v56  ;;  %20311 = vst [vmem:[#allocation33_spill] sm:$0xff] %v15942_v58 }
 0x1eb   : > { %2000 = vrot.lane.b32.xlu0 %v15758_v2, %s14836_s14 }
 0x1ec   : > { %v1084_v45 = vpop.permute.xlu1 %1083 }
 0x1ed   : > { %v15917_v54 = vpop.permute.xlu0 %1984  ;;  %12391 = vmatpush3.bf16.msra.mxu1 %v12388_v56  ;;  %v15930_v56 = vld [vmem:[#allocation2 + $0x187] sm:$0xff] }
 0x1ee   : > { %20306 = vst [vmem:[#allocation28_spill] sm:$0xff] %v15917_v54  ;;  %1055 = vrot.lane.b32.xlu1 %v948_v7, %s14835_s13  ;;  %12393 = vmatprep.subr.bf16.mxu1 %v12392_v13  ;;  %20308 = vst [vmem:[#allocation30_spill] sm:$0xff] %v15930_v56 }
 0x1ef   : > { %2006 = vrot.lane.b32.xlu0 %v15915_v55, %s14836_s14 }
 0x1f0   : > { %v1212_v2 = vpop.permute.xlu1 %1211 }
 0x1f1   : > { %v1082_v61 = vpop.permute.xlu0 %1081  ;;  %12395 = vmatpush3.bf16.msra.mxu1 %v12392_v13  ;;  %v2514_v13 = vld [vmem:[#allocation2 + $0xf0] sm:$0xff] }
 0x1f2   : > { %1183 = vrot.lane.b32.xlu1 %v980_v24, %s14836_s14  ;;  %12397 = vmatprep.subr.bf16.mxu1 %v15920_v25  ;;  %v1281_v7 = vsel %vm790_vm4, %v15930_v56, %v1082_v61  ;;  %v1282_v24 = vsel %vm790_vm4, %v15934_v51, %v1084_v45  ;;  %v2546_v45 = vld [vmem:[#allocation2 + $0xf1] sm:$0xff]  ;;  %v15961_v56 = vld [vmem:[#allocation2 + $0x1a7] sm:$0xff] }
 0x1f3   : > { %1876 = vrot.lane.b32.xlu0 %v15925_v5, %s14835_s13  ;;  %v1315_v5 = vsel %vm1289_vm6, %v1282_v24, %v1212_v2  ;;  %v950_v2 = vld [vmem:[#allocation2 + $0xd0] sm:$0xff]  ;;  %v2513_v24 = vld [vmem:[#allocation2 + $0xe8] sm:$0xff]  ;;  %20315 = vst [vmem:[#allocation37_spill] sm:$0xff] %v15961_v56 }
 0x1f4   : > { %v15932_v59 = vpop.permute.xlu1 %1862 }
 0x1f5   : > { %20309 = vst [vmem:[#allocation31_spill] sm:$0xff] %v15932_v59  ;;  %v1210_v55 = vpop.permute.xlu0 %1209 }
 0x1f6   : > { %v1314_v27 = vsel %vm1289_vm6, %v1281_v7, %v1210_v55  ;;  %2621 = vrot.lane.b32.xlu1 %v2514_v13, %s14835_s13  ;;  %v979_v55 = vld [vmem:[#allocation2 + $0xa9] sm:$0xff] }
 0x1f7   : > { %2004 = vrot.lane.b32.xlu0 %v15942_v58, %s14836_s14  ;;  %12118 = vmatprep.mubr.msk.f32.mxu1 %vm1334_vm7, %v1314_v27 }
 0x1f8   : > { %v15948_v59 = vpop.permute.xlu1 %1990  ;;  %12119 = vmatmul.mubr.msk.f32.gmra.mrb[4].mxu1 %vm1334_vm7, %v1315_v5  ;;  %v982_v5 = vld [vmem:[#allocation2 + $0xd1] sm:$0xff] }
 0x1f9   : > { %20312 = vst [vmem:[#allocation34_spill] sm:$0xff] %v15948_v59  ;;  %v15951_v61 = vpop.permute.xlu0 %1860  ;;  %v2545_v59 = vld [vmem:[#allocation2 + $0xe9] sm:$0xff] }
 0x1fa   : > { %20313 = vst [vmem:[#allocation35_spill] sm:$0xff] %v15951_v61  ;;  %2749 = vrot.lane.b32.xlu1 %v2546_v45, %s14836_s14  ;;  %v15965_v61 = vld [vmem:[#allocation2 + $0x1af] sm:$0xff] }
 0x1fb   : > { %1181 = vrot.lane.b32.xlu0 %v979_v55, %s14836_s14  ;;  %20317 = vst [vmem:[#allocation39_spill] sm:$0xff] %v15965_v61 }
 0x1fc   : > { %v1088_v7 = vpop.permute.xlu1 %1087 }
 0x1fd   : > { %v15955_v51 = vpop.permute.xlu0 %1988  ;;  %v1284_v50 = vsel %vm790_vm4, %v15965_v61, %v1088_v7  ;;  %v981_v7 = vld [vmem:[#allocation2 + $0xc9] sm:$0xff] }
 0x1fe   : > { %20314 = vst [vmem:[#allocation36_spill] sm:$0xff] %v15955_v51  ;;  %1059 = vrot.lane.b32.xlu1 %v950_v2, %s14835_s13 }
 0x1ff   : > { %2619 = vrot.lane.b32.xlu0 %v2513_v24, %s14835_s13 }
 0x200   : > { %v1216_v27 = vpop.permute.xlu1 %1215 }
 0x201   : > { %v1086_v58 = vpop.permute.xlu0 %1085  ;;  %v1317_v0 = vsel %vm1289_vm6, %v1284_v50, %v1216_v27  ;;  %v2515_v50 = vld [vmem:[#allocation2 + $0x108] sm:$0xff] }
 0x202   : > { %1187 = vrot.lane.b32.xlu1 %v982_v5, %s14836_s14  ;;  %v1283_v2 = vsel %vm790_vm4, %v15961_v56, %v1086_v58  ;;  %v949_v5 = vld [vmem:[#allocation2 + $0xc8] sm:$0xff]  ;;  %v2548_v56 = vld [vmem:[#allocation2 + $0x111] sm:$0xff] }
 0x203   : > { %2747 = vrot.lane.b32.xlu0 %v2545_v59, %s14836_s14 }
 0x204   : > { %v15963_v55 = vpop.permute.xlu1 %1866 }
 0x205   : > { %20316 = vst [vmem:[#allocation38_spill] sm:$0xff] %v15963_v55  ;;  %v1214_v51 = vpop.permute.xlu0 %1213 }
 0x206   : > { %v1316_v54 = vsel %vm1289_vm6, %v1283_v2, %v1214_v51  ;;  %2625 = vrot.lane.b32.xlu1 %v2516_v57, %s14835_s13 }
 0x207   : > { %1057 = vrot.lane.b32.xlu0 %v949_v5, %s14835_s13  ;;  %12121 = vmatprep.mubr.msk.f32.mxu1 %vm1334_vm7, %v1316_v54  ;;  %v15989_v5 = vld [vmem:[#allocation2 + $0x1c7] sm:$0xff] }
 0x208   : > { %v15976_v55 = vpop.permute.xlu1 %1994  ;;  %12122 = vmatmul.mubr.msk.f32.gmra.mrb[6].mxu1 %vm1334_vm7, %v1317_v0  ;;  %v2547_v0 = vld [vmem:[#allocation2 + $0x109] sm:$0xff]  ;;  %20321 = vst [vmem:[#allocation43_spill] sm:$0xff] %v15989_v5 }
 0x209   : > { %20318 = vst [vmem:[#allocation40_spill] sm:$0xff] %v15976_v55  ;;  %v15979_v58 = vpop.permute.xlu0 %1864 }
 0x20a   : > { %20319 = vst [vmem:[#allocation41_spill] sm:$0xff] %v15979_v58  ;;  %2753 = vrot.lane.b32.xlu1 %v2548_v56, %s14836_s14 }
 0x20b   : > { %1185 = vrot.lane.b32.xlu0 %v981_v7, %s14836_s14  ;;  %v15993_v7 = vld [vmem:[#allocation2 + $0x1cf] sm:$0xff] }
 0x20c   : > { %v1092_v51 = vpop.permute.xlu1 %1091  ;;  %20323 = vst [vmem:[#allocation45_spill] sm:$0xff] %v15993_v7 }
 0x20d   : > { %v15983_v2 = vpop.permute.xlu0 %1992  ;;  %v1286_v58 = vsel %vm790_vm4, %v15993_v7, %v1092_v51  ;;  %v2520_v7 = vld [vmem:[#allocation2 + $0x150] sm:$0xff] }
 0x20e   : > { %20320 = vst [vmem:[#allocation42_spill] sm:$0xff] %v15983_v2  ;;  %1063 = vrot.lane.b32.xlu1 %v2514_v13, %s14835_s13  ;;  %v2518_v2 = vld [vmem:[#allocation2 + $0x130] sm:$0xff] }
 0x20f   : > { %2623 = vrot.lane.b32.xlu0 %v2515_v50, %s14835_s13 }
 0x210   : > { %v1220_v54 = vpop.permute.xlu1 %1219 }
 0x211   : > { %v1090_v27 = vpop.permute.xlu0 %1089 }
 0x212   : > { %1191 = vrot.lane.b32.xlu1 %v2546_v45, %s14836_s14  ;;  %v1285_v61 = vsel %vm790_vm4, %v15989_v5, %v1090_v27  ;;  %v1319_v45 = vsel %vm1289_vm6, %v1286_v58, %v1220_v54  ;;  %v16009_v5 = vld [vmem:[#allocation2 + $0x131] sm:$0xff] }
 0x213   : > { %2751 = vrot.lane.b32.xlu0 %v2547_v0, %s14836_s14 }
 0x214   : > { %v15991_v55 = vpop.permute.xlu1 %1870 }
 0x215   : > { %20322 = vst [vmem:[#allocation44_spill] sm:$0xff] %v15991_v55  ;;  %v1218_v13 = vpop.permute.xlu0 %1217 }
 0x216   : > { %v1318_v60 = vsel %vm1289_vm6, %v1285_v61, %v1218_v13  ;;  %2629 = vrot.lane.b32.xlu1 %v2518_v2, %s14835_s13 }
 0x217   : > { %1061 = vrot.lane.b32.xlu0 %v2513_v24, %s14835_s13  ;;  %12124 = vmatprep.mubr.msk.f32.mxu1 %vm1334_vm7, %v1318_v60  ;;  %v16017_v24 = vld [vmem:[#allocation2 + $0x128] sm:$0xff] }
 0x218   : > { %v16004_v55 = vpop.permute.xlu1 %1998  ;;  %12125 = vmatmul.mubr.msk.f32.gmra.mrb[8].mxu1 %vm1334_vm7, %v1319_v45  ;;  %v16021_v60 = vld [vmem:[#allocation2 + $0x47] sm:$0xff] }
 0x219   : > { %20324 = vst [vmem:[#allocation46_spill] sm:$0xff] %v16004_v55  ;;  %v16007_v27 = vpop.permute.xlu0 %1868  ;;  %v1261_v54 = vsel %vm790_vm4, %v16021_v60, %v15674_v14  ;;  %v16028_v45 = vld [vmem:[#allocation2 + $0x129] sm:$0xff] }
 0x21a   : > { %20325 = vst [vmem:[#allocation47_spill] sm:$0xff] %v16007_v27  ;;  %2757 = vrot.lane.b32.xlu1 %v16009_v5, %s14836_s14 }
 0x21b   : > { %1189 = vrot.lane.b32.xlu0 %v2545_v59, %s14836_s14 }
 0x21c   : > { %v1096_v61 = vpop.permute.xlu1 %1095 }
 0x21d   : > { %v16014_v51 = vpop.permute.xlu0 %1996 }
 0x21e   : > { %20326 = vst [vmem:[#allocation48_spill] sm:$0xff] %v16014_v51  ;;  %1067 = vrot.lane.b32.xlu1 %v2516_v57, %s14835_s13  ;;  %v16034_v51 = vld [vmem:[#allocation2 + $0x4f] sm:$0xff] }
 0x21f   : > { %2627 = vrot.lane.b32.xlu0 %v16017_v24, %s14835_s13 }
 0x220   : > { %v1224_v58 = vpop.permute.xlu1 %1223 }
 0x221   : > { %v1170_v13 = vpop.permute.xlu0 %1169 }
 0x222   : > { %v1294_v59 = vsel %vm1289_vm6, %v1261_v54, %v1170_v13  ;;  %1195 = vrot.lane.b32.xlu1 %v2548_v56, %s14836_s14  ;;  %v16039_v56 = vld [vmem:[#allocation2 + $0x1e7] sm:$0xff]  ;;  %v16041_v13 = vld [vmem:[#allocation2 + $0x1ef] sm:$0xff] }
 0x223   : > { %2755 = vrot.lane.b32.xlu0 %v16028_v45, %s14836_s14  ;;  %12088 = vmatprep.mubr.msk.f32.mxu0 %vm1334_vm7, %v1294_v59 }
 0x224   : > { %v1044_v57 = vpop.permute.xlu1 %1043 }
 0x225   : > { %v1094_v55 = vpop.permute.xlu0 %1093  ;;  %v1262_v14 = vsel %vm790_vm4, %v16034_v51, %v1044_v57  ;;  %v2040_v57 = vsel %vm790_vm4, %v15634_v39, %v15622_v31  ;;  %v2041_v39 = vsel %vm790_vm4, %v15636_v41, %v15620_v29  ;;  %v11300_v29 = vld [vmem:[%s20212_s3 + $0xe8] sm:$0xff] }
 0x226   : > { %2633 = vrot.lane.b32.xlu1 %v2520_v7, %s14835_s13  ;;  %v1287_v59 = vsel %vm790_vm4, %v16039_v56, %v1094_v55  ;;  %v1288_v7 = vsel %vm790_vm4, %v16041_v13, %v1096_v61  ;;  %v11297_v55 = vld [vmem:[%s20212_s3 + $0xd0] sm:$0xff] }
 0x227   : > { %1065 = vrot.lane.b32.xlu0 %v2515_v50, %s14835_s13  ;;  %v1321_v38 = vsel %vm1289_vm6, %v1288_v7, %v1224_v58  ;;  %v2073_v58 = vsel %vm1289_vm6, %v2041_v39, %v15626_v6 }
 0x228   : > { %v1172_v54 = vpop.permute.xlu1 %1171 }
 0x229   : > { %v1295_v27 = vsel %vm1289_vm6, %v1262_v14, %v1172_v54  ;;  %v1222_v18 = vpop.permute.xlu0 %1221  ;;  %v16099_v14 = vld [vmem:[#allocation2 + $0x67] sm:$0xff] }
 0x22a   : > { %v1320_v50 = vsel %vm1289_vm6, %v1287_v59, %v1222_v18  ;;  %2761 = vrot.lane.b32.xlu1 %v2552_v37, %s14836_s14  ;;  %12089 = vmatmul.mubr.msk.f32.gmra.mrb[36].mxu0 %vm1334_vm7, %v1295_v27  ;;  %v11298_v37 = vld [vmem:[%s20212_s3 + $0xd8] sm:$0xff]  ;;  %v2072_v18 = vsel %vm1289_vm6, %v2040_v57, %v15628_v32  ;;  %v2042_v32 = vsel %vm790_vm4, %v16021_v60, %v15650_v62  ;;  %v2522_v57 = vld [vmem:[#allocation2 + $0x170] sm:$0xff] }
 0x22b   : > { %1193 = vrot.lane.b32.xlu0 %v2547_v0, %s14836_s14  ;;  %12127 = vmatprep.mubr.msk.f32.mxu1 %vm1334_vm7, %v1320_v50  ;;  %v2519_v0 = vld [vmem:[#allocation2 + $0x148] sm:$0xff]  ;;  %v12400_v61 = vpack.c.bf16 %v11298_v37, %v11297_v55  ;;  %v2074_v41 = vsel %vm1289_vm6, %v2042_v32, %v15656_v3  ;;  %v2043_v62 = vsel %vm790_vm4, %v16034_v51, %v15647_v49  ;;  %v11301_v49 = vld [vmem:[%s20212_s3 + $0xf0] sm:$0xff] }
 0x22c   : > { %v16065_v27 = vpop.permute.xlu1 %1874  ;;  %12128 = vmatmul.mubr.msk.f32.gmra.mrb[10].mxu1 %vm1334_vm7, %v1321_v38  ;;  %v11299_v38 = vld [vmem:[%s20212_s3 + $0xe0] sm:$0xff]  ;;  %v2551_v3 = vld [vmem:[#allocation2 + $0x149] sm:$0xff]  ;;  %v2075_v59 = vsel %vm1289_vm6, %v2043_v62, %v15654_v1  ;;  %v2554_v32 = vld [vmem:[#allocation2 + $0x171] sm:$0xff] }
 0x22d   : > { %12154 = vmatprep.mubr.msk.f32.mxu1 %vm1334_vm7, %v2072_v18  ;;  %v16069_v31 = vpop.permute.xlu0 %2607  ;;  %v12404_v54 = vpack.c.bf16 %v11300_v29, %v11299_v38  ;;  %v16120_v1 = vld [vmem:[#allocation2 + $0x6f] sm:$0xff]  ;;  %v16126_v37 = vld [vmem:[#allocation2 + $0x87] sm:$0xff] }
 0x22e   : > { %1071 = vrot.lane.b32.xlu1 %v2518_v2, %s14835_s13  ;;  %v2045_v55 = vsel %vm790_vm4, %v16120_v1, %v15672_v12  ;;  %v2046_v39 = vsel %vm790_vm4, %v16126_v37, %v15713_v40  ;;  %v11303_v12 = vld [vmem:[%s20212_s3 + $0x100] sm:$0xff] }
 0x22f   : > { %2631 = vrot.lane.b32.xlu0 %v2519_v0, %s14835_s13  ;;  %v2077_v18 = vsel %vm1289_vm6, %v2045_v55, %v15678_v15  ;;  %v11304_v0 = vld [vmem:[%s20212_s3 + $0x108] sm:$0xff] }
 0x230   : > { %v16089_v2 = vpop.permute.xlu1 %2002  ;;  %12155 = vmatmul.mubr.msk.f32.vlgmr.msra.gmra.mrb[12].mxu1 %vm1334_vm7, %v2073_v58  ;;  %v16147_v15 = vld [vmem:[#allocation2 + $0x8f] sm:$0xff]  ;;  %v16155_v29 = vld [vmem:[#allocation2 + $0xa7] sm:$0xff] }
 0x231   : > { %12399 = vmatpush3.bf16.msra.mxu1 %v15920_v25  ;;  %12157 = vmatprep.mubr.msk.f32.mxu1 %vm1334_vm7, %v2074_v41  ;;  %v16094_v6 = vpop.permute.xlu0 %2735  ;;  %v2044_v25 = vsel %vm790_vm4, %v16099_v14, %v15680_v16  ;;  %v2047_v38 = vsel %vm790_vm4, %v16147_v15, %v15705_v33  ;;  %v12412_v41 = vpack.c.bf16 %v11304_v0, %v11303_v12  ;;  %v1700_v12 = vld [vmem:[#allocation2 + $0xe7] sm:$0xff] }
 0x232   : > { %1199 = vrot.lane.b32.xlu1 %v16009_v5, %s14836_s14  ;;  %12401 = vmatprep.subr.bf16.mxu1 %v12400_v61  ;;  %v11302_v5 = vld [vmem:[%s20212_s3 + $0xf8] sm:$0xff]  ;;  %v2076_v7 = vsel %vm1289_vm6, %v2044_v25, %v15686_v20  ;;  %v2079_v62 = vsel %vm1289_vm6, %v2047_v38, %v15711_v36  ;;  %v2524_v25 = vld [vmem:[#allocation2 + $0x190] sm:$0xff] }
 0x233   : > { %2759 = vrot.lane.b32.xlu0 %v2551_v3, %s14836_s14  ;;  %v12408_v20 = vpack.c.bf16 %v11302_v5, %v11301_v49  ;;  %v2048_v3 = vsel %vm790_vm4, %v16155_v29, %v15727_v48  ;;  %v11306_v36 = vld [vmem:[%s20212_s3 + $0x118] sm:$0xff]  ;;  %v16176_v48 = vld [vmem:[#allocation2 + $0xaf] sm:$0xff]  ;;  %v16184_v49 = vld [vmem:[#allocation2 + $0xc7] sm:$0xff] }
 0x234   : > { %v16117_v50 = vpop.permute.xlu1 %2609  ;;  %12158 = vmatmul.mubr.msk.f32.gmra.mrb[14].mxu1 %vm1334_vm7, %v2075_v59  ;;  %v2080_v33 = vsel %vm1289_vm6, %v2048_v3, %v15736_v8  ;;  %v11305_v59 = vld [vmem:[%s20212_s3 + $0x110] sm:$0xff]  ;;  %v2049_v8 = vsel %vm790_vm4, %v16176_v48, %v15717_v43  ;;  %v2521_v5 = vld [vmem:[#allocation2 + $0x168] sm:$0xff] }
 0x235   : > { %12160 = vmatprep.mubr.msk.f32.mxu1 %vm1334_vm7, %v2076_v7  ;;  %v1046_v16 = vpop.permute.xlu0 %1045  ;;  %12403 = vmatpush3.bf16.msra.mxu1 %v12400_v61  ;;  %v2078_v61 = vsel %vm1289_vm6, %v2046_v39, %v15719_v44  ;;  %v2081_v7 = vsel %vm1289_vm6, %v2049_v8, %v15725_v46  ;;  %v2553_v0 = vld [vmem:[#allocation2 + $0x169] sm:$0xff] }
 0x236   : > { %2637 = vrot.lane.b32.xlu1 %v2522_v57, %s14835_s13  ;;  %12405 = vmatprep.subr.bf16.mxu1 %v12404_v54  ;;  %v1263_v40 = vsel %vm790_vm4, %v16099_v14, %v1046_v16  ;;  %v2050_v16 = vsel %vm790_vm4, %v16184_v49, %v15746_v17  ;;  %v12416_v57 = vpack.c.bf16 %v11306_v36, %v11305_v59  ;;  %v2556_v17 = vld [vmem:[#allocation2 + $0x191] sm:$0xff]  ;;  %v1704_v36 = vld [vmem:[#allocation2 + $0x127] sm:$0xff] }
 0x237   : > { %1069 = vrot.lane.b32.xlu0 %v16017_v24, %s14835_s13  ;;  %v2082_v55 = vsel %vm1289_vm6, %v2050_v16, %v15754_v22  ;;  %v1705_v16 = vld [vmem:[#allocation2 + $0x12f] sm:$0xff] }
 0x238   : > { %v16144_v58 = vpop.permute.xlu1 %2737  ;;  %12161 = vmatmul.mubr.msk.f32.gmra.mrb[16].mxu1 %vm1334_vm7, %v2077_v18  ;;  %v16198_v18 = vld [vmem:[#allocation2 + $0xcf] sm:$0xff] }
 0x239   : > { %12163 = vmatprep.mubr.msk.f32.mxu1 %vm1334_vm7, %v2078_v61  ;;  %v1174_v24 = vpop.permute.xlu0 %1173  ;;  %12407 = vmatpush3.bf16.msra.mxu1 %v12404_v54  ;;  %v2051_v22 = vsel %vm790_vm4, %v16198_v18, %v15734_v4  ;;  %v1701_v4 = vld [vmem:[#allocation2 + $0xef] sm:$0xff] }
 0x23a   : > { %v1296_v44 = vsel %vm1289_vm6, %v1263_v40, %v1174_v24  ;;  %2765 = vrot.lane.b32.xlu1 %v2554_v32, %s14836_s14  ;;  %12409 = vmatprep.subr.bf16.mxu1 %v12408_v20  ;;  %v2083_v61 = vsel %vm1289_vm6, %v2051_v22, %v15742_v11  ;;  %v2052_v40 = vsel %vm790_vm4, %v1700_v12, %v15764_v30  ;;  %v1702_v30 = vld [vmem:[#allocation2 + $0x107] sm:$0xff] }
 0x23b   : > { %1197 = vrot.lane.b32.xlu0 %v16028_v45, %s14836_s14  ;;  %12091 = vmatprep.mubr.msk.f32.mxu0 %vm1334_vm7, %v1296_v44  ;;  %v2084_v24 = vsel %vm1289_vm6, %v2052_v40, %v15772_v34  ;;  %v2526_v44 = vld [vmem:[#allocation2 + $0x1b0] sm:$0xff]  ;;  %v2053_v11 = vsel %vm790_vm4, %v1701_v4, %v15752_v21  ;;  %v20327_v12 = vld [vmem:[#allocation18_spill] sm:$0xff] }
 0x23c   : > { %v1048_v54 = vpop.permute.xlu1 %1047  ;;  %12164 = vmatmul.mubr.msk.f32.gmra.mrb[18].mxu1 %vm1334_vm7, %v2079_v62  ;;  %v2085_v34 = vsel %vm1289_vm6, %v2053_v11, %v15762_v23  ;;  %v2054_v62 = vsel %vm790_vm4, %v1702_v30, %v15780_v42  ;;  %v1703_v21 = vld [vmem:[#allocation2 + $0x10f] sm:$0xff]  ;;  %v20330_v4 = vld [vmem:[#allocation26_spill] sm:$0xff] }
 0x23d   : > { %12166 = vmatprep.mubr.msk.f32.mxu1 %vm1334_vm7, %v2080_v33  ;;  %v16179_v45 = vpop.permute.xlu0 %2611  ;;  %12411 = vmatpush3.bf16.msra.mxu1 %v12408_v20  ;;  %v1264_v43 = vsel %vm790_vm4, %v16120_v1, %v1048_v54  ;;  %v2086_v3 = vsel %vm1289_vm6, %v2054_v62, %v15792_v35  ;;  %v2558_v23 = vld [vmem:[#allocation2 + $0x1b1] sm:$0xff]  ;;  %v2055_v42 = vsel %vm790_vm4, %v1703_v21, %v15770_v53  ;;  %v2555_v35 = vld [vmem:[#allocation2 + $0x189] sm:$0xff]  ;;  %v20333_v62 = vld [vmem:[#allocation22_spill] sm:$0xff] }
 0x23e   : > { %2641 = vrot.lane.b32.xlu1 %v2524_v25, %s14835_s13  ;;  %12413 = vmatprep.subr.bf16.mxu1 %v12412_v41  ;;  %v2087_v8 = vsel %vm1289_vm6, %v2055_v42, %v15778_v63  ;;  %v2057_v63 = vsel %vm790_vm4, %v1705_v16, %v15788_v26  ;;  %v20329_v40 = vld [vmem:[#allocation19_spill] sm:$0xff]  ;;  %v20332_v11 = vld [vmem:[#allocation28_spill] sm:$0xff] }
 0x23f   : > { %2635 = vrot.lane.b32.xlu0 %v2521_v5, %s14835_s13  ;;  %v2056_v5 = vsel %vm790_vm4, %v1704_v36, %v15800_v9  ;;  %v2525_v9 = vld [vmem:[#allocation2 + $0x1a8] sm:$0xff] }
 0x240   : > { %v1176_v20 = vpop.permute.xlu1 %1175  ;;  %12167 = vmatmul.mubr.msk.f32.gmra.mrb[20].mxu1 %vm1334_vm7, %v2081_v7  ;;  %v2088_v7 = vsel %vm1289_vm6, %v2056_v5, %v15806_v19  ;;  %v2058_v19 = vsel %vm790_vm4, %v15832_v52, %v15838_v10  ;;  %v2560_v52 = vld [vmem:[#allocation2 + $0x1d1] sm:$0xff]  ;;  %v20337_v36 = vld [vmem:[#allocation35_spill] sm:$0xff] }
 0x241   : > { %v1297_v46 = vsel %vm1289_vm6, %v1264_v43, %v1176_v20  ;;  %12169 = vmatprep.mubr.msk.f32.mxu1 %vm1334_vm7, %v2082_v55  ;;  %v16202_v39 = vpop.permute.xlu0 %2739  ;;  %12415 = vmatpush3.bf16.msra.mxu1 %v12412_v41  ;;  %v2523_v41 = vld [vmem:[#allocation2 + $0x188] sm:$0xff]  ;;  %v2528_v55 = vld [vmem:[#allocation2 + $0x1d0] sm:$0xff]  ;;  %v2089_v43 = vsel %vm1289_vm6, %v2057_v63, %v15798_v28 }
 0x242   : > { %2769 = vrot.lane.b32.xlu1 %v2556_v17, %s14836_s14  ;;  %12092 = vmatmul.mubr.msk.f32.gmra.mrb[38].mxu0 %vm1334_vm7, %v1297_v46  ;;  %v2090_v46 = vsel %vm1289_vm6, %v2058_v19, %v15855_v47  ;;  %v2557_v47 = vld [vmem:[#allocation2 + $0x1a9] sm:$0xff]  ;;  %v20343_v19 = vld [vmem:[#allocation34_spill] sm:$0xff] }
 0x243   : > { %2763 = vrot.lane.b32.xlu0 %v2553_v0, %s14836_s14  ;;  %12417 = vmatprep.subr.bf16.mxu1 %v12416_v57  ;;  %v20328_v0 = vld [vmem:[#allocation20_spill] sm:$0xff]  ;;  %v20340_v16 = vld [vmem:[#allocation31_spill] sm:$0xff] }
 0x244   : > { %v16216_v32 = vpop.permute.xlu1 %2613  ;;  %12170 = vmatmul.mubr.msk.f32.gmra.mrb[22].mxu1 %vm1334_vm7, %v2083_v61  ;;  %v2059_v61 = vsel %vm790_vm4, %v20328_v0, %v20327_v12 }
 0x245   : > { %12172 = vmatprep.mubr.msk.f32.mxu1 %vm1334_vm7, %v2084_v24  ;;  %v1050_v38 = vpop.permute.xlu0 %1049  ;;  %12419 = vmatpush3.bf16.msra.mxu1 %v12416_v57  ;;  %v2091_v24 = vsel %vm1289_vm6, %v2059_v61, %v20329_v40  ;;  %v20348_v40 = vld [vmem:[#allocation39_spill] sm:$0xff] }
 0x246   : > { %2645 = vrot.lane.b32.xlu1 %v2526_v44, %s14835_s13  ;;  %v1265_v54 = vsel %vm790_vm4, %v16126_v37, %v1050_v38  ;;  %v20331_v38 = vld [vmem:[#allocation21_spill] sm:$0xff] }
 0x247   : > { %2639 = vrot.lane.b32.xlu0 %v2523_v41, %s14835_s13  ;;  %v2060_v44 = vsel %vm790_vm4, %v20331_v38, %v20330_v4  ;;  %v20349_v4 = vld [vmem:[#allocation24_spill] sm:$0xff]  ;;  %v2529_v38 = vld [vmem:[#allocation2 + $0x1e8] sm:$0xff] }
 0x248   : > { %v16230_v33 = vpop.permute.xlu1 %2741  ;;  %12173 = vmatmul.mubr.msk.f32.gmra.mrb[24].mxu1 %vm1334_vm7, %v2085_v34  ;;  %v2092_v30 = vsel %vm1289_vm6, %v2060_v44, %v20332_v11  ;;  %v20350_v44 = vld [vmem:[#allocation40_spill] sm:$0xff] }
 0x249   : > { %12175 = vmatprep.mubr.msk.f32.mxu1 %vm1334_vm7, %v2086_v3  ;;  %v1178_v59 = vpop.permute.xlu0 %1177  ;;  %v20334_v3 = vld [vmem:[#allocation23_spill] sm:$0xff] }
 0x24a   : > { %v1298_v25 = vsel %vm1289_vm6, %v1265_v54, %v1178_v59  ;;  %2773 = vrot.lane.b32.xlu1 %v2558_v23, %s14836_s14  ;;  %v2061_v21 = vsel %vm790_vm4, %v20334_v3, %v20333_v62  ;;  %v20335_v54 = vld [vmem:[#allocation14_spill] sm:$0xff]  ;;  %v20336_v23 = vld [vmem:[#allocation25_spill] sm:$0xff]  ;;  %v20352_v62 = vld [vmem:[#allocation43_spill] sm:$0xff] }
 0x24b   : > { %2767 = vrot.lane.b32.xlu0 %v2555_v35, %s14836_s14  ;;  %12094 = vmatprep.mubr.msk.f32.mxu0 %vm1334_vm7, %v1298_v25  ;;  %v2527_v59 = vld [vmem:[#allocation2 + $0x1c8] sm:$0xff]  ;;  %v2093_v42 = vsel %vm1289_vm6, %v2061_v21, %v20336_v23  ;;  %v20353_v21 = vld [vmem:[#allocation48_spill] sm:$0xff] }
 0x24c   : > { %v1052_v53 = vpop.permute.xlu1 %1051  ;;  %12176 = vmatmul.mubr.msk.f32.gmra.mrb[26].mxu1 %vm1334_vm7, %v2087_v8  ;;  %v20338_v25 = vld [vmem:[#allocation30_spill] sm:$0xff]  ;;  %v20339_v8 = vld [vmem:[#allocation36_spill] sm:$0xff] }
 0x24d   : > { %12178 = vmatprep.mubr.msk.f32.mxu1 %vm1334_vm7, %v2088_v7  ;;  %v16250_v57 = vpop.permute.xlu0 %2615  ;;  %v1266_v26 = vsel %vm790_vm4, %v16147_v15, %v1052_v53  ;;  %v2062_v35 = vsel %vm790_vm4, %v20338_v25, %v20337_v36  ;;  %v20355_v36 = vld [vmem:[#allocation45_spill] sm:$0xff] }
 0x24e   : > { %2649 = vrot.lane.b32.xlu1 %v2528_v55, %s14835_s13  ;;  %v2094_v5 = vsel %vm1289_vm6, %v2062_v35, %v20339_v8  ;;  %v20341_v55 = vld [vmem:[#allocation32_spill] sm:$0xff]  ;;  %v20356_v35 = vld [vmem:[#allocation27_spill] sm:$0xff] }
 0x24f   : > { %2643 = vrot.lane.b32.xlu0 %v2525_v9, %s14835_s13  ;;  %v16261_v20 = vpop.f32.mrb[34].mxu0  ;;  %v2063_v63 = vsel %vm790_vm4, %v20341_v55, %v20340_v16  ;;  %v20342_v9 = vld [vmem:[#allocation15_spill] sm:$0xff] }
 0x250   : > { %v1180_v17 = vpop.permute.xlu1 %1179  ;;  %v16267_v22 = vpop.f32.mrb[35].mxu0  ;;  %12179 = vmatmul.mubr.msk.f32.gmra.mrb[28].mxu1 %vm1334_vm7, %v2089_v43  ;;  %v2559_v43 = vld [vmem:[#allocation2 + $0x1c9] sm:$0xff] }
 0x251   : > { %v1299_v28 = vsel %vm1289_vm6, %v1266_v26, %v1180_v17  ;;  %12181 = vmatprep.mubr.msk.f32.mxu1 %vm1334_vm7, %v2090_v46  ;;  %v16272_v10 = vpop.permute.xlu0 %2743  ;;  %v2095_v46 = vsel %vm1289_vm6, %v2063_v63, %v20343_v19  ;;  %v20344_v26 = vld [vmem:[#allocation41_spill] sm:$0xff]  ;;  %v2561_v8 = vld [vmem:[#allocation2 + $0x1e9] sm:$0xff] }
 0x252   : > { %2777 = vrot.lane.b32.xlu1 %v2560_v52, %s14836_s14  ;;  %12095 = vmatmul.mubr.msk.f32.gmra.mrb[40].mxu0 %vm1334_vm7, %v1299_v28  ;;  %v20345_v17 = vld [vmem:[#allocation37_spill] sm:$0xff]  ;;  %v20346_v52 = vld [vmem:[#allocation42_spill] sm:$0xff]  ;;  %v2534_v63 = vld [vmem:[#allocation2 + $0x230] sm:$0xff] }
 0x253   : > { %2771 = vrot.lane.b32.xlu0 %v2557_v47, %s14836_s14  ;;  %v2064_v28 = vsel %vm790_vm4, %v20345_v17, %v20344_v26  ;;  %v20347_v47 = vld [vmem:[#allocation38_spill] sm:$0xff]  ;;  %v20358_v26 = vld [vmem:[#allocation29_spill] sm:$0xff] }
 0x254   : > { %v16287_v41 = vpop.permute.xlu1 %2617  ;;  %12182 = vmatmul.mubr.msk.f32.gmra.mrb[30].mxu1 %vm1334_vm7, %v2091_v24  ;;  %v2096_v12 = vsel %vm1289_vm6, %v2064_v28, %v20346_v52  ;;  %v2065_v24 = vsel %vm790_vm4, %v20348_v40, %v20347_v47  ;;  %v2566_v28 = vld [vmem:[#allocation2 + $0x231] sm:$0xff]  ;;  %v16361_v52 = vld [vmem:[#allocation2 + $0x207] sm:$0xff] }
 0x255   : > { %12184 = vmatprep.mubr.msk.f32.mxu1 %vm1334_vm7, %v2092_v30  ;;  %v16291_v34 = vpop.permute.xlu0 %1053  ;;  %v2097_v11 = vsel %vm1289_vm6, %v2065_v24, %v20350_v44  ;;  %v20351_v30 = vld [vmem:[#allocation47_spill] sm:$0xff] }
 0x256   : > { %2653 = vrot.lane.b32.xlu1 %v20335_v54, %s14835_s13  ;;  %v2066_v3 = vsel %vm790_vm4, %v20352_v62, %v20351_v30  ;;  %v20361_v30 = vld [vmem:[#allocation9_spill] sm:$0xff] }
 0x257   : > { %2647 = vrot.lane.b32.xlu0 %v2527_v59, %s14835_s13  ;;  %v2098_v54 = vsel %vm1289_vm6, %v2066_v3, %v20353_v21 }
 0x258   : > { %v16306_v7 = vpop.permute.xlu1 %2745  ;;  %12185 = vmatmul.mubr.msk.f32.gmra.mrb[0].mxu1 %vm1334_vm7, %v2093_v42  ;;  %v20354_v42 = vld [vmem:[#allocation44_spill] sm:$0xff] }
 0x259   : > { %12187 = vmatprep.mubr.msk.f32.mxu1 %vm1334_vm7, %v2094_v5  ;;  %v1873_v53 = vpop.permute.xlu0 %1872  ;;  %v2067_v25 = vsel %vm790_vm4, %v20355_v36, %v20354_v42  ;;  %v20357_v5 = vld [vmem:[#allocation46_spill] sm:$0xff] }
 0x25a   : > { %2781 = vrot.lane.b32.xlu1 %v20342_v9, %s14836_s14  ;;  %v2099_v16 = vsel %vm1289_vm6, %v2067_v25, %v20357_v5  ;;  %v2068_v55 = vsel %vm790_vm4, %v16039_v56, %v1873_v53  ;;  %v20362_v42 = vld [vmem:[#allocation6_spill] sm:$0xff]  ;;  %v20363_v5 = vld [vmem:[#allocation8_spill] sm:$0xff] }
 0x25b   : > { %2775 = vrot.lane.b32.xlu0 %v2559_v43, %s14836_s14  ;;  %v2824_v25 = vsel %vm790_vm4, %v16034_v51, %v20362_v42  ;;  %v2484_v42 = vld [vmem:[#allocation2 + $0x10f] sm:$0xff] }
 0x25c   : > { %v1879_v0 = vpop.permute.xlu1 %1878  ;;  %12188 = vmatmul.mubr.msk.f32.gmra.mrb[2].mxu1 %vm1334_vm7, %v2095_v46  ;;  %v2069_v46 = vsel %vm790_vm4, %v16041_v13, %v16065_v27 }
 0x25d   : > { %12190 = vmatprep.mubr.msk.f32.mxu1 %vm1334_vm7, %v2096_v12  ;;  %v2001_v61 = vpop.permute.xlu0 %2000  ;;  %v2101_v53 = vsel %vm1289_vm6, %v2069_v46, %v16089_v2 }
 0x25e   : > { %2657 = vrot.lane.b32.xlu1 %v20349_v4, %s14835_s13  ;;  %v2100_v9 = vsel %vm1289_vm6, %v2068_v55, %v2001_v61  ;;  %v16366_v61 = vld [vmem:[#allocation2 + $0x20f] sm:$0xff] }
 0x25f   : > { %2651 = vrot.lane.b32.xlu0 %v2529_v38, %s14835_s13  ;;  %v2071_v24 = vsel %vm790_vm4, %v16366_v61, %v1879_v0  ;;  %v20359_v4 = vld [vmem:[#allocation7_spill] sm:$0xff]  ;;  %v20364_v55 = vld [vmem:[#allocation12_spill] sm:$0xff] }
 0x260   : > { %v1056_v59 = vpop.permute.xlu1 %1055  ;;  %12191 = vmatmul.mubr.msk.f32.gmra.mrb[4].mxu1 %vm1334_vm7, %v2097_v11  ;;  %v2823_v38 = vsel %vm790_vm4, %v16021_v60, %v20359_v4  ;;  %v20360_v11 = vld [vmem:[#allocation33_spill] sm:$0xff]  ;;  %v2533_v0 = vld [vmem:[#allocation2 + $0x228] sm:$0xff] }
 0x261   : > { %12193 = vmatprep.mubr.msk.f32.mxu1 %vm1334_vm7, %v2098_v54  ;;  %v2007_v23 = vpop.permute.xlu0 %2006  ;;  %v2855_v3 = vsel %vm1289_vm6, %v2823_v38, %v20361_v30  ;;  %v1267_v54 = vsel %vm790_vm4, %v16155_v29, %v16291_v34  ;;  %v916_v60 = vld [vmem:[#allocation2 + $0xaf] sm:$0xff] }
 0x262   : > { %2785 = vrot.lane.b32.xlu1 %v20356_v35, %s14836_s14  ;;  %v2103_v44 = vsel %vm1289_vm6, %v2071_v24, %v2007_v23  ;;  %v1268_v35 = vsel %vm790_vm4, %v916_v60, %v1056_v59  ;;  %v2565_v59 = vld [vmem:[#allocation2 + $0x229] sm:$0xff] }
 0x263   : > { %2779 = vrot.lane.b32.xlu0 %v2561_v8, %s14836_s14  ;;  %v918_v38 = vld [vmem:[#allocation2 + $0xcf] sm:$0xff]  ;;  %v2483_v60 = vld [vmem:[#allocation2 + $0x107] sm:$0xff] }
 0x264   : > { %v1184_v43 = vpop.permute.xlu1 %1183  ;;  %12194 = vmatmul.mubr.msk.f32.gmra.mrb[6].mxu1 %vm1334_vm7, %v2099_v16  ;;  %v2856_v16 = vsel %vm1289_vm6, %v2824_v25, %v20363_v5 }
 0x265   : > { %12196 = vmatprep.mubr.msk.f32.mxu1 %vm1334_vm7, %v2100_v9  ;;  %v1877_v19 = vpop.permute.xlu0 %1876  ;;  %v1301_v34 = vsel %vm1289_vm6, %v1268_v35, %v1184_v43  ;;  %v20365_v9 = vld [vmem:[#allocation13_spill] sm:$0xff]  ;;  %v20367_v43 = vld [vmem:[#allocation11_spill] sm:$0xff] }
 0x266   : > { %2661 = vrot.lane.b32.xlu1 %v2534_v63, %s14835_s13  ;;  %v2070_v27 = vsel %vm790_vm4, %v16361_v52, %v1877_v19  ;;  %v2825_v63 = vsel %vm790_vm4, %v16099_v14, %v20364_v55 }
 0x267   : > { %2655 = vrot.lane.b32.xlu0 %v20358_v26, %s14835_s13  ;;  %v2857_v51 = vsel %vm1289_vm6, %v2825_v63, %v20365_v9 }
 0x268   : > { %v16363_v12 = vpop.permute.xlu1 %2621  ;;  %12197 = vmatmul.mubr.msk.f32.gmra.mrb[8].mxu1 %vm1334_vm7, %v2101_v53  ;;  %v20366_v53 = vld [vmem:[#allocation10_spill] sm:$0xff] }
 0x269   : > { %v2005_v47 = vpop.permute.xlu0 %2004  ;;  %v2826_v14 = vsel %vm790_vm4, %v16120_v1, %v20366_v53  ;;  %v2828_v1 = vsel %vm790_vm4, %v16147_v15, %v16117_v50  ;;  %v2830_v50 = vsel %vm790_vm4, %v16176_v48, %v16216_v32  ;;  %v2831_v15 = vsel %vm790_vm4, %v16184_v49, %v16250_v57  ;;  %v2481_v49 = vld [vmem:[#allocation2 + $0xe7] sm:$0xff] }
 0x26a   : > { %v2102_v2 = vsel %vm1289_vm6, %v2070_v27, %v2005_v47  ;;  %2789 = vrot.lane.b32.xlu1 %v2566_v28, %s14836_s14  ;;  %v2858_v26 = vsel %vm1289_vm6, %v2826_v14, %v20367_v43  ;;  %v2827_v28 = vsel %vm790_vm4, %v16126_v37, %v16069_v31  ;;  %v2829_v31 = vsel %vm790_vm4, %v16155_v29, %v16179_v45  ;;  %v917_v45 = vld [vmem:[#allocation2 + $0xc7] sm:$0xff]  ;;  %v2486_v43 = vld [vmem:[#allocation2 + $0x12f] sm:$0xff] }
 0x26b   : > { %2783 = vrot.lane.b32.xlu0 %v20360_v11, %s14836_s14  ;;  %12199 = vmatprep.mubr.msk.f32.mxu1 %vm1334_vm7, %v2102_v2  ;;  %v2859_v27 = vsel %vm1289_vm6, %v2827_v28, %v16094_v6  ;;  %v2860_v2 = vsel %vm1289_vm6, %v2828_v1, %v16144_v58  ;;  %v2861_v6 = vsel %vm1289_vm6, %v2829_v31, %v16202_v39  ;;  %v2485_v53 = vld [vmem:[#allocation2 + $0x127] sm:$0xff] }
 0x26c   : > { %v16383_v21 = vpop.permute.xlu1 %2749  ;;  %12200 = vmatmul.mubr.msk.f32.gmra.mrb[10].mxu1 %vm1334_vm7, %v2103_v44  ;;  %v2862_v58 = vsel %vm1289_vm6, %v2830_v50, %v16230_v33  ;;  %v2863_v29 = vsel %vm1289_vm6, %v2831_v15, %v16272_v10  ;;  %v2832_v32 = vsel %vm790_vm4, %v16198_v18, %v16287_v41  ;;  %v2482_v18 = vld [vmem:[#allocation2 + $0xef] sm:$0xff]  ;;  %v3285_v1 = vld [vmem:[%s20214_s5] sm:$0xff] }
 0x26d   : > { %12226 = vmatprep.mubr.msk.f32.mxu1 %vm1334_vm7, %v2855_v3  ;;  %v1182_v23 = vpop.permute.xlu0 %1181  ;;  %v2864_v10 = vsel %vm1289_vm6, %v2832_v32, %v16306_v7  ;;  %v2834_v7 = vsel %vm790_vm4, %v2482_v18, %v16363_v12  ;;  %v2488_v32 = vld [vmem:[#allocation2 + $0x14f] sm:$0xff] }
 0x26e   : > { %v1300_v8 = vsel %vm1289_vm6, %v1267_v54, %v1182_v23  ;;  %v2866_v54 = vsel %vm1289_vm6, %v2834_v7, %v16383_v21  ;;  %v3290_v7 = vld [vmem:[%s20214_s5 + $0x28] sm:$0xff] }
 0x26f   : > { %2659 = vrot.lane.b32.xlu0 %v2533_v0, %s14835_s13  ;;  %12097 = vmatprep.mubr.msk.f32.mxu0 %vm1334_vm7, %v1300_v8 }
 0x270   : > { %v1060_v19 = vpop.permute.xlu1 %1059  ;;  %12098 = vmatmul.mubr.msk.f32.gmra.mrb[42].mxu0 %vm1334_vm7, %v1301_v34  ;;  %12227 = vmatmul.mubr.msk.f32.vlgmr.msra.gmra.mrb[12].mxu1 %vm1334_vm7, %v2856_v16 }
 0x271   : > { %12229 = vmatprep.mubr.msk.f32.mxu1 %vm1334_vm7, %v2857_v51  ;;  %v2620_v46 = vpop.permute.xlu0 %2619  ;;  %v1270_v33 = vsel %vm790_vm4, %v918_v38, %v1060_v19 }
 0x272   : > { %v2833_v11 = vsel %vm790_vm4, %v2481_v49, %v2620_v46 }
 0x273   : > { %2787 = vrot.lane.b32.xlu0 %v2565_v59, %s14836_s14 }
 0x274   : > { %v1188_v47 = vpop.permute.xlu1 %1187  ;;  %12230 = vmatmul.mubr.msk.f32.gmra.mrb[14].mxu1 %vm1334_vm7, %v2858_v26 }
 0x275   : > { %12232 = vmatprep.mubr.msk.f32.mxu1 %vm1334_vm7, %v2859_v27  ;;  %v2748_v24 = vpop.permute.xlu0 %2747  ;;  %v1303_v30 = vsel %vm1289_vm6, %v1270_v33, %v1188_v47 }
 0x276   : > { %v2865_v3 = vsel %vm1289_vm6, %v2833_v11, %v2748_v24 }
 0x278   : > { %v2626_v37 = vpop.permute.xlu1 %2625  ;;  %12233 = vmatmul.mubr.msk.f32.gmra.mrb[16].mxu1 %vm1334_vm7, %v2860_v2  ;;  %v3286_v2 = vld [vmem:[%s20214_s5 + $0x8] sm:$0xff] }
 0x279   : > { %12235 = vmatprep.mubr.msk.f32.mxu1 %vm1334_vm7, %v2861_v6  ;;  %v1058_v4 = vpop.permute.xlu0 %1057  ;;  %v2836_v8 = vsel %vm790_vm4, %v2484_v42, %v2626_v37  ;;  %v12420_v6 = vpack.c.bf16 %v3286_v2, %v3285_v1 }
 0x27a   : > { %v1269_v44 = vsel %vm790_vm4, %v917_v45, %v1058_v4 }
 0x27b   : > { %12421 = vmatprep.subr.bf16.mxu0 %v12420_v6 }
 0x27c   : > { %v2754_v39 = vpop.permute.xlu1 %2753  ;;  %12236 = vmatmul.mubr.msk.f32.gmra.mrb[18].mxu1 %vm1334_vm7, %v2862_v58  ;;  %12423 = vmatpush3.bf16.msra.mxu0 %v12420_v6 }
 0x27d   : > { %12238 = vmatprep.mubr.msk.f32.mxu1 %vm1334_vm7, %v2863_v29  ;;  %v1186_v48 = vpop.permute.xlu0 %1185  ;;  %v2868_v16 = vsel %vm1289_vm6, %v2836_v8, %v2754_v39 }
 0x27e   : > { %v1302_v57 = vsel %vm1289_vm6, %v1269_v44, %v1186_v48  ;;  %v2487_v44 = vld [vmem:[#allocation2 + $0x147] sm:$0xff] }
 0x27f   : > { %12100 = vmatprep.mubr.msk.f32.mxu0 %vm1334_vm7, %v1302_v57 }
 0x280   : > { %v1064_v0 = vpop.permute.xlu1 %1063  ;;  %12101 = vmatmul.mubr.msk.f32.gmra.mrb[44].mxu0 %vm1334_vm7, %v1303_v30  ;;  %12239 = vmatmul.mubr.msk.f32.gmra.mrb[20].mxu1 %vm1334_vm7, %v2864_v10  ;;  %v3287_v30 = vld [vmem:[%s20214_s5 + $0x10] sm:$0xff] }
 0x281   : > { %12241 = vmatprep.mubr.msk.f32.mxu1 %vm1334_vm7, %v2865_v3  ;;  %v2624_v41 = vpop.permute.xlu0 %2623  ;;  %v1272_v9 = vsel %vm790_vm4, %v2482_v18, %v1064_v0  ;;  %v3288_v3 = vld [vmem:[%s20214_s5 + $0x18] sm:$0xff]  ;;  %v3289_v0 = vld [vmem:[%s20214_s5 + $0x20] sm:$0xff] }
 0x282   : > { %v2835_v25 = vsel %vm790_vm4, %v2483_v60, %v2624_v41  ;;  %v12424_v41 = vpack.c.bf16 %v3288_v3, %v3287_v30 }
 0x284   : > { %v1192_v23 = vpop.permute.xlu1 %1191  ;;  %12242 = vmatmul.mubr.msk.f32.gmra.mrb[22].mxu1 %vm1334_vm7, %v2866_v54  ;;  %12425 = vmatprep.subr.bf16.mxu0 %v12424_v41 }
 0x285   : > { %v2752_v35 = vpop.permute.xlu0 %2751  ;;  %v1305_v19 = vsel %vm1289_vm6, %v1272_v9, %v1192_v23  ;;  %v3291_v23 = vld [vmem:[%s20214_s5 + $0x30] sm:$0xff]  ;;  %12427 = vmatpush3.bf16.msra.mxu0 %v12424_v41 }
 0x286   : > { %v2867_v5 = vsel %vm1289_vm6, %v2835_v25, %v2752_v35 }
 0x287   : > { %12244 = vmatprep.mubr.msk.f32.mxu1 %vm1334_vm7, %v2867_v5 }
 0x288   : > { %v2630_v12 = vpop.permute.xlu1 %2629  ;;  %12245 = vmatmul.mubr.msk.f32.gmra.mrb[24].mxu1 %vm1334_vm7, %v2868_v16 }
 0x289   : > { %v1062_v21 = vpop.permute.xlu0 %1061  ;;  %v2838_v27 = vsel %vm790_vm4, %v2486_v43, %v2630_v12 }
 0x28a   : > { %v1271_v63 = vsel %vm790_vm4, %v2481_v49, %v1062_v21 }
 0x28c   : > { %v2758_v55 = vpop.permute.xlu1 %2757 }
 0x28d   : > { %v1190_v34 = vpop.permute.xlu0 %1189  ;;  %v2870_v24 = vsel %vm1289_vm6, %v2838_v27, %v2758_v55 }
 0x28e   : > { %v1304_v51 = vsel %vm1289_vm6, %v1271_v63, %v1190_v34  ;;  %v2489_v34 = vld [vmem:[#allocation2 + $0x167] sm:$0xff] }
 0x28f   : > { %12103 = vmatprep.mubr.msk.f32.mxu0 %vm1334_vm7, %v1304_v51  ;;  %v2490_v51 = vld [vmem:[#allocation2 + $0x16f] sm:$0xff] }
 0x290   : > { %v1068_v59 = vpop.permute.xlu1 %1067  ;;  %12104 = vmatmul.mubr.msk.f32.gmra.mrb[46].mxu0 %vm1334_vm7, %v1305_v19 }
 0x291   : > { %v2628_v46 = vpop.permute.xlu0 %2627  ;;  %v1274_v15 = vsel %vm790_vm4, %v2484_v42, %v1068_v59  ;;  %v3292_v42 = vld [vmem:[%s20214_s5 + $0x38] sm:$0xff] }
 0x292   : > { %v2837_v26 = vsel %vm790_vm4, %v2485_v53, %v2628_v46  ;;  %v12432_v35 = vpack.c.bf16 %v3292_v42, %v3291_v23  ;;  %v2502_v23 = vld [vmem:[#allocation2 + $0x22f] sm:$0xff]  ;;  %v2501_v42 = vld [vmem:[#allocation2 + $0x227] sm:$0xff] }
 0x294   : > { %v1196_v14 = vpop.permute.xlu1 %1195 }
 0x295   : > { %v2756_v28 = vpop.permute.xlu0 %2755  ;;  %v1307_v45 = vsel %vm1289_vm6, %v1274_v15, %v1196_v14 }
 0x296   : > { %v2869_v47 = vsel %vm1289_vm6, %v2837_v26, %v2756_v28  ;;  %v2491_v28 = vld [vmem:[#allocation2 + $0x187] sm:$0xff] }
 0x297   : > { %12247 = vmatprep.mubr.msk.f32.mxu1 %vm1334_vm7, %v2869_v47  ;;  %v2492_v47 = vld [vmem:[#allocation2 + $0x18f] sm:$0xff] }
 0x298   : > { %v2634_v31 = vpop.permute.xlu1 %2633  ;;  %12248 = vmatmul.mubr.msk.f32.gmra.mrb[26].mxu1 %vm1334_vm7, %v2870_v24 }
 0x299   : > { %v1066_v37 = vpop.permute.xlu0 %1065  ;;  %v2840_v57 = vsel %vm790_vm4, %v2488_v32, %v2634_v31 }
 0x29a   : > { %v1273_v50 = vsel %vm790_vm4, %v2483_v60, %v1066_v37  ;;  %v12428_v60 = vpack.c.bf16 %v3290_v7, %v3289_v0 }
 0x29c   : > { %v2762_v4 = vpop.permute.xlu1 %2761  ;;  %12429 = vmatprep.subr.bf16.mxu0 %v12428_v60 }
 0x29d   : > { %v1194_v58 = vpop.permute.xlu0 %1193  ;;  %v2872_v11 = vsel %vm1289_vm6, %v2840_v57, %v2762_v4  ;;  %12431 = vmatpush3.bf16.msra.mxu0 %v12428_v60 }
 0x29e   : > { %v1306_v29 = vsel %vm1289_vm6, %v1273_v50, %v1194_v58  ;;  %12433 = vmatprep.subr.bf16.mxu0 %v12432_v35 }
 0x29f   : > { %12106 = vmatprep.mubr.msk.f32.mxu0 %vm1334_vm7, %v1306_v29 }
 0x2a0   : > { %v1072_v39 = vpop.permute.xlu1 %1071  ;;  %12107 = vmatmul.mubr.msk.f32.gmra.mrb[48].mxu0 %vm1334_vm7, %v1307_v45 }
 0x2a1   : > { %v2632_v38 = vpop.permute.xlu0 %2631  ;;  %v1276_v16 = vsel %vm790_vm4, %v2486_v43, %v1072_v39  ;;  %12435 = vmatpush3.bf16.msra.mxu0 %v12432_v35 }
 0x2a2   : > { %v2839_v33 = vsel %vm790_vm4, %v2487_v44, %v2632_v38 }
 0x2a4   : > { %v1200_v48 = vpop.permute.xlu1 %1199 }
 0x2a5   : > { %v2760_v49 = vpop.permute.xlu0 %2759  ;;  %v1309_v21 = vsel %vm1289_vm6, %v1276_v16, %v1200_v48 }
 0x2a6   : > { %v2871_v10 = vsel %vm1289_vm6, %v2839_v33, %v2760_v49 }
 0x2a7   : > { %12250 = vmatprep.mubr.msk.f32.mxu1 %vm1334_vm7, %v2871_v10 }
 0x2a8   : > { %v2638_v18 = vpop.permute.xlu1 %2637  ;;  %12251 = vmatmul.mubr.msk.f32.gmra.mrb[28].mxu1 %vm1334_vm7, %v2872_v11 }
 0x2a9   : > { %v1070_v54 = vpop.permute.xlu0 %1069  ;;  %v2842_v46 = vsel %vm790_vm4, %v2490_v51, %v2638_v18  ;;  %v3799_v51 = vld [vmem:[#allocation3 + $0x8] sm:$0xff] }
 0x2aa   : > { %v1275_v8 = vsel %vm790_vm4, %v2485_v53, %v1070_v54 }
 0x2ac   : > { %v2766_v25 = vpop.permute.xlu1 %2765 }
 0x2ad   : > { %v1198_v5 = vpop.permute.xlu0 %1197  ;;  %v2874_v14 = vsel %vm1289_vm6, %v2842_v46, %v2766_v25  ;;  %v16581_v46 = vld [vmem:[%s20213_s4] ss:$0 sm:$0xff] }
 0x2ae   : > { %v1308_v12 = vsel %vm1289_vm6, %v1275_v8, %v1198_v5 }
 0x2af   : > { %12109 = vmatprep.mubr.msk.f32.mxu0 %vm1334_vm7, %v1308_v12 }
 0x2b0   : > { %v2642_v55 = vpop.permute.xlu1 %2641  ;;  %12110 = vmatmul.mubr.msk.f32.gmra.mrb[50].mxu0 %vm1334_vm7, %v1309_v21 }
 0x2b1   : > { %v2636_v63 = vpop.permute.xlu0 %2635  ;;  %v2844_v2 = vsel %vm790_vm4, %v2492_v47, %v2642_v55  ;;  %v20242_v47 = vmov 0.0|0.0  }
 0x2b2   : > { %v2841_v19 = vsel %vm790_vm4, %v2489_v34, %v2636_v63  ;;  %12436 = vmatprep.subr.bf16.mxu0 %v20242_v47  ;;  %12574 = vmatprep.subr.bf16.mxu1 %v20242_v47 }
 0x2b4   : > { %v2770_v9 = vpop.permute.xlu1 %2769 }
 0x2b5   : > { %v2764_v59 = vpop.permute.xlu0 %2763  ;;  %v2876_v6 = vsel %vm1289_vm6, %v2844_v2, %v2770_v9 }
 0x2b6   : > { %v2873_v53 = vsel %vm1289_vm6, %v2841_v19, %v2764_v59  ;;  %v3800_v19 = vld [vmem:[#allocation3 + $0x10] sm:$0xff] }
 0x2b7   : > { %12253 = vmatprep.mubr.msk.f32.mxu1 %vm1334_vm7, %v2873_v53  ;;  %v13232_v59 = vpack.i.bf16 %v3800_v19, %v3799_v51  ;;  %v20368_v53 = vld [vmem:[#allocation16_spill] sm:$0xff] }
 0x2b8   : > { %v2646_v43 = vpop.permute.xlu1 %2645  ;;  %12254 = vmatmul.mubr.msk.f32.gmra.mrb[30].mxu1 %vm1334_vm7, %v2874_v14  ;;  %v1657_v14 = vadd.f32 %v20368_v53, %v16581_v46 }
 0x2b9   : > { %v2640_v26 = vpop.permute.xlu0 %2639  ;;  %v2846_v29 = vsel %vm790_vm4, %v20348_v40, %v2646_v43  ;;  %13233 = vrot.lane.b32.xlu0 %v13232_v59, %s14836_s14  ;;  %v20369_v43 = vld [vmem:[#allocation17_spill] sm:$0xff] }
 0x2ba   : > { %v2843_v24 = vsel %vm790_vm4, %v2491_v28, %v2640_v26  ;;  %v1656_v26 = vadd.f32 %v16581_v46, %v20369_v43 }
 0x2bc   : > { %v2774_v27 = vpop.permute.xlu1 %2773 }
 0x2bd   : > { %v2768_v1 = vpop.permute.xlu0 %2767  ;;  %v2878_v39 = vsel %vm1289_vm6, %v2846_v29, %v2774_v27 }
 0x2be   : > { %v2875_v31 = vsel %vm1289_vm6, %v2843_v24, %v2768_v1 }
 0x2bf   : > { %12256 = vmatprep.mubr.msk.f32.mxu1 %vm1334_vm7, %v2875_v31  ;;  %v4023_v31 = vld [vmem:[%s20216_s7] sm:$0xff] }
 0x2c0   : > { %v2650_v37 = vpop.permute.xlu1 %2649  ;;  %12257 = vmatmul.mubr.msk.f32.gmra.mrb[0].mxu1 %vm1334_vm7, %v2876_v6  ;;  %v4024_v6 = vld [vmem:[%s20216_s7 + $0x8] sm:$0xff] }
 0x2c1   : > { %v2644_v4 = vpop.permute.xlu0 %2643  ;;  %v12437_v29 = vpack.c.bf16 %v4024_v6, %v4023_v31 }
 0x2c2   : > { %v2845_v58 = vsel %vm790_vm4, %v20345_v17, %v2644_v4  ;;  %v2848_v17 = vsel %vm790_vm4, %v20355_v36, %v2650_v37  ;;  %v1659_v4 = vadd.f32 %v16261_v20, %v16581_v46 }
 0x2c4   : > { %v2778_v50 = vpop.permute.xlu1 %2777 }
 0x2c5   : > { %v2772_v15 = vpop.permute.xlu0 %2771  ;;  %v2880_v49 = vsel %vm1289_vm6, %v2848_v17, %v2778_v50  ;;  %v1658_v50 = vadd.f32 %v16581_v46, %v16267_v22 }
 0x2c6   : > { %v2877_v45 = vsel %vm1289_vm6, %v2845_v58, %v2772_v15 }
 0x2c7   : > { %12259 = vmatprep.mubr.msk.f32.mxu1 %vm1334_vm7, %v2877_v45 }
 0x2c8   : > { %v2654_v38 = vpop.permute.xlu1 %2653  ;;  %12260 = vmatmul.mubr.msk.f32.gmra.mrb[2].mxu1 %vm1334_vm7, %v2878_v39 }
 0x2c9   : > { %v2648_v44 = vpop.permute.xlu0 %2647 }
 0x2ca   : > { %v2847_v32 = vsel %vm790_vm4, %v20352_v62, %v2648_v44  ;;  %v2850_v62 = vsel %vm790_vm4, %v16041_v13, %v2654_v38  ;;  %v4025_v44 = vld [vmem:[%s20216_s7 + $0x10] sm:$0xff] }
 0x2cc   : > { %v2782_v48 = vpop.permute.xlu1 %2781 }
 0x2cd   : > { %v2776_v33 = vpop.permute.xlu0 %2775  ;;  %v2882_v36 = vsel %vm1289_vm6, %v2850_v62, %v2782_v48  ;;  %v4026_v48 = vld [vmem:[%s20216_s7 + $0x18] sm:$0xff] }
 0x2ce   : > { %v2879_v40 = vsel %vm1289_vm6, %v2847_v32, %v2776_v33 }
 0x2cf   : > { %12262 = vmatprep.mubr.msk.f32.mxu1 %vm1334_vm7, %v2879_v40  ;;  %v12440_v40 = vpack.c.bf16 %v4026_v48, %v4025_v44  ;;  %v4037_v48 = vld [vmem:[%s20216_s7 + $0x70] sm:$0xff] }
 0x2d0   : > { %12263 = vmatmul.mubr.msk.f32.gmra.mrb[4].mxu1 %vm1334_vm7, %v2880_v49  ;;  %v2658_v10 = vpop.permute.xlu1 %2657 }
 0x2d1   : > { %v2652_v57 = vpop.permute.xlu0 %2651 }
 0x2d2   : > { %v2849_v11 = vsel %vm790_vm4, %v16039_v56, %v2652_v57  ;;  %v2852_v56 = vsel %vm790_vm4, %v16366_v61, %v2658_v10 }
 0x2d4   : > { %v2786_v0 = vpop.permute.xlu1 %2785 }
 0x2d5   : > { %v2780_v30 = vpop.permute.xlu0 %2779  ;;  %v2884_v60 = vsel %vm1289_vm6, %v2852_v56, %v2786_v0 }
 0x2d6   : > { %v2881_v3 = vsel %vm1289_vm6, %v2849_v11, %v2780_v30  ;;  %v4027_v11 = vld [vmem:[%s20216_s7 + $0x20] sm:$0xff]  ;;  %v4028_v30 = vld [vmem:[%s20216_s7 + $0x28] sm:$0xff] }
 0x2d7   : > { %12265 = vmatprep.mubr.msk.f32.mxu1 %vm1334_vm7, %v2881_v3 }
 0x2d8   : > { %12266 = vmatmul.mubr.msk.f32.gmra.mrb[6].mxu1 %vm1334_vm7, %v2882_v36  ;;  %v2662_v41 = vpop.permute.xlu1 %2661 }
 0x2d9   : > { %v2656_v18 = vpop.permute.xlu0 %2655  ;;  %v2854_v35 = vsel %vm790_vm4, %v2502_v23, %v2662_v41  ;;  %v12443_v41 = vpack.c.bf16 %v4028_v30, %v4027_v11 }
 0x2da   : > { %v2851_v7 = vsel %vm790_vm4, %v16361_v52, %v2656_v18 }
 0x2dc   : > { %v2790_v8 = vpop.permute.xlu1 %2789 }
 0x2dd   : > { %v2784_v54 = vpop.permute.xlu0 %2783  ;;  %v2886_v16 = vsel %vm1289_vm6, %v2854_v35, %v2790_v8 }
 0x2de   : > { %v2883_v13 = vsel %vm1289_vm6, %v2851_v7, %v2784_v54 }
 0x2df   : > { %12268 = vmatprep.mubr.msk.f32.mxu1 %vm1334_vm7, %v2883_v13  ;;  %v4029_v13 = vld [vmem:[%s20216_s7 + $0x30] sm:$0xff] }
 0x2e0   : > { %12269 = vmatmul.mubr.msk.f32.gmra.mrb[8].mxu1 %vm1334_vm7, %v2884_v60  ;;  %v4030_v60 = vld [vmem:[%s20216_s7 + $0x38] sm:$0xff] }
 0x2e1   : > { %v2660_v25 = vpop.permute.xlu0 %2659 }
 0x2e2   : > { %v2853_v52 = vsel %vm790_vm4, %v2501_v42, %v2660_v25 }
 0x2e5   : > { %v2788_v5 = vpop.permute.xlu0 %2787 }
 0x2e6   : > { %v2885_v61 = vsel %vm1289_vm6, %v2853_v52, %v2788_v5  ;;  %v12446_v5 = vpack.c.bf16 %v4030_v60, %v4029_v13 }
 0x2e7   : > { %12271 = vmatprep.mubr.msk.f32.mxu1 %vm1334_vm7, %v2885_v61 }
 0x2e8   : > { %12272 = vmatmul.mubr.msk.f32.gmra.mrb[10].mxu1 %vm1334_vm7, %v2886_v16 }
 0x2fd   : > { %v12090_v12 = vpop.f32.mrb[36].mxu0 }
 0x2fe   : > { %v1517_v21 = vpop.f32.mrb[37].mxu0  ;;  %v1661_v20 = vadd.f32 %v12090_v12, %v16581_v46 }
 0x2ff   : > { %v1660_v22 = vadd.f32 %v16581_v46, %v1517_v21 }
 0x315   : > { %v12093_v55 = vpop.f32.mrb[38].mxu0 }
 0x316   : > { %v1527_v63 = vpop.f32.mrb[39].mxu0  ;;  %v1663_v3 = vadd.f32 %v12093_v55, %v16581_v46  ;;  %v4031_v55 = vld [vmem:[%s20216_s7 + $0x40] sm:$0xff] }
 0x317   : > { %v1662_v36 = vadd.f32 %v16581_v46, %v1527_v63  ;;  %v4032_v63 = vld [vmem:[%s20216_s7 + $0x48] sm:$0xff] }
 0x318   : > { %v12449_v53 = vpack.c.bf16 %v4032_v63, %v4031_v55 }
 0x325   : > { %v12096_v34 = vpop.f32.mrb[40].mxu0 }
 0x326   : > { %v16575_v9 = vpop.f32.mrb[41].mxu0  ;;  %v1665_v42 = vadd.f32 %v12096_v34, %v16581_v46 }
 0x327   : > { %v1664_v25 = vadd.f32 %v16581_v46, %v16575_v9 }
 0x343   : > { %v16587_v28 = vpop.f32.mrb[42].mxu0  ;;  %v12228_v27 = vpop.f32.mrb[12].mxu1 }
 0x344   : > { %v12707_v24 = vadd.f32 %v12228_v27, %v1657_v14  ;;  %v16591_v1 = vpop.f32.mrb[43].mxu0  ;;  %v3062_v2 = vpop.f32.mrb[13].mxu1  ;;  %v1667_v9 = vadd.f32 %v16587_v28, %v16581_v46  ;;  %v4033_v27 = vld [vmem:[%s20216_s7 + $0x50] sm:$0xff]  ;;  %v4034_v28 = vld [vmem:[%s20216_s7 + $0x58] sm:$0xff] }
 0x345   : > { %v12709_v37 = vadd.f32 %v3062_v2, %v1656_v26  ;;  %v1666_v51 = vadd.f32 %v16581_v46, %v16591_v1 }
 0x346   : > { %v3254_v45 = vmax.f32 %v12707_v24, 0.0 }
 0x347   : > { %v3253_v58 = vmax.f32 %v12709_v37, 0.0  ;;  %v12231_v15 = vpop.f32.mrb[14].mxu1  ;;  %v12452_v37 = vpack.c.bf16 %v4034_v28, %v4033_v27 }
 0x348   : > { %v12711_v39 = vadd.f32 %v12231_v15, %v1659_v4  ;;  %v3072_v38 = vpop.f32.mrb[15].mxu1  ;;  %v4035_v15 = vld [vmem:[%s20216_s7 + $0x60] sm:$0xff] }
 0x349   : > { %v12713_v32 = vadd.f32 %v3072_v38, %v1658_v50  ;;  %12290 = vmatprep.mubr.msk.f32.mxu0 %vm1289_vm6, %v3253_v58 }
 0x34a   : > { %12291 = vmatmul.mubr.msk.f32.vlgmr.msra.gmra.mrb[52].mxu0 %vm1289_vm6, %v3254_v45  ;;  %v3256_v49 = vmax.f32 %v12711_v39, 0.0 }
 0x34b   : > { %v3255_v33 = vmax.f32 %v12713_v32, 0.0  ;;  %v12234_v17 = vpop.f32.mrb[16].mxu1  ;;  %12438 = vmatpush1.bf16.msra.mxu0 %v12437_v29  ;;  %v4036_v29 = vld [vmem:[%s20216_s7 + $0x68] sm:$0xff]  ;;  %v4038_v32 = vld [vmem:[%s20216_s7 + $0x78] sm:$0xff] }
 0x34c   : > { %v12715_v57 = vadd.f32 %v12234_v17, %v1661_v20  ;;  %v3082_v10 = vpop.f32.mrb[17].mxu1  ;;  %12439 = vmatprep.subr.bf16.mxu0 %v20242_v47  ;;  %v12455_v38 = vpack.c.bf16 %v4036_v29, %v4035_v15  ;;  %v4039_v17 = vld [vmem:[%s20216_s7 + $0x80] sm:$0xff]  ;;  %v20370_v29 = vmov 0.0  }
 0x34d   : > { %v12717_v62 = vadd.f32 %v3082_v10, %v1660_v22  ;;  %12293 = vmatprep.mubr.msk.f32.mxu0 %vm1289_vm6, %v3255_v33  ;;  %v12458_v22 = vpack.c.bf16 %v4038_v32, %v4037_v48  ;;  %v4042_v10 = vld [vmem:[%s20216_s7 + $0x98] sm:$0xff]  ;;  %3657 = vst.msk [vmem:[#allocation3 + $0x18] sm:$0x1] %vm3656_vm8, %v20370_v29  ;;  %3661 = vst.msk [vmem:[#allocation3 + $0x38] sm:$0x1] %vm3656_vm8, %v20370_v29 }
 0x34e   : > { %12294 = vmatmul.mubr.msk.f32.gmra.mrb[54].mxu0 %vm1289_vm6, %v3256_v49  ;;  %v3258_v7 = vmax.f32 %v12715_v57, 0.0  ;;  %v4041_v57 = vld [vmem:[%s20216_s7 + $0x90] sm:$0xff]  ;;  %3665 = vst.msk [vmem:[#allocation3 + $0x58] sm:$0x1] %vm3656_vm8, %v20370_v29  ;;  %3669 = vst.msk [vmem:[#allocation3 + $0x78] sm:$0x1] %vm3656_vm8, %v20370_v29 }
 0x34f   : > { %v3257_v0 = vmax.f32 %v12717_v62, 0.0  ;;  %v12237_v18 = vpop.f32.mrb[18].mxu1  ;;  %12441 = vmatpush1.bf16.msra.mxu0 %v12440_v40  ;;  %v4040_v40 = vld [vmem:[%s20216_s7 + $0x88] sm:$0xff]  ;;  %3673 = vst.msk [vmem:[#allocation3 + $0x98] sm:$0x1] %vm3656_vm8, %v20370_v29 }
 0x350   : > { %v12719_v54 = vadd.f32 %v12237_v18, %v1663_v3  ;;  %v3092_v56 = vpop.f32.mrb[19].mxu1  ;;  %12442 = vmatprep.subr.bf16.mxu0 %v20242_v47  ;;  %v12461_v49 = vpack.c.bf16 %v4040_v40, %v4039_v17  ;;  %v12464_v3 = vpack.c.bf16 %v4042_v10, %v4041_v57  ;;  %3677 = vst.msk [vmem:[#allocation3 + $0xb8] sm:$0x1] %vm3656_vm8, %v20370_v29  ;;  %3681 = vst.msk [vmem:[#allocation3 + $0xd8] sm:$0x1] %vm3656_vm8, %v20370_v29 }
 0x351   : > { %v12721_v23 = vadd.f32 %v3092_v56, %v1662_v36  ;;  %12296 = vmatprep.mubr.msk.f32.mxu0 %vm1289_vm6, %v3257_v0  ;;  %3685 = vst.msk [vmem:[#allocation3 + $0xf8] sm:$0x1] %vm3656_vm8, %v20370_v29  ;;  %3689 = vst.msk [vmem:[#allocation3 + $0x118] sm:$0x1] %vm3656_vm8, %v20370_v29 }
 0x352   : > { %12297 = vmatmul.mubr.msk.f32.gmra.mrb[56].mxu0 %vm1289_vm6, %v3258_v7  ;;  %v3260_v16 = vmax.f32 %v12719_v54, 0.0  ;;  %3693 = vst.msk [vmem:[#allocation3 + $0x138] sm:$0x1] %vm3656_vm8, %v20370_v29  ;;  %3697 = vst.msk [vmem:[#allocation3 + $0x158] sm:$0x1] %vm3656_vm8, %v20370_v29 }
 0x353   : > { %v3259_v35 = vmax.f32 %v12721_v23, 0.0  ;;  %v12102_v8 = vpop.f32.mrb[44].mxu0  ;;  %v12240_v52 = vpop.f32.mrb[20].mxu1  ;;  %12444 = vmatpush1.bf16.msra.mxu0 %v12443_v41  ;;  %3701 = vst.msk [vmem:[#allocation3 + $0x178] sm:$0x1] %vm3656_vm8, %v20370_v29 }
 0x354   : > { %v12723_v61 = vadd.f32 %v12240_v52, %v1665_v42  ;;  %v1557_v12 = vpop.f32.mrb[45].mxu0  ;;  %v3102_v21 = vpop.f32.mrb[21].mxu1  ;;  %12445 = vmatprep.subr.bf16.mxu0 %v20242_v47  ;;  %v1669_v1 = vadd.f32 %v12102_v8, %v16581_v46  ;;  %3705 = vst.msk [vmem:[#allocation3 + $0x198] sm:$0x1] %vm3656_vm8, %v20370_v29  ;;  %3709 = vst.msk [vmem:[#allocation3 + $0x1b8] sm:$0x1] %vm3656_vm8, %v20370_v29 }
 0x355   : > { %v12725_v34 = vadd.f32 %v3102_v21, %v1664_v25  ;;  %12299 = vmatprep.mubr.msk.f32.mxu0 %vm1289_vm6, %v3259_v35  ;;  %v1668_v2 = vadd.f32 %v16581_v46, %v1557_v12  ;;  %3713 = vst.msk [vmem:[#allocation3 + $0x1d8] sm:$0x1] %vm3656_vm8, %v20370_v29  ;;  %3717 = vst.msk [vmem:[#allocation3 + $0x1f8] sm:$0x1] %vm3656_vm8, %v20370_v29 }
 0x356   : > { %12300 = vmatmul.mubr.msk.f32.gmra.mrb[58].mxu0 %vm1289_vm6, %v3260_v16  ;;  %v3262_v14 = vmax.f32 %v12723_v61, 0.0  ;;  %3721 = vst.msk [vmem:[#allocation3 + $0x218] sm:$0x1] %vm3656_vm8, %v20370_v29  ;;  %3725 = vst.msk [vmem:[#allocation3 + $0x238] sm:$0x1] %vm3656_vm8, %v20370_v29 }
 0x357   : > { %v3261_v19 = vmax.f32 %v12725_v34, 0.0  ;;  %v12243_v59 = vpop.f32.mrb[22].mxu1  ;;  %12447 = vmatpush1.bf16.msra.mxu0 %v12446_v5  ;;  %5705 = vst.msk [vmem:[#allocation4 + $0x18] sm:$0x3] %vm5704_vm9, %v20370_v29  ;;  %5709 = vst.msk [vmem:[#allocation4 + $0x38] sm:$0x3] %vm5704_vm9, %v20370_v29 }
 0x358   : > { %v12727_v43 = vadd.f32 %v12243_v59, %v1667_v9  ;;  %v3112_v26 = vpop.f32.mrb[23].mxu1  ;;  %12448 = vmatprep.subr.bf16.mxu0 %v20242_v47  ;;  %5713 = vst.msk [vmem:[#allocation4 + $0x58] sm:$0x3] %vm5704_vm9, %v20370_v29  ;;  %5717 = vst.msk [vmem:[#allocation4 + $0x78] sm:$0x3] %vm5704_vm9, %v20370_v29 }
 0x359   : > { %v12729_v24 = vadd.f32 %v3112_v26, %v1666_v51  ;;  %12302 = vmatprep.mubr.msk.f32.mxu0 %vm1289_vm6, %v3261_v19  ;;  %5721 = vst.msk [vmem:[#allocation4 + $0x98] sm:$0x3] %vm5704_vm9, %v20370_v29  ;;  %5725 = vst.msk [vmem:[#allocation4 + $0xb8] sm:$0x3] %vm5704_vm9, %v20370_v29 }
 0x35a   : > { %12303 = vmatmul.mubr.msk.f32.gmra.mrb[60].mxu0 %vm1289_vm6, %v3262_v14  ;;  %v3264_v4 = vmax.f32 %v12727_v43, 0.0  ;;  %5729 = vst.msk [vmem:[#allocation4 + $0xd8] sm:$0x3] %vm5704_vm9, %v20370_v29  ;;  %5733 = vst.msk [vmem:[#allocation4 + $0xf8] sm:$0x3] %vm5704_vm9, %v20370_v29 }
 0x35b   : > { %v3263_v31 = vmax.f32 %v12729_v24, 0.0  ;;  %v12246_v6 = vpop.f32.mrb[24].mxu1  ;;  %12450 = vmatpush1.bf16.msra.mxu0 %v12449_v53  ;;  %5737 = vst.msk [vmem:[#allocation4 + $0x118] sm:$0x3] %vm5704_vm9, %v20370_v29  ;;  %5741 = vst.msk [vmem:[#allocation4 + $0x138] sm:$0x3] %vm5704_vm9, %v20370_v29 }
 0x35c   : > { %v12731_v50 = vadd.f32 %v12246_v6, %v1669_v1  ;;  %v3122_v58 = vpop.f32.mrb[25].mxu1  ;;  %12451 = vmatprep.subr.bf16.mxu0 %v20242_v47  ;;  %5745 = vst.msk [vmem:[#allocation4 + $0x158] sm:$0x3] %vm5704_vm9, %v20370_v29  ;;  %5749 = vst.msk [vmem:[#allocation4 + $0x178] sm:$0x3] %vm5704_vm9, %v20370_v29 }
 0x35d   : > { %v12733_v45 = vadd.f32 %v3122_v58, %v1668_v2  ;;  %12305 = vmatprep.mubr.msk.f32.mxu0 %vm1289_vm6, %v3263_v31  ;;  %v4043_v2 = vld [vmem:[%s20216_s7 + $0xa0] sm:$0xff]  ;;  %v4044_v31 = vld [vmem:[%s20216_s7 + $0xa8] sm:$0xff]  ;;  %v4046_v58 = vld [vmem:[%s20216_s7 + $0xb8] sm:$0xff]  ;;  %5753 = vst.msk [vmem:[#allocation4 + $0x198] sm:$0x3] %vm5704_vm9, %v20370_v29 }
 0x35e   : > { %12306 = vmatmul.mubr.msk.f32.gmra.mrb[62].mxu0 %vm1289_vm6, %v3264_v4  ;;  %v3266_v44 = vmax.f32 %v12731_v50, 0.0  ;;  %v12467_v6 = vpack.c.bf16 %v4044_v31, %v4043_v2  ;;  %v4045_v50 = vld [vmem:[%s20216_s7 + $0xb0] sm:$0xff]  ;;  %5757 = vst.msk [vmem:[#allocation4 + $0x1b8] sm:$0x3] %vm5704_vm9, %v20370_v29  ;;  %5761 = vst.msk [vmem:[#allocation4 + $0x1d8] sm:$0x3] %vm5704_vm9, %v20370_v29 }
 0x35f   : > { %v3265_v39 = vmax.f32 %v12733_v45, 0.0  ;;  %12453 = vmatpush1.bf16.msra.mxu0 %v12452_v37  ;;  %v12470_v15 = vpack.c.bf16 %v4046_v58, %v4045_v50  ;;  %5765 = vst.msk [vmem:[#allocation4 + $0x1f8] sm:$0x3] %vm5704_vm9, %v20370_v29  ;;  %5769 = vst.msk [vmem:[#allocation4 + $0x218] sm:$0x3] %vm5704_vm9, %v20370_v29 }
 0x360   : > { %12454 = vmatprep.subr.bf16.mxu0 %v20242_v47  ;;  %5773 = vst.msk [vmem:[#allocation4 + $0x238] sm:$0x3] %vm5704_vm9, %v20370_v29  ;;  %5777 = vst.msk [vmem:[#allocation4 + $0x258] sm:$0x3] %vm5704_vm9, %v20370_v29 }
 0x361   : > { %12308 = vmatprep.mubr.msk.f32.mxu0 %vm1289_vm6, %v3265_v39  ;;  %5781 = vst.msk [vmem:[#allocation4 + $0x278] sm:$0x3] %vm5704_vm9, %v20370_v29 }
 0x362   : > { %12309 = vmatmul.mubr.msk.f32.gmra.mrb[64].mxu0 %vm1289_vm6, %v3266_v44 }
 0x363   : > { %v12105_v20 = vpop.f32.mrb[46].mxu0  ;;  %12456 = vmatpush1.bf16.msra.mxu0 %v12455_v38 }
 0x364   : > { %v1567_v33 = vpop.f32.mrb[47].mxu0  ;;  %12457 = vmatprep.subr.bf16.mxu0 %v20242_v47  ;;  %v1671_v11 = vadd.f32 %v12105_v20, %v16581_v46 }
 0x365   : > { %v1670_v30 = vadd.f32 %v16581_v46, %v1567_v33 }
 0x367   : > { %12459 = vmatpush1.bf16.msra.mxu0 %v12458_v22 }
 0x368   : > { %12460 = vmatprep.subr.bf16.mxu0 %v20242_v47 }
 0x36b   : > { %v12249_v62 = vpop.f32.mrb[26].mxu1  ;;  %12462 = vmatpush1.bf16.msra.mxu0 %v12461_v49 }
 0x36c   : > { %v12735_v36 = vadd.f32 %v12249_v62, %v1671_v11  ;;  %v3132_v0 = vpop.f32.mrb[27].mxu1  ;;  %12463 = vmatprep.subr.bf16.mxu0 %v20242_v47 }
 0x36d   : > { %v12737_v18 = vadd.f32 %v3132_v0, %v1670_v30 }
 0x36e   : > { %v3268_v7 = vmax.f32 %v12735_v36, 0.0 }
 0x36f   : > { %v3267_v41 = vmax.f32 %v12737_v18, 0.0  ;;  %12465 = vmatpush1.bf16.msra.mxu0 %v12464_v3 }
 0x370   : > { %12466 = vmatprep.subr.bf16.mxu0 %v20242_v47 }
 0x371   : > { %12311 = vmatprep.mubr.msk.f32.mxu0 %vm1289_vm6, %v3267_v41  ;;  %v13234_v41 = vpop.permute.xlu0 %13233 }
 0x372   : > { %12312 = vmatmul.mubr.msk.f32.gmra.mrb[66].mxu0 %vm1289_vm6, %v3268_v7 }
 0x373   : > { %v12108_v54 = vpop.f32.mrb[48].mxu0  ;;  %12468 = vmatpush1.bf16.msra.mxu0 %v12467_v6 }
 0x374   : > { %v1577_v56 = vpop.f32.mrb[49].mxu0  ;;  %v1673_v13 = vadd.f32 %v12108_v54, %v16581_v46  ;;  %12469 = vmatprep.subr.bf16.mxu0 %v20242_v47 }
 0x375   : > { %v1672_v60 = vadd.f32 %v16581_v46, %v1577_v56  ;;  %v13235_v56 = vunpack.i.l.bf16 %v13234_v41 }
 0x377   : > { %12471 = vmatpush1.bf16.msra.mxu0 %v12470_v15 }
 0x378   : > { %12472 = vmatprep.subr.bf16.mxu0 %v20242_v47 }
 0x37b   : > { %v12252_v23 = vpop.f32.mrb[28].mxu1 }
 0x37c   : > { %v12739_v42 = vadd.f32 %v12252_v23, %v1673_v13  ;;  %v3142_v25 = vpop.f32.mrb[29].mxu1  ;;  %v3767_v23 = vld [vmem:[#allocation3 + $0x7] sm:$0xff] }
 0x37d   : > { %v12741_v35 = vadd.f32 %v3142_v25, %v1672_v60  ;;  %v3831_v60 = vld [vmem:[#allocation3 + $0x9] sm:$0xff]  ;;  %v3991_v25 = vsel %vm1289_vm6, %v3767_v23, %v13235_v56 }
 0x37e   : > { %v3270_v52 = vmax.f32 %v12739_v42, 0.0  ;;  %v13236_v42 = vunpack.i.h.bf16 %v13234_v41 }
 0x37f   : > { %v3269_v8 = vmax.f32 %v12741_v35, 0.0  ;;  %v3832_v35 = vld [vmem:[#allocation3 + $0x11] sm:$0xff] }
 0x381   : > { %12314 = vmatprep.mubr.msk.f32.mxu0 %vm1289_vm6, %v3269_v8  ;;  %v3768_v8 = vld [vmem:[#allocation3 + $0xf] sm:$0xff] }
 0x382   : > { %12315 = vmatmul.mubr.msk.f32.gmra.mrb[68].mxu0 %vm1289_vm6, %v3270_v52  ;;  %v16787_v52 = vld [vmem:[%s20215_s6] ss:$0 sm:$0xff] }
 0x383   : > { %v12111_v5 = vpop.f32.mrb[50].mxu0 }
 0x384   : > { %v1587_v16 = vpop.f32.mrb[51].mxu0  ;;  %v1675_v61 = vadd.f32 %v12111_v5, %v16581_v46  ;;  %v11405_v5 = vld [vmem:[%s20216_s7 + $0xc0] sm:$0xff] }
 0x385   : > { %v1674_v12 = vadd.f32 %v16581_v46, %v1587_v16  ;;  %v11406_v16 = vld [vmem:[%s20216_s7 + $0xc8] sm:$0xff] }
 0x38b   : > { %v12255_v21 = vpop.f32.mrb[30].mxu1 }
 0x38c   : > { %v12743_v55 = vadd.f32 %v12255_v21, %v1675_v61  ;;  %v3152_v63 = vpop.f32.mrb[31].mxu1  ;;  %v12473_v61 = vpack.c.bf16 %v11406_v16, %v11405_v5 }
 0x38d   : > { %v12745_v34 = vadd.f32 %v3152_v63, %v1674_v12 }
 0x38e   : > { %v3272_v51 = vmax.f32 %v12743_v55, 0.0 }
 0x38f   : > { %v3271_v9 = vmax.f32 %v12745_v34, 0.0 }
 0x391   : > { %12317 = vmatprep.mubr.msk.f32.mxu0 %vm1289_vm6, %v3271_v9 }
 0x392   : > { %12318 = vmatmul.mubr.msk.f32.gmra.mrb[70].mxu0 %vm1289_vm6, %v3272_v51 }
 0x393   : > { %v12258_v19 = vpop.f32.mrb[0].mxu1 }
 0x394   : > { %v12746_v59 = vadd.f32 %v12258_v19, %v16581_v46  ;;  %v3162_v53 = vpop.f32.mrb[1].mxu1 }
 0x395   : > { %v12747_v14 = vadd.f32 %v16581_v46, %v3162_v53 }
 0x396   : > { %v3274_v26 = vmax.f32 %v12746_v59, 0.0 }
 0x397   : > { %v3273_v43 = vmax.f32 %v12747_v14, 0.0 }
 0x399   : > { %12320 = vmatprep.mubr.msk.f32.mxu0 %vm1289_vm6, %v3273_v43 }
 0x39a   : > { %12321 = vmatmul.mubr.msk.f32.gmra.mrb[72].mxu0 %vm1289_vm6, %v3274_v26 }
 0x39b   : > { %v12261_v27 = vpop.f32.mrb[2].mxu1 }
 0x39c   : > { %v12748_v28 = vadd.f32 %v12261_v27, %v16581_v46  ;;  %v3172_v24 = vpop.f32.mrb[3].mxu1  ;;  %v11407_v27 = vld [vmem:[%s20216_s7 + $0xd0] sm:$0xff] }
 0x39d   : > { %v12749_v1 = vadd.f32 %v16581_v46, %v3172_v24 }
 0x39e   : > { %v3276_v4 = vmax.f32 %v12748_v28, 0.0  ;;  %v11408_v28 = vld [vmem:[%s20216_s7 + $0xd8] sm:$0xff] }
 0x39f   : > { %v3275_v37 = vmax.f32 %v12749_v1, 0.0  ;;  %v12476_v2 = vpack.c.bf16 %v11408_v28, %v11407_v27  ;;  %v11413_v27 = vld [vmem:[%s20216_s7 + $0x100] sm:$0xff]  ;;  %v11414_v28 = vld [vmem:[%s20216_s7 + $0x108] sm:$0xff] }
 0x3a1   : > { %12323 = vmatprep.mubr.msk.f32.mxu0 %vm1289_vm6, %v3275_v37 }
 0x3a2   : > { %12324 = vmatmul.mubr.msk.f32.gmra.mrb[74].mxu0 %vm1289_vm6, %v3276_v4 }
 0x3a3   : > { %v12264_v45 = vpop.f32.mrb[4].mxu1 }
 0x3a4   : > { %v12750_v39 = vadd.f32 %v12264_v45, %v16581_v46  ;;  %v3182_v38 = vpop.f32.mrb[5].mxu1 }
 0x3a5   : > { %v12751_v44 = vadd.f32 %v16581_v46, %v3182_v38 }
 0x3a6   : > { %v3278_v32 = vmax.f32 %v12750_v39, 0.0 }
 0x3a7   : > { %v3277_v48 = vmax.f32 %v12751_v44, 0.0 }
 0x3a9   : > { %12326 = vmatprep.mubr.msk.f32.mxu0 %vm1289_vm6, %v3277_v48 }
 0x3aa   : > { %12327 = vmatmul.mubr.msk.f32.gmra.mrb[76].mxu0 %vm1289_vm6, %v3278_v32 }
 0x3ab   : > { %v12267_v20 = vpop.f32.mrb[6].mxu1 }
 0x3ac   : > { %v12752_v22 = vadd.f32 %v12267_v20, %v16581_v46  ;;  %v3192_v33 = vpop.f32.mrb[7].mxu1 }
 0x3ad   : > { %v12753_v17 = vadd.f32 %v16581_v46, %v3192_v33 }
 0x3ae   : > { %v3280_v49 = vmax.f32 %v12752_v22, 0.0 }
 0x3af   : > { %v3279_v40 = vmax.f32 %v12753_v17, 0.0 }
 0x3b1   : > { %12329 = vmatprep.mubr.msk.f32.mxu0 %vm1289_vm6, %v3279_v40 }
 0x3b2   : > { %12330 = vmatmul.mubr.msk.f32.gmra.mrb[78].mxu0 %vm1289_vm6, %v3280_v49 }
 0x3b3   : > { %v12270_v57 = vpop.f32.mrb[8].mxu1 }
 0x3b4   : > { %v12754_v10 = vadd.f32 %v12270_v57, %v16581_v46  ;;  %v3202_v11 = vpop.f32.mrb[9].mxu1 }
 0x3b5   : > { %v12755_v30 = vadd.f32 %v16581_v46, %v3202_v11  ;;  %v11409_v11 = vld [vmem:[%s20216_s7 + $0xe0] sm:$0xff] }
 0x3b6   : > { %v3282_v3 = vmax.f32 %v12754_v10, 0.0 }
 0x3b7   : > { %v3281_v62 = vmax.f32 %v12755_v30, 0.0  ;;  %v11410_v30 = vld [vmem:[%s20216_s7 + $0xe8] sm:$0xff] }
 0x3b9   : > { %12332 = vmatprep.mubr.msk.f32.mxu0 %vm1289_vm6, %v3281_v62 }
 0x3ba   : > { %12333 = vmatmul.mubr.msk.f32.gmra.mrb[80].mxu0 %vm1289_vm6, %v3282_v3 }
 0x3bb   : > { %v12273_v36 = vpop.f32.mrb[10].mxu1 }
 0x3bc   : > { %v12756_v0 = vadd.f32 %v12273_v36, %v16581_v46  ;;  %v3212_v18 = vpop.f32.mrb[11].mxu1 }
 0x3bd   : > { %v12757_v7 = vadd.f32 %v16581_v46, %v3212_v18  ;;  %v3992_v46 = vsel %vm1289_vm6, %v3768_v8, %v13236_v42 }
 0x3be   : > { %v3284_v13 = vmax.f32 %v12756_v0, 0.0  ;;  %v12479_v0 = vpack.c.bf16 %v11410_v30, %v11409_v11 }
 0x3bf   : > { %v3283_v54 = vmax.f32 %v12757_v7, 0.0 }
 0x3c1   : > { %12335 = vmatprep.mubr.msk.f32.mxu0 %vm1289_vm6, %v3283_v54 }
 0x3c2   : > { %12336 = vmatmul.mubr.msk.f32.gmra.mrb[82].mxu0 %vm1289_vm6, %v3284_v13 }
 0x3c3   : > { %11373 = vmatprep.mubr.msk.f32.mxu0 %vm1289_vm6, %v3831_v60 }
 0x3c6   : > { %4208 = vmatmul.mubr.f32.vlgmr.msra.gmra.mrb[84].mxu0 %v3991_v25 }
 0x3c7   : > { %11374 = vmatprep.mubr.msk.f32.mxu0 %vm1289_vm6, %v3832_v35  ;;  %12474 = vmatpush1.bf16.msra.mxu0 %v12473_v61 }
 0x3c8   : > { %12475 = vmatprep.subr.bf16.mxu0 %v20242_v47 }
 0x3ca   : > { %4213 = vmatmul.mubr.f32.gmra.mrb[86].mxu0 %v3992_v46 }
 0x3cb   : > { %12477 = vmatpush1.bf16.msra.mxu0 %v12476_v2  ;;  %v12485_v2 = vpack.c.bf16 %v11414_v28, %v11413_v27 }
 0x3cc   : > { %12478 = vmatprep.subr.bf16.mxu0 %v20242_v47 }
 0x3cf   : > { %12480 = vmatpush1.bf16.msra.mxu0 %v12479_v0 }
 0x3d0   : > { %12481 = vmatprep.subr.bf16.mxu0 %v20242_v47 }
 0x41d   : > { %v12292_v12 = vpop.f32.mrb[52].mxu0 }
 0x41e   : > { %v3468_v21 = vadd.f32 %v12292_v12, %v16787_v52  ;;  %v3462_v55 = vpop.f32.mrb[53].mxu0 }
 0x41f   : > { %v3463_v63 = vadd.f32 %v16787_v52, %v3462_v55 }
 0x420   : > { %v3622_v34 = vmax.f32 %v3468_v21, 0.0 }
 0x421   : > { %v3621_v9 = vmax.f32 %v3463_v63, 0.0  ;;  %v12295_v51 = vpop.f32.mrb[54].mxu0  ;;  %v11411_v63 = vld [vmem:[%s20216_s7 + $0xf0] sm:$0xff] }
 0x422   : > { %3728 = vst.msk [vmem:[#allocation3 + $0x30] sm:$0xff] %vm1289_vm6, %v3622_v34  ;;  %v3478_v19 = vadd.f32 %v12295_v51, %v16787_v52  ;;  %v3472_v59 = vpop.f32.mrb[55].mxu0  ;;  %v11412_v34 = vld [vmem:[%s20216_s7 + $0xf8] sm:$0xff] }
 0x423   : > { %3727 = vst.msk [vmem:[#allocation3 + $0x28] sm:$0xff] %vm1289_vm6, %v3621_v9  ;;  %v3473_v53 = vadd.f32 %v16787_v52, %v3472_v59  ;;  %v12482_v9 = vpack.c.bf16 %v11412_v34, %v11411_v63 }
 0x424   : > { %v3624_v14 = vmax.f32 %v3478_v19, 0.0 }
 0x425   : > { %v3623_v43 = vmax.f32 %v3473_v53, 0.0  ;;  %v12298_v26 = vpop.f32.mrb[56].mxu0  ;;  %12483 = vmatpush1.bf16.msra.mxu0 %v12482_v9 }
 0x426   : > { %3730 = vst.msk [vmem:[#allocation3 + $0x50] sm:$0xff] %vm1289_vm6, %v3624_v14  ;;  %v3488_v24 = vadd.f32 %v12298_v26, %v16787_v52  ;;  %v3482_v1 = vpop.f32.mrb[57].mxu0  ;;  %12484 = vmatprep.subr.bf16.mxu0 %v20242_v47 }
 0x427   : > { %3729 = vst.msk [vmem:[#allocation3 + $0x48] sm:$0xff] %vm1289_vm6, %v3623_v43  ;;  %v3483_v31 = vadd.f32 %v16787_v52, %v3482_v1 }
 0x428   : > { %v3626_v6 = vmax.f32 %v3488_v24, 0.0 }
 0x429   : > { %v3625_v37 = vmax.f32 %v3483_v31, 0.0  ;;  %v12301_v4 = vpop.f32.mrb[58].mxu0  ;;  %v3802_v50 = vld [vmem:[#allocation3 + $0x30] sm:$0xff]  ;;  %12486 = vmatpush1.bf16.msra.mxu0 %v12485_v2 }
 0x42a   : > { %3732 = vst.msk [vmem:[#allocation3 + $0x70] sm:$0xff] %vm1289_vm6, %v3626_v6  ;;  %v3498_v58 = vadd.f32 %v12301_v4, %v16787_v52  ;;  %v3492_v15 = vpop.f32.mrb[59].mxu0  ;;  %v3833_v45 = vld [vmem:[#allocation3 + $0x29] sm:$0xff]  ;;  %12487 = vmatprep.subr.bf16.mxu0 %v20242_v47 }
 0x42b   : > { %v3801_v39 = vld [vmem:[#allocation3 + $0x28] sm:$0xff]  ;;  %3731 = vst.msk [vmem:[#allocation3 + $0x68] sm:$0xff] %vm1289_vm6, %v3625_v37  ;;  %v3493_v38 = vadd.f32 %v16787_v52, %v3492_v15  ;;  %11375 = vmatprep.mubr.msk.f32.mxu0 %vm1289_vm6, %v3833_v45  ;;  %v11415_v4 = vld [vmem:[%s20216_s7 + $0x110] sm:$0xff] }
 0x42c   : > { %v16818_v44 = vpack.i.bf16 %v3802_v50, %v3801_v39  ;;  %v3628_v48 = vmax.f32 %v3498_v58, 0.0  ;;  %v11416_v50 = vld [vmem:[%s20216_s7 + $0x118] sm:$0xff] }
 0x42d   : > { %v3627_v32 = vmax.f32 %v3493_v38, 0.0  ;;  %v12304_v20 = vpop.f32.mrb[60].mxu0  ;;  %v3804_v22 = vld [vmem:[#allocation3 + $0x50] sm:$0xff]  ;;  %v12488_v15 = vpack.c.bf16 %v11416_v50, %v11415_v4 }
 0x42e   : > { %13238 = vrot.lane.b32.xlu1 %v16818_v44, %s14836_s14  ;;  %3734 = vst.msk [vmem:[#allocation3 + $0x90] sm:$0xff] %vm1289_vm6, %v3628_v48  ;;  %v3508_v33 = vadd.f32 %v12304_v20, %v16787_v52  ;;  %v3502_v17 = vpop.f32.mrb[61].mxu0  ;;  %v3803_v40 = vld [vmem:[#allocation3 + $0x48] sm:$0xff] }
 0x42f   : > { %3733 = vst.msk [vmem:[#allocation3 + $0x88] sm:$0xff] %vm1289_vm6, %v3627_v32  ;;  %v3503_v49 = vadd.f32 %v16787_v52, %v3502_v17  ;;  %v16826_v57 = vpack.i.bf16 %v3804_v22, %v3803_v40  ;;  %12489 = vmatpush1.bf16.msra.mxu0 %v12488_v15  ;;  %v11417_v17 = vld [vmem:[%s20216_s7 + $0x120] sm:$0xff]  ;;  %v11418_v40 = vld [vmem:[%s20216_s7 + $0x128] sm:$0xff] }
 0x430   : > { %v3630_v10 = vmax.f32 %v3508_v33, 0.0  ;;  %12490 = vmatprep.subr.bf16.mxu0 %v20242_v47 }
 0x431   : > { %v3629_v62 = vmax.f32 %v3503_v49, 0.0  ;;  %v12307_v3 = vpop.f32.mrb[62].mxu0  ;;  %13243 = vrot.lane.b32.xlu0 %v16826_v57, %s14836_s14  ;;  %v3806_v36 = vld [vmem:[#allocation3 + $0x70] sm:$0xff]  ;;  %v12491_v49 = vpack.c.bf16 %v11418_v40, %v11417_v17 }
 0x432   : > { %3736 = vst.msk [vmem:[#allocation3 + $0xb0] sm:$0xff] %vm1289_vm6, %v3630_v10  ;;  %v3518_v18 = vadd.f32 %v12307_v3, %v16787_v52  ;;  %v3512_v41 = vpop.f32.mrb[63].mxu0  ;;  %v3805_v7 = vld [vmem:[#allocation3 + $0x68] sm:$0xff]  ;;  %v11420_v3 = vld [vmem:[%s20216_s7 + $0x138] sm:$0xff] }
 0x433   : > { %3735 = vst.msk [vmem:[#allocation3 + $0xa8] sm:$0xff] %vm1289_vm6, %v3629_v62  ;;  %v3513_v54 = vadd.f32 %v16787_v52, %v3512_v41  ;;  %v16840_v56 = vpack.i.bf16 %v3806_v36, %v3805_v7  ;;  %12492 = vmatpush1.bf16.msra.mxu0 %v12491_v49  ;;  %v11419_v62 = vld [vmem:[%s20216_s7 + $0x130] sm:$0xff] }
 0x434   : > { %v3632_v13 = vmax.f32 %v3518_v18, 0.0  ;;  %12493 = vmatprep.subr.bf16.mxu0 %v20242_v47  ;;  %v12494_v0 = vpack.c.bf16 %v11420_v3, %v11419_v62 }
 0x435   : > { %v3631_v60 = vmax.f32 %v3513_v54, 0.0  ;;  %v12310_v23 = vpop.f32.mrb[64].mxu0  ;;  %13248 = vrot.lane.b32.xlu1 %v16840_v56, %s14836_s14  ;;  %v3808_v42 = vld [vmem:[#allocation3 + $0x90] sm:$0xff] }
 0x436   : > { %3738 = vst.msk [vmem:[#allocation3 + $0xd0] sm:$0xff] %vm1289_vm6, %v3632_v13  ;;  %v3528_v25 = vadd.f32 %v12310_v23, %v16787_v52  ;;  %v3522_v35 = vpop.f32.mrb[65].mxu0  ;;  %v3807_v8 = vld [vmem:[#allocation3 + $0x88] sm:$0xff] }
 0x437   : > { %3737 = vst.msk [vmem:[#allocation3 + $0xc8] sm:$0xff] %vm1289_vm6, %v3631_v60  ;;  %v3523_v46 = vadd.f32 %v16787_v52, %v3522_v35  ;;  %v16849_v5 = vpack.i.bf16 %v3808_v42, %v3807_v8  ;;  %12495 = vmatpush1.bf16.msra.mxu0 %v12494_v0  ;;  %v11421_v8 = vld [vmem:[%s20216_s7 + $0x140] sm:$0xff] }
 0x438   : > { %v3634_v16 = vmax.f32 %v3528_v25, 0.0  ;;  %12496 = vmatprep.subr.bf16.mxu0 %v20242_v47 }
 0x439   : > { %v3633_v61 = vmax.f32 %v3523_v46, 0.0  ;;  %13253 = vrot.lane.b32.xlu0 %v16849_v5, %s14836_s14  ;;  %v3810_v12 = vld [vmem:[#allocation3 + $0xb0] sm:$0xff]  ;;  %v11422_v46 = vld [vmem:[%s20216_s7 + $0x148] sm:$0xff] }
 0x43a   : > { %3740 = vst.msk [vmem:[#allocation3 + $0xf0] sm:$0xff] %vm1289_vm6, %v3634_v16  ;;  %v3809_v21 = vld [vmem:[#allocation3 + $0xa8] sm:$0xff] }
 0x43b   : > { %3739 = vst.msk [vmem:[#allocation3 + $0xe8] sm:$0xff] %vm1289_vm6, %v3633_v61  ;;  %v16855_v55 = vpack.i.bf16 %v3810_v12, %v3809_v21  ;;  %v12497_v12 = vpack.c.bf16 %v11422_v46, %v11421_v8 }
 0x43d   : > { %13258 = vrot.lane.b32.xlu1 %v16855_v55, %s14836_s14  ;;  %v3812_v51 = vld [vmem:[#allocation3 + $0xd0] sm:$0xff]  ;;  %12498 = vmatpush1.bf16.msra.mxu0 %v12497_v12 }
 0x43e   : > { %v3811_v19 = vld [vmem:[#allocation3 + $0xc8] sm:$0xff]  ;;  %12499 = vmatprep.subr.bf16.mxu0 %v20242_v47 }
 0x43f   : > { %v16865_v59 = vpack.i.bf16 %v3812_v51, %v3811_v19 }
 0x441   : > { %13263 = vrot.lane.b32.xlu0 %v16865_v59, %s14836_s14  ;;  %v3814_v53 = vld [vmem:[#allocation3 + $0xf0] sm:$0xff] }
 0x442   : > { %v3813_v14 = vld [vmem:[#allocation3 + $0xe8] sm:$0xff] }
 0x443   : > { %v16870_v43 = vpack.i.bf16 %v3814_v53, %v3813_v14 }
 0x445   : > { %v12313_v26 = vpop.f32.mrb[66].mxu0  ;;  %13268 = vrot.lane.b32.xlu1 %v16870_v43, %s14836_s14 }
 0x446   : > { %v3538_v24 = vadd.f32 %v12313_v26, %v16787_v52  ;;  %v3532_v1 = vpop.f32.mrb[67].mxu0 }
 0x447   : > { %v3533_v31 = vadd.f32 %v16787_v52, %v3532_v1  ;;  %v11424_v1 = vld [vmem:[%s20216_s7 + $0x158] sm:$0xff] }
 0x448   : > { %v3636_v6 = vmax.f32 %v3538_v24, 0.0  ;;  %v11423_v24 = vld [vmem:[%s20216_s7 + $0x150] sm:$0xff] }
 0x449   : > { %v3635_v37 = vmax.f32 %v3533_v31, 0.0  ;;  %v12500_v2 = vpack.c.bf16 %v11424_v1, %v11423_v24  ;;  %v17018_v24 = vld [vmem:[#allocation3 + $0x2f] sm:$0xff] }
 0x44a   : > { %3742 = vst.msk [vmem:[#allocation3 + $0x110] sm:$0xff] %vm1289_vm6, %v3636_v6 }
 0x44b   : > { %3741 = vst.msk [vmem:[#allocation3 + $0x108] sm:$0xff] %vm1289_vm6, %v3635_v37  ;;  %12501 = vmatpush1.bf16.msra.mxu0 %v12500_v2 }
 0x44c   : > { %12502 = vmatprep.subr.bf16.mxu0 %v20242_v47 }
 0x451   : > { %v3816_v58 = vld [vmem:[#allocation3 + $0x110] sm:$0xff] }
 0x452   : > { %v3815_v45 = vld [vmem:[#allocation3 + $0x108] sm:$0xff] }
 0x453   : > { %v16891_v39 = vpack.i.bf16 %v3816_v58, %v3815_v45 }
 0x455   : > { %v12316_v38 = vpop.f32.mrb[68].mxu0  ;;  %13273 = vrot.lane.b32.xlu0 %v16891_v39, %s14836_s14 }
 0x456   : > { %v3548_v48 = vadd.f32 %v12316_v38, %v16787_v52  ;;  %v3542_v32 = vpop.f32.mrb[69].mxu0 }
 0x457   : > { %v3543_v20 = vadd.f32 %v16787_v52, %v3542_v32  ;;  %v11426_v32 = vld [vmem:[%s20216_s7 + $0x168] sm:$0xff] }
 0x458   : > { %v3638_v22 = vmax.f32 %v3548_v48, 0.0  ;;  %v11425_v48 = vld [vmem:[%s20216_s7 + $0x160] sm:$0xff] }
 0x459   : > { %v3637_v33 = vmax.f32 %v3543_v20, 0.0 }
 0x45a   : > { %3744 = vst.msk [vmem:[#allocation3 + $0x130] sm:$0xff] %vm1289_vm6, %v3638_v22  ;;  %v12503_v22 = vpack.c.bf16 %v11426_v32, %v11425_v48  ;;  %v17046_v32 = vld [vmem:[#allocation3 + $0x69] sm:$0xff] }
 0x45b   : > { %3743 = vst.msk [vmem:[#allocation3 + $0x128] sm:$0xff] %vm1289_vm6, %v3637_v33 }
 0x45c   : > { %12504 = vmatpush1.bf16.msra.mxu0 %v12503_v22 }
 0x45d   : > { %12505 = vmatprep.subr.bf16.mxu0 %v20242_v47 }
 0x461   : > { %v3818_v10 = vld [vmem:[#allocation3 + $0x130] sm:$0xff] }
 0x462   : > { %v3817_v11 = vld [vmem:[#allocation3 + $0x128] sm:$0xff] }
 0x463   : > { %v16907_v30 = vpack.i.bf16 %v3818_v10, %v3817_v11 }
 0x465   : > { %13278 = vrot.lane.b32.xlu1 %v16907_v30, %s14836_s14  ;;  %v12319_v36 = vpop.f32.mrb[70].mxu0 }
 0x466   : > { %v3558_v18 = vadd.f32 %v12319_v36, %v16787_v52  ;;  %v3552_v41 = vpop.f32.mrb[71].mxu0 }
 0x467   : > { %v3553_v7 = vadd.f32 %v16787_v52, %v3552_v41 }
 0x468   : > { %v3640_v54 = vmax.f32 %v3558_v18, 0.0 }
 0x469   : > { %v3639_v13 = vmax.f32 %v3553_v7, 0.0 }
 0x46a   : > { %3746 = vst.msk [vmem:[#allocation3 + $0x150] sm:$0xff] %vm1289_vm6, %v3640_v54  ;;  %v11427_v54 = vld [vmem:[%s20216_s7 + $0x170] sm:$0xff] }
 0x46b   : > { %3745 = vst.msk [vmem:[#allocation3 + $0x148] sm:$0xff] %vm1289_vm6, %v3639_v13  ;;  %v11428_v13 = vld [vmem:[%s20216_s7 + $0x178] sm:$0xff] }
 0x46d   : > { %v12322_v60 = vpop.f32.mrb[72].mxu0 }
 0x46e   : > { %v3568_v23 = vadd.f32 %v12322_v60, %v16787_v52  ;;  %v3562_v42 = vpop.f32.mrb[73].mxu0 }
 0x46f   : > { %v3563_v25 = vadd.f32 %v16787_v52, %v3562_v42  ;;  %v12506_v42 = vpack.c.bf16 %v11428_v13, %v11427_v54  ;;  %v17082_v13 = vld [vmem:[#allocation3 + $0x91] sm:$0xff] }
 0x470   : > { %v3642_v35 = vmax.f32 %v3568_v23, 0.0 }
 0x471   : > { %v3641_v16 = vmax.f32 %v3563_v25, 0.0  ;;  %v3820_v61 = vld [vmem:[#allocation3 + $0x150] sm:$0xff]  ;;  %12507 = vmatpush1.bf16.msra.mxu0 %v12506_v42 }
 0x472   : > { %3748 = vst.msk [vmem:[#allocation3 + $0x170] sm:$0xff] %vm1289_vm6, %v3642_v35  ;;  %v3819_v21 = vld [vmem:[#allocation3 + $0x148] sm:$0xff]  ;;  %12508 = vmatprep.subr.bf16.mxu0 %v20242_v47 }
 0x473   : > { %3747 = vst.msk [vmem:[#allocation3 + $0x168] sm:$0xff] %vm1289_vm6, %v3641_v16  ;;  %v16932_v63 = vpack.i.bf16 %v3820_v61, %v3819_v21 }
 0x475   : > { %v12325_v34 = vpop.f32.mrb[74].mxu0  ;;  %13283 = vrot.lane.b32.xlu0 %v16932_v63, %s14836_s14 }
 0x476   : > { %v3578_v9 = vadd.f32 %v12325_v34, %v16787_v52  ;;  %v3572_v51 = vpop.f32.mrb[75].mxu0 }
 0x477   : > { %v3573_v19 = vadd.f32 %v16787_v52, %v3572_v51 }
 0x478   : > { %v3644_v53 = vmax.f32 %v3578_v9, 0.0 }
 0x479   : > { %v3643_v14 = vmax.f32 %v3573_v19, 0.0  ;;  %v3822_v26 = vld [vmem:[#allocation3 + $0x170] sm:$0xff] }
 0x47a   : > { %3750 = vst.msk [vmem:[#allocation3 + $0x190] sm:$0xff] %vm1289_vm6, %v3644_v53  ;;  %v3821_v27 = vld [vmem:[#allocation3 + $0x168] sm:$0xff] }
 0x47b   : > { %3749 = vst.msk [vmem:[#allocation3 + $0x188] sm:$0xff] %vm1289_vm6, %v3643_v14  ;;  %v16941_v28 = vpack.i.bf16 %v3822_v26, %v3821_v27  ;;  %v17010_v27 = vld [vmem:[#allocation3 + $0x31] sm:$0xff] }
 0x47d   : > { %v12328_v31 = vpop.f32.mrb[76].mxu0  ;;  %13288 = vrot.lane.b32.xlu1 %v16941_v28, %s14836_s14 }
 0x47e   : > { %v3588_v6 = vadd.f32 %v12328_v31, %v16787_v52  ;;  %v3582_v37 = vpop.f32.mrb[77].mxu0  ;;  %v17022_v31 = vld [vmem:[#allocation3 + $0x49] sm:$0xff] }
 0x47f   : > { %v3583_v4 = vadd.f32 %v16787_v52, %v3582_v37 }
 0x480   : > { %v3646_v50 = vmax.f32 %v3588_v6, 0.0  ;;  %v17030_v6 = vld [vmem:[#allocation3 + $0x47] sm:$0xff] }
 0x481   : > { %v3645_v58 = vmax.f32 %v3583_v4, 0.0  ;;  %v3824_v15 = vld [vmem:[#allocation3 + $0x190] sm:$0xff] }
 0x482   : > { %3752 = vst.msk [vmem:[#allocation3 + $0x1b0] sm:$0xff] %vm1289_vm6, %v3646_v50  ;;  %v3823_v45 = vld [vmem:[#allocation3 + $0x188] sm:$0xff] }
 0x483   : > { %3751 = vst.msk [vmem:[#allocation3 + $0x1a8] sm:$0xff] %vm1289_vm6, %v3645_v58  ;;  %v16956_v38 = vpack.i.bf16 %v3824_v15, %v3823_v45  ;;  %v17034_v58 = vld [vmem:[#allocation3 + $0x51] sm:$0xff] }
 0x484   : > { %v17042_v15 = vld [vmem:[#allocation3 + $0x4f] sm:$0xff] }
 0x485   : > { %v12331_v20 = vpop.f32.mrb[78].mxu0  ;;  %13293 = vrot.lane.b32.xlu0 %v16956_v38, %s14836_s14 }
 0x486   : > { %v3598_v33 = vadd.f32 %v12331_v20, %v16787_v52  ;;  %v3592_v17 = vpop.f32.mrb[79].mxu0  ;;  %v17054_v20 = vld [vmem:[#allocation3 + $0x67] sm:$0xff] }
 0x487   : > { %v3593_v40 = vadd.f32 %v16787_v52, %v3592_v17 }
 0x488   : > { %v3648_v49 = vmax.f32 %v3598_v33, 0.0 }
 0x489   : > { %v3647_v10 = vmax.f32 %v3593_v40, 0.0  ;;  %v3826_v11 = vld [vmem:[#allocation3 + $0x1b0] sm:$0xff] }
 0x48a   : > { %3754 = vst.msk [vmem:[#allocation3 + $0x1d0] sm:$0xff] %vm1289_vm6, %v3648_v49  ;;  %v3825_v62 = vld [vmem:[#allocation3 + $0x1a8] sm:$0xff]  ;;  %v17058_v40 = vld [vmem:[#allocation3 + $0x71] sm:$0xff] }
 0x48b   : > { %3753 = vst.msk [vmem:[#allocation3 + $0x1c8] sm:$0xff] %vm1289_vm6, %v3647_v10  ;;  %v16971_v3 = vpack.i.bf16 %v3826_v11, %v3825_v62  ;;  %v17066_v49 = vld [vmem:[#allocation3 + $0x6f] sm:$0xff] }
 0x48c   : > { %v17070_v62 = vld [vmem:[#allocation3 + $0x89] sm:$0xff] }
 0x48d   : > { %v12334_v36 = vpop.f32.mrb[80].mxu0  ;;  %13298 = vrot.lane.b32.xlu1 %v16971_v3, %s14836_s14 }
 0x48e   : > { %v3608_v0 = vadd.f32 %v12334_v36, %v16787_v52  ;;  %v3602_v18 = vpop.f32.mrb[81].mxu0 }
 0x48f   : > { %v3603_v41 = vadd.f32 %v16787_v52, %v3602_v18  ;;  %v17078_v18 = vld [vmem:[#allocation3 + $0x87] sm:$0xff] }
 0x490   : > { %v3650_v7 = vmax.f32 %v3608_v0, 0.0 }
 0x491   : > { %v3649_v60 = vmax.f32 %v3603_v41, 0.0  ;;  %v3828_v23 = vld [vmem:[#allocation3 + $0x1d0] sm:$0xff] }
 0x492   : > { %3756 = vst.msk [vmem:[#allocation3 + $0x1f0] sm:$0xff] %vm1289_vm6, %v3650_v7  ;;  %v3827_v25 = vld [vmem:[#allocation3 + $0x1c8] sm:$0xff] }
 0x493   : > { %3755 = vst.msk [vmem:[#allocation3 + $0x1e8] sm:$0xff] %vm1289_vm6, %v3649_v60  ;;  %v16985_v35 = vpack.i.bf16 %v3828_v23, %v3827_v25  ;;  %v17093_v25 = vld [vmem:[#allocation3 + $0xa9] sm:$0xff] }
 0x495   : > { %v12337_v8 = vpop.f32.mrb[82].mxu0  ;;  %13303 = vrot.lane.b32.xlu0 %v16985_v35, %s14836_s14 }
 0x496   : > { %v3618_v46 = vadd.f32 %v12337_v8, %v16787_v52  ;;  %v3612_v16 = vpop.f32.mrb[83].mxu0  ;;  %v17101_v8 = vld [vmem:[#allocation3 + $0xa7] sm:$0xff] }
 0x497   : > { %v3613_v61 = vadd.f32 %v16787_v52, %v3612_v16 }
 0x498   : > { %v3652_v12 = vmax.f32 %v3618_v46, 0.0 }
 0x499   : > { %v3651_v21 = vmax.f32 %v3613_v61, 0.0  ;;  %13313 = vrot.lane.b32.xlu0 %v16818_v44, %s14836_s14  ;;  %v3830_v34 = vld [vmem:[#allocation3 + $0x1f0] sm:$0xff]  ;;  %v17006_v44 = vld [vmem:[#allocation3 + $0x27] sm:$0xff] }
 0x49a   : > { %3758 = vst.msk [vmem:[#allocation3 + $0x210] sm:$0xff] %vm1289_vm6, %v3652_v12  ;;  %v3829_v9 = vld [vmem:[#allocation3 + $0x1e8] sm:$0xff]  ;;  %v17105_v61 = vld [vmem:[#allocation3 + $0xb1] sm:$0xff] }
 0x49b   : > { %3757 = vst.msk [vmem:[#allocation3 + $0x208] sm:$0xff] %vm1289_vm6, %v3651_v21  ;;  %v16996_v51 = vpack.i.bf16 %v3830_v34, %v3829_v9  ;;  %v17117_v21 = vld [vmem:[#allocation3 + $0xc9] sm:$0xff] }
 0x49d   : > { %13308 = vrot.lane.b32.xlu1 %v16996_v51, %s14836_s14  ;;  %13323 = vrot.lane.b32.xlu0 %v16840_v56, %s14836_s14 }
 0x4a0   : > { %v13239_v52 = vpop.permute.xlu1 %13238 }
 0x4a1   : > { %v13240_v19 = vunpack.i.l.bf16 %v13239_v52  ;;  %13318 = vrot.lane.b32.xlu1 %v16826_v57, %s14836_s14  ;;  %13333 = vrot.lane.b32.xlu0 %v16855_v55, %s14836_s14  ;;  %v13241_v53 = vunpack.i.h.bf16 %v13239_v52  ;;  %v4463_v0 = vld [vmem:[#allocation3 + $0x210] sm:$0xff] }
 0x4a2   : > { %v4462_v36 = vld [vmem:[#allocation3 + $0x208] sm:$0xff]  ;;  %v17129_v52 = vld [vmem:[#allocation3 + $0xd1] sm:$0xff] }
 0x4a3   : > { %v3993_v14 = vsel %vm1289_vm6, %v17006_v44, %v13240_v19  ;;  %v13244_v26 = vpop.permute.xlu0 %13243  ;;  %v3994_v2 = vsel %vm1289_vm6, %v17018_v24, %v13241_v53  ;;  %v13387_v60 = vpack.i.bf16 %v4463_v0, %v4462_v36  ;;  %v17141_v53 = vld [vmem:[#allocation3 + $0xe9] sm:$0xff]  ;;  %v17190_v0 = vld [vmem:[#allocation3 + $0x131] sm:$0xff] }
 0x4a4   : > { %4218 = vmatmul.mubr.f32.gmra.mrb[88].mxu0 %v3993_v14  ;;  %v13245_v1 = vunpack.i.l.bf16 %v13244_v26  ;;  %v13246_v37 = vunpack.i.h.bf16 %v13244_v26 }
 0x4a5   : > { %11376 = vmatprep.mubr.msk.f32.mxu0 %vm1289_vm6, %v17010_v27  ;;  %13328 = vrot.lane.b32.xlu1 %v16849_v5, %s14836_s14 }
 0x4a6   : > { %13343 = vrot.lane.b32.xlu0 %v16870_v43, %s14836_s14  ;;  %v3995_v4 = vsel %vm1289_vm6, %v17030_v6, %v13245_v1  ;;  %v3996_v48 = vsel %vm1289_vm6, %v17042_v15, %v13246_v37  ;;  %v17153_v1 = vld [vmem:[#allocation3 + $0xf1] sm:$0xff]  ;;  %v17164_v37 = vld [vmem:[#allocation3 + $0x109] sm:$0xff] }
 0x4a7   : > { %v13249_v50 = vpop.permute.xlu1 %13248 }
 0x4a8   : > { %4223 = vmatmul.mubr.f32.gmra.mrb[90].mxu0 %v3994_v2  ;;  %v13250_v45 = vunpack.i.l.bf16 %v13249_v50  ;;  %v13251_v22 = vunpack.i.h.bf16 %v13249_v50 }
 0x4a9   : > { %11377 = vmatprep.mubr.msk.f32.mxu0 %vm1289_vm6, %v17022_v31  ;;  %13338 = vrot.lane.b32.xlu1 %v16865_v59, %s14836_s14 }
 0x4aa   : > { %13353 = vrot.lane.b32.xlu0 %v16907_v30, %s14836_s14  ;;  %v3997_v33 = vsel %vm1289_vm6, %v17054_v20, %v13250_v45  ;;  %v3998_v11 = vsel %vm1289_vm6, %v17066_v49, %v13251_v22  ;;  %v17178_v22 = vld [vmem:[#allocation3 + $0x10f] sm:$0xff] }
 0x4ab   : > { %v13254_v17 = vpop.permute.xlu0 %13253 }
 0x4ac   : > { %4228 = vmatmul.mubr.f32.gmra.mrb[92].mxu0 %v3995_v4  ;;  %v13255_v10 = vunpack.i.l.bf16 %v13254_v17  ;;  %v13256_v41 = vunpack.i.h.bf16 %v13254_v17  ;;  %v17170_v4 = vld [vmem:[#allocation3 + $0x107] sm:$0xff] }
 0x4ad   : > { %11378 = vmatprep.mubr.msk.f32.mxu0 %vm1289_vm6, %v17034_v58  ;;  %13348 = vrot.lane.b32.xlu1 %v16891_v39, %s14836_s14 }
 0x4ae   : > { %13363 = vrot.lane.b32.xlu0 %v16941_v28, %s14836_s14  ;;  %v3999_v7 = vsel %vm1289_vm6, %v17078_v18, %v13255_v10  ;;  %v17186_v10 = vld [vmem:[#allocation3 + $0x127] sm:$0xff] }
 0x4af   : > { %v13259_v54 = vpop.permute.xlu1 %13258 }
 0x4b0   : > { %4233 = vmatmul.mubr.f32.gmra.mrb[94].mxu0 %v3996_v48  ;;  %v13260_v23 = vunpack.i.l.bf16 %v13259_v54  ;;  %v17174_v48 = vld [vmem:[#allocation3 + $0x111] sm:$0xff] }
 0x4b1   : > { %11379 = vmatprep.mubr.msk.f32.mxu0 %vm1289_vm6, %v17046_v32  ;;  %13358 = vrot.lane.b32.xlu1 %v16932_v63, %s14836_s14 }
 0x4b2   : > { %13373 = vrot.lane.b32.xlu0 %v16971_v3, %s14836_s14  ;;  %v4001_v46 = vsel %vm1289_vm6, %v17101_v8, %v13260_v23 }
 0x4b3   : > { %v13264_v16 = vpop.permute.xlu0 %13263 }
 0x4b4   : > { %4238 = vmatmul.mubr.f32.gmra.mrb[96].mxu0 %v3997_v33 }
 0x4b5   : > { %11380 = vmatprep.mubr.msk.f32.mxu0 %vm1289_vm6, %v17058_v40  ;;  %13368 = vrot.lane.b32.xlu1 %v16956_v38, %s14836_s14 }
 0x4b6   : > { %13383 = vrot.lane.b32.xlu0 %v16996_v51, %s14836_s14 }
 0x4b7   : > { %v13269_v9 = vpop.permute.xlu1 %13268 }
 0x4b8   : > { %4243 = vmatmul.mubr.f32.gmra.mrb[98].mxu0 %v3998_v11 }
 0x4b9   : > { %11381 = vmatprep.mubr.msk.f32.mxu0 %vm1289_vm6, %v17070_v62  ;;  %13378 = vrot.lane.b32.xlu1 %v16985_v35, %s14836_s14 }
 0x4ba   : > { %13393 = vrot.lane.b32.xlu0 %v16826_v57, %s14836_s14  ;;  %v17089_v57 = vld [vmem:[#allocation3 + $0x8f] sm:$0xff] }
 0x4bb   : > { %v4000_v42 = vsel %vm1289_vm6, %v17089_v57, %v13256_v41  ;;  %v17194_v41 = vld [vmem:[#allocation3 + $0x12f] sm:$0xff] }
 0x4bc   : > { %4248 = vmatmul.mubr.f32.gmra.mrb[100].mxu0 %v3999_v7 }
 0x4bd   : > { %11382 = vmatprep.mubr.msk.f32.mxu0 %vm1289_vm6, %v17082_v13  ;;  %13388 = vrot.lane.b32.xlu1 %v13387_v60, %s14836_s14 }
 0x4be   : > { %13403 = vrot.lane.b32.xlu0 %v16849_v5, %s14836_s14  ;;  %v13261_v5 = vunpack.i.h.bf16 %v13259_v54 }
 0x4c0   : > { %4253 = vmatmul.mubr.f32.gmra.mrb[102].mxu0 %v4000_v42  ;;  %v17202_v42 = vld [vmem:[#allocation3 + $0x147] sm:$0xff] }
 0x4c1   : > { %11383 = vmatprep.mubr.msk.f32.mxu0 %vm1289_vm6, %v17093_v25  ;;  %13398 = vrot.lane.b32.xlu1 %v16840_v56, %s14836_s14  ;;  %v17113_v56 = vld [vmem:[#allocation3 + $0xaf] sm:$0xff] }
 0x4c2   : > { %13413 = vrot.lane.b32.xlu0 %v16865_v59, %s14836_s14  ;;  %v13265_v59 = vunpack.i.l.bf16 %v13264_v16  ;;  %v4002_v12 = vsel %vm1289_vm6, %v17113_v56, %v13261_v5 }
 0x4c4   : > { %4258 = vmatmul.mubr.f32.gmra.mrb[104].mxu0 %v4001_v46 }
 0x4c5   : > { %11384 = vmatprep.mubr.msk.f32.mxu0 %vm1289_vm6, %v17105_v61  ;;  %13408 = vrot.lane.b32.xlu1 %v16855_v55, %s14836_s14  ;;  %v17125_v55 = vld [vmem:[#allocation3 + $0xc7] sm:$0xff] }
 0x4c6   : > { %13423 = vrot.lane.b32.xlu0 %v16891_v39, %s14836_s14  ;;  %v13266_v39 = vunpack.i.h.bf16 %v13264_v16  ;;  %v4003_v34 = vsel %vm1289_vm6, %v17125_v55, %v13265_v59  ;;  %v17206_v16 = vld [vmem:[#allocation3 + $0x151] sm:$0xff] }
 0x4c7   : > { %v13274_v26 = vpop.permute.xlu0 %13273  ;;  %v17210_v59 = vld [vmem:[#allocation3 + $0x14f] sm:$0xff] }
 0x4c8   : > { %4263 = vmatmul.mubr.f32.gmra.mrb[106].mxu0 %v4002_v12 }
 0x4c9   : > { %11385 = vmatprep.mubr.msk.f32.mxu0 %vm1289_vm6, %v17117_v21  ;;  %13418 = vrot.lane.b32.xlu1 %v16870_v43, %s14836_s14  ;;  %v17137_v43 = vld [vmem:[#allocation3 + $0xcf] sm:$0xff] }
 0x4ca   : > { %13433 = vrot.lane.b32.xlu0 %v16932_v63, %s14836_s14  ;;  %v13270_v63 = vunpack.i.l.bf16 %v13269_v9  ;;  %v4004_v19 = vsel %vm1289_vm6, %v17137_v43, %v13266_v39 }
 0x4cc   : > { %4268 = vmatmul.mubr.f32.gmra.mrb[108].mxu0 %v4003_v34  ;;  %v17214_v34 = vld [vmem:[#allocation3 + $0x169] sm:$0xff] }
 0x4cd   : > { %11386 = vmatprep.mubr.msk.f32.mxu0 %vm1289_vm6, %v17129_v52  ;;  %13428 = vrot.lane.b32.xlu1 %v16907_v30, %s14836_s14  ;;  %v17149_v30 = vld [vmem:[#allocation3 + $0xe7] sm:$0xff] }
 0x4ce   : > { %13443 = vrot.lane.b32.xlu0 %v16956_v38, %s14836_s14  ;;  %v13271_v38 = vunpack.i.h.bf16 %v13269_v9  ;;  %v4005_v14 = vsel %vm1289_vm6, %v17149_v30, %v13270_v63  ;;  %v17218_v63 = vld [vmem:[#allocation3 + $0x167] sm:$0xff] }
 0x4d0   : > { %4273 = vmatmul.mubr.f32.gmra.mrb[110].mxu0 %v4004_v19 }
 0x4d1   : > { %11387 = vmatprep.mubr.msk.f32.mxu0 %vm1289_vm6, %v17141_v53  ;;  %13438 = vrot.lane.b32.xlu1 %v16941_v28, %s14836_s14  ;;  %v17160_v28 = vld [vmem:[#allocation3 + $0xef] sm:$0xff] }
 0x4d2   : > { %13453 = vrot.lane.b32.xlu0 %v16985_v35, %s14836_s14  ;;  %v13275_v35 = vunpack.i.l.bf16 %v13274_v26  ;;  %v4006_v2 = vsel %vm1289_vm6, %v17160_v28, %v13271_v38 }
 0x4d4   : > { %4278 = vmatmul.mubr.f32.gmra.mrb[112].mxu0 %v4005_v14  ;;  %v4007_v50 = vsel %vm1289_vm6, %v17170_v4, %v13275_v35  ;;  %v17222_v14 = vld [vmem:[#allocation3 + $0x171] sm:$0xff] }
 0x4d5   : > { %11388 = vmatprep.mubr.msk.f32.mxu0 %vm1289_vm6, %v17153_v1  ;;  %13448 = vrot.lane.b32.xlu1 %v16971_v3, %s14836_s14  ;;  %v13276_v3 = vunpack.i.h.bf16 %v13274_v26  ;;  %v17226_v26 = vld [vmem:[#allocation3 + $0x16f] sm:$0xff] }
 0x4d6   : > { %13463 = vrot.lane.b32.xlu0 %v13387_v60, %s14836_s14  ;;  %v17198_v60 = vld [vmem:[#allocation3 + $0x149] sm:$0xff] }
 0x4d7   : > { %v13279_v45 = vpop.permute.xlu1 %13278  ;;  %v4008_v17 = vsel %vm1289_vm6, %v17178_v22, %v13276_v3  ;;  %v17230_v3 = vld [vmem:[#allocation3 + $0x189] sm:$0xff] }
 0x4d8   : > { %4283 = vmatmul.mubr.f32.gmra.mrb[114].mxu0 %v4006_v2  ;;  %v13280_v33 = vunpack.i.l.bf16 %v13279_v45  ;;  %v13281_v11 = vunpack.i.h.bf16 %v13279_v45  ;;  %v17234_v45 = vld [vmem:[#allocation3 + $0x187] sm:$0xff] }
 0x4d9   : > { %11389 = vmatprep.mubr.msk.f32.mxu0 %vm1289_vm6, %v17164_v37  ;;  %13458 = vrot.lane.b32.xlu1 %v16996_v51, %s14836_s14  ;;  %v17182_v51 = vld [vmem:[#allocation3 + $0x129] sm:$0xff] }
 0x4da   : > { %v4009_v36 = vsel %vm1289_vm6, %v17186_v10, %v13280_v33  ;;  %v4010_v7 = vsel %vm1289_vm6, %v17194_v41, %v13281_v11  ;;  %v17238_v11 = vld [vmem:[#allocation3 + $0x191] sm:$0xff] }
 0x4dc   : > { %4288 = vmatmul.mubr.f32.gmra.mrb[116].mxu0 %v4007_v50 }
 0x4dd   : > { %11390 = vmatprep.mubr.msk.f32.mxu0 %vm1289_vm6, %v17174_v48 }
 0x4e0   : > { %4293 = vmatmul.mubr.f32.gmra.mrb[118].mxu0 %v4008_v17 }
 0x4e1   : > { %11391 = vmatprep.mubr.msk.f32.mxu0 %vm1289_vm6, %v17182_v51 }
 0x4e4   : > { %4298 = vmatmul.mubr.f32.gmra.mrb[120].mxu0 %v4009_v36  ;;  %v17242_v36 = vld [vmem:[#allocation3 + $0x18f] sm:$0xff] }
 0x4e5   : > { %11392 = vmatprep.mubr.msk.f32.mxu0 %vm1289_vm6, %v17190_v0 }
 0x4e7   : > { %v13284_v54 = vpop.permute.xlu0 %13283 }
 0x4e8   : > { %4303 = vmatmul.mubr.f32.gmra.mrb[122].mxu0 %v4010_v7  ;;  %v13285_v23 = vunpack.i.l.bf16 %v13284_v54  ;;  %v13286_v5 = vunpack.i.h.bf16 %v13284_v54 }
 0x4e9   : > { %11393 = vmatprep.mubr.msk.f32.mxu0 %vm1289_vm6, %v17198_v60 }
 0x4ea   : > { %v4011_v46 = vsel %vm1289_vm6, %v17202_v42, %v13285_v23  ;;  %v4012_v12 = vsel %vm1289_vm6, %v17210_v59, %v13286_v5  ;;  %v17246_v23 = vld [vmem:[#allocation3 + $0x1a9] sm:$0xff] }
 0x4ec   : > { %4308 = vmatmul.mubr.f32.gmra.mrb[124].mxu0 %v4011_v46  ;;  %v17250_v46 = vld [vmem:[#allocation3 + $0x1a7] sm:$0xff] }
 0x4ed   : > { %11394 = vmatprep.mubr.msk.f32.mxu0 %vm1289_vm6, %v17206_v16 }
 0x4ef   : > { %v13289_v39 = vpop.permute.xlu1 %13288 }
 0x4f0   : > { %4313 = vmatmul.mubr.f32.gmra.mrb[126].mxu0 %v4012_v12  ;;  %v13290_v9 = vunpack.i.l.bf16 %v13289_v39  ;;  %v13291_v19 = vunpack.i.h.bf16 %v13289_v39 }
 0x4f1   : > { %11395 = vmatprep.mubr.msk.f32.mxu0 %vm1289_vm6, %v17214_v34 }
 0x4f2   : > { %v4013_v38 = vsel %vm1289_vm6, %v17218_v63, %v13290_v9  ;;  %v4014_v35 = vsel %vm1289_vm6, %v17226_v26, %v13291_v19  ;;  %v17254_v9 = vld [vmem:[#allocation3 + $0x1b1] sm:$0xff] }
 0x4f3   : > { %20371 = vst [vmem:[#allocation18_spill] sm:$0xff] %v17254_v9  ;;  %v17258_v19 = vld [vmem:[#allocation3 + $0x1af] sm:$0xff] }
 0x4f4   : > { %4318 = vmatmul.mubr.f32.gmra.mrb[128].mxu0 %v4013_v38  ;;  %20372 = vst [vmem:[#allocation20_spill] sm:$0xff] %v17258_v19 }
 0x4f5   : > { %11396 = vmatprep.mubr.msk.f32.mxu0 %vm1289_vm6, %v17222_v14 }
 0x4f7   : > { %v13294_v2 = vpop.permute.xlu0 %13293 }
 0x4f8   : > { %4323 = vmatmul.mubr.f32.gmra.mrb[130].mxu0 %v4014_v35  ;;  %v13295_v50 = vunpack.i.l.bf16 %v13294_v2  ;;  %v13296_v33 = vunpack.i.h.bf16 %v13294_v2  ;;  %v17262_v2 = vld [vmem:[#allocation3 + $0x1c9] sm:$0xff] }
 0x4f9   : > { %11397 = vmatprep.mubr.msk.f32.mxu0 %vm1289_vm6, %v17230_v3  ;;  %20373 = vst [vmem:[#allocation19_spill] sm:$0xff] %v17262_v2 }
 0x4fa   : > { %v4015_v17 = vsel %vm1289_vm6, %v17234_v45, %v13295_v50  ;;  %v4016_v7 = vsel %vm1289_vm6, %v17242_v36, %v13296_v33  ;;  %v17266_v33 = vld [vmem:[#allocation3 + $0x1c7] sm:$0xff] }
 0x4fb   : > { %20374 = vst [vmem:[#allocation26_spill] sm:$0xff] %v17266_v33 }
 0x4fc   : > { %4328 = vmatmul.mubr.f32.gmra.mrb[132].mxu0 %v4015_v17 }
 0x4fd   : > { %11398 = vmatprep.mubr.msk.f32.mxu0 %vm1289_vm6, %v17238_v11 }
 0x4ff   : > { %v13299_v54 = vpop.permute.xlu1 %13298 }
 0x500   : > { %4333 = vmatmul.mubr.f32.gmra.mrb[134].mxu0 %v4016_v7  ;;  %v13300_v5 = vunpack.i.l.bf16 %v13299_v54  ;;  %v13301_v12 = vunpack.i.h.bf16 %v13299_v54  ;;  %v17270_v54 = vld [vmem:[#allocation3 + $0x1d1] sm:$0xff] }
 0x501   : > { %11399 = vmatprep.mubr.msk.f32.mxu0 %vm1289_vm6, %v17246_v23  ;;  %20375 = vst [vmem:[#allocation21_spill] sm:$0xff] %v17270_v54 }
 0x502   : > { %v4017_v39 = vsel %vm1289_vm6, %v17250_v46, %v13300_v5  ;;  %v4018_v38 = vsel %vm1289_vm6, %v17258_v19, %v13301_v12  ;;  %v17274_v5 = vld [vmem:[#allocation3 + $0x1cf] sm:$0xff] }
 0x503   : > { %20376 = vst [vmem:[#allocation28_spill] sm:$0xff] %v17274_v5 }
 0x504   : > { %4338 = vmatmul.mubr.f32.gmra.mrb[136].mxu0 %v4017_v39 }
 0x505   : > { %11400 = vmatprep.mubr.msk.f32.mxu0 %vm1289_vm6, %v17254_v9 }
 0x507   : > { %v13304_v35 = vpop.permute.xlu0 %13303 }
 0x508   : > { %4343 = vmatmul.mubr.f32.gmra.mrb[138].mxu0 %v4018_v38  ;;  %v13305_v50 = vunpack.i.l.bf16 %v13304_v35  ;;  %v13306_v17 = vunpack.i.h.bf16 %v13304_v35  ;;  %v17278_v38 = vld [vmem:[#allocation3 + $0x1e9] sm:$0xff] }
 0x509   : > { %11401 = vmatprep.mubr.msk.f32.mxu0 %vm1289_vm6, %v17262_v2  ;;  %20377 = vst [vmem:[#allocation22_spill] sm:$0xff] %v17278_v38  ;;  %v17282_v35 = vld [vmem:[#allocation3 + $0x1e7] sm:$0xff] }
 0x50a   : > { %v4019_v7 = vsel %vm1289_vm6, %v17266_v33, %v13305_v50  ;;  %v4020_v12 = vsel %vm1289_vm6, %v17274_v5, %v13306_v17  ;;  %20378 = vst [vmem:[#allocation23_spill] sm:$0xff] %v17282_v35  ;;  %v17286_v33 = vld [vmem:[#allocation3 + $0x1f1] sm:$0xff] }
 0x50b   : > { %20379 = vst [vmem:[#allocation14_spill] sm:$0xff] %v17286_v33  ;;  %v17290_v17 = vld [vmem:[#allocation3 + $0x1ef] sm:$0xff]  ;;  %v11464_v5 = vld [vmem:[%s20216_s7 + $0x198] sm:$0xff] }
 0x50c   : > { %4348 = vmatmul.mubr.f32.gmra.mrb[140].mxu0 %v4019_v7 }
 0x50d   : > { %11402 = vmatprep.mubr.msk.f32.mxu0 %vm1289_vm6, %v17270_v54  ;;  %v13314_v54 = vpop.permute.xlu0 %13313 }
 0x50e   : > { %v13316_v2 = vunpack.i.h.bf16 %v13314_v54 }
 0x50f   : > { %v13309_v39 = vpop.permute.xlu1 %13308 }
 0x510   : > { %4353 = vmatmul.mubr.f32.gmra.mrb[142].mxu0 %v4020_v12  ;;  %v13310_v47 = vunpack.i.l.bf16 %v13309_v39  ;;  %v13311_v50 = vunpack.i.h.bf16 %v13309_v39  ;;  %v11461_v12 = vld [vmem:[%s20216_s7 + $0x180] sm:$0xff]  ;;  %v11462_v39 = vld [vmem:[%s20216_s7 + $0x188] sm:$0xff] }
 0x511   : > { %11403 = vmatprep.mubr.msk.f32.mxu0 %vm1289_vm6, %v17278_v38  ;;  %v13315_v38 = vunpack.i.l.bf16 %v13314_v54  ;;  %v11466_v54 = vld [vmem:[%s20216_s7 + $0x1a8] sm:$0xff] }
 0x512   : > { %v4021_v7 = vsel %vm1289_vm6, %v17282_v35, %v13310_v47  ;;  %v4022_v47 = vsel %vm1289_vm6, %v17290_v17, %v13311_v50  ;;  %v12509_v35 = vpack.c.bf16 %v11462_v39, %v11461_v12  ;;  %v5097_v50 = vld [vmem:[#allocation3 + $0x228] sm:$0xff]  ;;  %v20380_v39 = vmov 0.0|0.0  }
 0x513   : > { %v4624_v19 = vsel %vm1289_vm6, %v17006_v44, %v13315_v38  ;;  %v13319_v9 = vpop.permute.xlu1 %13318 }
 0x514   : > { %4358 = vmatmul.mubr.f32.gmra.mrb[144].mxu0 %v4021_v7  ;;  %v4464_v7 = vld [vmem:[#allocation3 + $0x29] sm:$0xff]  ;;  %v13320_v38 = vunpack.i.l.bf16 %v13319_v9 }
 0x515   : > { %11404 = vmatprep.mubr.msk.f32.mxu0 %vm1289_vm6, %v17286_v33  ;;  %v11463_v33 = vld [vmem:[%s20216_s7 + $0x190] sm:$0xff] }
 0x516   : > { %v12512_v12 = vpack.c.bf16 %v11464_v5, %v11463_v33  ;;  %v11467_v33 = vld [vmem:[%s20216_s7 + $0x1b0] sm:$0xff]  ;;  %v11468_v5 = vld [vmem:[%s20216_s7 + $0x1b8] sm:$0xff] }
 0x518   : > { %4363 = vmatmul.mubr.f32.gmra.mrb[146].mxu0 %v4022_v47  ;;  %v5098_v47 = vld [vmem:[#allocation3 + $0x230] sm:$0xff] }
 0x519   : > { %11429 = vmatprep.mubr.msk.f32.mxu0 %vm1289_vm6, %v4464_v7  ;;  %v11465_v7 = vld [vmem:[%s20216_s7 + $0x1a0] sm:$0xff]  ;;  %v13467_v44 = vpack.i.bf16 %v5098_v47, %v5097_v50 }
 0x51a   : > { %v11469_v50 = vld [vmem:[%s20216_s7 + $0x1c0] sm:$0xff] }
 0x51b   : > { %13468 = vrot.lane.b32.xlu1 %v13467_v44, %s14836_s14  ;;  %v13329_v44 = vpop.permute.xlu1 %13328 }
 0x51c   : > { %4842 = vmatmul.mubr.f32.vlgmr.msra.gmra.mrb[84].mxu0 %v4624_v19  ;;  %v4625_v19 = vsel %vm1289_vm6, %v17018_v24, %v13316_v2  ;;  %v4626_v24 = vsel %vm1289_vm6, %v17030_v6, %v13320_v38  ;;  %v13324_v2 = vpop.permute.xlu0 %13323  ;;  %v11473_v38 = vld [vmem:[%s20216_s7 + $0x1e0] sm:$0xff] }
 0x51d   : > { %12510 = vmatpush1.bf16.msra.mxu0 %v12509_v35  ;;  %11430 = vmatprep.mubr.msk.f32.mxu0 %vm1289_vm6, %v17010_v27  ;;  %v12515_v27 = vpack.c.bf16 %v11466_v54, %v11465_v7  ;;  %v13321_v35 = vunpack.i.h.bf16 %v13319_v9  ;;  %v11470_v9 = vld [vmem:[%s20216_s7 + $0x1c8] sm:$0xff]  ;;  %v13325_v47 = vunpack.i.l.bf16 %v13324_v2  ;;  %v11472_v7 = vld [vmem:[%s20216_s7 + $0x1d8] sm:$0xff]  ;;  %v13326_v54 = vunpack.i.h.bf16 %v13324_v2  ;;  %v11477_v2 = vld [vmem:[%s20216_s7 + $0x200] sm:$0xff] }
 0x51e   : > { %12511 = vmatprep.subr.bf16.mxu0 %v20380_v39 }
 0x51f   : > { %v4627_v6 = vsel %vm1289_vm6, %v17042_v15, %v13321_v35  ;;  %v4628_v15 = vsel %vm1289_vm6, %v17054_v20, %v13325_v47  ;;  %v4629_v20 = vsel %vm1289_vm6, %v17066_v49, %v13326_v54  ;;  %v13331_v35 = vunpack.i.h.bf16 %v13329_v44  ;;  %v11480_v47 = vld [vmem:[%s20216_s7 + $0x218] sm:$0xff] }
 0x520   : > { %4847 = vmatmul.mubr.f32.gmra.mrb[86].mxu0 %v4625_v19  ;;  %v11474_v19 = vld [vmem:[%s20216_s7 + $0x1e8] sm:$0xff] }
 0x521   : > { %11431 = vmatprep.mubr.msk.f32.mxu0 %vm1289_vm6, %v17022_v31  ;;  %12513 = vmatpush1.bf16.msra.mxu0 %v12512_v12  ;;  %v12518_v31 = vpack.c.bf16 %v11468_v5, %v11467_v33  ;;  %v11471_v12 = vld [vmem:[%s20216_s7 + $0x1d0] sm:$0xff]  ;;  %v11476_v5 = vld [vmem:[%s20216_s7 + $0x1f8] sm:$0xff] }
 0x522   : > { %12514 = vmatprep.subr.bf16.mxu0 %v20380_v39  ;;  %v11475_v33 = vld [vmem:[%s20216_s7 + $0x1f0] sm:$0xff] }
 0x524   : > { %4852 = vmatmul.mubr.f32.gmra.mrb[88].mxu0 %v4626_v24  ;;  %v13334_v24 = vpop.permute.xlu0 %13333 }
 0x525   : > { %11432 = vmatprep.mubr.msk.f32.mxu0 %vm1289_vm6, %v17034_v58  ;;  %12516 = vmatpush1.bf16.msra.mxu0 %v12515_v27  ;;  %v12521_v58 = vpack.c.bf16 %v11470_v9, %v11469_v50  ;;  %v13330_v27 = vunpack.i.l.bf16 %v13329_v44  ;;  %v13335_v50 = vunpack.i.l.bf16 %v13334_v24  ;;  %v11479_v9 = vld [vmem:[%s20216_s7 + $0x210] sm:$0xff]  ;;  %v11484_v44 = vld [vmem:[%s20216_s7 + $0x238] sm:$0xff] }
 0x526   : > { %12517 = vmatprep.subr.bf16.mxu0 %v20380_v39 }
 0x527   : > { %v4630_v49 = vsel %vm1289_vm6, %v17078_v18, %v13330_v27  ;;  %v4631_v18 = vsel %vm1289_vm6, %v17089_v57, %v13331_v35  ;;  %v4632_v57 = vsel %vm1289_vm6, %v17101_v8, %v13335_v50  ;;  %v5858_v50 = vld [vmem:[#allocation4 + $0x2f] sm:$0xff] }
 0x528   : > { %4857 = vmatmul.mubr.f32.gmra.mrb[90].mxu0 %v4627_v6  ;;  %v13336_v6 = vunpack.i.h.bf16 %v13334_v24 }
 0x529   : > { %11433 = vmatprep.mubr.msk.f32.mxu0 %vm1289_vm6, %v17046_v32  ;;  %12519 = vmatpush1.bf16.msra.mxu0 %v12518_v31  ;;  %v12524_v32 = vpack.c.bf16 %v11472_v7, %v11471_v12  ;;  %v11478_v31 = vld [vmem:[%s20216_s7 + $0x208] sm:$0xff]  ;;  %v11481_v12 = vld [vmem:[%s20216_s7 + $0x220] sm:$0xff] }
 0x52a   : > { %12520 = vmatprep.subr.bf16.mxu0 %v20380_v39  ;;  %v11482_v7 = vld [vmem:[%s20216_s7 + $0x228] sm:$0xff]  ;;  %v4633_v8 = vsel %vm1289_vm6, %v17113_v56, %v13336_v6 }
 0x52c   : > { %4862 = vmatmul.mubr.f32.gmra.mrb[92].mxu0 %v4628_v15  ;;  %v11483_v15 = vld [vmem:[%s20216_s7 + $0x230] sm:$0xff] }
 0x52d   : > { %11434 = vmatprep.mubr.msk.f32.mxu0 %vm1289_vm6, %v17058_v40  ;;  %12522 = vmatpush1.bf16.msra.mxu0 %v12521_v58  ;;  %v12527_v40 = vpack.c.bf16 %v11474_v19, %v11473_v38  ;;  %v13339_v58 = vpop.permute.xlu1 %13338  ;;  %v13344_v38 = vpop.permute.xlu0 %13343 }
 0x52e   : > { %12523 = vmatprep.subr.bf16.mxu0 %v20380_v39  ;;  %v13340_v54 = vunpack.i.l.bf16 %v13339_v58  ;;  %v13345_v19 = vunpack.i.l.bf16 %v13344_v38 }
 0x530   : > { %4867 = vmatmul.mubr.f32.gmra.mrb[94].mxu0 %v4629_v20  ;;  %v4634_v56 = vsel %vm1289_vm6, %v17125_v55, %v13340_v54  ;;  %v13346_v55 = vunpack.i.h.bf16 %v13344_v38  ;;  %v4636_v20 = vsel %vm1289_vm6, %v17149_v30, %v13345_v19  ;;  %v5922_v54 = vld [vmem:[#allocation4 + $0x31] sm:$0xff]  ;;  %v20385_v19 = vld [vmem:[#allocation21_spill] sm:$0xff] }
 0x531   : > { %11435 = vmatprep.mubr.msk.f32.mxu0 %vm1289_vm6, %v17070_v62  ;;  %12525 = vmatpush1.bf16.msra.mxu0 %v12524_v32  ;;  %v12530_v62 = vpack.c.bf16 %v11476_v5, %v11475_v33  ;;  %v13341_v32 = vunpack.i.h.bf16 %v13339_v58  ;;  %v13354_v5 = vpop.permute.xlu0 %13353  ;;  %v5919_v58 = vld [vmem:[#allocation4 + $0x9] sm:$0xff] }
 0x532   : > { %12526 = vmatprep.subr.bf16.mxu0 %v20380_v39  ;;  %v13355_v30 = vunpack.i.l.bf16 %v13354_v5 }
 0x533   : > { %v4635_v27 = vsel %vm1289_vm6, %v17137_v43, %v13341_v32  ;;  %v4637_v43 = vsel %vm1289_vm6, %v17160_v28, %v13346_v55  ;;  %v13356_v28 = vunpack.i.h.bf16 %v13354_v5  ;;  %v20386_v55 = vld [vmem:[#allocation28_spill] sm:$0xff]  ;;  %v20389_v5 = vld [vmem:[#allocation14_spill] sm:$0xff] }
 0x534   : > { %4872 = vmatmul.mubr.f32.gmra.mrb[96].mxu0 %v4630_v49 }
 0x535   : > { %11436 = vmatprep.mubr.msk.f32.mxu0 %vm1289_vm6, %v17082_v13  ;;  %12528 = vmatpush1.bf16.msra.mxu0 %v12527_v40  ;;  %v12533_v13 = vpack.c.bf16 %v11478_v31, %v11477_v2  ;;  %v13364_v49 = vpop.permute.xlu0 %13363  ;;  %v5856_v2 = vld [vmem:[#allocation4 + $0xf] sm:$0xff]  ;;  %v5857_v31 = vld [vmem:[#allocation4 + $0x27] sm:$0xff] }
 0x536   : > { %12529 = vmatprep.subr.bf16.mxu0 %v20380_v39 }
 0x538   : > { %4877 = vmatmul.mubr.f32.gmra.mrb[98].mxu0 %v4631_v18  ;;  %v5888_v18 = vld [vmem:[#allocation4 + $0x10] sm:$0xff] }
 0x539   : > { %11437 = vmatprep.mubr.msk.f32.mxu0 %vm1289_vm6, %v17093_v25  ;;  %12531 = vmatpush1.bf16.msra.mxu0 %v12530_v62  ;;  %v12536_v25 = vpack.c.bf16 %v11480_v47, %v11479_v9  ;;  %v13374_v62 = vpop.permute.xlu0 %13373  ;;  %v5889_v9 = vld [vmem:[#allocation4 + $0x28] sm:$0xff]  ;;  %v5890_v47 = vld [vmem:[#allocation4 + $0x30] sm:$0xff] }
 0x53a   : > { %12532 = vmatprep.subr.bf16.mxu0 %v20380_v39  ;;  %v13487_v6 = vpack.i.bf16 %v5890_v47, %v5889_v9  ;;  %v13376_v29 = vunpack.i.h.bf16 %v13374_v62 }
 0x53c   : > { %4882 = vmatmul.mubr.f32.gmra.mrb[100].mxu0 %v4632_v57 }
 0x53d   : > { %11438 = vmatprep.mubr.msk.f32.mxu0 %vm1289_vm6, %v17105_v61  ;;  %12534 = vmatpush1.bf16.msra.mxu0 %v12533_v13  ;;  %v12539_v61 = vpack.c.bf16 %v11482_v7, %v11481_v12  ;;  %v20381_v12 = vld [vmem:[#allocation18_spill] sm:$0xff]  ;;  %v5921_v7 = vld [vmem:[#allocation4 + $0x29] sm:$0xff] }
 0x53e   : > { %12535 = vmatprep.subr.bf16.mxu0 %v20380_v39 }
 0x540   : > { %4887 = vmatmul.mubr.f32.gmra.mrb[102].mxu0 %v4633_v8  ;;  %v13497_v8 = vpack.i.bf16 %v5922_v54, %v5921_v7 }
 0x541   : > { %11439 = vmatprep.mubr.msk.f32.mxu0 %vm1289_vm6, %v17117_v21  ;;  %12537 = vmatpush1.bf16.msra.mxu0 %v12536_v25  ;;  %v12542_v21 = vpack.c.bf16 %v11484_v44, %v11483_v15  ;;  %v5920_v25 = vld [vmem:[#allocation4 + $0x11] sm:$0xff] }
 0x542   : > { %12538 = vmatprep.subr.bf16.mxu0 %v20380_v39  ;;  %v20382_v15 = vld [vmem:[#allocation20_spill] sm:$0xff] }
 0x543   : > { %v4649_v44 = vsel %vm1289_vm6, %v20382_v15, %v13376_v29  ;;  %v11555_v29 = vld [vmem:[%s20218_s9 + $0xc8] sm:$0xff] }
 0x544   : > { %4892 = vmatmul.mubr.f32.gmra.mrb[104].mxu0 %v4634_v56  ;;  %v20384_v56 = vld [vmem:[#allocation26_spill] sm:$0xff] }
 0x545   : > { %11440 = vmatprep.mubr.msk.f32.mxu0 %vm1289_vm6, %v17129_v52  ;;  %12540 = vmatpush1.bf16.msra.mxu0 %v12539_v61  ;;  %v13349_v52 = vpop.permute.xlu1 %13348 }
 0x546   : > { %12541 = vmatprep.subr.bf16.mxu0 %v20380_v39  ;;  %v13350_v40 = vunpack.i.l.bf16 %v13349_v52 }
 0x548   : > { %4897 = vmatmul.mubr.f32.gmra.mrb[106].mxu0 %v4635_v27  ;;  %v4638_v33 = vsel %vm1289_vm6, %v17170_v4, %v13350_v40 }
 0x549   : > { %11441 = vmatprep.mubr.msk.f32.mxu0 %vm1289_vm6, %v17141_v53  ;;  %12543 = vmatpush1.bf16.msra.mxu0 %v12542_v21  ;;  %v13351_v53 = vunpack.i.h.bf16 %v13349_v52  ;;  %v13359_v35 = vpop.permute.xlu1 %13358  ;;  %v13384_v21 = vpop.permute.xlu0 %13383  ;;  %v20387_v52 = vld [vmem:[#allocation22_spill] sm:$0xff] }
 0x54a   : > { %12544 = vmatprep.subr.bf16.mxu0 %v20380_v39  ;;  %v13360_v4 = vunpack.i.l.bf16 %v13359_v35  ;;  %v13385_v27 = vunpack.i.l.bf16 %v13384_v21  ;;  %v13386_v40 = vunpack.i.h.bf16 %v13384_v21 }
 0x54c   : > { %4902 = vmatmul.mubr.f32.gmra.mrb[108].mxu0 %v4636_v20 }
 0x54d   : > { %11442 = vmatprep.mubr.msk.f32.mxu0 %vm1289_vm6, %v17153_v1  ;;  %v4639_v1 = vsel %vm1289_vm6, %v17178_v22, %v13351_v53  ;;  %v13361_v22 = vunpack.i.h.bf16 %v13359_v35  ;;  %v13369_v24 = vpop.permute.xlu1 %13368 }
 0x550   : > { %4907 = vmatmul.mubr.f32.gmra.mrb[110].mxu0 %v4637_v43  ;;  %v20388_v43 = vld [vmem:[#allocation23_spill] sm:$0xff] }
 0x551   : > { %11443 = vmatprep.mubr.msk.f32.mxu0 %vm1289_vm6, %v17164_v37  ;;  %v4640_v37 = vsel %vm1289_vm6, %v17186_v10, %v13355_v30  ;;  %v13365_v10 = vunpack.i.l.bf16 %v13364_v49  ;;  %v4652_v53 = vsel %vm1289_vm6, %v20388_v43, %v13385_v27  ;;  %v5039_v43 = vld [vmem:[#allocation3 + $0x87] sm:$0xff] }
 0x554   : > { %4912 = vmatmul.mubr.f32.gmra.mrb[112].mxu0 %v4638_v33 }
 0x555   : > { %11444 = vmatprep.mubr.msk.f32.mxu0 %vm1289_vm6, %v17174_v48  ;;  %v4641_v48 = vsel %vm1289_vm6, %v17194_v41, %v13356_v28  ;;  %v13366_v41 = vunpack.i.h.bf16 %v13364_v49  ;;  %v17547_v28 = vld [vmem:[#allocation3 + $0x209] sm:$0xff] }
 0x558   : > { %4917 = vmatmul.mubr.f32.gmra.mrb[114].mxu0 %v4639_v1  ;;  %v4653_v1 = vsel %vm1289_vm6, %v17290_v17, %v13386_v40  ;;  %v17559_v17 = vld [vmem:[#allocation3 + $0x20f] sm:$0xff] }
 0x559   : > { %11445 = vmatprep.mubr.msk.f32.mxu0 %vm1289_vm6, %v17182_v51  ;;  %v4642_v51 = vsel %vm1289_vm6, %v17202_v42, %v13360_v4  ;;  %v13370_v42 = vunpack.i.l.bf16 %v13369_v24 }
 0x55c   : > { %4922 = vmatmul.mubr.f32.gmra.mrb[116].mxu0 %v4640_v37  ;;  %v17551_v37 = vld [vmem:[#allocation3 + $0x207] sm:$0xff] }
 0x55d   : > { %11446 = vmatprep.mubr.msk.f32.mxu0 %vm1289_vm6, %v17190_v0  ;;  %v4643_v0 = vsel %vm1289_vm6, %v17210_v59, %v13361_v22  ;;  %v13371_v59 = vunpack.i.h.bf16 %v13369_v24  ;;  %v17555_v22 = vld [vmem:[#allocation3 + $0x211] sm:$0xff] }
 0x560   : > { %4927 = vmatmul.mubr.f32.gmra.mrb[118].mxu0 %v4641_v48  ;;  %v13394_v48 = vpop.permute.xlu0 %13393 }
 0x561   : > { %11447 = vmatprep.mubr.msk.f32.mxu0 %vm1289_vm6, %v17198_v60  ;;  %v4644_v60 = vsel %vm1289_vm6, %v17218_v63, %v13365_v10  ;;  %v5855_v63 = vld [vmem:[#allocation4 + $0x7] sm:$0xff] }
 0x562   : > { %v5099_v10 = vld [vmem:[#allocation3 + $0x49] sm:$0xff] }
 0x564   : > { %4932 = vmatmul.mubr.f32.gmra.mrb[120].mxu0 %v4642_v51  ;;  %v13395_v51 = vunpack.i.l.bf16 %v13394_v48  ;;  %v13404_v15 = vpop.permute.xlu0 %13403 }
 0x565   : > { %11448 = vmatprep.mubr.msk.f32.mxu0 %vm1289_vm6, %v17206_v16  ;;  %v4645_v16 = vsel %vm1289_vm6, %v17226_v26, %v13366_v41  ;;  %v13477_v26 = vpack.i.bf16 %v5858_v50, %v5857_v31  ;;  %v6464_v41 = vld [vmem:[%s20218_s9 + $0x8] sm:$0xff]  ;;  %v11553_v31 = vld [vmem:[%s20218_s9 + $0xb8] sm:$0xff] }
 0x567   : > { %13478 = vrot.lane.b32.xlu1 %v13477_v26, %s14835_s13 }
 0x568   : > { %4937 = vmatmul.mubr.f32.gmra.mrb[122].mxu0 %v4643_v0  ;;  %v6463_v0 = vld [vmem:[%s20218_s9] sm:$0xff] }
 0x569   : > { %11449 = vmatprep.mubr.msk.f32.mxu0 %vm1289_vm6, %v17214_v34  ;;  %v4646_v34 = vsel %vm1289_vm6, %v17234_v45, %v13370_v42  ;;  %v4647_v45 = vsel %vm1289_vm6, %v17242_v36, %v13371_v59  ;;  %v13379_v36 = vpop.permute.xlu1 %13378  ;;  %v12545_v24 = vpack.c.bf16 %v6464_v41, %v6463_v0  ;;  %v6465_v42 = vld [vmem:[%s20218_s9 + $0x10] sm:$0xff]  ;;  %v11550_v59 = vld [vmem:[%s20218_s9 + $0xa0] sm:$0xff]  ;;  %v6476_v41 = vld [vmem:[%s20218_s9 + $0x68] sm:$0xff] }
 0x56a   : > { %v13380_v61 = vunpack.i.l.bf16 %v13379_v36  ;;  %v13381_v32 = vunpack.i.h.bf16 %v13379_v36  ;;  %v6475_v0 = vld [vmem:[%s20218_s9 + $0x60] sm:$0xff] }
 0x56b   : > { %13488 = vrot.lane.b32.xlu1 %v13487_v6, %s14836_s14 }
 0x56c   : > { %4942 = vmatmul.mubr.f32.gmra.mrb[124].mxu0 %v4644_v60  ;;  %v4650_v38 = vsel %vm1289_vm6, %v20384_v56, %v13380_v61  ;;  %v4651_v20 = vsel %vm1289_vm6, %v20386_v55, %v13381_v32  ;;  %v5035_v60 = vld [vmem:[#allocation3 + $0x47] sm:$0xff]  ;;  %v11557_v61 = vld [vmem:[%s20218_s9 + $0xd8] sm:$0xff]  ;;  %v5038_v32 = vld [vmem:[#allocation3 + $0x6f] sm:$0xff] }
 0x56d   : > { %11450 = vmatprep.mubr.msk.f32.mxu0 %vm1289_vm6, %v17222_v14  ;;  %v13472_v14 = vpack.i.bf16 %v5856_v2, %v5855_v63  ;;  %v13389_v33 = vpop.permute.xlu1 %13388  ;;  %v5259_v63 = vsel %vm1289_vm6, %v5035_v60, %v13395_v51  ;;  %v6471_v56 = vld [vmem:[%s20218_s9 + $0x40] sm:$0xff]  ;;  %v5104_v51 = vld [vmem:[#allocation3 + $0x91] sm:$0xff] }
 0x56e   : > { %v13390_v30 = vunpack.i.l.bf16 %v13389_v33  ;;  %v13391_v35 = vunpack.i.h.bf16 %v13389_v33  ;;  %v11558_v55 = vld [vmem:[%s20218_s9 + $0xe0] sm:$0xff]  ;;  %v6474_v33 = vld [vmem:[%s20218_s9 + $0x58] sm:$0xff] }
 0x56f   : > { %13473 = vrot.lane.b32.xlu0 %v13472_v14, %s14835_s13  ;;  %13498 = vrot.lane.b32.xlu1 %v13497_v8, %s14838_s30  ;;  %v11552_v14 = vld [vmem:[%s20218_s9 + $0xb0] sm:$0xff] }
 0x570   : > { %4947 = vmatmul.mubr.f32.gmra.mrb[126].mxu0 %v4645_v16  ;;  %v4654_v4 = vsel %vm1289_vm6, %v17551_v37, %v13390_v30  ;;  %v4655_v49 = vsel %vm1289_vm6, %v17559_v17, %v13391_v35  ;;  %v6466_v16 = vld [vmem:[%s20218_s9 + $0x18] sm:$0xff]  ;;  %v13406_v30 = vunpack.i.h.bf16 %v13404_v15  ;;  %v11560_v35 = vld [vmem:[%s20218_s9 + $0xf0] sm:$0xff] }
 0x571   : > { %11451 = vmatprep.mubr.msk.f32.mxu0 %vm1289_vm6, %v17230_v3  ;;  %v13375_v3 = vunpack.i.l.bf16 %v13374_v62  ;;  %v13396_v62 = vunpack.i.h.bf16 %v13394_v48  ;;  %v13399_v50 = vpop.permute.xlu1 %13398 }
 0x572   : > { %v13400_v9 = vunpack.i.l.bf16 %v13399_v50  ;;  %v13401_v7 = vunpack.i.h.bf16 %v13399_v50 }
 0x573   : > { %v4648_v57 = vsel %vm1289_vm6, %v17250_v46, %v13375_v3  ;;  %v20383_v46 = vld [vmem:[#allocation19_spill] sm:$0xff]  ;;  %13508 = vrot.lane.b32.xlu1 %v13487_v6, %s14836_s14  ;;  %v12548_v3 = vpack.c.bf16 %v6466_v16, %v6465_v42  ;;  %v11554_v6 = vld [vmem:[%s20218_s9 + $0xc0] sm:$0xff] }
 0x574   : > { %4952 = vmatmul.mubr.f32.gmra.mrb[128].mxu0 %v4646_v34  ;;  %v11551_v34 = vld [vmem:[%s20218_s9 + $0xa8] sm:$0xff]  ;;  %v5262_v27 = vsel %vm1289_vm6, %v5038_v32, %v13401_v7  ;;  %v11562_v16 = vld [vmem:[%s20218_s9 + $0x100] sm:$0xff] }
 0x575   : > { %11452 = vmatprep.mubr.msk.f32.mxu0 %vm1289_vm6, %v17238_v11  ;;  %v5887_v11 = vld [vmem:[#allocation4 + $0x8] sm:$0xff]  ;;  %v12575_v2 = vpack.c.bf16 %v11551_v34, %v11550_v59  ;;  %v13409_v48 = vpop.permute.xlu1 %13408 }
 0x576   : > { %v13482_v13 = vpack.i.bf16 %v5888_v18, %v5887_v11  ;;  %v6467_v11 = vld [vmem:[%s20218_s9 + $0x20] sm:$0xff]  ;;  %v6468_v18 = vld [vmem:[%s20218_s9 + $0x28] sm:$0xff]  ;;  %v13411_v50 = vunpack.i.h.bf16 %v13409_v48 }
 0x577   : > { %12576 = vmatpush1.bf16.msra.mxu1 %v12575_v2  ;;  %v12551_v36 = vpack.c.bf16 %v6468_v18, %v6467_v11  ;;  %v11563_v59 = vld [vmem:[%s20218_s9 + $0x108] sm:$0xff]  ;;  %v6477_v2 = vld [vmem:[%s20218_s9 + $0x70] sm:$0xff] }
 0x578   : > { %4957 = vmatmul.mubr.f32.gmra.mrb[130].mxu0 %v4647_v45  ;;  %13483 = vrot.lane.b32.xlu0 %v13482_v13, %s14836_s14  ;;  %v5036_v45 = vld [vmem:[#allocation3 + $0x4f] sm:$0xff]  ;;  %v12578_v13 = vpack.c.bf16 %v11553_v31, %v11552_v14  ;;  %v6478_v14 = vld [vmem:[%s20218_s9 + $0x78] sm:$0xff]  ;;  %v12593_v31 = vpack.c.bf16 %v11563_v59, %v11562_v16  ;;  %v14795_v16 = vld [vmem:[#allocation3 + $0x147] sm:$0xff] }
 0x579   : > { %11453 = vmatprep.mubr.msk.f32.mxu0 %vm1289_vm6, %v17246_v23  ;;  %v13492_v23 = vpack.i.bf16 %v5920_v25, %v5919_v58  ;;  %v5260_v47 = vsel %vm1289_vm6, %v5036_v45, %v13396_v62  ;;  %12577 = vmatprep.subr.bf16.mxu1 %v20380_v39  ;;  %v5037_v58 = vld [vmem:[#allocation3 + $0x67] sm:$0xff]  ;;  %v6469_v25 = vld [vmem:[%s20218_s9 + $0x30] sm:$0xff]  ;;  %v12563_v62 = vpack.c.bf16 %v6476_v41, %v6475_v0 }
 0x57a   : > { %v5261_v54 = vsel %vm1289_vm6, %v5037_v58, %v13400_v9  ;;  %v5105_v34 = vld [vmem:[#allocation3 + $0xa9] sm:$0xff]  ;;  %v5106_v45 = vld [vmem:[#allocation3 + $0xb1] sm:$0xff]  ;;  %v12566_v11 = vpack.c.bf16 %v6478_v14, %v6477_v2 }
 0x57b   : > { %12579 = vmatpush1.bf16.msra.mxu1 %v12578_v13  ;;  %v5042_v18 = vld [vmem:[#allocation3 + $0xaf] sm:$0xff]  ;;  %v6479_v13 = vld [vmem:[%s20218_s9 + $0x80] sm:$0xff] }
 0x57c   : > { %4962 = vmatmul.mubr.f32.gmra.mrb[132].mxu0 %v4648_v57  ;;  %13493 = vrot.lane.b32.xlu0 %v13492_v23, %s14838_s30  ;;  %v5101_v57 = vld [vmem:[#allocation3 + $0x69] sm:$0xff]  ;;  %v12581_v23 = vpack.c.bf16 %v11555_v29, %v11554_v6  ;;  %v5266_v6 = vsel %vm1289_vm6, %v5042_v18, %v13411_v50 }
 0x57d   : > { %11454 = vmatprep.mubr.msk.f32.mxu0 %vm1289_vm6, %v20381_v12  ;;  %v6470_v12 = vld [vmem:[%s20218_s9 + $0x38] sm:$0xff]  ;;  %12580 = vmatprep.subr.bf16.mxu1 %v20380_v39  ;;  %v6480_v9 = vld [vmem:[%s20218_s9 + $0x88] sm:$0xff] }
 0x57e   : > { %v5107_v29 = vld [vmem:[#allocation3 + $0xc9] sm:$0xff] }
 0x57f   : > { %12582 = vmatpush1.bf16.msra.mxu1 %v12581_v23  ;;  %v5108_v23 = vld [vmem:[#allocation3 + $0xd1] sm:$0xff]  ;;  %v14798_v50 = vld [vmem:[#allocation3 + $0x169] sm:$0xff] }
 0x580   : > { %4967 = vmatmul.mubr.f32.gmra.mrb[134].mxu0 %v4649_v44  ;;  %13503 = vrot.lane.b32.xlu0 %v13477_v26, %s14835_s13  ;;  %v5100_v26 = vld [vmem:[#allocation3 + $0x51] sm:$0xff] }
 0x581   : > { %11455 = vmatprep.mubr.msk.f32.mxu0 %vm1289_vm6, %v20383_v46  ;;  %v5102_v44 = vld [vmem:[#allocation3 + $0x71] sm:$0xff]  ;;  %v12554_v46 = vpack.c.bf16 %v6470_v12, %v6469_v25  ;;  %12583 = vmatprep.subr.bf16.mxu1 %v20380_v39  ;;  %v13419_v12 = vpop.permute.xlu1 %13418 }
 0x582   : > { %v5044_v7 = vld [vmem:[#allocation3 + $0xcf] sm:$0xff] }
 0x583   : > { %v14793_v0 = vld [vmem:[#allocation3 + $0x12f] sm:$0xff] }
 0x584   : > { %4972 = vmatmul.mubr.f32.gmra.mrb[136].mxu0 %v4650_v38  ;;  %13513 = vrot.lane.b32.xlu0 %v13497_v8, %s14838_s30  ;;  %v11556_v8 = vld [vmem:[%s20218_s9 + $0xd0] sm:$0xff]  ;;  %v6472_v38 = vld [vmem:[%s20218_s9 + $0x48] sm:$0xff] }
 0x585   : > { %11456 = vmatprep.mubr.msk.f32.mxu0 %vm1289_vm6, %v20385_v19  ;;  %v12584_v21 = vpack.c.bf16 %v11557_v61, %v11556_v8  ;;  %v13405_v19 = vunpack.i.l.bf16 %v13404_v15  ;;  %v12557_v40 = vpack.c.bf16 %v6472_v38, %v6471_v56  ;;  %v5109_v61 = vld [vmem:[#allocation3 + $0xe9] sm:$0xff]  ;;  %v5110_v56 = vld [vmem:[#allocation3 + $0xf1] sm:$0xff] }
 0x586   : > { %v5045_v15 = vld [vmem:[#allocation3 + $0xe7] sm:$0xff]  ;;  %v14797_v14 = vld [vmem:[#allocation3 + $0x14f] sm:$0xff] }
 0x587   : > { %12585 = vmatpush1.bf16.msra.mxu1 %v12584_v21  ;;  %v14785_v21 = vld [vmem:[#allocation3 + $0xef] sm:$0xff] }
 0x588   : > { %4977 = vmatmul.mubr.f32.gmra.mrb[138].mxu0 %v4651_v20  ;;  %v11559_v20 = vld [vmem:[%s20218_s9 + $0xe8] sm:$0xff]  ;;  %12586 = vmatprep.subr.bf16.mxu1 %v20380_v39 }
 0x589   : > { %11457 = vmatprep.mubr.msk.f32.mxu0 %vm1289_vm6, %v20387_v52  ;;  %v5103_v52 = vld [vmem:[#allocation3 + $0x89] sm:$0xff] }
 0x58c   : > { %4982 = vmatmul.mubr.f32.gmra.mrb[140].mxu0 %v4652_v53  ;;  %v6473_v53 = vld [vmem:[%s20218_s9 + $0x50] sm:$0xff] }
 0x58d   : > { %11458 = vmatprep.mubr.msk.f32.mxu0 %vm1289_vm6, %v20389_v5  ;;  %v12587_v5 = vpack.c.bf16 %v11559_v20, %v11558_v55  ;;  %v14787_v20 = vld [vmem:[#allocation3 + $0x107] sm:$0xff] }
 0x58f   : > { %12588 = vmatpush1.bf16.msra.mxu1 %v12587_v5 }
 0x590   : > { %4987 = vmatmul.mubr.f32.gmra.mrb[142].mxu0 %v4653_v1  ;;  %v5263_v1 = vsel %vm1289_vm6, %v5039_v43, %v13405_v19  ;;  %12589 = vmatprep.subr.bf16.mxu1 %v20380_v39  ;;  %v14788_v43 = vld [vmem:[#allocation3 + $0x111] sm:$0xff] }
 0x591   : > { %11459 = vmatprep.mubr.msk.f32.mxu0 %vm1289_vm6, %v17547_v28 }
 0x594   : > { %4992 = vmatmul.mubr.f32.gmra.mrb[144].mxu0 %v4654_v4  ;;  %v11561_v4 = vld [vmem:[%s20218_s9 + $0xf8] sm:$0xff] }
 0x595   : > { %11460 = vmatprep.mubr.msk.f32.mxu0 %vm1289_vm6, %v17555_v22  ;;  %v12590_v60 = vpack.c.bf16 %v11561_v4, %v11560_v35  ;;  %v14791_v4 = vld [vmem:[#allocation3 + $0x127] sm:$0xff] }
 0x597   : > { %12591 = vmatpush1.bf16.msra.mxu1 %v12590_v60 }
 0x598   : > { %4997 = vmatmul.mubr.f32.gmra.mrb[146].mxu0 %v4655_v49  ;;  %v12560_v49 = vpack.c.bf16 %v6474_v33, %v6473_v53  ;;  %12592 = vmatprep.subr.bf16.mxu1 %v20380_v39  ;;  %v14789_v33 = vld [vmem:[#allocation3 + $0x10f] sm:$0xff] }
 0x599   : > { %11485 = vmatprep.mubr.msk.f32.mxu0 %vm1289_vm6, %v5099_v10  ;;  %v5040_v10 = vld [vmem:[#allocation3 + $0x8f] sm:$0xff] }
 0x59a   : > { %v5264_v42 = vsel %vm1289_vm6, %v5040_v10, %v13406_v30  ;;  %v14790_v30 = vld [vmem:[#allocation3 + $0x129] sm:$0xff] }
 0x59b   : > { %12594 = vmatpush1.bf16.msra.mxu1 %v12593_v31 }
 0x59c   : > { %5477 = vmatmul.mubr.f32.vlgmr.msra.gmra.mrb[84].mxu0 %v5259_v63  ;;  %v5041_v63 = vld [vmem:[#allocation3 + $0xa7] sm:$0xff]  ;;  %12595 = vmatprep.subr.bf16.mxu1 %v20380_v39 }
 0x59d   : > { %11486 = vmatprep.mubr.msk.f32.mxu0 %vm1289_vm6, %v5100_v26  ;;  %12546 = vmatpush1.bf16.msra.mxu0 %v12545_v24  ;;  %v13410_v24 = vunpack.i.l.bf16 %v13409_v48 }
 0x59e   : > { %12547 = vmatprep.subr.bf16.mxu0 %v20380_v39 }
 0x59f   : > { %v5265_v26 = vsel %vm1289_vm6, %v5041_v63, %v13410_v24  ;;  %v14794_v24 = vld [vmem:[#allocation3 + $0x149] sm:$0xff] }
 0x5a0   : > { %5482 = vmatmul.mubr.f32.gmra.mrb[86].mxu0 %v5260_v47 }
 0x5a1   : > { %11487 = vmatprep.mubr.msk.f32.mxu0 %vm1289_vm6, %v5101_v57  ;;  %12549 = vmatpush1.bf16.msra.mxu0 %v12548_v3  ;;  %v13414_v3 = vpop.permute.xlu0 %13413  ;;  %v12569_v57 = vpack.c.bf16 %v6480_v9, %v6479_v13  ;;  %v14800_v13 = vld [vmem:[#allocation3 + $0x171] sm:$0xff] }
 0x5a2   : > { %12550 = vmatprep.subr.bf16.mxu0 %v20380_v39  ;;  %v13415_v47 = vunpack.i.l.bf16 %v13414_v3  ;;  %v13416_v58 = vunpack.i.h.bf16 %v13414_v3 }
 0x5a4   : > { %5487 = vmatmul.mubr.f32.gmra.mrb[88].mxu0 %v5261_v54  ;;  %v13420_v54 = vunpack.i.l.bf16 %v13419_v12  ;;  %v5268_v8 = vsel %vm1289_vm6, %v5044_v7, %v13416_v58  ;;  %v14804_v7 = vld [vmem:[#allocation3 + $0x191] sm:$0xff] }
 0x5a5   : > { %11488 = vmatprep.mubr.msk.f32.mxu0 %vm1289_vm6, %v5102_v44  ;;  %12552 = vmatpush1.bf16.msra.mxu0 %v12551_v36  ;;  %v5043_v36 = vld [vmem:[#allocation3 + $0xc7] sm:$0xff]  ;;  %v13421_v44 = vunpack.i.h.bf16 %v13419_v12  ;;  %v13424_v32 = vpop.permute.xlu0 %13423 }
 0x5a6   : > { %12553 = vmatprep.subr.bf16.mxu0 %v20380_v39  ;;  %v5267_v25 = vsel %vm1289_vm6, %v5043_v36, %v13415_v47  ;;  %v13425_v38 = vunpack.i.l.bf16 %v13424_v32  ;;  %v13426_v55 = vunpack.i.h.bf16 %v13424_v32  ;;  %v14803_v12 = vld [vmem:[#allocation3 + $0x187] sm:$0xff]  ;;  %v6482_v32 = vld [vmem:[%s20218_s9 + $0x98] sm:$0xff] }
 0x5a7   : > { %v5270_v19 = vsel %vm1289_vm6, %v14785_v21, %v13421_v44  ;;  %v11565_v21 = vld [vmem:[%s20218_s9 + $0x118] sm:$0xff] }
 0x5a8   : > { %5492 = vmatmul.mubr.f32.gmra.mrb[90].mxu0 %v5262_v27  ;;  %v14786_v27 = vld [vmem:[#allocation3 + $0x109] sm:$0xff]  ;;  %v5272_v5 = vsel %vm1289_vm6, %v14789_v33, %v13426_v55 }
 0x5a9   : > { %11489 = vmatprep.mubr.msk.f32.mxu0 %vm1289_vm6, %v5103_v52  ;;  %12555 = vmatpush1.bf16.msra.mxu0 %v12554_v46  ;;  %v5269_v46 = vsel %vm1289_vm6, %v5045_v15, %v13420_v54  ;;  %v5271_v52 = vsel %vm1289_vm6, %v14787_v20, %v13425_v38  ;;  %v14805_v15 = vld [vmem:[#allocation3 + $0x18f] sm:$0xff] }
 0x5aa   : > { %12556 = vmatprep.subr.bf16.mxu0 %v20380_v39 }
 0x5ac   : > { %5497 = vmatmul.mubr.f32.gmra.mrb[92].mxu0 %v5263_v1  ;;  %v13434_v1 = vpop.permute.xlu0 %13433 }
 0x5ad   : > { %11490 = vmatprep.mubr.msk.f32.mxu0 %vm1289_vm6, %v5104_v51  ;;  %12558 = vmatpush1.bf16.msra.mxu0 %v12557_v40  ;;  %v13429_v40 = vpop.permute.xlu1 %13428  ;;  %v14792_v51 = vld [vmem:[#allocation3 + $0x131] sm:$0xff]  ;;  %v13435_v10 = vunpack.i.l.bf16 %v13434_v1 }
 0x5ae   : > { %12559 = vmatprep.subr.bf16.mxu0 %v20380_v39  ;;  %v13430_v53 = vunpack.i.l.bf16 %v13429_v40  ;;  %v13431_v35 = vunpack.i.h.bf16 %v13429_v40 }
 0x5af   : > { %v5275_v59 = vsel %vm1289_vm6, %v14795_v16, %v13435_v10  ;;  %v11568_v10 = vld [vmem:[%s20218_s9 + $0x130] sm:$0xff] }
 0x5b0   : > { %5502 = vmatmul.mubr.f32.gmra.mrb[94].mxu0 %v5264_v42  ;;  %v5273_v48 = vsel %vm1289_vm6, %v14791_v4, %v13430_v53  ;;  %v5274_v41 = vsel %vm1289_vm6, %v14793_v0, %v13431_v35  ;;  %v13444_v60 = vpop.permute.xlu0 %13443  ;;  %v13436_v42 = vunpack.i.h.bf16 %v13434_v1  ;;  %v11567_v53 = vld [vmem:[%s20218_s9 + $0x128] sm:$0xff]  ;;  %v11569_v0 = vld [vmem:[%s20218_s9 + $0x138] sm:$0xff] }
 0x5b1   : > { %11491 = vmatprep.mubr.msk.f32.mxu0 %vm1289_vm6, %v5105_v34  ;;  %12561 = vmatpush1.bf16.msra.mxu0 %v12560_v49  ;;  %v13439_v49 = vpop.permute.xlu1 %13438  ;;  %v13445_v47 = vunpack.i.l.bf16 %v13444_v60  ;;  %v17765_v1 = vld [vmem:[#allocation4 + $0x26] sm:$0xff] }
 0x5b2   : > { %12562 = vmatprep.subr.bf16.mxu0 %v20380_v39  ;;  %v13440_v63 = vunpack.i.l.bf16 %v13439_v49  ;;  %v5276_v31 = vsel %vm1289_vm6, %v14797_v14, %v13436_v42  ;;  %v13441_v3 = vunpack.i.h.bf16 %v13439_v49  ;;  %v14810_v42 = vld [vmem:[#allocation3 + $0x1c9] sm:$0xff] }
 0x5b3   : > { %v14811_v14 = vld [vmem:[#allocation3 + $0x1c7] sm:$0xff] }
 0x5b4   : > { %5507 = vmatmul.mubr.f32.gmra.mrb[96].mxu0 %v5265_v26  ;;  %v17712_v2 = vpop.permute.xlu0 %13453 }
 0x5b5   : > { %11492 = vmatprep.mubr.msk.f32.mxu0 %vm1289_vm6, %v5106_v45  ;;  %12564 = vmatpush1.bf16.msra.mxu0 %v12563_v62  ;;  %v17709_v34 = vpop.permute.xlu1 %13448  ;;  %v14796_v62 = vld [vmem:[#allocation3 + $0x151] sm:$0xff]  ;;  %v14799_v45 = vld [vmem:[#allocation3 + $0x167] sm:$0xff] }
 0x5b6   : > { %12565 = vmatprep.subr.bf16.mxu0 %v20380_v39  ;;  %v13451_v20 = vunpack.i.h.bf16 %v17709_v34 }
 0x5b8   : > { %5512 = vmatmul.mubr.f32.gmra.mrb[98].mxu0 %v5266_v6  ;;  %v17719_v18 = vpop.permute.xlu0 %13463  ;;  %v14801_v6 = vld [vmem:[#allocation3 + $0x16f] sm:$0xff] }
 0x5b9   : > { %11493 = vmatprep.mubr.msk.f32.mxu0 %vm1289_vm6, %v5107_v29  ;;  %12567 = vmatpush1.bf16.msra.mxu0 %v12566_v11  ;;  %v17716_v26 = vpop.permute.xlu1 %13458  ;;  %v5277_v11 = vsel %vm1289_vm6, %v14799_v45, %v13440_v63  ;;  %v5278_v29 = vsel %vm1289_vm6, %v14801_v6, %v13441_v3  ;;  %v13456_v63 = vunpack.i.h.bf16 %v17712_v2  ;;  %v17781_v3 = vld [vmem:[#allocation4 + $0x2a] sm:$0xff] }
 0x5ba   : > { %12568 = vmatprep.subr.bf16.mxu0 %v20380_v39  ;;  %11570 = vmatprep.mubr.msk.f32.mxu1 %vm790_vm4, %v17781_v3 }
 0x5bc   : > { %5517 = vmatmul.mubr.f32.gmra.mrb[100].mxu0 %v5267_v25  ;;  %v13446_v25 = vunpack.i.h.bf16 %v13444_v60 }
 0x5bd   : > { %11494 = vmatprep.mubr.msk.f32.mxu0 %vm1289_vm6, %v5108_v23  ;;  %12570 = vmatpush1.bf16.msra.mxu0 %v12569_v57  ;;  %v17722_v9 = vpop.permute.xlu1 %13468  ;;  %v14802_v57 = vld [vmem:[#allocation3 + $0x189] sm:$0xff]  ;;  %v5279_v23 = vsel %vm1289_vm6, %v14803_v12, %v13445_v47  ;;  %v14812_v47 = vld [vmem:[#allocation3 + $0x1d1] sm:$0xff] }
 0x5be   : > { %12571 = vmatprep.subr.bf16.mxu0 %v20380_v39  ;;  %v5280_v44 = vsel %vm1289_vm6, %v14805_v15, %v13446_v25  ;;  %v17795_v12 = vld [vmem:[#allocation4 + $0x32] sm:$0xff]  ;;  %v13461_v15 = vunpack.i.h.bf16 %v17716_v26 }
 0x5c0   : > { %5522 = vmatmul.mubr.f32.gmra.mrb[102].mxu0 %v5268_v8 }
 0x5c1   : > { %11495 = vmatprep.mubr.msk.f32.mxu0 %vm1289_vm6, %v5109_v61  ;;  %v13450_v61 = vunpack.i.l.bf16 %v17709_v34 }
 0x5c4   : > { %5527 = vmatmul.mubr.f32.gmra.mrb[104].mxu0 %v5269_v46  ;;  %v6481_v46 = vld [vmem:[%s20218_s9 + $0x90] sm:$0xff] }
 0x5c5   : > { %11496 = vmatprep.mubr.msk.f32.mxu0 %vm1289_vm6, %v5110_v56  ;;  %v11564_v56 = vld [vmem:[%s20218_s9 + $0x110] sm:$0xff]  ;;  %v12572_v38 = vpack.c.bf16 %v6482_v32, %v6481_v46 }
 0x5c6   : > { %v12596_v55 = vpack.c.bf16 %v11565_v21, %v11564_v56  ;;  %v14816_v32 = vld [vmem:[#allocation3 + $0x1f1] sm:$0xff]  ;;  %v13465_v56 = vunpack.i.l.bf16 %v17719_v18 }
 0x5c7   : > { %12573 = vmatpush1.bf16.msra.mxu0 %v12572_v38  ;;  %v14817_v38 = vld [vmem:[#allocation3 + $0x1ef] sm:$0xff] }
 0x5c8   : > { %5532 = vmatmul.mubr.f32.gmra.mrb[106].mxu0 %v5270_v19  ;;  %v14806_v19 = vld [vmem:[#allocation3 + $0x1a9] sm:$0xff]  ;;  %12597 = vmatpush1.bf16.msra.mxu1 %v12596_v55  ;;  %v5286_v21 = vsel %vm1289_vm6, %v14817_v38, %v13461_v15  ;;  %v13470_v55 = vunpack.i.l.bf16 %v17722_v9 }
 0x5c9   : > { %11497 = vmatprep.mubr.msk.f32.mxu0 %vm1289_vm6, %v14786_v27  ;;  %12598 = vmatprep.subr.bf16.mxu1 %v20380_v39 }
 0x5cc   : > { %5537 = vmatmul.mubr.f32.gmra.mrb[108].mxu0 %v5271_v52  ;;  %v14807_v52 = vld [vmem:[#allocation3 + $0x1a7] sm:$0xff] }
 0x5cd   : > { %11498 = vmatprep.mubr.msk.f32.mxu0 %vm1289_vm6, %v14788_v43  ;;  %v5281_v40 = vsel %vm1289_vm6, %v14807_v52, %v13450_v61  ;;  %v11566_v43 = vld [vmem:[%s20218_s9 + $0x120] sm:$0xff]  ;;  %v14814_v61 = vld [vmem:[#allocation3 + $0x1e9] sm:$0xff] }
 0x5ce   : > { %v5065_v52 = vld [vmem:[#allocation3 + $0x227] sm:$0xff] }
 0x5d0   : > { %5542 = vmatmul.mubr.f32.gmra.mrb[110].mxu0 %v5272_v5  ;;  %v12599_v5 = vpack.c.bf16 %v11567_v53, %v11566_v43  ;;  %v5130_v53 = vld [vmem:[#allocation3 + $0x231] sm:$0xff] }
 0x5d1   : > { %11499 = vmatprep.mubr.msk.f32.mxu0 %vm1289_vm6, %v14790_v30  ;;  %v14808_v30 = vld [vmem:[#allocation3 + $0x1b1] sm:$0xff] }
 0x5d2   : > { %12600 = vmatpush1.bf16.msra.mxu1 %v12599_v5  ;;  %v5066_v5 = vld [vmem:[#allocation3 + $0x22f] sm:$0xff] }
 0x5d3   : > { %12601 = vmatprep.subr.bf16.mxu1 %v20380_v39 }
 0x5d4   : > { %5547 = vmatmul.mubr.f32.gmra.mrb[112].mxu0 %v5273_v48  ;;  %v13455_v48 = vunpack.i.l.bf16 %v17712_v2  ;;  %v17788_v2 = vld [vmem:[#allocation4 + $0x2e] sm:$0xff] }
 0x5d5   : > { %11500 = vmatprep.mubr.msk.f32.mxu0 %vm1289_vm6, %v14792_v51  ;;  %v14809_v51 = vld [vmem:[#allocation3 + $0x1af] sm:$0xff] }
 0x5d6   : > { %v5282_v49 = vsel %vm1289_vm6, %v14809_v51, %v13451_v20  ;;  %v5129_v20 = vld [vmem:[#allocation3 + $0x229] sm:$0xff] }
 0x5d7   : > { %v5951_v51 = vld [vmem:[#allocation4 + $0xa] sm:$0xff] }
 0x5d8   : > { %5552 = vmatmul.mubr.f32.gmra.mrb[114].mxu0 %v5274_v41 }
 0x5d9   : > { %11501 = vmatprep.mubr.msk.f32.mxu0 %vm1289_vm6, %v14794_v24  ;;  %v17728_v58 = vpop.permute.xlu1 %13478  ;;  %v12602_v24 = vpack.c.bf16 %v11569_v0, %v11568_v10 }
 0x5da   : > { %v13480_v10 = vunpack.i.l.bf16 %v17728_v58 }
 0x5db   : > { %12603 = vmatpush1.bf16.msra.mxu1 %v12602_v24  ;;  %v5952_v24 = vld [vmem:[#allocation4 + $0x12] sm:$0xff] }
 0x5dc   : > { %5557 = vmatmul.mubr.f32.gmra.mrb[116].mxu0 %v5275_v59  ;;  %12604 = vmatprep.subr.bf16.mxu1 %v20380_v39 }
 0x5dd   : > { %11502 = vmatprep.mubr.msk.f32.mxu0 %vm1289_vm6, %v14796_v62  ;;  %v17734_v8 = vpop.permute.xlu1 %13488 }
 0x5e0   : > { %5562 = vmatmul.mubr.f32.gmra.mrb[118].mxu0 %v5276_v31  ;;  %v5283_v31 = vsel %vm1289_vm6, %v14811_v14, %v13455_v48 }
 0x5e1   : > { %11503 = vmatprep.mubr.msk.f32.mxu0 %vm1289_vm6, %v14798_v50  ;;  %v17726_v36 = vpop.permute.xlu0 %13473  ;;  %v17761_v33 = vpop.permute.xlu1 %13498 }
 0x5e2   : > { %v13475_v43 = vunpack.i.l.bf16 %v17726_v36 }
 0x5e4   : > { %5567 = vmatmul.mubr.f32.gmra.mrb[120].mxu0 %v5277_v11 }
 0x5e5   : > { %11504 = vmatprep.mubr.msk.f32.mxu0 %vm1289_vm6, %v14800_v13  ;;  %v13509_v60 = vpop.permute.xlu1 %13508 }
 0x5e6   : > { %v13510_v16 = vunpack.i.l.bf16 %v13509_v60  ;;  %v13511_v50 = vunpack.i.h.bf16 %v13509_v60  ;;  %v13490_v60 = vunpack.i.l.bf16 %v17734_v8 }
 0x5e8   : > { %5572 = vmatmul.mubr.f32.gmra.mrb[122].mxu0 %v5278_v29  ;;  %v13460_v29 = vunpack.i.l.bf16 %v17716_v26  ;;  %v5287_v26 = vsel %vm1289_vm6, %v17551_v37, %v13465_v56  ;;  %v5289_v37 = vsel %vm1289_vm6, %v5065_v52, %v13470_v55 }
 0x5e9   : > { %11505 = vmatprep.mubr.msk.f32.mxu0 %vm1289_vm6, %v14802_v57  ;;  %v14813_v57 = vld [vmem:[#allocation3 + $0x1cf] sm:$0xff] }
 0x5ea   : > { %v17732_v54 = vpop.permute.xlu0 %13483  ;;  %v5284_v25 = vsel %vm1289_vm6, %v14813_v57, %v13456_v63 }
 0x5eb   : > { %v13486_v48 = vunpack.i.h.bf16 %v17732_v54 }
 0x5ec   : > { %5577 = vmatmul.mubr.f32.gmra.mrb[124].mxu0 %v5279_v23 }
 0x5ed   : > { %11506 = vmatprep.mubr.msk.f32.mxu0 %vm1289_vm6, %v14804_v7 }
 0x5ee   : > { %v17751_v27 = vpop.permute.xlu0 %13493 }
 0x5f0   : > { %5582 = vmatmul.mubr.f32.gmra.mrb[126].mxu0 %v5280_v44  ;;  %v14815_v44 = vld [vmem:[#allocation3 + $0x1e7] sm:$0xff] }
 0x5f1   : > { %11507 = vmatprep.mubr.msk.f32.mxu0 %vm1289_vm6, %v14806_v19  ;;  %v5285_v46 = vsel %vm1289_vm6, %v14815_v44, %v13460_v29  ;;  %v13466_v19 = vunpack.i.h.bf16 %v17719_v18  ;;  %v13471_v18 = vunpack.i.h.bf16 %v17722_v9  ;;  %v13495_v9 = vunpack.i.l.bf16 %v17751_v27 }
 0x5f2   : > { %v13504_v35 = vpop.permute.xlu0 %13503 }
 0x5f3   : > { %v13505_v4 = vunpack.i.l.bf16 %v13504_v35  ;;  %v13506_v34 = vunpack.i.h.bf16 %v13504_v35 }
 0x5f4   : > { %5587 = vmatmul.mubr.f32.gmra.mrb[128].mxu0 %v5281_v40  ;;  %v5288_v40 = vsel %vm1289_vm6, %v17559_v17, %v13466_v19  ;;  %v5824_v17 = vld [vmem:[#allocation4 + $0xe] sm:$0xff] }
 0x5f5   : > { %11508 = vmatprep.mubr.msk.f32.mxu0 %vm1289_vm6, %v14808_v30  ;;  %v7381_v41 = vsel %vm790_vm4, %v17765_v1, %v13505_v4  ;;  %v7382_v6 = vsel %vm790_vm4, %v17788_v2, %v13506_v34  ;;  %v13476_v30 = vunpack.i.h.bf16 %v17726_v36  ;;  %v5290_v4 = vsel %vm1289_vm6, %v5066_v5, %v13471_v18 }
 0x5f6   : > { %v13514_v59 = vpop.permute.xlu0 %13513  ;;  %v7413_v45 = vsel %vm1289_vm6, %v7381_v41, %v13510_v16  ;;  %v7414_v23 = vsel %vm1289_vm6, %v7382_v6, %v13511_v50  ;;  %v13496_v36 = vunpack.i.h.bf16 %v17751_v27  ;;  %v6369_v16 = vsel %vm790_vm4, %v17765_v1, %v13480_v10 }
 0x5f7   : > { %v13515_v62 = vunpack.i.l.bf16 %v13514_v59  ;;  %v13516_v11 = vunpack.i.h.bf16 %v13514_v59  ;;  %v6368_v0 = vsel %vm790_vm4, %v5824_v17, %v13476_v30  ;;  %v13500_v59 = vunpack.i.l.bf16 %v17761_v33 }
 0x5f8   : > { %5592 = vmatmul.mubr.f32.gmra.mrb[130].mxu0 %v5282_v49  ;;  %v13491_v34 = vunpack.i.h.bf16 %v17734_v8 }
 0x5f9   : > { %11509 = vmatprep.mubr.msk.f32.mxu0 %vm1289_vm6, %v14810_v42  ;;  %v7445_v13 = vsel %vm1334_vm7, %v7413_v45, %v13515_v62  ;;  %v7446_v7 = vsel %vm1334_vm7, %v7414_v23, %v13516_v11  ;;  %v6400_v42 = vsel %vm1289_vm6, %v6368_v0, %v13486_v48  ;;  %v6401_v62 = vsel %vm1289_vm6, %v6369_v16, %v13490_v60 }
 0x5fa   : > { %7659 = vmatmul.mubr.f32.vlgmr.msra.gmra.mrb[32].mxu1 %v7445_v13  ;;  %v6432_v27 = vsel %vm1334_vm7, %v6400_v42, %v13496_v36  ;;  %v6433_v1 = vsel %vm1334_vm7, %v6401_v62, %v13500_v59 }
 0x5fb   : > { %11571 = vmatprep.mubr.msk.f32.mxu1 %vm790_vm4, %v17795_v12 }
 0x5fc   : > { %5597 = vmatmul.mubr.f32.gmra.mrb[132].mxu0 %v5283_v31  ;;  %v17857_v31 = vld [vmem:[%s20217_s8] ss:$0 sm:$0xff] }
 0x5fd   : > { %11510 = vmatprep.mubr.msk.f32.mxu0 %vm1289_vm6, %v14812_v47 }
 0x5fe   : > { %7664 = vmatmul.mubr.f32.gmra.mrb[34].mxu1 %v7446_v7 }
 0x600   : > { %5602 = vmatmul.mubr.f32.gmra.mrb[134].mxu0 %v5284_v25 }
 0x601   : > { %11511 = vmatprep.mubr.msk.f32.mxu0 %vm1289_vm6, %v14814_v61 }
 0x604   : > { %5607 = vmatmul.mubr.f32.gmra.mrb[136].mxu0 %v5285_v46 }
 0x605   : > { %11512 = vmatprep.mubr.msk.f32.mxu0 %vm1289_vm6, %v14816_v32 }
 0x608   : > { %5612 = vmatmul.mubr.f32.gmra.mrb[138].mxu0 %v5286_v21 }
 0x609   : > { %11513 = vmatprep.mubr.msk.f32.mxu0 %vm1289_vm6, %v17547_v28  ;;  %v5823_v28 = vld [vmem:[#allocation4 + $0x6] sm:$0xff] }
 0x60a   : > { %v6367_v35 = vsel %vm790_vm4, %v5823_v28, %v13475_v43 }
 0x60c   : > { %5617 = vmatmul.mubr.f32.gmra.mrb[140].mxu0 %v5287_v26 }
 0x60d   : > { %11514 = vmatprep.mubr.msk.f32.mxu0 %vm1289_vm6, %v17555_v22  ;;  %v13485_v22 = vunpack.i.l.bf16 %v17732_v54  ;;  %v13481_v54 = vunpack.i.h.bf16 %v17728_v58  ;;  %v13501_v58 = vunpack.i.h.bf16 %v17761_v33 }
 0x60f   : > { %v6399_v49 = vsel %vm1289_vm6, %v6367_v35, %v13485_v22  ;;  %v6370_v63 = vsel %vm790_vm4, %v17788_v2, %v13481_v54 }
 0x610   : > { %5622 = vmatmul.mubr.f32.gmra.mrb[142].mxu0 %v5288_v40  ;;  %v6431_v41 = vsel %vm1334_vm7, %v6399_v49, %v13495_v9  ;;  %v6402_v14 = vsel %vm1289_vm6, %v6370_v63, %v13491_v34 }
 0x611   : > { %11515 = vmatprep.mubr.msk.f32.mxu0 %vm1289_vm6, %v5129_v20  ;;  %v6434_v8 = vsel %vm1334_vm7, %v6402_v14, %v13501_v58 }
 0x614   : > { %5627 = vmatmul.mubr.f32.gmra.mrb[144].mxu0 %v5289_v37 }
 0x615   : > { %11516 = vmatprep.mubr.msk.f32.mxu0 %vm1289_vm6, %v5130_v53 }
 0x618   : > { %5632 = vmatmul.mubr.f32.gmra.mrb[146].mxu0 %v5290_v4 }
 0x619   : > { %11518 = vmatprep.mubr.msk.f32.mxu0 %vm790_vm4, %v5951_v51 }
 0x61c   : > { %6644 = vmatmul.mubr.f32.vlgmr.msra.gmra.mrb[148].mxu0 %v6431_v41 }
 0x61d   : > { %11519 = vmatprep.mubr.msk.f32.mxu0 %vm790_vm4, %v5952_v24 }
 0x620   : > { %6649 = vmatmul.mubr.f32.gmra.mrb[150].mxu0 %v6432_v27 }
 0x621   : > { %11520 = vmatprep.mubr.msk.f32.mxu0 %vm790_vm4, %v17781_v3 }
 0x624   : > { %6654 = vmatmul.mubr.f32.gmra.mrb[152].mxu0 %v6433_v1 }
 0x625   : > { %11521 = vmatprep.mubr.msk.f32.mxu0 %vm790_vm4, %v17795_v12 }
 0x628   : > { %6659 = vmatmul.mubr.f32.gmra.mrb[154].mxu0 %v6434_v8 }
 0x66f   : > { %v5478_v33 = vpop.f32.mrb[84].mxu0 }
 0x670   : > { %v12758_v50 = vadd.f32 %v17857_v31, %v5478_v33  ;;  %v5480_v3 = vpop.f32.mrb[85].mxu0 }
 0x672   : > { %v5669_v45 = vmax.f32 %v12758_v50, 0.0 }
 0x673   : > { %v5483_v11 = vpop.f32.mrb[86].mxu0 }
 0x674   : > { %5783 = vst.msk [vmem:[#allocation4 + $0x48] sm:$0xff] %vm790_vm4, %v5669_v45  ;;  %v12759_v13 = vadd.f32 %v17857_v31, %v5483_v11  ;;  %v5485_v47 = vpop.f32.mrb[87].mxu0 }
 0x675   : > { %v11602_v47 = vld [vmem:[%s20218_s9 + $0x140] sm:$0xff] }
 0x676   : > { %v5670_v2 = vmax.f32 %v12759_v13, 0.0 }
 0x677   : > { %v5488_v6 = vpop.f32.mrb[88].mxu0 }
 0x678   : > { %5784 = vst.msk [vmem:[#allocation4 + $0x50] sm:$0xff] %vm790_vm4, %v5670_v2  ;;  %v12760_v29 = vadd.f32 %v17857_v31, %v5488_v6  ;;  %v5490_v57 = vpop.f32.mrb[89].mxu0  ;;  %v11603_v2 = vld [vmem:[%s20218_s9 + $0x148] sm:$0xff] }
 0x67a   : > { %v5671_v25 = vmax.f32 %v12760_v29, 0.0  ;;  %v12605_v29 = vpack.c.bf16 %v11603_v2, %v11602_v47 }
 0x67b   : > { %v5493_v12 = vpop.f32.mrb[90].mxu0  ;;  %v6871_v46 = vld [vmem:[#allocation4 + $0x47] sm:$0xff] }
 0x67c   : > { %5785 = vst.msk [vmem:[#allocation4 + $0x68] sm:$0xff] %vm790_vm4, %v5671_v25  ;;  %v12761_v23 = vadd.f32 %v17857_v31, %v5493_v12  ;;  %v5495_v7 = vpop.f32.mrb[91].mxu0  ;;  %v5891_v40 = vld [vmem:[#allocation4 + $0x48] sm:$0xff]  ;;  %12606 = vmatpush1.bf16.msra.mxu1 %v12605_v29 }
 0x67d   : > { %12607 = vmatprep.subr.bf16.mxu1 %v20380_v39 }
 0x67e   : > { %v5672_v61 = vmax.f32 %v12761_v23, 0.0 }
 0x67f   : > { %v5498_v15 = vpop.f32.mrb[92].mxu0  ;;  %v5955_v44 = vld [vmem:[#allocation4 + $0x4a] sm:$0xff] }
 0x680   : > { %v6872_v32 = vld [vmem:[#allocation4 + $0x4f] sm:$0xff]  ;;  %5786 = vst.msk [vmem:[#allocation4 + $0x70] sm:$0xff] %vm790_vm4, %v5672_v61  ;;  %v12762_v56 = vadd.f32 %v17857_v31, %v5498_v15  ;;  %v5500_v38 = vpop.f32.mrb[93].mxu0  ;;  %11522 = vmatprep.mubr.msk.f32.mxu0 %vm790_vm4, %v5955_v44  ;;  %11572 = vmatprep.mubr.msk.f32.mxu1 %vm790_vm4, %v5955_v44 }
 0x681   : > { %v13532_v21 = vpack.i.bf16 %v6872_v32, %v6871_v46  ;;  %v6935_v19 = vld [vmem:[#allocation4 + $0x49] sm:$0xff]  ;;  %v6936_v26 = vld [vmem:[#allocation4 + $0x51] sm:$0xff] }
 0x682   : > { %v5892_v55 = vld [vmem:[#allocation4 + $0x50] sm:$0xff]  ;;  %v5673_v20 = vmax.f32 %v12762_v56, 0.0  ;;  %v13542_v18 = vpack.i.bf16 %v6936_v26, %v6935_v19 }
 0x683   : > { %13533 = vrot.lane.b32.xlu1 %v13532_v21, %s14835_s13  ;;  %13518 = vrot.lane.b32.xlu0 %v13532_v21, %s14835_s13  ;;  %v5503_v52 = vpop.f32.mrb[94].mxu0  ;;  %v13522_v37 = vpack.i.bf16 %v5892_v55, %v5891_v40  ;;  %v5861_v22 = vld [vmem:[#allocation4 + $0x67] sm:$0xff] }
 0x684   : > { %5787 = vst.msk [vmem:[#allocation4 + $0x88] sm:$0xff] %vm790_vm4, %v5673_v20  ;;  %v12763_v43 = vadd.f32 %v17857_v31, %v5503_v52  ;;  %v5505_v28 = vpop.f32.mrb[95].mxu0  ;;  %v5893_v49 = vld [vmem:[#allocation4 + $0x68] sm:$0xff] }
 0x686   : > { %v5674_v53 = vmax.f32 %v12763_v43, 0.0 }
 0x687   : > { %13543 = vrot.lane.b32.xlu1 %v13542_v18, %s14838_s30  ;;  %13523 = vrot.lane.b32.xlu0 %v13522_v37, %s14836_s14  ;;  %v5508_v5 = vpop.f32.mrb[96].mxu0  ;;  %v5862_v30 = vld [vmem:[#allocation4 + $0x6f] sm:$0xff] }
 0x688   : > { %5788 = vst.msk [vmem:[#allocation4 + $0x90] sm:$0xff] %vm790_vm4, %v5674_v53  ;;  %v12764_v35 = vadd.f32 %v17857_v31, %v5508_v5  ;;  %v5510_v17 = vpop.f32.mrb[97].mxu0  ;;  %v13547_v4 = vpack.i.bf16 %v5862_v30, %v5861_v22  ;;  %v5894_v9 = vld [vmem:[#allocation4 + $0x70] sm:$0xff]  ;;  %v11605_v5 = vld [vmem:[%s20218_s9 + $0x158] sm:$0xff] }
 0x689   : > { %v13552_v36 = vpack.i.bf16 %v5894_v9, %v5893_v49  ;;  %v5925_v41 = vld [vmem:[#allocation4 + $0x69] sm:$0xff]  ;;  %v5926_v60 = vld [vmem:[#allocation4 + $0x71] sm:$0xff] }
 0x68a   : > { %v5675_v48 = vmax.f32 %v12764_v35, 0.0  ;;  %v13557_v59 = vpack.i.bf16 %v5926_v60, %v5925_v41  ;;  %v11604_v53 = vld [vmem:[%s20218_s9 + $0x150] sm:$0xff] }
 0x68b   : > { %13528 = vrot.lane.b32.xlu0 %v13542_v18, %s14838_s30  ;;  %13548 = vrot.lane.b32.xlu1 %v13547_v4, %s14835_s13  ;;  %v5513_v51 = vpop.f32.mrb[98].mxu0  ;;  %v6875_v8 = vld [vmem:[#allocation4 + $0x87] sm:$0xff]  ;;  %v12608_v30 = vpack.c.bf16 %v11605_v5, %v11604_v53 }
 0x68c   : > { %5789 = vst.msk [vmem:[#allocation4 + $0xa8] sm:$0xff] %vm790_vm4, %v5675_v48  ;;  %v12765_v10 = vadd.f32 %v17857_v31, %v5513_v51  ;;  %v5515_v0 = vpop.f32.mrb[99].mxu0  ;;  %v5895_v25 = vld [vmem:[#allocation4 + $0x88] sm:$0xff] }
 0x68d   : > { %12609 = vmatpush1.bf16.msra.mxu1 %v12608_v30 }
 0x68e   : > { %v5676_v24 = vmax.f32 %v12765_v10, 0.0  ;;  %12610 = vmatprep.subr.bf16.mxu1 %v20380_v39 }
 0x68f   : > { %13538 = vrot.lane.b32.xlu0 %v13522_v37, %s14836_s14  ;;  %13553 = vrot.lane.b32.xlu1 %v13552_v36, %s14836_s14  ;;  %v5518_v42 = vpop.f32.mrb[100].mxu0  ;;  %v6876_v58 = vld [vmem:[#allocation4 + $0x8f] sm:$0xff] }
 0x690   : > { %5790 = vst.msk [vmem:[#allocation4 + $0xb0] sm:$0xff] %vm790_vm4, %v5676_v24  ;;  %v12766_v54 = vadd.f32 %v17857_v31, %v5518_v42  ;;  %v5520_v16 = vpop.f32.mrb[101].mxu0  ;;  %v13592_v3 = vpack.i.bf16 %v6876_v58, %v6875_v8  ;;  %v6939_v45 = vld [vmem:[#allocation4 + $0x89] sm:$0xff]  ;;  %v6940_v11 = vld [vmem:[#allocation4 + $0x91] sm:$0xff] }
 0x691   : > { %v5896_v13 = vld [vmem:[#allocation4 + $0x90] sm:$0xff]  ;;  %v13602_v7 = vpack.i.bf16 %v6940_v11, %v6939_v45 }
 0x692   : > { %v5677_v27 = vmax.f32 %v12766_v54, 0.0  ;;  %v13582_v61 = vpack.i.bf16 %v5896_v13, %v5895_v25 }
 0x693   : > { %13563 = vrot.lane.b32.xlu0 %v13547_v4, %s14835_s13  ;;  %13558 = vrot.lane.b32.xlu1 %v13557_v59, %s14838_s30  ;;  %v5523_v34 = vpop.f32.mrb[102].mxu0  ;;  %v5865_v32 = vld [vmem:[#allocation4 + $0xa7] sm:$0xff] }
 0x694   : > { %5791 = vst.msk [vmem:[#allocation4 + $0xc8] sm:$0xff] %vm790_vm4, %v5677_v27  ;;  %v12767_v62 = vadd.f32 %v17857_v31, %v5523_v34  ;;  %v5525_v63 = vpop.f32.mrb[103].mxu0  ;;  %v5897_v20 = vld [vmem:[#allocation4 + $0xa8] sm:$0xff] }
 0x695   : > { %v11606_v63 = vld [vmem:[%s20218_s9 + $0x160] sm:$0xff] }
 0x696   : > { %v5678_v1 = vmax.f32 %v12767_v62, 0.0 }
 0x697   : > { %13573 = vrot.lane.b32.xlu0 %v13557_v59, %s14838_s30  ;;  %13568 = vrot.lane.b32.xlu1 %v13552_v36, %s14836_s14  ;;  %v5528_v14 = vpop.f32.mrb[104].mxu0  ;;  %v5866_v15 = vld [vmem:[#allocation4 + $0xaf] sm:$0xff] }
 0x698   : > { %5792 = vst.msk [vmem:[#allocation4 + $0xd0] sm:$0xff] %vm790_vm4, %v5678_v1  ;;  %v12768_v33 = vadd.f32 %v17857_v31, %v5528_v14  ;;  %v5530_v50 = vpop.f32.mrb[105].mxu0  ;;  %v13607_v21 = vpack.i.bf16 %v5866_v15, %v5865_v32  ;;  %v5898_v19 = vld [vmem:[#allocation4 + $0xb0] sm:$0xff] }
 0x699   : > { %v13612_v43 = vpack.i.bf16 %v5898_v19, %v5897_v20  ;;  %v5929_v28 = vld [vmem:[#allocation4 + $0xa9] sm:$0xff]  ;;  %v5930_v18 = vld [vmem:[#allocation4 + $0xb1] sm:$0xff] }
 0x69a   : > { %v5679_v6 = vmax.f32 %v12768_v33, 0.0  ;;  %v13617_v4 = vpack.i.bf16 %v5930_v18, %v5929_v28  ;;  %v11607_v33 = vld [vmem:[%s20218_s9 + $0x168] sm:$0xff]  ;;  %v11608_v19 = vld [vmem:[%s20218_s9 + $0x170] sm:$0xff] }
 0x69b   : > { %13593 = vrot.lane.b32.xlu1 %v13592_v3, %s14835_s13  ;;  %13578 = vrot.lane.b32.xlu0 %v13592_v3, %s14835_s13  ;;  %v5533_v57 = vpop.f32.mrb[106].mxu0  ;;  %v6879_v41 = vld [vmem:[#allocation4 + $0xc7] sm:$0xff]  ;;  %v12611_v3 = vpack.c.bf16 %v11607_v33, %v11606_v63 }
 0x69c   : > { %5793 = vst.msk [vmem:[#allocation4 + $0xe8] sm:$0xff] %vm790_vm4, %v5679_v6  ;;  %v12769_v12 = vadd.f32 %v17857_v31, %v5533_v57  ;;  %v5535_v23 = vpop.f32.mrb[107].mxu0  ;;  %v5899_v62 = vld [vmem:[#allocation4 + $0xc8] sm:$0xff] }
 0x69d   : > { %12612 = vmatpush1.bf16.msra.mxu1 %v12611_v3 }
 0x69e   : > { %v5680_v44 = vmax.f32 %v12769_v12, 0.0  ;;  %12613 = vmatprep.subr.bf16.mxu1 %v20380_v39 }
 0x69f   : > { %13603 = vrot.lane.b32.xlu1 %v13602_v7, %s14838_s30  ;;  %13583 = vrot.lane.b32.xlu0 %v13582_v61, %s14836_s14  ;;  %v5538_v46 = vpop.f32.mrb[108].mxu0  ;;  %v6880_v10 = vld [vmem:[#allocation4 + $0xcf] sm:$0xff] }
 0x6a0   : > { %5794 = vst.msk [vmem:[#allocation4 + $0xf0] sm:$0xff] %vm790_vm4, %v5680_v44  ;;  %v12770_v56 = vadd.f32 %v17857_v31, %v5538_v46  ;;  %v5540_v38 = vpop.f32.mrb[109].mxu0  ;;  %v13647_v42 = vpack.i.bf16 %v6880_v10, %v6879_v41  ;;  %v6943_v54 = vld [vmem:[#allocation4 + $0xc9] sm:$0xff]  ;;  %v6944_v16 = vld [vmem:[#allocation4 + $0xd1] sm:$0xff] }
 0x6a1   : > { %v5900_v59 = vld [vmem:[#allocation4 + $0xd0] sm:$0xff]  ;;  %v13657_v14 = vpack.i.bf16 %v6944_v16, %v6943_v54  ;;  %v11610_v54 = vld [vmem:[%s20218_s9 + $0x180] sm:$0xff]  ;;  %v11611_v16 = vld [vmem:[%s20218_s9 + $0x188] sm:$0xff] }
 0x6a2   : > { %v5681_v26 = vmax.f32 %v12770_v56, 0.0  ;;  %v13642_v8 = vpack.i.bf16 %v5900_v59, %v5899_v62 }
 0x6a3   : > { %13588 = vrot.lane.b32.xlu0 %v13602_v7, %s14838_s30  ;;  %13608 = vrot.lane.b32.xlu1 %v13607_v21, %s14835_s13  ;;  %v5543_v55 = vpop.f32.mrb[110].mxu0  ;;  %v5869_v13 = vld [vmem:[#allocation4 + $0xe7] sm:$0xff] }
 0x6a4   : > { %5795 = vst.msk [vmem:[#allocation4 + $0x108] sm:$0xff] %vm790_vm4, %v5681_v26  ;;  %v12771_v52 = vadd.f32 %v17857_v31, %v5543_v55  ;;  %v5545_v40 = vpop.f32.mrb[111].mxu0  ;;  %v5901_v12 = vld [vmem:[#allocation4 + $0xe8] sm:$0xff]  ;;  %v11609_v26 = vld [vmem:[%s20218_s9 + $0x178] sm:$0xff] }
 0x6a5   : > { %v12614_v20 = vpack.c.bf16 %v11609_v26, %v11608_v19 }
 0x6a6   : > { %v5682_v37 = vmax.f32 %v12771_v52, 0.0 }
 0x6a7   : > { %13598 = vrot.lane.b32.xlu0 %v13582_v61, %s14836_s14  ;;  %13613 = vrot.lane.b32.xlu1 %v13612_v43, %s14836_s14  ;;  %v5548_v22 = vpop.f32.mrb[112].mxu0  ;;  %v5870_v50 = vld [vmem:[#allocation4 + $0xef] sm:$0xff] }
 0x6a8   : > { %5796 = vst.msk [vmem:[#allocation4 + $0x110] sm:$0xff] %vm790_vm4, %v5682_v37  ;;  %v12772_v35 = vadd.f32 %v17857_v31, %v5548_v22  ;;  %v5550_v17 = vpop.f32.mrb[113].mxu0  ;;  %v13662_v6 = vpack.i.bf16 %v5870_v50, %v5869_v13  ;;  %v5902_v29 = vld [vmem:[#allocation4 + $0xf0] sm:$0xff]  ;;  %12615 = vmatpush1.bf16.msra.mxu1 %v12614_v20 }
 0x6a9   : > { %v13667_v61 = vpack.i.bf16 %v5902_v29, %v5901_v12  ;;  %v6945_v15 = vld [vmem:[#allocation4 + $0xe9] sm:$0xff]  ;;  %v6946_v44 = vld [vmem:[#allocation4 + $0xf1] sm:$0xff]  ;;  %12616 = vmatprep.subr.bf16.mxu1 %v20380_v39 }
 0x6aa   : > { %v5683_v9 = vmax.f32 %v12772_v35, 0.0 }
 0x6ab   : > { %13623 = vrot.lane.b32.xlu0 %v13607_v21, %s14835_s13  ;;  %13618 = vrot.lane.b32.xlu1 %v13617_v4, %s14838_s30  ;;  %v5553_v48 = vpop.f32.mrb[114].mxu0  ;;  %v13682_v21 = vpack.i.bf16 %v6946_v44, %v6945_v15  ;;  %v5903_v17 = vld [vmem:[#allocation4 + $0x108] sm:$0xff]  ;;  %v11613_v15 = vld [vmem:[%s20218_s9 + $0x198] sm:$0xff] }
 0x6ac   : > { %5797 = vst.msk [vmem:[#allocation4 + $0x128] sm:$0xff] %vm790_vm4, %v5683_v9  ;;  %v12773_v51 = vadd.f32 %v17857_v31, %v5553_v48  ;;  %v5555_v49 = vpop.f32.mrb[115].mxu0 }
 0x6ae   : > { %v5684_v0 = vmax.f32 %v12773_v51, 0.0 }
 0x6af   : > { %13633 = vrot.lane.b32.xlu0 %v13617_v4, %s14838_s30  ;;  %13628 = vrot.lane.b32.xlu1 %v13612_v43, %s14836_s14  ;;  %v5558_v36 = vpop.f32.mrb[116].mxu0  ;;  %v6884_v55 = vld [vmem:[#allocation4 + $0x10f] sm:$0xff]  ;;  %v6883_v43 = vld [vmem:[#allocation4 + $0x107] sm:$0xff] }
 0x6b0   : > { %5798 = vst.msk [vmem:[#allocation4 + $0x130] sm:$0xff] %vm790_vm4, %v5684_v0  ;;  %v12774_v60 = vadd.f32 %v17857_v31, %v5558_v36  ;;  %v5560_v24 = vpop.f32.mrb[117].mxu0  ;;  %v13697_v37 = vpack.i.bf16 %v6884_v55, %v6883_v43  ;;  %v6947_v53 = vld [vmem:[#allocation4 + $0x109] sm:$0xff]  ;;  %v6948_v5 = vld [vmem:[#allocation4 + $0x111] sm:$0xff] }
 0x6b1   : > { %v5904_v22 = vld [vmem:[#allocation4 + $0x110] sm:$0xff]  ;;  %v13707_v48 = vpack.i.bf16 %v6948_v5, %v6947_v53 }
 0x6b2   : > { %v5685_v27 = vmax.f32 %v12774_v60, 0.0  ;;  %v13692_v51 = vpack.i.bf16 %v5904_v22, %v5903_v17 }
 0x6b3   : > { %13648 = vrot.lane.b32.xlu1 %v13647_v42, %s14835_s13  ;;  %13638 = vrot.lane.b32.xlu0 %v13647_v42, %s14835_s13  ;;  %v5563_v34 = vpop.f32.mrb[118].mxu0  ;;  %v5873_v36 = vld [vmem:[#allocation4 + $0x127] sm:$0xff] }
 0x6b4   : > { %5799 = vst.msk [vmem:[#allocation4 + $0x148] sm:$0xff] %vm790_vm4, %v5685_v27  ;;  %v12775_v58 = vadd.f32 %v17857_v31, %v5563_v34  ;;  %v5565_v1 = vpop.f32.mrb[119].mxu0  ;;  %v12617_v27 = vpack.c.bf16 %v11611_v16, %v11610_v54  ;;  %v5905_v62 = vld [vmem:[#allocation4 + $0x128] sm:$0xff] }
 0x6b6   : > { %v5686_v45 = vmax.f32 %v12775_v58, 0.0  ;;  %12618 = vmatpush1.bf16.msra.mxu1 %v12617_v27 }
 0x6b7   : > { %13658 = vrot.lane.b32.xlu1 %v13657_v14, %s14838_s30  ;;  %13643 = vrot.lane.b32.xlu0 %v13642_v8, %s14836_s14  ;;  %v5568_v11 = vpop.f32.mrb[120].mxu0  ;;  %v5874_v49 = vld [vmem:[#allocation4 + $0x12f] sm:$0xff] }
 0x6b8   : > { %5800 = vst.msk [vmem:[#allocation4 + $0x150] sm:$0xff] %vm790_vm4, %v5686_v45  ;;  %v12776_v47 = vadd.f32 %v17857_v31, %v5568_v11  ;;  %v5570_v2 = vpop.f32.mrb[121].mxu0  ;;  %v13712_v24 = vpack.i.bf16 %v5874_v49, %v5873_v36  ;;  %v5906_v42 = vld [vmem:[#allocation4 + $0x130] sm:$0xff]  ;;  %12619 = vmatprep.subr.bf16.mxu1 %v20380_v39  ;;  %v11615_v49 = vld [vmem:[%s20218_s9 + $0x1a8] sm:$0xff] }
 0x6b9   : > { %v13717_v1 = vpack.i.bf16 %v5906_v42, %v5905_v62  ;;  %v6949_v14 = vld [vmem:[#allocation4 + $0x129] sm:$0xff] }
 0x6ba   : > { %v5687_v57 = vmax.f32 %v12776_v47, 0.0 }
 0x6bb   : > { %13653 = vrot.lane.b32.xlu0 %v13642_v8, %s14836_s14  ;;  %13663 = vrot.lane.b32.xlu1 %v13662_v6, %s14835_s13  ;;  %v5573_v25 = vpop.f32.mrb[122].mxu0  ;;  %v6950_v8 = vld [vmem:[#allocation4 + $0x131] sm:$0xff] }
 0x6bc   : > { %5801 = vst.msk [vmem:[#allocation4 + $0x168] sm:$0xff] %vm790_vm4, %v5687_v57  ;;  %v12777_v23 = vadd.f32 %v17857_v31, %v5573_v25  ;;  %v5575_v7 = vpop.f32.mrb[123].mxu0  ;;  %v13732_v11 = vpack.i.bf16 %v6950_v8, %v6949_v14 }
 0x6be   : > { %v5688_v46 = vmax.f32 %v12777_v23, 0.0 }
 0x6bf   : > { %13673 = vrot.lane.b32.xlu0 %v13662_v6, %s14835_s13  ;;  %13668 = vrot.lane.b32.xlu1 %v13667_v61, %s14836_s14  ;;  %v5578_v32 = vpop.f32.mrb[124].mxu0  ;;  %v6888_v13 = vld [vmem:[#allocation4 + $0x14f] sm:$0xff]  ;;  %v6887_v6 = vld [vmem:[#allocation4 + $0x147] sm:$0xff] }
 0x6c0   : > { %5802 = vst.msk [vmem:[#allocation4 + $0x170] sm:$0xff] %vm790_vm4, %v5688_v46  ;;  %v12778_v56 = vadd.f32 %v17857_v31, %v5578_v32  ;;  %v5580_v38 = vpop.f32.mrb[125].mxu0  ;;  %v13747_v25 = vpack.i.bf16 %v6888_v13, %v6887_v6  ;;  %v6951_v12 = vld [vmem:[#allocation4 + $0x149] sm:$0xff]  ;;  %v6952_v23 = vld [vmem:[#allocation4 + $0x151] sm:$0xff] }
 0x6c1   : > { %v5908_v7 = vld [vmem:[#allocation4 + $0x150] sm:$0xff]  ;;  %v13757_v19 = vpack.i.bf16 %v6952_v23, %v6951_v12 }
 0x6c2   : > { %v5689_v52 = vmax.f32 %v12778_v56, 0.0  ;;  %v5907_v56 = vld [vmem:[#allocation4 + $0x148] sm:$0xff] }
 0x6c3   : > { %13683 = vrot.lane.b32.xlu0 %v13682_v21, %s14838_s30  ;;  %13678 = vrot.lane.b32.xlu1 %v13667_v61, %s14836_s14  ;;  %v5583_v40 = vpop.f32.mrb[126].mxu0  ;;  %v11612_v61 = vld [vmem:[%s20218_s9 + $0x190] sm:$0xff]  ;;  %v13742_v26 = vpack.i.bf16 %v5908_v7, %v5907_v56  ;;  %v5909_v22 = vld [vmem:[#allocation4 + $0x168] sm:$0xff] }
 0x6c4   : > { %5803 = vst.msk [vmem:[#allocation4 + $0x188] sm:$0xff] %vm790_vm4, %v5689_v52  ;;  %v12779_v28 = vadd.f32 %v17857_v31, %v5583_v40  ;;  %v5585_v18 = vpop.f32.mrb[127].mxu0  ;;  %v12620_v46 = vpack.c.bf16 %v11613_v15, %v11612_v61  ;;  %v5877_v40 = vld [vmem:[#allocation4 + $0x167] sm:$0xff] }
 0x6c5   : > { %v5827_v56 = vld [vmem:[#allocation4 + $0x46] sm:$0xff] }
 0x6c6   : > { %v5690_v30 = vmax.f32 %v12779_v28, 0.0  ;;  %12621 = vmatpush1.bf16.msra.mxu1 %v12620_v46 }
 0x6c7   : > { %13698 = vrot.lane.b32.xlu1 %v13697_v37, %s14835_s13  ;;  %13688 = vrot.lane.b32.xlu0 %v13697_v37, %s14835_s13  ;;  %v5588_v35 = vpop.f32.mrb[128].mxu0  ;;  %v5878_v55 = vld [vmem:[#allocation4 + $0x16f] sm:$0xff] }
 0x6c8   : > { %5804 = vst.msk [vmem:[#allocation4 + $0x190] sm:$0xff] %vm790_vm4, %v5690_v30  ;;  %v12780_v4 = vadd.f32 %v17857_v31, %v5588_v35  ;;  %v5590_v9 = vpop.f32.mrb[129].mxu0  ;;  %12622 = vmatprep.subr.bf16.mxu1 %v20380_v39  ;;  %v13762_v18 = vpack.i.bf16 %v5878_v55, %v5877_v40  ;;  %v5910_v37 = vld [vmem:[#allocation4 + $0x170] sm:$0xff] }
 0x6c9   : > { %v13767_v17 = vpack.i.bf16 %v5910_v37, %v5909_v22  ;;  %v6954_v9 = vld [vmem:[#allocation4 + $0x171] sm:$0xff]  ;;  %v11618_v37 = vld [vmem:[%s20218_s9 + $0x1c0] sm:$0xff] }
 0x6ca   : > { %v5691_v10 = vmax.f32 %v12780_v4, 0.0  ;;  %v6953_v4 = vld [vmem:[#allocation4 + $0x169] sm:$0xff]  ;;  %v5956_v40 = vld [vmem:[#allocation4 + $0x52] sm:$0xff] }
 0x6cb   : > { %13708 = vrot.lane.b32.xlu1 %v13707_v48, %s14838_s30  ;;  %13693 = vrot.lane.b32.xlu0 %v13692_v51, %s14836_s14  ;;  %v5593_v0 = vpop.f32.mrb[130].mxu0  ;;  %v6891_v16 = vld [vmem:[#allocation4 + $0x187] sm:$0xff] }
 0x6cc   : > { %5805 = vst.msk [vmem:[#allocation4 + $0x1a8] sm:$0xff] %vm790_vm4, %v5691_v10  ;;  %v12781_v41 = vadd.f32 %v17857_v31, %v5593_v0  ;;  %v5595_v60 = vpop.f32.mrb[131].mxu0  ;;  %v5911_v14 = vld [vmem:[#allocation4 + $0x188] sm:$0xff] }
 0x6cd   : > { %v13782_v60 = vpack.i.bf16 %v6954_v9, %v6953_v4 }
 0x6ce   : > { %v5692_v59 = vmax.f32 %v12781_v41, 0.0 }
 0x6cf   : > { %13703 = vrot.lane.b32.xlu0 %v13692_v51, %s14836_s14  ;;  %13713 = vrot.lane.b32.xlu1 %v13712_v24, %s14835_s13  ;;  %v5598_v34 = vpop.f32.mrb[132].mxu0  ;;  %v11614_v51 = vld [vmem:[%s20218_s9 + $0x1a0] sm:$0xff]  ;;  %v6955_v62 = vld [vmem:[#allocation4 + $0x189] sm:$0xff] }
 0x6d0   : > { %5806 = vst.msk [vmem:[#allocation4 + $0x1b0] sm:$0xff] %vm790_vm4, %v5692_v59  ;;  %v12782_v63 = vadd.f32 %v17857_v31, %v5598_v34  ;;  %v5600_v58 = vpop.f32.mrb[133].mxu0  ;;  %v12623_v0 = vpack.c.bf16 %v11615_v49, %v11614_v51 }
 0x6d1   : > { %v5912_v58 = vld [vmem:[#allocation4 + $0x190] sm:$0xff] }
 0x6d2   : > { %v5693_v33 = vmax.f32 %v12782_v63, 0.0  ;;  %12624 = vmatpush1.bf16.msra.mxu1 %v12623_v0  ;;  %v6956_v63 = vld [vmem:[#allocation4 + $0x191] sm:$0xff] }
 0x6d3   : > { %13723 = vrot.lane.b32.xlu0 %v13712_v24, %s14835_s13  ;;  %13718 = vrot.lane.b32.xlu1 %v13717_v1, %s14836_s14  ;;  %v5603_v50 = vpop.f32.mrb[134].mxu0  ;;  %v6892_v24 = vld [vmem:[#allocation4 + $0x18f] sm:$0xff]  ;;  %v13807_v8 = vpack.i.bf16 %v6956_v63, %v6955_v62 }
 0x6d4   : > { %5807 = vst.msk [vmem:[#allocation4 + $0x1c8] sm:$0xff] %vm790_vm4, %v5693_v33  ;;  %v12783_v3 = vadd.f32 %v17857_v31, %v5603_v50  ;;  %v5605_v45 = vpop.f32.mrb[135].mxu0  ;;  %12625 = vmatprep.subr.bf16.mxu1 %v20380_v39  ;;  %v13797_v34 = vpack.i.bf16 %v6892_v24, %v6891_v16  ;;  %v13792_v33 = vpack.i.bf16 %v5912_v58, %v5911_v14  ;;  %v5957_v63 = vld [vmem:[#allocation4 + $0x6a] sm:$0xff] }
 0x6d5   : > { %v11617_v45 = vld [vmem:[%s20218_s9 + $0x1b8] sm:$0xff]  ;;  %v5829_v14 = vld [vmem:[#allocation4 + $0x66] sm:$0xff] }
 0x6d6   : > { %v5694_v47 = vmax.f32 %v12783_v3, 0.0  ;;  %v11616_v3 = vld [vmem:[%s20218_s9 + $0x1b0] sm:$0xff] }
 0x6d7   : > { %13733 = vrot.lane.b32.xlu0 %v13732_v11, %s14838_s30  ;;  %13728 = vrot.lane.b32.xlu1 %v13717_v1, %s14836_s14  ;;  %v5608_v2 = vpop.f32.mrb[136].mxu0  ;;  %v5882_v50 = vld [vmem:[#allocation4 + $0x1af] sm:$0xff] }
 0x6d8   : > { %5808 = vst.msk [vmem:[#allocation4 + $0x1d0] sm:$0xff] %vm790_vm4, %v5694_v47  ;;  %v12784_v29 = vadd.f32 %v17857_v31, %v5608_v2  ;;  %v5610_v57 = vpop.f32.mrb[137].mxu0  ;;  %v12626_v2 = vpack.c.bf16 %v11617_v45, %v11616_v3  ;;  %v5914_v6 = vld [vmem:[#allocation4 + $0x1b0] sm:$0xff] }
 0x6d9   : > { %v6957_v7 = vld [vmem:[#allocation4 + $0x1a9] sm:$0xff]  ;;  %v6958_v61 = vld [vmem:[#allocation4 + $0x1b1] sm:$0xff] }
 0x6da   : > { %v5695_v44 = vmax.f32 %v12784_v29, 0.0  ;;  %v5913_v29 = vld [vmem:[#allocation4 + $0x1a8] sm:$0xff]  ;;  %12627 = vmatpush1.bf16.msra.mxu1 %v12626_v2 }
 0x6db   : > { %13748 = vrot.lane.b32.xlu1 %v13747_v25, %s14835_s13  ;;  %13738 = vrot.lane.b32.xlu0 %v13747_v25, %s14835_s13  ;;  %v5613_v32 = vpop.f32.mrb[138].mxu0  ;;  %v13817_v12 = vpack.i.bf16 %v5914_v6, %v5913_v29 }
 0x6dc   : > { %5809 = vst.msk [vmem:[#allocation4 + $0x1e8] sm:$0xff] %vm790_vm4, %v5695_v44  ;;  %v12785_v38 = vadd.f32 %v17857_v31, %v5613_v32  ;;  %v5615_v21 = vpop.f32.mrb[139].mxu0  ;;  %12628 = vmatprep.subr.bf16.mxu1 %v20380_v39  ;;  %v13832_v32 = vpack.i.bf16 %v6958_v61, %v6957_v7 }
 0x6de   : > { %v5696_v20 = vmax.f32 %v12785_v38, 0.0 }
 0x6df   : > { %13758 = vrot.lane.b32.xlu1 %v13757_v19, %s14838_s30  ;;  %13743 = vrot.lane.b32.xlu0 %v13742_v26, %s14836_s14  ;;  %v5618_v52 = vpop.f32.mrb[140].mxu0  ;;  %v6959_v4 = vld [vmem:[#allocation4 + $0x1c9] sm:$0xff]  ;;  %v6960_v9 = vld [vmem:[#allocation4 + $0x1d1] sm:$0xff] }
 0x6e0   : > { %5810 = vst.msk [vmem:[#allocation4 + $0x1f0] sm:$0xff] %vm790_vm4, %v5696_v20  ;;  %v12786_v43 = vadd.f32 %v17857_v31, %v5618_v52  ;;  %v5620_v28 = vpop.f32.mrb[141].mxu0 }
 0x6e2   : > { %v5697_v53 = vmax.f32 %v12786_v43, 0.0 }
 0x6e3   : > { %13753 = vrot.lane.b32.xlu0 %v13742_v26, %s14836_s14  ;;  %13763 = vrot.lane.b32.xlu1 %v13762_v18, %s14835_s13  ;;  %v5623_v5 = vpop.f32.mrb[142].mxu0  ;;  %v6896_v26 = vld [vmem:[#allocation4 + $0x1cf] sm:$0xff] }
 0x6e4   : > { %5811 = vst.msk [vmem:[#allocation4 + $0x208] sm:$0xff] %vm790_vm4, %v5697_v53  ;;  %v12787_v30 = vadd.f32 %v17857_v31, %v5623_v5  ;;  %v5625_v35 = vpop.f32.mrb[143].mxu0  ;;  %v11619_v53 = vld [vmem:[%s20218_s9 + $0x1c8] sm:$0xff] }
 0x6e6   : > { %v5698_v48 = vmax.f32 %v12787_v30, 0.0 }
 0x6e7   : > { %13773 = vrot.lane.b32.xlu0 %v13762_v18, %s14835_s13  ;;  %13768 = vrot.lane.b32.xlu1 %v13767_v17, %s14836_s14  ;;  %v5628_v10 = vpop.f32.mrb[144].mxu0  ;;  %v6895_v18 = vld [vmem:[#allocation4 + $0x1c7] sm:$0xff]  ;;  %v5886_v45 = vld [vmem:[#allocation4 + $0x1ef] sm:$0xff] }
 0x6e8   : > { %5812 = vst.msk [vmem:[#allocation4 + $0x210] sm:$0xff] %vm790_vm4, %v5698_v48  ;;  %v12788_v36 = vadd.f32 %v17857_v31, %v5628_v10  ;;  %v5630_v41 = vpop.f32.mrb[145].mxu0  ;;  %v13847_v35 = vpack.i.bf16 %v6896_v26, %v6895_v18  ;;  %v12629_v48 = vpack.c.bf16 %v11619_v53, %v11618_v37  ;;  %v5959_v18 = vld [vmem:[#allocation4 + $0x8a] sm:$0xff] }
 0x6ea   : > { %v5699_v42 = vmax.f32 %v12788_v36, 0.0  ;;  %v5916_v36 = vld [vmem:[#allocation4 + $0x1d0] sm:$0xff]  ;;  %12630 = vmatpush1.bf16.msra.mxu1 %v12629_v48 }
 0x6eb   : > { %13783 = vrot.lane.b32.xlu0 %v13782_v60, %s14838_s30  ;;  %13778 = vrot.lane.b32.xlu1 %v13767_v17, %s14836_s14  ;;  %v5633_v54 = vpop.f32.mrb[146].mxu0  ;;  %v5828_v17 = vld [vmem:[#allocation4 + $0x4e] sm:$0xff] }
 0x6ec   : > { %5813 = vst.msk [vmem:[#allocation4 + $0x228] sm:$0xff] %vm790_vm4, %v5699_v42  ;;  %v12789_v59 = vadd.f32 %v17857_v31, %v5633_v54  ;;  %v5635_v27 = vpop.f32.mrb[147].mxu0  ;;  %v5881_v31 = vld [vmem:[#allocation4 + $0x1a7] sm:$0xff]  ;;  %12631 = vmatprep.subr.bf16.mxu1 %v20380_v39  ;;  %v11620_v48 = vld [vmem:[%s20218_s9 + $0x1d0] sm:$0xff] }
 0x6ed   : > { %v13812_v47 = vpack.i.bf16 %v5882_v50, %v5881_v31  ;;  %v5915_v27 = vld [vmem:[#allocation4 + $0x1c8] sm:$0xff] }
 0x6ee   : > { %v5700_v1 = vmax.f32 %v12789_v59, 0.0  ;;  %v13857_v59 = vpack.i.bf16 %v6960_v9, %v6959_v4 }
 0x6ef   : > { %13798 = vrot.lane.b32.xlu1 %v13797_v34, %s14835_s13  ;;  %13788 = vrot.lane.b32.xlu0 %v13797_v34, %s14835_s13 }
 0x6f0   : > { %5814 = vst.msk [vmem:[#allocation4 + $0x230] sm:$0xff] %vm790_vm4, %v5700_v1  ;;  %v13842_v1 = vpack.i.bf16 %v5916_v36, %v5915_v27  ;;  %v5831_v27 = vld [vmem:[#allocation4 + $0x86] sm:$0xff] }
 0x6f3   : > { %13808 = vrot.lane.b32.xlu1 %v13807_v8, %s14838_s30  ;;  %13793 = vrot.lane.b32.xlu0 %v13792_v33, %s14836_s14 }
 0x6f5   : > { %v18038_v11 = vpop.permute.xlu1 %13533  ;;  %v13519_v13 = vpop.permute.xlu0 %13518 }
 0x6f6   : > { %v13520_v23 = vunpack.i.l.bf16 %v13519_v13  ;;  %v13521_v38 = vunpack.i.h.bf16 %v13519_v13  ;;  %v13535_v55 = vunpack.i.l.bf16 %v18038_v11  ;;  %v13536_v5 = vunpack.i.h.bf16 %v18038_v11 }
 0x6f7   : > { %13803 = vrot.lane.b32.xlu0 %v13792_v33, %s14836_s14  ;;  %13813 = vrot.lane.b32.xlu1 %v13812_v47, %s14835_s13 }
 0x6f8   : > { %v6371_v19 = vsel %vm790_vm4, %v5827_v56, %v13520_v23  ;;  %v6372_v0 = vsel %vm790_vm4, %v5828_v17, %v13521_v38  ;;  %v7383_v42 = vsel %vm790_vm4, %v5827_v56, %v13535_v55  ;;  %v7384_v8 = vsel %vm790_vm4, %v5828_v17, %v13536_v5 }
 0x6f9   : > { %v18042_v57 = vpop.permute.xlu1 %13543  ;;  %v13524_v25 = vpop.permute.xlu0 %13523 }
 0x6fa   : > { %v13525_v15 = vunpack.i.l.bf16 %v13524_v25  ;;  %v13526_v20 = vunpack.i.h.bf16 %v13524_v25  ;;  %v13545_v41 = vunpack.i.l.bf16 %v18042_v57  ;;  %v13546_v11 = vunpack.i.h.bf16 %v18042_v57  ;;  %v5885_v25 = vld [vmem:[#allocation4 + $0x1e7] sm:$0xff]  ;;  %v5958_v57 = vld [vmem:[#allocation4 + $0x72] sm:$0xff] }
 0x6fb   : > { %13823 = vrot.lane.b32.xlu0 %v13812_v47, %s14835_s13  ;;  %13818 = vrot.lane.b32.xlu1 %v13817_v12, %s14836_s14 }
 0x6fc   : > { %v6403_v52 = vsel %vm1289_vm6, %v6371_v19, %v13525_v15  ;;  %v6404_v24 = vsel %vm1289_vm6, %v6372_v0, %v13526_v20  ;;  %v13862_v15 = vpack.i.bf16 %v5886_v45, %v5885_v25  ;;  %v6900_v0 = vld [vmem:[#allocation4 + $0x20f] sm:$0xff] }
 0x6fd   : > { %v13529_v44 = vpop.permute.xlu0 %13528  ;;  %v18047_v46 = vpop.permute.xlu1 %13548 }
 0x6fe   : > { %v13530_v21 = vunpack.i.l.bf16 %v13529_v44  ;;  %v13531_v43 = vunpack.i.h.bf16 %v13529_v44  ;;  %v13550_v51 = vunpack.i.l.bf16 %v18047_v46  ;;  %v13551_v33 = vunpack.i.h.bf16 %v18047_v46  ;;  %v5830_v44 = vld [vmem:[#allocation4 + $0x6e] sm:$0xff] }
 0x6ff   : > { %13833 = vrot.lane.b32.xlu0 %v13832_v32, %s14838_s30  ;;  %13828 = vrot.lane.b32.xlu1 %v13817_v12, %s14836_s14 }
 0x700   : > { %v6435_v28 = vsel %vm1334_vm7, %v6403_v52, %v13530_v21  ;;  %v6436_v54 = vsel %vm1334_vm7, %v6404_v24, %v13531_v43  ;;  %v6373_v31 = vsel %vm790_vm4, %v5829_v14, %v13550_v51  ;;  %v6374_v38 = vsel %vm790_vm4, %v5830_v44, %v13551_v33  ;;  %v5918_v21 = vld [vmem:[#allocation4 + $0x1f0] sm:$0xff]  ;;  %v5917_v52 = vld [vmem:[#allocation4 + $0x1e8] sm:$0xff]  ;;  %v11621_v51 = vld [vmem:[%s20218_s9 + $0x1d8] sm:$0xff] }
 0x701   : > { %v13539_v22 = vpop.permute.xlu0 %13538  ;;  %6664 = vmatmul.mubr.f32.gmra.mrb[156].mxu0 %v6435_v28  ;;  %v18062_v30 = vpop.permute.xlu1 %13553  ;;  %v18104_v53 = vpack.i.bf16 %v5918_v21, %v5917_v52  ;;  %v6899_v24 = vld [vmem:[#allocation4 + $0x207] sm:$0xff] }
 0x702   : > { %v13541_v49 = vunpack.i.h.bf16 %v13539_v22  ;;  %v13540_v10 = vunpack.i.l.bf16 %v13539_v22  ;;  %11523 = vmatprep.mubr.msk.f32.mxu0 %vm790_vm4, %v5956_v40  ;;  %v13555_v60 = vunpack.i.l.bf16 %v18062_v30  ;;  %v13556_v13 = vunpack.i.h.bf16 %v18062_v30  ;;  %v6961_v30 = vld [vmem:[#allocation4 + $0x1e9] sm:$0xff] }
 0x703   : > { %13848 = vrot.lane.b32.xlu1 %v13847_v35, %s14835_s13  ;;  %13838 = vrot.lane.b32.xlu0 %v13847_v35, %s14835_s13  ;;  %v6962_v35 = vld [vmem:[#allocation4 + $0x1f1] sm:$0xff] }
 0x704   : > { %v7415_v16 = vsel %vm1289_vm6, %v7383_v42, %v13540_v10  ;;  %v7416_v3 = vsel %vm1289_vm6, %v7384_v8, %v13541_v49  ;;  %v6405_v2 = vsel %vm1289_vm6, %v6373_v31, %v13555_v60  ;;  %v6406_v19 = vsel %vm1289_vm6, %v6374_v38, %v13556_v13  ;;  %v6964_v8 = vld [vmem:[#allocation4 + $0x211] sm:$0xff] }
 0x705   : > { %6669 = vmatmul.mubr.f32.gmra.mrb[158].mxu0 %v6436_v54  ;;  %v13564_v34 = vpop.permute.xlu0 %13563  ;;  %v13559_v62 = vpop.permute.xlu1 %13558  ;;  %v7447_v58 = vsel %vm1334_vm7, %v7415_v16, %v13545_v41  ;;  %v7448_v61 = vsel %vm1334_vm7, %v7416_v3, %v13546_v11  ;;  %v18123_v10 = vpack.i.bf16 %v6962_v35, %v6961_v30  ;;  %v6932_v41 = vld [vmem:[#allocation4 + $0x210] sm:$0xff]  ;;  %v12632_v60 = vpack.c.bf16 %v11621_v51, %v11620_v48  ;;  %v6931_v16 = vld [vmem:[#allocation4 + $0x208] sm:$0xff] }
 0x706   : > { %v13560_v50 = vunpack.i.l.bf16 %v13559_v62  ;;  %11524 = vmatprep.mubr.msk.f32.mxu0 %vm790_vm4, %v5957_v63  ;;  %7669 = vmatmul.mubr.f32.gmra.mrb[36].mxu1 %v7447_v58  ;;  %v13565_v47 = vunpack.i.l.bf16 %v13564_v34  ;;  %v13561_v6 = vunpack.i.h.bf16 %v13559_v62  ;;  %v13566_v12 = vunpack.i.h.bf16 %v13564_v34  ;;  %v7883_v11 = vld [vmem:[#allocation4 + $0x47] sm:$0xff]  ;;  %v7886_v48 = vld [vmem:[#allocation4 + $0x6f] sm:$0xff] }
 0x707   : > { %11573 = vmatprep.mubr.msk.f32.mxu1 %vm790_vm4, %v5956_v40  ;;  %13858 = vrot.lane.b32.xlu1 %v13857_v59, %s14838_s30  ;;  %v18132_v59 = vpack.i.bf16 %v6900_v0, %v6899_v24  ;;  %v7917_v24 = vld [vmem:[#allocation4 + $0x68] sm:$0xff] }
 0x708   : > { %13843 = vrot.lane.b32.xlu0 %v13842_v1, %s14836_s14  ;;  %v6437_v29 = vsel %vm1334_vm7, %v6405_v2, %v13560_v50  ;;  %v7385_v26 = vsel %vm790_vm4, %v5829_v14, %v13565_v47  ;;  %v6438_v55 = vsel %vm1334_vm7, %v6406_v19, %v13561_v6  ;;  %v7386_v5 = vsel %vm790_vm4, %v5830_v44, %v13566_v12  ;;  %v6963_v14 = vld [vmem:[#allocation4 + $0x209] sm:$0xff]  ;;  %v5960_v6 = vld [vmem:[#allocation4 + $0x92] sm:$0xff] }
 0x709   : > { %v13574_v23 = vpop.permute.xlu0 %13573  ;;  %v13569_v7 = vpop.permute.xlu1 %13568  ;;  %6674 = vmatmul.mubr.f32.gmra.mrb[160].mxu0 %v6437_v29  ;;  %12633 = vmatpush1.bf16.msra.mxu1 %v12632_v60  ;;  %v18146_v25 = vpack.i.bf16 %v6964_v8, %v6963_v14  ;;  %v5832_v12 = vld [vmem:[#allocation4 + $0x8e] sm:$0xff] }
 0x70a   : > { %v13575_v46 = vunpack.i.l.bf16 %v13574_v23  ;;  %v13571_v32 = vunpack.i.h.bf16 %v13569_v7  ;;  %v13570_v56 = vunpack.i.l.bf16 %v13569_v7  ;;  %11525 = vmatprep.mubr.msk.f32.mxu0 %vm790_vm4, %v5958_v57  ;;  %7674 = vmatmul.mubr.f32.gmra.mrb[38].mxu1 %v7448_v61  ;;  %v13576_v40 = vunpack.i.h.bf16 %v13574_v23  ;;  %v7948_v44 = vld [vmem:[#allocation4 + $0x51] sm:$0xff] }
 0x70b   : > { %11574 = vmatprep.mubr.msk.f32.mxu1 %vm790_vm4, %v5957_v63  ;;  %13863 = vrot.lane.b32.xlu1 %v13862_v15, %s14835_s13  ;;  %v13892_v63 = vpack.i.bf16 %v6932_v41, %v6931_v16 }
 0x70c   : > { %13853 = vrot.lane.b32.xlu0 %v13842_v1, %s14836_s14  ;;  %v7417_v20 = vsel %vm1289_vm6, %v7385_v26, %v13570_v56  ;;  %v7418_v22 = vsel %vm1289_vm6, %v7386_v5, %v13571_v32  ;;  %v7884_v1 = vld [vmem:[#allocation4 + $0x4f] sm:$0xff]  ;;  %12634 = vmatprep.subr.bf16.mxu1 %v20380_v39 }
 0x70d   : > { %6679 = vmatmul.mubr.f32.gmra.mrb[162].mxu0 %v6438_v55  ;;  %v18099_v43 = vpop.permute.xlu1 %13593  ;;  %v18101_v28 = vpop.permute.xlu0 %13578  ;;  %v7449_v37 = vsel %vm1334_vm7, %v7417_v20, %v13575_v46  ;;  %v7450_v9 = vsel %vm1334_vm7, %v7418_v22, %v13576_v40  ;;  %v13902_v29 = vpack.i.bf16 %v7884_v1, %v7883_v11  ;;  %v7916_v46 = vld [vmem:[#allocation4 + $0x50] sm:$0xff]  ;;  %v7915_v55 = vld [vmem:[#allocation4 + $0x48] sm:$0xff] }
 0x70e   : > { %11526 = vmatprep.mubr.msk.f32.mxu0 %vm790_vm4, %v5959_v18  ;;  %7679 = vmatmul.mubr.f32.gmra.mrb[40].mxu1 %v7449_v37  ;;  %v13580_v49 = vunpack.i.l.bf16 %v18101_v28  ;;  %v13581_v34 = vunpack.i.h.bf16 %v18101_v28  ;;  %v13595_v33 = vunpack.i.l.bf16 %v18099_v43  ;;  %v13596_v13 = vunpack.i.h.bf16 %v18099_v43  ;;  %v5961_v40 = vld [vmem:[#allocation4 + $0xaa] sm:$0xff] }
 0x70f   : > { %11575 = vmatprep.mubr.msk.f32.mxu1 %vm790_vm4, %v5958_v57  ;;  %13868 = vrot.lane.b32.xlu1 %v18104_v53, %s14836_s14  ;;  %v5833_v37 = vld [vmem:[#allocation4 + $0xa6] sm:$0xff]  ;;  %v7888_v11 = vld [vmem:[#allocation4 + $0x8f] sm:$0xff] }
 0x710   : > { %13873 = vrot.lane.b32.xlu0 %v13862_v15, %s14835_s13  ;;  %v6375_v58 = vsel %vm790_vm4, %v5831_v27, %v13580_v49  ;;  %v6376_v61 = vsel %vm790_vm4, %v5832_v12, %v13581_v34  ;;  %v7947_v15 = vld [vmem:[#allocation4 + $0x49] sm:$0xff]  ;;  %v7387_v21 = vsel %vm790_vm4, %v5831_v27, %v13595_v33  ;;  %v7388_v5 = vsel %vm790_vm4, %v5832_v12, %v13596_v13 }
 0x711   : > { %v18113_v17 = vpop.permute.xlu1 %13603  ;;  %v13584_v4 = vpop.permute.xlu0 %13583  ;;  %v13912_v28 = vpack.i.bf16 %v7948_v44, %v7947_v15  ;;  %v5963_v12 = vld [vmem:[#allocation4 + $0xca] sm:$0xff] }
 0x712   : > { %7684 = vmatmul.mubr.f32.gmra.mrb[42].mxu1 %v7450_v9  ;;  %v13585_v36 = vunpack.i.l.bf16 %v13584_v4  ;;  %v13586_v50 = vunpack.i.h.bf16 %v13584_v4  ;;  %v13605_v32 = vunpack.i.l.bf16 %v18113_v17  ;;  %v7918_v9 = vld [vmem:[#allocation4 + $0x70] sm:$0xff]  ;;  %v13606_v51 = vunpack.i.h.bf16 %v18113_v17 }
 0x713   : > { %11576 = vmatprep.mubr.msk.f32.mxu1 %vm790_vm4, %v5959_v18  ;;  %13878 = vrot.lane.b32.xlu1 %v18104_v53, %s14836_s14  ;;  %v13907_v18 = vpack.i.bf16 %v7916_v46, %v7915_v55  ;;  %v5962_v17 = vld [vmem:[#allocation4 + $0xb2] sm:$0xff] }
 0x714   : > { %13883 = vrot.lane.b32.xlu0 %v18123_v10, %s14838_s30  ;;  %v6407_v31 = vsel %vm1289_vm6, %v6375_v58, %v13585_v36  ;;  %v6408_v38 = vsel %vm1289_vm6, %v6376_v61, %v13586_v50  ;;  %v5834_v58 = vld [vmem:[#allocation4 + $0xae] sm:$0xff] }
 0x715   : > { %v13589_v42 = vpop.permute.xlu0 %13588  ;;  %v18130_v54 = vpop.permute.xlu1 %13608  ;;  %v7949_v50 = vld [vmem:[#allocation4 + $0x69] sm:$0xff] }
 0x716   : > { %v13590_v62 = vunpack.i.l.bf16 %v13589_v42  ;;  %v13591_v3 = vunpack.i.h.bf16 %v13589_v42  ;;  %v13610_v23 = vunpack.i.l.bf16 %v18130_v54  ;;  %v13611_v22 = vunpack.i.h.bf16 %v18130_v54  ;;  %v7885_v42 = vld [vmem:[#allocation4 + $0x67] sm:$0xff]  ;;  %v7920_v46 = vld [vmem:[#allocation4 + $0x90] sm:$0xff] }
 0x717   : > { %13888 = vrot.lane.b32.xlu1 %v18132_v59, %s14835_s13 }
 0x718   : > { %13893 = vrot.lane.b32.xlu0 %v13892_v63, %s14836_s14  ;;  %v6439_v45 = vsel %vm1334_vm7, %v6407_v31, %v13590_v62  ;;  %v6440_v19 = vsel %vm1334_vm7, %v6408_v38, %v13591_v3  ;;  %v6377_v35 = vsel %vm790_vm4, %v5833_v37, %v13610_v23  ;;  %v18174_v62 = vpack.i.bf16 %v7918_v9, %v7917_v24  ;;  %v7950_v31 = vld [vmem:[#allocation4 + $0x71] sm:$0xff]  ;;  %v7919_v38 = vld [vmem:[#allocation4 + $0x88] sm:$0xff] }
 0x719   : > { %v13599_v47 = vpop.permute.xlu0 %13598  ;;  %6684 = vmatmul.mubr.f32.gmra.mrb[164].mxu0 %v6439_v45  ;;  %v18144_v2 = vpop.permute.xlu1 %13613  ;;  %v18176_v63 = vpack.i.bf16 %v7886_v48, %v7885_v42  ;;  %v6378_v33 = vsel %vm790_vm4, %v5834_v58, %v13611_v22  ;;  %v18207_v55 = vpack.i.bf16 %v7920_v46, %v7919_v38  ;;  %v7921_v22 = vld [vmem:[#allocation4 + $0xa8] sm:$0xff]  ;;  %v7926_v38 = vld [vmem:[#allocation4 + $0xf0] sm:$0xff] }
 0x71a   : > { %v13601_v7 = vunpack.i.h.bf16 %v13599_v47  ;;  %v13600_v57 = vunpack.i.l.bf16 %v13599_v47  ;;  %11527 = vmatprep.mubr.msk.f32.mxu0 %vm790_vm4, %v5960_v6  ;;  %v13615_v56 = vunpack.i.l.bf16 %v18144_v2  ;;  %v13616_v49 = vunpack.i.h.bf16 %v18144_v2  ;;  %v6847_v48 = vld [vmem:[#allocation4 + $0xc6] sm:$0xff]  ;;  %v6848_v24 = vld [vmem:[#allocation4 + $0xce] sm:$0xff] }
 0x71b   : > { %13898 = vrot.lane.b32.xlu1 %v18146_v25, %s14838_s30  ;;  %v6849_v46 = vld [vmem:[#allocation4 + $0xe6] sm:$0xff] }
 0x71c   : > { %13903 = vrot.lane.b32.xlu0 %v13902_v29, %s14835_s13  ;;  %v7419_v26 = vsel %vm1289_vm6, %v7387_v21, %v13600_v57  ;;  %v7420_v4 = vsel %vm1289_vm6, %v7388_v5, %v13601_v7  ;;  %v6409_v36 = vsel %vm1289_vm6, %v6377_v35, %v13615_v56  ;;  %v6410_v3 = vsel %vm1289_vm6, %v6378_v33, %v13616_v49  ;;  %v7887_v7 = vld [vmem:[#allocation4 + $0x87] sm:$0xff]  ;;  %v7952_v56 = vld [vmem:[#allocation4 + $0x91] sm:$0xff] }
 0x71d   : > { %6689 = vmatmul.mubr.f32.gmra.mrb[166].mxu0 %v6440_v19  ;;  %v13624_v20 = vpop.permute.xlu0 %13623  ;;  %v13619_v52 = vpop.permute.xlu1 %13618  ;;  %v7451_v43 = vsel %vm1334_vm7, %v7419_v26, %v13605_v32  ;;  %v7452_v34 = vsel %vm1334_vm7, %v7420_v4, %v13606_v51  ;;  %v18192_v57 = vpack.i.bf16 %v7950_v31, %v7949_v50  ;;  %v18196_v15 = vpack.i.bf16 %v7888_v11, %v7887_v7  ;;  %v7951_v32 = vld [vmem:[#allocation4 + $0x89] sm:$0xff]  ;;  %v7954_v49 = vld [vmem:[#allocation4 + $0xb1] sm:$0xff] }
 0x71e   : > { %v13620_v30 = vunpack.i.l.bf16 %v13619_v52  ;;  %11528 = vmatprep.mubr.msk.f32.mxu0 %vm790_vm4, %v5961_v40  ;;  %7689 = vmatmul.mubr.f32.gmra.mrb[44].mxu1 %v7451_v43  ;;  %v13625_v0 = vunpack.i.l.bf16 %v13624_v20  ;;  %v13621_v41 = vunpack.i.h.bf16 %v13619_v52  ;;  %v13626_v54 = vunpack.i.h.bf16 %v13624_v20  ;;  %v7890_v52 = vld [vmem:[#allocation4 + $0xaf] sm:$0xff] }
 0x71f   : > { %11577 = vmatprep.mubr.msk.f32.mxu1 %vm790_vm4, %v5960_v6  ;;  %13908 = vrot.lane.b32.xlu1 %v13907_v18, %s14836_s14  ;;  %v18209_v20 = vpack.i.bf16 %v7952_v56, %v7951_v32  ;;  %v7922_v43 = vld [vmem:[#allocation4 + $0xb0] sm:$0xff] }
 0x720   : > { %13913 = vrot.lane.b32.xlu0 %v13912_v28, %s14838_s30  ;;  %v6441_v60 = vsel %vm1334_vm7, %v6409_v36, %v13620_v30  ;;  %v7389_v45 = vsel %vm790_vm4, %v5833_v37, %v13625_v0  ;;  %v6442_v13 = vsel %vm1334_vm7, %v6410_v3, %v13621_v41  ;;  %v7390_v61 = vsel %vm790_vm4, %v5834_v58, %v13626_v54  ;;  %v7889_v28 = vld [vmem:[#allocation4 + $0xa7] sm:$0xff]  ;;  %v7892_v41 = vld [vmem:[#allocation4 + $0xcf] sm:$0xff] }
 0x721   : > { %v13634_v16 = vpop.permute.xlu0 %13633  ;;  %v13629_v27 = vpop.permute.xlu1 %13628  ;;  %6694 = vmatmul.mubr.f32.gmra.mrb[168].mxu0 %v6441_v60  ;;  %v18218_v30 = vpack.i.bf16 %v7890_v52, %v7889_v28  ;;  %v18220_v9 = vpack.i.bf16 %v7922_v43, %v7921_v22  ;;  %v7953_v51 = vld [vmem:[#allocation4 + $0xa9] sm:$0xff]  ;;  %v6976_v58 = vld [vmem:[#allocation4 + $0xd2] sm:$0xff] }
 0x722   : > { %v13635_v1 = vunpack.i.l.bf16 %v13634_v16  ;;  %v13631_v14 = vunpack.i.h.bf16 %v13629_v27  ;;  %v13630_v8 = vunpack.i.l.bf16 %v13629_v27  ;;  %11529 = vmatprep.mubr.msk.f32.mxu0 %vm790_vm4, %v5962_v17  ;;  %7694 = vmatmul.mubr.f32.gmra.mrb[46].mxu1 %v7452_v34  ;;  %v13636_v2 = vunpack.i.h.bf16 %v13634_v16  ;;  %v7891_v27 = vld [vmem:[#allocation4 + $0xc7] sm:$0xff]  ;;  %v7956_v3 = vld [vmem:[#allocation4 + $0xd1] sm:$0xff] }
 0x723   : > { %11578 = vmatprep.mubr.msk.f32.mxu1 %vm790_vm4, %v5961_v40  ;;  %13918 = vrot.lane.b32.xlu1 %v18176_v63, %s14835_s13  ;;  %v7955_v31 = vld [vmem:[#allocation4 + $0xc9] sm:$0xff] }
 0x724   : > { %13923 = vrot.lane.b32.xlu0 %v18174_v62, %s14836_s14  ;;  %v7421_v47 = vsel %vm1289_vm6, %v7389_v45, %v13630_v8  ;;  %v7422_v44 = vsel %vm1289_vm6, %v7390_v61, %v13631_v14  ;;  %v7924_v8 = vld [vmem:[#allocation4 + $0xd0] sm:$0xff]  ;;  %v7923_v45 = vld [vmem:[#allocation4 + $0xc8] sm:$0xff] }
 0x725   : > { %6699 = vmatmul.mubr.f32.gmra.mrb[170].mxu0 %v6442_v13  ;;  %v13649_v6 = vpop.permute.xlu1 %13648  ;;  %v18189_v29 = vpop.permute.xlu0 %13638  ;;  %v7453_v23 = vsel %vm1334_vm7, %v7421_v47, %v13635_v1  ;;  %v7454_v26 = vsel %vm1334_vm7, %v7422_v44, %v13636_v2  ;;  %v18234_v1 = vpack.i.bf16 %v7892_v41, %v7891_v27  ;;  %v6977_v61 = vld [vmem:[#allocation4 + $0xea] sm:$0xff]  ;;  %v18245_v44 = vpack.i.bf16 %v7956_v3, %v7955_v31 }
 0x726   : > { %11530 = vmatprep.mubr.msk.f32.mxu0 %vm790_vm4, %v5963_v12  ;;  %7699 = vmatmul.mubr.f32.gmra.mrb[48].mxu1 %v7453_v23  ;;  %v13650_v40 = vunpack.i.l.bf16 %v13649_v6  ;;  %v13651_v18 = vunpack.i.h.bf16 %v13649_v6  ;;  %v18243_v6 = vpack.i.bf16 %v7924_v8, %v7923_v45  ;;  %v7894_v32 = vld [vmem:[#allocation4 + $0xef] sm:$0xff] }
 0x727   : > { %11579 = vmatprep.mubr.msk.f32.mxu1 %vm790_vm4, %v5962_v17  ;;  %13928 = vrot.lane.b32.xlu1 %v18192_v57, %s14838_s30  ;;  %v18231_v17 = vpack.i.bf16 %v7954_v49, %v7953_v51  ;;  %v6850_v52 = vld [vmem:[#allocation4 + $0xee] sm:$0xff] }
 0x728   : > { %13933 = vrot.lane.b32.xlu0 %v18196_v15, %s14835_s13  ;;  %v7391_v36 = vsel %vm790_vm4, %v6847_v48, %v13650_v40  ;;  %v7392_v34 = vsel %vm790_vm4, %v6848_v24, %v13651_v18  ;;  %v7957_v49 = vld [vmem:[#allocation4 + $0xe9] sm:$0xff]  ;;  %v7960_v45 = vld [vmem:[#allocation4 + $0x111] sm:$0xff] }
 0x729   : > { %v13659_v21 = vpop.permute.xlu1 %13658  ;;  %v18204_v19 = vpop.permute.xlu0 %13643  ;;  %v7896_v41 = vld [vmem:[#allocation4 + $0x10f] sm:$0xff] }
 0x72a   : > { %7704 = vmatmul.mubr.f32.gmra.mrb[50].mxu1 %v7454_v26  ;;  %v13660_v0 = vunpack.i.l.bf16 %v13659_v21  ;;  %v13661_v33 = vunpack.i.h.bf16 %v13659_v21  ;;  %v7893_v26 = vld [vmem:[#allocation4 + $0xe7] sm:$0xff] }
 0x72b   : > { %11580 = vmatprep.mubr.msk.f32.mxu1 %vm790_vm4, %v5963_v12  ;;  %13938 = vrot.lane.b32.xlu1 %v18207_v55, %s14836_s14  ;;  %v18259_v22 = vpack.i.bf16 %v7894_v32, %v7893_v26  ;;  %v7959_v3 = vld [vmem:[#allocation4 + $0x109] sm:$0xff] }
 0x72c   : > { %13943 = vrot.lane.b32.xlu0 %v18209_v20, %s14838_s30  ;;  %v18294_v32 = vpack.i.bf16 %v7960_v45, %v7959_v3  ;;  %v7900_v45 = vld [vmem:[#allocation4 + $0x14f] sm:$0xff] }
 0x72d   : > { %v13654_v37 = vpop.permute.xlu0 %13653  ;;  %v18216_v5 = vpop.permute.xlu1 %13663 }
 0x72e   : > { %v13656_v35 = vunpack.i.h.bf16 %v13654_v37  ;;  %v13655_v4 = vunpack.i.l.bf16 %v13654_v37  ;;  %v7925_v37 = vld [vmem:[#allocation4 + $0xe8] sm:$0xff] }
 0x72f   : > { %13948 = vrot.lane.b32.xlu1 %v18218_v30, %s14835_s13  ;;  %v18262_v48 = vpack.i.bf16 %v7926_v38, %v7925_v37  ;;  %v7898_v38 = vld [vmem:[#allocation4 + $0x12f] sm:$0xff]  ;;  %v7897_v37 = vld [vmem:[#allocation4 + $0x127] sm:$0xff] }
 0x730   : > { %13953 = vrot.lane.b32.xlu0 %v18220_v9, %s14836_s14  ;;  %v7423_v60 = vsel %vm1289_vm6, %v7391_v36, %v13655_v4  ;;  %v7424_v14 = vsel %vm1289_vm6, %v7392_v34, %v13656_v35  ;;  %v6978_v4 = vld [vmem:[#allocation4 + $0xf2] sm:$0xff]  ;;  %v18265_v36 = vpop.f32.mrb[148].mxu0  ;;  %v7895_v34 = vld [vmem:[#allocation4 + $0x107] sm:$0xff] }
 0x731   : > { %v13674_v42 = vpop.permute.xlu0 %13673  ;;  %v18228_v54 = vpop.permute.xlu1 %13668  ;;  %v7455_v16 = vsel %vm1334_vm7, %v7423_v60, %v13660_v0  ;;  %v7456_v2 = vsel %vm1334_vm7, %v7424_v14, %v13661_v33  ;;  %v7958_v0 = vld [vmem:[#allocation4 + $0xf1] sm:$0xff]  ;;  %20391 = vst [vmem:[#allocation35_spill] sm:$0xff] %v18265_v36  ;;  %v18279_v8 = vpack.i.bf16 %v7896_v41, %v7895_v34  ;;  %v18307_v41 = vpack.i.bf16 %v7898_v38, %v7897_v37  ;;  %v7963_v37 = vld [vmem:[#allocation4 + $0x149] sm:$0xff] }
 0x732   : > { %7709 = vmatmul.mubr.f32.gmra.mrb[52].mxu1 %v7455_v16  ;;  %v13675_v50 = vunpack.i.l.bf16 %v13674_v42  ;;  %v13676_v11 = vunpack.i.h.bf16 %v13674_v42  ;;  %v6647_v60 = vpop.f32.mrb[149].mxu0  ;;  %v6979_v14 = vld [vmem:[#allocation4 + $0x10a] sm:$0xff] }
 0x733   : > { %11581 = vmatprep.mubr.msk.f32.mxu1 %vm790_vm4, %v6976_v58  ;;  %13958 = vrot.lane.b32.xlu1 %v18231_v17, %s14838_s30  ;;  %v18272_v24 = vpop.f32.mrb[150].mxu0  ;;  %v18277_v58 = vpack.i.bf16 %v7958_v0, %v7957_v49  ;;  %v7928_v33 = vld [vmem:[#allocation4 + $0x110] sm:$0xff]  ;;  %v7929_v0 = vld [vmem:[#allocation4 + $0x128] sm:$0xff] }
 0x734   : > { %13963 = vrot.lane.b32.xlu0 %v18234_v1, %s14835_s13  ;;  %v7393_v56 = vsel %vm790_vm4, %v6849_v46, %v13675_v50  ;;  %v7394_v35 = vsel %vm790_vm4, %v6850_v52, %v13676_v11  ;;  %20392 = vst [vmem:[#allocation30_spill] sm:$0xff] %v18272_v24  ;;  %v6652_v50 = vpop.f32.mrb[151].mxu0 }
 0x735   : > { %v13684_v13 = vpop.permute.xlu0 %13683  ;;  %v13679_v47 = vpop.permute.xlu1 %13678  ;;  %v7962_v50 = vld [vmem:[#allocation4 + $0x131] sm:$0xff] }
 0x736   : > { %v13685_v12 = vunpack.i.l.bf16 %v13684_v13  ;;  %v13681_v23 = vunpack.i.h.bf16 %v13679_v47  ;;  %v13680_v7 = vunpack.i.l.bf16 %v13679_v47  ;;  %7714 = vmatmul.mubr.f32.gmra.mrb[54].mxu1 %v7456_v2  ;;  %v13686_v40 = vunpack.i.h.bf16 %v13684_v13  ;;  %v18285_v11 = vpop.f32.mrb[152].mxu0  ;;  %v7927_v13 = vld [vmem:[#allocation4 + $0x108] sm:$0xff] }
 0x737   : > { %11582 = vmatprep.mubr.msk.f32.mxu1 %vm790_vm4, %v6977_v61  ;;  %13968 = vrot.lane.b32.xlu1 %v18243_v6, %s14836_s14  ;;  %20394 = vst [vmem:[#allocation31_spill] sm:$0xff] %v18285_v11  ;;  %v6657_v47 = vpop.f32.mrb[153].mxu0 }
 0x738   : > { %13973 = vrot.lane.b32.xlu0 %v18245_v44, %s14838_s30  ;;  %v7425_v21 = vsel %vm1289_vm6, %v7393_v56, %v13680_v7  ;;  %v7426_v51 = vsel %vm1289_vm6, %v7394_v35, %v13681_v23  ;;  %v18292_v7 = vpack.i.bf16 %v7928_v33, %v7927_v13  ;;  %v6851_v56 = vld [vmem:[#allocation4 + $0x106] sm:$0xff]  ;;  %v6852_v35 = vld [vmem:[#allocation4 + $0x10e] sm:$0xff] }
 0x739   : > { %v18254_v43 = vpop.permute.xlu1 %13698  ;;  %v18256_v28 = vpop.permute.xlu0 %13688  ;;  %v7457_v18 = vsel %vm1334_vm7, %v7425_v21, %v13685_v12  ;;  %v7458_v27 = vsel %vm1334_vm7, %v7426_v51, %v13686_v40  ;;  %v7930_v40 = vld [vmem:[#allocation4 + $0x130] sm:$0xff] }
 0x73a   : > { %20390 = vst [vmem:[#allocation25_spill] sm:$0xff] %v18256_v28  ;;  %7719 = vmatmul.mubr.f32.gmra.mrb[56].mxu1 %v7457_v18  ;;  %v13700_v31 = vunpack.i.l.bf16 %v18254_v43  ;;  %v13701_v2 = vunpack.i.h.bf16 %v18254_v43  ;;  %v18296_v21 = vpop.f32.mrb[154].mxu0  ;;  %v18310_v34 = vpack.i.bf16 %v7930_v40, %v7929_v0  ;;  %v7961_v33 = vld [vmem:[#allocation4 + $0x129] sm:$0xff] }
 0x73b   : > { %11583 = vmatprep.mubr.msk.f32.mxu1 %vm790_vm4, %v6978_v4  ;;  %13978 = vrot.lane.b32.xlu1 %v18259_v22, %s14835_s13  ;;  %20396 = vst [vmem:[#allocation15_spill] sm:$0xff] %v18296_v21  ;;  %v6662_v43 = vpop.f32.mrb[155].mxu0  ;;  %v6853_v40 = vld [vmem:[#allocation4 + $0x126] sm:$0xff]  ;;  %v6854_v0 = vld [vmem:[#allocation4 + $0x12e] sm:$0xff] }
 0x73c   : > { %13983 = vrot.lane.b32.xlu0 %v18262_v48, %s14836_s14  ;;  %v7395_v52 = vsel %vm790_vm4, %v6851_v56, %v13700_v31  ;;  %v7396_v60 = vsel %vm790_vm4, %v6852_v35, %v13701_v2  ;;  %v7932_v43 = vld [vmem:[#allocation4 + $0x150] sm:$0xff] }
 0x73d   : > { %v13709_v42 = vpop.permute.xlu1 %13708  ;;  %v18274_v16 = vpop.permute.xlu0 %13693  ;;  %v7964_v35 = vld [vmem:[#allocation4 + $0x151] sm:$0xff] }
 0x73e   : > { %20393 = vst [vmem:[#allocation36_spill] sm:$0xff] %v18274_v16  ;;  %7724 = vmatmul.mubr.f32.gmra.mrb[58].mxu1 %v7458_v27  ;;  %v13710_v26 = vunpack.i.l.bf16 %v13709_v42  ;;  %v6980_v27 = vld [vmem:[#allocation4 + $0x112] sm:$0xff]  ;;  %v13711_v31 = vunpack.i.h.bf16 %v13709_v42  ;;  %v9973_v16 = vld [vmem:[#allocation4 + $0x248] sm:$0xff] }
 0x73f   : > { %11584 = vmatprep.mubr.msk.f32.mxu1 %vm790_vm4, %v6979_v14  ;;  %13988 = vrot.lane.b32.xlu1 %v18277_v58, %s14838_s30  ;;  %v6856_v21 = vld [vmem:[#allocation4 + $0x14e] sm:$0xff] }
 0x740   : > { %13993 = vrot.lane.b32.xlu0 %v18279_v8, %s14835_s13 }
 0x741   : > { %v13704_v12 = vpop.permute.xlu0 %13703  ;;  %v18290_v23 = vpop.permute.xlu1 %13713 }
 0x742   : > { %20395 = vst [vmem:[#allocation32_spill] sm:$0xff] %v18290_v23  ;;  %v13706_v61 = vunpack.i.h.bf16 %v13704_v12  ;;  %v13705_v46 = vunpack.i.l.bf16 %v13704_v12  ;;  %v6986_v23 = vld [vmem:[#allocation4 + $0x172] sm:$0xff] }
 0x743   : > { %13998 = vrot.lane.b32.xlu1 %v18292_v7, %s14836_s14 }
 0x744   : > { %14003 = vrot.lane.b32.xlu0 %v18294_v32, %s14838_s30  ;;  %v7427_v18 = vsel %vm1289_vm6, %v7395_v52, %v13705_v46  ;;  %v7428_v14 = vsel %vm1289_vm6, %v7396_v60, %v13706_v61  ;;  %v7899_v46 = vld [vmem:[#allocation4 + $0x147] sm:$0xff]  ;;  %v18319_v61 = vpack.i.bf16 %v7962_v50, %v7961_v33 }
 0x745   : > { %v13724_v4 = vpop.permute.xlu0 %13723  ;;  %v18304_v51 = vpop.permute.xlu1 %13718  ;;  %v7459_v49 = vsel %vm1334_vm7, %v7427_v18, %v13710_v26  ;;  %v7460_v12 = vsel %vm1334_vm7, %v7428_v14, %v13711_v31  ;;  %v6981_v26 = vld [vmem:[#allocation4 + $0x12a] sm:$0xff]  ;;  %v18321_v52 = vpack.i.bf16 %v7900_v45, %v7899_v46  ;;  %v18336_v45 = vpack.i.bf16 %v7964_v35, %v7963_v37 }
 0x746   : > { %20397 = vst [vmem:[#allocation34_spill] sm:$0xff] %v18304_v51  ;;  %7729 = vmatmul.mubr.f32.gmra.mrb[60].mxu1 %v7459_v49  ;;  %v13725_v3 = vunpack.i.l.bf16 %v13724_v4  ;;  %v13726_v13 = vunpack.i.h.bf16 %v13724_v4  ;;  %v7931_v49 = vld [vmem:[#allocation4 + $0x148] sm:$0xff]  ;;  %v7966_v37 = vld [vmem:[#allocation4 + $0x171] sm:$0xff] }
 0x747   : > { %11585 = vmatprep.mubr.msk.f32.mxu1 %vm790_vm4, %v6980_v27  ;;  %14008 = vrot.lane.b32.xlu1 %v18307_v41, %s14835_s13  ;;  %v18333_v50 = vpack.i.bf16 %v7932_v43, %v7931_v49  ;;  %v7901_v46 = vld [vmem:[#allocation4 + $0x167] sm:$0xff] }
 0x748   : > { %14013 = vrot.lane.b32.xlu0 %v18310_v34, %s14836_s14  ;;  %v7397_v18 = vsel %vm790_vm4, %v6853_v40, %v13725_v3  ;;  %v7398_v31 = vsel %vm790_vm4, %v6854_v0, %v13726_v13  ;;  %v6982_v3 = vld [vmem:[#allocation4 + $0x132] sm:$0xff] }
 0x749   : > { %v13734_v47 = vpop.permute.xlu0 %13733  ;;  %v13729_v2 = vpop.permute.xlu1 %13728 }
 0x74a   : > { %v13735_v56 = vunpack.i.l.bf16 %v13734_v47  ;;  %v13731_v42 = vunpack.i.h.bf16 %v13729_v2  ;;  %v13730_v38 = vunpack.i.l.bf16 %v13729_v2  ;;  %7734 = vmatmul.mubr.f32.gmra.mrb[62].mxu1 %v7460_v12  ;;  %v13736_v60 = vunpack.i.h.bf16 %v13734_v47  ;;  %v7902_v12 = vld [vmem:[#allocation4 + $0x16f] sm:$0xff] }
 0x74b   : > { %11586 = vmatprep.mubr.msk.f32.mxu1 %vm790_vm4, %v6981_v26  ;;  %14018 = vrot.lane.b32.xlu1 %v18319_v61, %s14838_s30  ;;  %v7934_v47 = vld [vmem:[#allocation4 + $0x170] sm:$0xff]  ;;  %v7933_v26 = vld [vmem:[#allocation4 + $0x168] sm:$0xff]  ;;  %v18347_v40 = vpack.i.bf16 %v7902_v12, %v7901_v46 }
 0x74c   : > { %14023 = vrot.lane.b32.xlu0 %v18321_v52, %s14835_s13  ;;  %v7429_v4 = vsel %vm1289_vm6, %v7397_v18, %v13730_v38  ;;  %v7430_v2 = vsel %vm1289_vm6, %v7398_v31, %v13731_v42  ;;  %v6983_v42 = vld [vmem:[#allocation4 + $0x14a] sm:$0xff]  ;;  %v18349_v43 = vpack.i.bf16 %v7934_v47, %v7933_v26 }
 0x74d   : > { %v13749_v27 = vpop.permute.xlu1 %13748  ;;  %v18330_v14 = vpop.permute.xlu0 %13738  ;;  %v7461_v33 = vsel %vm1334_vm7, %v7429_v4, %v13735_v56  ;;  %v7462_v13 = vsel %vm1334_vm7, %v7430_v2, %v13736_v60  ;;  %v7965_v18 = vld [vmem:[#allocation4 + $0x169] sm:$0xff] }
 0x74e   : > { %20398 = vst [vmem:[#allocation41_spill] sm:$0xff] %v18330_v14  ;;  %7739 = vmatmul.mubr.f32.gmra.mrb[64].mxu1 %v7461_v33  ;;  %v13750_v35 = vunpack.i.l.bf16 %v13749_v27  ;;  %v7904_v4 = vld [vmem:[#allocation4 + $0x18f] sm:$0xff]  ;;  %v13751_v49 = vunpack.i.h.bf16 %v13749_v27  ;;  %v7903_v33 = vld [vmem:[#allocation4 + $0x187] sm:$0xff]  ;;  %v18358_v31 = vpack.i.bf16 %v7966_v37, %v7965_v18 }
 0x74f   : > { %11587 = vmatprep.mubr.msk.f32.mxu1 %vm790_vm4, %v6982_v3  ;;  %14028 = vrot.lane.b32.xlu1 %v18333_v50, %s14836_s14  ;;  %v18360_v12 = vpack.i.bf16 %v7904_v4, %v7903_v33  ;;  %v6855_v47 = vld [vmem:[#allocation4 + $0x146] sm:$0xff]  ;;  %v7936_v46 = vld [vmem:[#allocation4 + $0x190] sm:$0xff] }
 0x750   : > { %14033 = vrot.lane.b32.xlu0 %v18336_v45, %s14838_s30  ;;  %v7399_v26 = vsel %vm790_vm4, %v6855_v47, %v13750_v35  ;;  %v7968_v27 = vld [vmem:[#allocation4 + $0x191] sm:$0xff]  ;;  %v7935_v37 = vld [vmem:[#allocation4 + $0x188] sm:$0xff]  ;;  %v7400_v24 = vsel %vm790_vm4, %v6856_v21, %v13751_v49 }
 0x751   : > { %v13759_v56 = vpop.permute.xlu1 %13758  ;;  %v18344_v38 = vpop.permute.xlu0 %13743  ;;  %v18371_v11 = vpack.i.bf16 %v7936_v46, %v7935_v37  ;;  %v6984_v35 = vld [vmem:[#allocation4 + $0x152] sm:$0xff]  ;;  %v7905_v46 = vld [vmem:[#allocation4 + $0x1a7] sm:$0xff] }
 0x752   : > { %20399 = vst [vmem:[#allocation37_spill] sm:$0xff] %v18344_v38  ;;  %7744 = vmatmul.mubr.f32.gmra.mrb[66].mxu1 %v7462_v13  ;;  %v13760_v13 = vunpack.i.l.bf16 %v13759_v56  ;;  %v13761_v38 = vunpack.i.h.bf16 %v13759_v56  ;;  %v6857_v56 = vld [vmem:[#allocation4 + $0x166] sm:$0xff]  ;;  %v7970_v14 = vld [vmem:[#allocation4 + $0x1b1] sm:$0xff] }
 0x753   : > { %11588 = vmatprep.mubr.msk.f32.mxu1 %vm790_vm4, %v6983_v42  ;;  %14038 = vrot.lane.b32.xlu1 %v18347_v40, %s14835_s13  ;;  %v7967_v42 = vld [vmem:[#allocation4 + $0x189] sm:$0xff] }
 0x754   : > { %14043 = vrot.lane.b32.xlu0 %v18349_v43, %s14836_s14  ;;  %v18374_v47 = vpack.i.bf16 %v7968_v27, %v7967_v42  ;;  %v7937_v27 = vld [vmem:[#allocation4 + $0x1a8] sm:$0xff] }
 0x755   : > { %v13754_v0 = vpop.permute.xlu0 %13753  ;;  %v18356_v60 = vpop.permute.xlu1 %13763 }
 0x756   : > { %20400 = vst [vmem:[#allocation42_spill] sm:$0xff] %v18356_v60  ;;  %v13756_v3 = vunpack.i.h.bf16 %v13754_v0  ;;  %v13755_v2 = vunpack.i.l.bf16 %v13754_v0  ;;  %v7906_v60 = vld [vmem:[#allocation4 + $0x1af] sm:$0xff] }
 0x757   : > { %14048 = vrot.lane.b32.xlu1 %v18358_v31, %s14838_s30 }
 0x758   : > { %14053 = vrot.lane.b32.xlu0 %v18360_v12, %s14835_s13  ;;  %v7431_v18 = vsel %vm1289_vm6, %v7399_v26, %v13755_v2  ;;  %v7432_v36 = vsel %vm1289_vm6, %v7400_v24, %v13756_v3  ;;  %v7938_v26 = vld [vmem:[#allocation4 + $0x1b0] sm:$0xff]  ;;  %v18383_v24 = vpack.i.bf16 %v7906_v60, %v7905_v46 }
 0x759   : > { %v13774_v0 = vpop.permute.xlu0 %13773  ;;  %v18368_v4 = vpop.permute.xlu1 %13768  ;;  %v7463_v33 = vsel %vm1334_vm7, %v7431_v18, %v13760_v13  ;;  %v7464_v42 = vsel %vm1334_vm7, %v7432_v36, %v13761_v38  ;;  %v7908_v36 = vld [vmem:[#allocation4 + $0x1cf] sm:$0xff] }
 0x75a   : > { %20401 = vst [vmem:[#allocation38_spill] sm:$0xff] %v18368_v4  ;;  %7749 = vmatmul.mubr.f32.gmra.mrb[68].mxu1 %v7463_v33  ;;  %v13775_v2 = vunpack.i.l.bf16 %v13774_v0  ;;  %v13776_v21 = vunpack.i.h.bf16 %v13774_v0  ;;  %v6985_v33 = vld [vmem:[#allocation4 + $0x16a] sm:$0xff] }
 0x75b   : > { %11589 = vmatprep.mubr.msk.f32.mxu1 %vm790_vm4, %v6984_v35  ;;  %14058 = vrot.lane.b32.xlu1 %v18371_v11, %s14836_s14  ;;  %v14072_v35 = vpack.i.bf16 %v7938_v26, %v7937_v27  ;;  %v7969_v4 = vld [vmem:[#allocation4 + $0x1a9] sm:$0xff] }
 0x75c   : > { %14063 = vrot.lane.b32.xlu0 %v18374_v47, %s14838_s30  ;;  %v7401_v0 = vsel %vm790_vm4, %v6857_v56, %v13775_v2  ;;  %v6858_v60 = vld [vmem:[#allocation4 + $0x16e] sm:$0xff]  ;;  %v18394_v51 = vpack.i.bf16 %v7970_v14, %v7969_v4 }
 0x75d   : > { %v13784_v49 = vpop.permute.xlu0 %13783  ;;  %v13779_v13 = vpop.permute.xlu1 %13778  ;;  %v7907_v27 = vld [vmem:[#allocation4 + $0x1c7] sm:$0xff] }
 0x75e   : > { %v13785_v3 = vunpack.i.l.bf16 %v13784_v49  ;;  %v13781_v18 = vunpack.i.h.bf16 %v13779_v13  ;;  %v13780_v37 = vunpack.i.l.bf16 %v13779_v13  ;;  %7754 = vmatmul.mubr.f32.gmra.mrb[70].mxu1 %v7464_v42  ;;  %v13786_v46 = vunpack.i.h.bf16 %v13784_v49  ;;  %v7971_v49 = vld [vmem:[#allocation4 + $0x1c9] sm:$0xff] }
 0x75f   : > { %11590 = vmatprep.mubr.msk.f32.mxu1 %vm790_vm4, %v6985_v33  ;;  %14068 = vrot.lane.b32.xlu1 %v18383_v24, %s14835_s13  ;;  %v7402_v33 = vsel %vm790_vm4, %v6858_v60, %v13776_v21  ;;  %v14082_v2 = vpack.i.bf16 %v7908_v36, %v7907_v27  ;;  %v7909_v60 = vld [vmem:[#allocation4 + $0x1e7] sm:$0xff] }
 0x760   : > { %14073 = vrot.lane.b32.xlu0 %v14072_v35, %s14836_s14  ;;  %v7433_v38 = vsel %vm1289_vm6, %v7401_v0, %v13780_v37  ;;  %v7434_v56 = vsel %vm1289_vm6, %v7402_v33, %v13781_v18  ;;  %v7940_v35 = vld [vmem:[#allocation4 + $0x1d0] sm:$0xff] }
 0x761   : > { %v13799_v13 = vpop.permute.xlu1 %13798  ;;  %v18391_v42 = vpop.permute.xlu0 %13788  ;;  %v7465_v26 = vsel %vm1334_vm7, %v7433_v38, %v13785_v3  ;;  %v7972_v37 = vld [vmem:[#allocation4 + $0x1d1] sm:$0xff]  ;;  %v7939_v3 = vld [vmem:[#allocation4 + $0x1c8] sm:$0xff]  ;;  %v7466_v21 = vsel %vm1334_vm7, %v7434_v56, %v13786_v46 }
 0x762   : > { %20402 = vst [vmem:[#allocation39_spill] sm:$0xff] %v18391_v42  ;;  %7759 = vmatmul.mubr.f32.gmra.mrb[72].mxu1 %v7465_v26  ;;  %v18405_v0 = vpack.i.bf16 %v7940_v35, %v7939_v3  ;;  %v6987_v18 = vld [vmem:[#allocation4 + $0x18a] sm:$0xff]  ;;  %v14092_v36 = vpack.i.bf16 %v7972_v37, %v7971_v49  ;;  %v13801_v26 = vunpack.i.h.bf16 %v13799_v13 }
 0x763   : > { %11591 = vmatprep.mubr.msk.f32.mxu1 %vm790_vm4, %v6986_v23  ;;  %14078 = vrot.lane.b32.xlu1 %v18394_v51, %s14838_s30  ;;  %v7910_v38 = vld [vmem:[#allocation4 + $0x1ef] sm:$0xff]  ;;  %v13800_v23 = vunpack.i.l.bf16 %v13799_v13  ;;  %v6859_v35 = vld [vmem:[#allocation4 + $0x186] sm:$0xff] }
 0x764   : > { %14083 = vrot.lane.b32.xlu0 %v14082_v2, %s14835_s13  ;;  %v18413_v46 = vpack.i.bf16 %v7910_v38, %v7909_v60  ;;  %v6860_v13 = vld [vmem:[#allocation4 + $0x18e] sm:$0xff] }
 0x765   : > { %v13809_v14 = vpop.permute.xlu1 %13808  ;;  %v18402_v4 = vpop.permute.xlu0 %13793  ;;  %v7403_v37 = vsel %vm790_vm4, %v6859_v35, %v13800_v23  ;;  %v7404_v38 = vsel %vm790_vm4, %v6860_v13, %v13801_v26  ;;  %v6988_v60 = vld [vmem:[#allocation4 + $0x192] sm:$0xff]  ;;  %v6989_v13 = vld [vmem:[#allocation4 + $0x1aa] sm:$0xff] }
 0x766   : > { %20403 = vst [vmem:[#allocation24_spill] sm:$0xff] %v18402_v4  ;;  %7764 = vmatmul.mubr.f32.gmra.mrb[74].mxu1 %v7466_v21  ;;  %v13810_v49 = vunpack.i.l.bf16 %v13809_v14  ;;  %v13811_v4 = vunpack.i.h.bf16 %v13809_v14  ;;  %v7977_v42 = vld [vmem:[#allocation4 + $0x229] sm:$0xff] }
 0x767   : > { %11592 = vmatprep.mubr.msk.f32.mxu1 %vm790_vm4, %v6987_v18  ;;  %14088 = vrot.lane.b32.xlu1 %v18405_v0, %s14836_s14 }
 0x768   : > { %14093 = vrot.lane.b32.xlu0 %v14092_v36, %s14838_s30 }
 0x769   : > { %v13804_v27 = vpop.permute.xlu0 %13803  ;;  %v18411_v33 = vpop.permute.xlu1 %13813 }
 0x76a   : > { %20404 = vst [vmem:[#allocation40_spill] sm:$0xff] %v18411_v33  ;;  %v13806_v2 = vunpack.i.h.bf16 %v13804_v27  ;;  %v13805_v56 = vunpack.i.l.bf16 %v13804_v27  ;;  %v7944_v33 = vld [vmem:[#allocation4 + $0x210] sm:$0xff] }
 0x76b   : > { %14098 = vrot.lane.b32.xlu1 %v18413_v46, %s14835_s13 }
 0x76c   : > { %14103 = vrot.lane.b32.xlu0 %v18104_v53, %s14836_s14  ;;  %v7435_v3 = vsel %vm1289_vm6, %v7403_v37, %v13805_v56  ;;  %v7436_v27 = vsel %vm1289_vm6, %v7404_v38, %v13806_v2  ;;  %v7943_v53 = vld [vmem:[#allocation4 + $0x208] sm:$0xff] }
 0x76d   : > { %v13824_v21 = vpop.permute.xlu0 %13823  ;;  %v18421_v18 = vpop.permute.xlu1 %13818  ;;  %v7467_v36 = vsel %vm1334_vm7, %v7435_v3, %v13810_v49  ;;  %v7468_v26 = vsel %vm1334_vm7, %v7436_v27, %v13811_v4  ;;  %v18432_v37 = vpack.i.bf16 %v7944_v33, %v7943_v53  ;;  %v7914_v38 = vld [vmem:[#allocation4 + $0x22f] sm:$0xff]  ;;  %v7913_v33 = vld [vmem:[#allocation4 + $0x227] sm:$0xff] }
 0x76e   : > { %20405 = vst [vmem:[#allocation47_spill] sm:$0xff] %v18421_v18  ;;  %7769 = vmatmul.mubr.f32.gmra.mrb[76].mxu1 %v7467_v36  ;;  %v13825_v23 = vunpack.i.l.bf16 %v13824_v21  ;;  %v13826_v56 = vunpack.i.h.bf16 %v13824_v21  ;;  %v6861_v36 = vld [vmem:[#allocation4 + $0x1a6] sm:$0xff]  ;;  %v6862_v21 = vld [vmem:[#allocation4 + $0x1ae] sm:$0xff] }
 0x76f   : > { %11593 = vmatprep.mubr.msk.f32.mxu1 %vm790_vm4, %v6988_v60  ;;  %14108 = vrot.lane.b32.xlu1 %v18123_v10, %s14838_s30 }
 0x770   : > { %14113 = vrot.lane.b32.xlu0 %v18132_v59, %s14835_s13  ;;  %v7405_v10 = vsel %vm790_vm4, %v6861_v36, %v13825_v23  ;;  %v7946_v59 = vld [vmem:[#allocation4 + $0x230] sm:$0xff]  ;;  %v7406_v18 = vsel %vm790_vm4, %v6862_v21, %v13826_v56  ;;  %v6863_v21 = vld [vmem:[#allocation4 + $0x1c6] sm:$0xff] }
 0x771   : > { %v13834_v35 = vpop.permute.xlu0 %13833  ;;  %v13829_v49 = vpop.permute.xlu1 %13828  ;;  %v6990_v23 = vld [vmem:[#allocation4 + $0x1b2] sm:$0xff] }
 0x772   : > { %v13835_v2 = vunpack.i.l.bf16 %v13834_v35  ;;  %v13831_v3 = vunpack.i.h.bf16 %v13829_v49  ;;  %v13830_v14 = vunpack.i.l.bf16 %v13829_v49  ;;  %7774 = vmatmul.mubr.f32.gmra.mrb[78].mxu1 %v7468_v26  ;;  %v13836_v60 = vunpack.i.h.bf16 %v13834_v35  ;;  %v7945_v26 = vld [vmem:[#allocation4 + $0x228] sm:$0xff] }
 0x773   : > { %11594 = vmatprep.mubr.msk.f32.mxu1 %vm790_vm4, %v6989_v13  ;;  %14118 = vrot.lane.b32.xlu1 %v18432_v37, %s14836_s14  ;;  %v18444_v13 = vpack.i.bf16 %v7914_v38, %v7913_v33  ;;  %v14132_v36 = vpack.i.bf16 %v7946_v59, %v7945_v26 }
 0x774   : > { %14123 = vrot.lane.b32.xlu0 %v18146_v25, %s14838_s30  ;;  %v7437_v4 = vsel %vm1289_vm6, %v7405_v10, %v13830_v14  ;;  %v7438_v25 = vsel %vm1289_vm6, %v7406_v18, %v13831_v3  ;;  %v7978_v14 = vld [vmem:[#allocation4 + $0x231] sm:$0xff] }
 0x775   : > { %v13849_v27 = vpop.permute.xlu1 %13848  ;;  %v18441_v53 = vpop.permute.xlu0 %13838  ;;  %v7469_v49 = vsel %vm1334_vm7, %v7437_v4, %v13835_v2  ;;  %v7470_v2 = vsel %vm1334_vm7, %v7438_v25, %v13836_v60  ;;  %v18453_v38 = vpack.i.bf16 %v7978_v14, %v7977_v42  ;;  %v6991_v10 = vld [vmem:[#allocation4 + $0x1ca] sm:$0xff] }
 0x776   : > { %20406 = vst [vmem:[#allocation43_spill] sm:$0xff] %v18441_v53  ;;  %7779 = vmatmul.mubr.f32.gmra.mrb[80].mxu1 %v7469_v49  ;;  %v13850_v18 = vunpack.i.l.bf16 %v13849_v27  ;;  %v13851_v59 = vunpack.i.h.bf16 %v13849_v27  ;;  %v10005_v53 = vld [vmem:[#allocation4 + $0x249] sm:$0xff] }
 0x777   : > { %11595 = vmatprep.mubr.msk.f32.mxu1 %vm790_vm4, %v6990_v23  ;;  %14128 = vrot.lane.b32.xlu1 %v18444_v13, %s14835_s13  ;;  %v6864_v23 = vld [vmem:[#allocation4 + $0x1ce] sm:$0xff] }
 0x778   : > { %14133 = vrot.lane.b32.xlu0 %v14132_v36, %s14836_s14  ;;  %v7407_v49 = vsel %vm790_vm4, %v6863_v21, %v13850_v18  ;;  %v7408_v25 = vsel %vm790_vm4, %v6864_v23, %v13851_v59  ;;  %v6865_v21 = vld [vmem:[#allocation4 + $0x1e6] sm:$0xff]  ;;  %v6866_v23 = vld [vmem:[#allocation4 + $0x1ee] sm:$0xff] }
 0x779   : > { %v13859_v35 = vpop.permute.xlu1 %13858 }
 0x77a   : > { %v18455_v56 = vpop.permute.xlu0 %13843  ;;  %7784 = vmatmul.mubr.f32.gmra.mrb[82].mxu1 %v7470_v2  ;;  %v13860_v60 = vunpack.i.l.bf16 %v13859_v35  ;;  %v13861_v2 = vunpack.i.h.bf16 %v13859_v35 }
 0x77b   : > { %20407 = vst [vmem:[#allocation48_spill] sm:$0xff] %v18455_v56  ;;  %11596 = vmatprep.mubr.msk.f32.mxu1 %vm790_vm4, %v6991_v10  ;;  %14138 = vrot.lane.b32.xlu1 %v18453_v38, %s14838_s30  ;;  %v19327_v56 = vld [vmem:[#allocation4 + $0xf2] sm:$0xff] }
 0x77c   : > { %14143 = vrot.lane.b32.xlu0 %v18176_v63, %s14835_s13  ;;  %20419 = vst [vmem:[#allocation13_spill] sm:$0xff] %v19327_v56 }
 0x77d   : > { %v18462_v3 = vpop.permute.xlu1 %13863 }
 0x77e   : > { %20408 = vst [vmem:[#allocation44_spill] sm:$0xff] %v18462_v3  ;;  %v13854_v4 = vpop.permute.xlu0 %13853 }
 0x77f   : > { %v13856_v33 = vunpack.i.h.bf16 %v13854_v4  ;;  %v13855_v42 = vunpack.i.l.bf16 %v13854_v4  ;;  %14148 = vrot.lane.b32.xlu1 %v18174_v62, %s14836_s14  ;;  %v6992_v62 = vld [vmem:[#allocation4 + $0x1d2] sm:$0xff] }
 0x780   : > { %14153 = vrot.lane.b32.xlu0 %v18192_v57, %s14838_s30 }
 0x781   : > { %v18469_v26 = vpop.permute.xlu1 %13868  ;;  %v7439_v63 = vsel %vm1289_vm6, %v7407_v49, %v13855_v42  ;;  %v7440_v57 = vsel %vm1289_vm6, %v7408_v25, %v13856_v33 }
 0x782   : > { %20409 = vst [vmem:[#allocation45_spill] sm:$0xff] %v18469_v26  ;;  %v13874_v36 = vpop.permute.xlu0 %13873  ;;  %v7471_v27 = vsel %vm1334_vm7, %v7439_v63, %v13860_v60  ;;  %v7472_v59 = vsel %vm1334_vm7, %v7440_v57, %v13861_v2  ;;  %v6993_v63 = vld [vmem:[#allocation4 + $0x1ea] sm:$0xff] }
 0x783   : > { %v13875_v14 = vunpack.i.l.bf16 %v13874_v36  ;;  %7789 = vmatmul.mubr.f32.gmra.mrb[84].mxu1 %v7471_v27  ;;  %14158 = vrot.lane.b32.xlu1 %v18196_v15, %s14835_s13  ;;  %v13876_v18 = vunpack.i.h.bf16 %v13874_v36 }
 0x784   : > { %11597 = vmatprep.mubr.msk.f32.mxu1 %vm790_vm4, %v6992_v62  ;;  %14163 = vrot.lane.b32.xlu0 %v18207_v55, %s14836_s14 }
 0x785   : > { %v13879_v10 = vpop.permute.xlu1 %13878  ;;  %v7409_v15 = vsel %vm790_vm4, %v6865_v21, %v13875_v14  ;;  %v7410_v62 = vsel %vm790_vm4, %v6866_v23, %v13876_v18  ;;  %v6995_v21 = vld [vmem:[#allocation4 + $0x20a] sm:$0xff] }
 0x786   : > { %v13884_v4 = vpop.permute.xlu0 %13883  ;;  %v13880_v42 = vunpack.i.l.bf16 %v13879_v10  ;;  %v13881_v49 = vunpack.i.h.bf16 %v13879_v10 }
 0x787   : > { %v13885_v60 = vunpack.i.l.bf16 %v13884_v4  ;;  %7794 = vmatmul.mubr.f32.gmra.mrb[86].mxu1 %v7472_v59  ;;  %14168 = vrot.lane.b32.xlu1 %v18209_v20, %s14838_s30  ;;  %v13886_v36 = vunpack.i.h.bf16 %v13884_v4  ;;  %v6994_v20 = vld [vmem:[#allocation4 + $0x1f2] sm:$0xff] }
 0x788   : > { %11598 = vmatprep.mubr.msk.f32.mxu1 %vm790_vm4, %v6993_v63  ;;  %14173 = vrot.lane.b32.xlu0 %v18218_v30, %s14835_s13  ;;  %v7441_v55 = vsel %vm1289_vm6, %v7409_v15, %v13880_v42  ;;  %v7442_v14 = vsel %vm1289_vm6, %v7410_v62, %v13881_v49  ;;  %v6867_v30 = vld [vmem:[#allocation4 + $0x206] sm:$0xff]  ;;  %v6868_v63 = vld [vmem:[#allocation4 + $0x20e] sm:$0xff] }
 0x789   : > { %v13889_v35 = vpop.permute.xlu1 %13888  ;;  %v7473_v33 = vsel %vm1334_vm7, %v7441_v55, %v13885_v60  ;;  %v7474_v59 = vsel %vm1334_vm7, %v7442_v14, %v13886_v36  ;;  %v11655_v62 = vld [vmem:[%s20218_s9 + $0x1e8] sm:$0xff] }
 0x78a   : > { %v13894_v27 = vpop.permute.xlu0 %13893  ;;  %v13890_v25 = vunpack.i.l.bf16 %v13889_v35  ;;  %v13891_v4 = vunpack.i.h.bf16 %v13889_v35 }
 0x78b   : > { %v13895_v57 = vunpack.i.l.bf16 %v13894_v27  ;;  %7799 = vmatmul.mubr.f32.gmra.mrb[88].mxu1 %v7473_v33  ;;  %14178 = vrot.lane.b32.xlu1 %v18220_v9, %s14836_s14  ;;  %v13896_v60 = vunpack.i.h.bf16 %v13894_v27 }
 0x78c   : > { %11599 = vmatprep.mubr.msk.f32.mxu1 %vm790_vm4, %v6994_v20  ;;  %14183 = vrot.lane.b32.xlu0 %v18231_v17, %s14838_s30  ;;  %v7411_v2 = vsel %vm790_vm4, %v6867_v30, %v13890_v25  ;;  %v7412_v33 = vsel %vm790_vm4, %v6868_v63, %v13891_v4  ;;  %v11654_v25 = vld [vmem:[%s20218_s9 + $0x1e0] sm:$0xff] }
 0x78d   : > { %v13899_v10 = vpop.permute.xlu1 %13898  ;;  %v7443_v9 = vsel %vm1289_vm6, %v7411_v2, %v13895_v57  ;;  %v7444_v27 = vsel %vm1289_vm6, %v7412_v33, %v13896_v60  ;;  %v7979_v2 = vld [vmem:[#allocation4 + $0x4a] sm:$0xff]  ;;  %v12635_v4 = vpack.c.bf16 %v11655_v62, %v11654_v25 }
 0x78e   : > { %v13904_v42 = vpop.permute.xlu0 %13903  ;;  %v13900_v18 = vunpack.i.l.bf16 %v13899_v10  ;;  %v13901_v55 = vunpack.i.h.bf16 %v13899_v10  ;;  %v7853_v33 = vld [vmem:[#allocation4 + $0x66] sm:$0xff] }
 0x78f   : > { %7804 = vmatmul.mubr.f32.gmra.mrb[90].mxu1 %v7474_v59  ;;  %14188 = vrot.lane.b32.xlu1 %v18234_v1, %s14835_s13  ;;  %v13905_v15 = vunpack.i.l.bf16 %v13904_v42  ;;  %v6996_v1 = vld [vmem:[#allocation4 + $0x212] sm:$0xff]  ;;  %v13906_v57 = vunpack.i.h.bf16 %v13904_v42  ;;  %v7981_v62 = vld [vmem:[#allocation4 + $0x6a] sm:$0xff] }
 0x790   : > { %11600 = vmatprep.mubr.msk.f32.mxu1 %vm790_vm4, %v6995_v21  ;;  %14193 = vrot.lane.b32.xlu0 %v18243_v6, %s14836_s14  ;;  %v7475_v17 = vsel %vm1334_vm7, %v7443_v9, %v13900_v18  ;;  %v7851_v6 = vld [vmem:[#allocation4 + $0x46] sm:$0xff]  ;;  %v7852_v18 = vld [vmem:[#allocation4 + $0x4e] sm:$0xff]  ;;  %v11657_v21 = vld [vmem:[%s20218_s9 + $0x1f8] sm:$0xff] }
 0x791   : > { %v13909_v49 = vpop.permute.xlu1 %13908  ;;  %v11656_v59 = vld [vmem:[%s20218_s9 + $0x1f0] sm:$0xff] }
 0x792   : > { %v13914_v35 = vpop.permute.xlu0 %13913  ;;  %v13910_v23 = vunpack.i.l.bf16 %v13909_v49  ;;  %v13911_v30 = vunpack.i.h.bf16 %v13909_v49  ;;  %v7980_v49 = vld [vmem:[#allocation4 + $0x52] sm:$0xff] }
 0x793   : > { %7809 = vmatmul.mubr.f32.gmra.mrb[92].mxu1 %v7475_v17  ;;  %14198 = vrot.lane.b32.xlu1 %v18245_v44, %s14838_s30  ;;  %v8395_v44 = vsel %vm790_vm4, %v7851_v6, %v13905_v15  ;;  %v13915_v20 = vunpack.i.l.bf16 %v13914_v35  ;;  %v12638_v15 = vpack.c.bf16 %v11657_v21, %v11656_v59  ;;  %v7982_v59 = vld [vmem:[#allocation4 + $0x72] sm:$0xff] }
 0x794   : > { %11601 = vmatprep.mubr.msk.f32.mxu1 %vm790_vm4, %v6996_v1  ;;  %14203 = vrot.lane.b32.xlu0 %v18259_v22, %s14835_s13  ;;  %v7476_v22 = vsel %vm1334_vm7, %v7444_v27, %v13901_v55  ;;  %v8427_v10 = vsel %vm1289_vm6, %v8395_v44, %v13910_v23  ;;  %v11659_v23 = vld [vmem:[%s20218_s9 + $0x208] sm:$0xff] }
 0x795   : > { %v18511_v36 = vpop.permute.xlu1 %13918  ;;  %v8459_v60 = vsel %vm1334_vm7, %v8427_v10, %v13915_v20 }
 0x796   : > { %v18521_v14 = vpop.permute.xlu0 %13923  ;;  %v13920_v9 = vunpack.i.l.bf16 %v18511_v36  ;;  %v13921_v1 = vunpack.i.h.bf16 %v18511_v36 }
 0x797   : > { %7814 = vmatmul.mubr.f32.gmra.mrb[94].mxu1 %v7476_v22  ;;  %14208 = vrot.lane.b32.xlu1 %v18262_v48, %s14836_s14  ;;  %v13916_v48 = vunpack.i.h.bf16 %v13914_v35  ;;  %v13925_v55 = vunpack.i.l.bf16 %v18521_v14  ;;  %v13926_v44 = vunpack.i.h.bf16 %v18521_v14  ;;  %v7854_v22 = vld [vmem:[#allocation4 + $0x6e] sm:$0xff] }
 0x798   : > { %11622 = vmatprep.mubr.msk.f32.mxu1 %vm790_vm4, %v7979_v2  ;;  %14213 = vrot.lane.b32.xlu0 %v18277_v58, %s14838_s30  ;;  %v8396_v58 = vsel %vm790_vm4, %v7852_v18, %v13906_v57  ;;  %v8397_v25 = vsel %vm790_vm4, %v7853_v33, %v13920_v9  ;;  %v7855_v9 = vld [vmem:[#allocation4 + $0x86] sm:$0xff] }
 0x799   : > { %v18530_v42 = vpop.permute.xlu1 %13928  ;;  %v8428_v63 = vsel %vm1289_vm6, %v8396_v58, %v13911_v30  ;;  %v8429_v20 = vsel %vm1289_vm6, %v8397_v25, %v13925_v55  ;;  %v11661_v30 = vld [vmem:[%s20218_s9 + $0x218] sm:$0xff]  ;;  %v7983_v33 = vld [vmem:[#allocation4 + $0x8a] sm:$0xff] }
 0x79a   : > { %v18539_v17 = vpop.permute.xlu0 %13933  ;;  %v13930_v6 = vunpack.i.l.bf16 %v18530_v42  ;;  %v13931_v2 = vunpack.i.h.bf16 %v18530_v42 }
 0x79b   : > { %8673 = vmatmul.mubr.f32.vlgmr.msra.gmra.mrb[32].mxu1 %v8459_v60  ;;  %14218 = vrot.lane.b32.xlu1 %v18279_v8, %s14835_s13  ;;  %v11658_v8 = vld [vmem:[%s20218_s9 + $0x200] sm:$0xff]  ;;  %v13935_v14 = vunpack.i.l.bf16 %v18539_v17  ;;  %v13936_v58 = vunpack.i.h.bf16 %v18539_v17 }
 0x79c   : > { %12636 = vmatpush1.bf16.msra.mxu1 %v12635_v4  ;;  %11623 = vmatprep.mubr.msk.f32.mxu1 %vm790_vm4, %v7980_v49  ;;  %v12641_v57 = vpack.c.bf16 %v11659_v23, %v11658_v8  ;;  %v8461_v10 = vsel %vm1334_vm7, %v8429_v20, %v13930_v6  ;;  %v8398_v4 = vsel %vm790_vm4, %v7854_v22, %v13921_v1  ;;  %v11662_v60 = vld [vmem:[%s20218_s9 + $0x220] sm:$0xff]  ;;  %v7856_v1 = vld [vmem:[#allocation4 + $0x8e] sm:$0xff] }
 0x79d   : > { %14223 = vrot.lane.b32.xlu0 %v18292_v7, %s14836_s14  ;;  %v18550_v35 = vpop.permute.xlu1 %13938  ;;  %12637 = vmatprep.subr.bf16.mxu1 %v20380_v39  ;;  %v8460_v7 = vsel %vm1334_vm7, %v8428_v63, %v13916_v48  ;;  %v8430_v48 = vsel %vm1289_vm6, %v8398_v4, %v13926_v44 }
 0x79e   : > { %v18561_v27 = vpop.permute.xlu0 %13943  ;;  %v13940_v18 = vunpack.i.l.bf16 %v18550_v35  ;;  %v8462_v63 = vsel %vm1334_vm7, %v8430_v48, %v13931_v2  ;;  %v13941_v55 = vunpack.i.h.bf16 %v18550_v35  ;;  %v11664_v35 = vld [vmem:[%s20218_s9 + $0x230] sm:$0xff] }
 0x79f   : > { %8678 = vmatmul.mubr.f32.gmra.mrb[34].mxu1 %v8460_v7  ;;  %14228 = vrot.lane.b32.xlu1 %v18294_v32, %s14838_s30  ;;  %v11660_v32 = vld [vmem:[%s20218_s9 + $0x210] sm:$0xff]  ;;  %v13945_v49 = vunpack.i.l.bf16 %v18561_v27  ;;  %v13946_v6 = vunpack.i.h.bf16 %v18561_v27 }
 0x7a0   : > { %11624 = vmatprep.mubr.msk.f32.mxu1 %vm790_vm4, %v7981_v62  ;;  %12639 = vmatpush1.bf16.msra.mxu1 %v12638_v15  ;;  %v12644_v21 = vpack.c.bf16 %v11661_v30, %v11660_v32  ;;  %v8399_v15 = vsel %vm790_vm4, %v7855_v9, %v13935_v14  ;;  %v8400_v62 = vsel %vm790_vm4, %v7856_v1, %v13936_v58  ;;  %v7857_v32 = vld [vmem:[#allocation4 + $0xa6] sm:$0xff]  ;;  %v7858_v9 = vld [vmem:[#allocation4 + $0xae] sm:$0xff] }
 0x7a1   : > { %14233 = vrot.lane.b32.xlu0 %v18307_v41, %s14835_s13  ;;  %v18571_v36 = vpop.permute.xlu1 %13948  ;;  %12640 = vmatprep.subr.bf16.mxu1 %v20380_v39  ;;  %v8431_v8 = vsel %vm1289_vm6, %v8399_v15, %v13940_v18  ;;  %v8432_v44 = vsel %vm1289_vm6, %v8400_v62, %v13941_v55  ;;  %v11667_v30 = vld [vmem:[%s20218_s9 + $0x248] sm:$0xff]  ;;  %v7986_v15 = vld [vmem:[#allocation4 + $0xb2] sm:$0xff] }
 0x7a2   : > { %v18583_v41 = vpop.permute.xlu0 %13953  ;;  %v13950_v7 = vunpack.i.l.bf16 %v18571_v36  ;;  %v13951_v14 = vunpack.i.h.bf16 %v18571_v36  ;;  %v7985_v18 = vld [vmem:[#allocation4 + $0xaa] sm:$0xff] }
 0x7a3   : > { %8683 = vmatmul.mubr.f32.gmra.mrb[36].mxu1 %v8461_v10  ;;  %14238 = vrot.lane.b32.xlu1 %v18310_v34, %s14836_s14  ;;  %v11663_v34 = vld [vmem:[%s20218_s9 + $0x228] sm:$0xff]  ;;  %v13955_v27 = vunpack.i.l.bf16 %v18583_v41 }
 0x7a4   : > { %11625 = vmatprep.mubr.msk.f32.mxu1 %vm790_vm4, %v7982_v59  ;;  %12642 = vmatpush1.bf16.msra.mxu1 %v12641_v57  ;;  %v12647_v17 = vpack.c.bf16 %v11663_v34, %v11662_v60  ;;  %v7984_v57 = vld [vmem:[#allocation4 + $0x92] sm:$0xff]  ;;  %v8401_v4 = vsel %vm790_vm4, %v7857_v32, %v13950_v7  ;;  %v7987_v62 = vld [vmem:[#allocation4 + $0xca] sm:$0xff] }
 0x7a5   : > { %14243 = vrot.lane.b32.xlu0 %v18319_v61, %s14838_s30  ;;  %v18593_v42 = vpop.permute.xlu1 %13958  ;;  %12643 = vmatprep.subr.bf16.mxu1 %v20380_v39  ;;  %v8433_v48 = vsel %vm1289_vm6, %v8401_v4, %v13955_v27  ;;  %v11669_v60 = vld [vmem:[%s20218_s9 + $0x258] sm:$0xff]  ;;  %v8951_v7 = vld [vmem:[#allocation4 + $0x1b0] sm:$0xff] }
 0x7a6   : > { %v18605_v61 = vpop.permute.xlu0 %13963  ;;  %v13960_v2 = vunpack.i.l.bf16 %v18593_v42  ;;  %v13961_v34 = vunpack.i.h.bf16 %v18593_v42  ;;  %v7860_v32 = vld [vmem:[#allocation4 + $0xce] sm:$0xff] }
 0x7a7   : > { %8688 = vmatmul.mubr.f32.gmra.mrb[38].mxu1 %v8462_v63  ;;  %14248 = vrot.lane.b32.xlu1 %v18321_v52, %s14835_s13  ;;  %v11665_v52 = vld [vmem:[%s20218_s9 + $0x238] sm:$0xff]  ;;  %v13966_v1 = vunpack.i.h.bf16 %v18605_v61 }
 0x7a8   : > { %11626 = vmatprep.mubr.msk.f32.mxu1 %vm790_vm4, %v7983_v33  ;;  %12645 = vmatpush1.bf16.msra.mxu1 %v12644_v21  ;;  %v12650_v20 = vpack.c.bf16 %v11665_v52, %v11664_v35  ;;  %v13956_v21 = vunpack.i.h.bf16 %v18583_v41  ;;  %v13965_v41 = vunpack.i.l.bf16 %v18605_v61  ;;  %v8465_v58 = vsel %vm1334_vm7, %v8433_v48, %v13960_v2  ;;  %v8950_v61 = vld [vmem:[#allocation4 + $0x1a8] sm:$0xff]  ;;  %v7988_v4 = vld [vmem:[#allocation4 + $0xd2] sm:$0xff] }
 0x7a9   : > { %14253 = vrot.lane.b32.xlu0 %v18333_v50, %s14836_s14  ;;  %v18616_v23 = vpop.permute.xlu1 %13968  ;;  %12646 = vmatprep.subr.bf16.mxu1 %v20380_v39  ;;  %v8463_v50 = vsel %vm1334_vm7, %v8431_v8, %v13945_v49  ;;  %v8402_v49 = vsel %vm790_vm4, %v7858_v9, %v13951_v14  ;;  %v7859_v8 = vld [vmem:[#allocation4 + $0xc6] sm:$0xff]  ;;  %v14297_v27 = vpack.i.bf16 %v8951_v7, %v8950_v61  ;;  %v7990_v7 = vld [vmem:[#allocation4 + $0xf2] sm:$0xff] }
 0x7aa   : > { %v18627_v25 = vpop.permute.xlu0 %13973  ;;  %v13970_v63 = vunpack.i.l.bf16 %v18616_v23  ;;  %v8434_v33 = vsel %vm1289_vm6, %v8402_v49, %v13956_v21  ;;  %v8404_v2 = vsel %vm790_vm4, %v7860_v32, %v13966_v1 }
 0x7ab   : > { %8693 = vmatmul.mubr.f32.gmra.mrb[40].mxu1 %v8463_v50  ;;  %14258 = vrot.lane.b32.xlu1 %v18336_v45, %s14838_s30  ;;  %v11666_v45 = vld [vmem:[%s20218_s9 + $0x240] sm:$0xff]  ;;  %v13975_v35 = vunpack.i.l.bf16 %v18627_v25  ;;  %v8466_v52 = vsel %vm1334_vm7, %v8434_v33, %v13961_v34  ;;  %v13971_v50 = vunpack.i.h.bf16 %v18616_v23  ;;  %v11673_v23 = vld [vmem:[%s20218_s9 + $0x278] sm:$0xff] }
 0x7ac   : > { %11627 = vmatprep.mubr.msk.f32.mxu1 %vm790_vm4, %v7984_v57  ;;  %12648 = vmatpush1.bf16.msra.mxu1 %v12647_v17  ;;  %v12653_v59 = vpack.c.bf16 %v11667_v30, %v11666_v45  ;;  %v11670_v17 = vld [vmem:[%s20218_s9 + $0x260] sm:$0xff]  ;;  %v13976_v45 = vunpack.i.h.bf16 %v18627_v25 }
 0x7ad   : > { %14263 = vrot.lane.b32.xlu0 %v18347_v40, %s14835_s13  ;;  %v18638_v22 = vpop.permute.xlu1 %13978  ;;  %12649 = vmatprep.subr.bf16.mxu1 %v20380_v39  ;;  %v8464_v40 = vsel %vm1334_vm7, %v8432_v44, %v13946_v6  ;;  %v8403_v6 = vsel %vm790_vm4, %v7859_v8, %v13965_v41 }
 0x7ae   : > { %v18649_v10 = vpop.permute.xlu0 %13983  ;;  %v8435_v57 = vsel %vm1289_vm6, %v8403_v6, %v13970_v63  ;;  %v13980_v30 = vunpack.i.l.bf16 %v18638_v22  ;;  %v8984_v63 = vld [vmem:[#allocation4 + $0x1c9] sm:$0xff] }
 0x7af   : > { %8698 = vmatmul.mubr.f32.gmra.mrb[42].mxu1 %v8464_v40  ;;  %14268 = vrot.lane.b32.xlu1 %v18349_v43, %s14836_s14  ;;  %v11668_v43 = vld [vmem:[%s20218_s9 + $0x250] sm:$0xff]  ;;  %v13985_v21 = vunpack.i.l.bf16 %v18649_v10 }
 0x7b0   : > { %11628 = vmatprep.mubr.msk.f32.mxu1 %vm790_vm4, %v7985_v18  ;;  %12651 = vmatpush1.bf16.msra.mxu1 %v12650_v20  ;;  %v12656_v55 = vpack.c.bf16 %v11669_v60, %v11668_v43  ;;  %v8921_v40 = vld [vmem:[#allocation4 + $0x1cf] sm:$0xff]  ;;  %v8436_v18 = vsel %vm1289_vm6, %v8404_v2, %v13971_v50  ;;  %v7861_v43 = vld [vmem:[#allocation4 + $0xe6] sm:$0xff]  ;;  %v13981_v60 = vunpack.i.h.bf16 %v18638_v22 }
 0x7b1   : > { %14273 = vrot.lane.b32.xlu0 %v18358_v31, %s14838_s30  ;;  %v18659_v36 = vpop.permute.xlu1 %13988  ;;  %12652 = vmatprep.subr.bf16.mxu1 %v20380_v39  ;;  %v8405_v49 = vsel %vm790_vm4, %v7861_v43, %v13980_v30  ;;  %v8955_v6 = vld [vmem:[#allocation4 + $0x1f0] sm:$0xff] }
 0x7b2   : > { %v18671_v31 = vpop.permute.xlu0 %13993  ;;  %v13990_v41 = vunpack.i.l.bf16 %v18659_v36  ;;  %v8437_v33 = vsel %vm1289_vm6, %v8405_v49, %v13985_v21  ;;  %v13991_v1 = vunpack.i.h.bf16 %v18659_v36  ;;  %v8986_v50 = vld [vmem:[#allocation4 + $0x1e9] sm:$0xff]  ;;  %v7992_v49 = vld [vmem:[#allocation4 + $0x112] sm:$0xff] }
 0x7b3   : > { %8703 = vmatmul.mubr.f32.gmra.mrb[44].mxu1 %v8465_v58  ;;  %14278 = vrot.lane.b32.xlu1 %v18360_v12, %s14835_s13  ;;  %v11671_v12 = vld [vmem:[%s20218_s9 + $0x268] sm:$0xff]  ;;  %v8468_v58 = vsel %vm1334_vm7, %v8436_v18, %v13976_v45  ;;  %v13996_v32 = vunpack.i.h.bf16 %v18671_v31 }
 0x7b4   : > { %11629 = vmatprep.mubr.msk.f32.mxu1 %vm790_vm4, %v7986_v15  ;;  %12654 = vmatpush1.bf16.msra.mxu1 %v12653_v59  ;;  %v12659_v44 = vpack.c.bf16 %v11671_v12, %v11670_v17  ;;  %v8920_v59 = vld [vmem:[#allocation4 + $0x1c7] sm:$0xff]  ;;  %v8985_v15 = vld [vmem:[#allocation4 + $0x1d1] sm:$0xff]  ;;  %v13995_v12 = vunpack.i.l.bf16 %v18671_v31 }
 0x7b5   : > { %14283 = vrot.lane.b32.xlu0 %v18371_v11, %s14836_s14  ;;  %v18681_v42 = vpop.permute.xlu1 %13998  ;;  %12655 = vmatprep.subr.bf16.mxu1 %v20380_v39  ;;  %v14307_v9 = vpack.i.bf16 %v8921_v40, %v8920_v59  ;;  %v14317_v8 = vpack.i.bf16 %v8985_v15, %v8984_v63  ;;  %v7862_v17 = vld [vmem:[#allocation4 + $0xee] sm:$0xff] }
 0x7b6   : > { %v18693_v11 = vpop.permute.xlu0 %14003  ;;  %v14001_v2 = vunpack.i.h.bf16 %v18681_v42  ;;  %v8924_v31 = vld [vmem:[#allocation4 + $0x207] sm:$0xff] }
 0x7b7   : > { %8708 = vmatmul.mubr.f32.gmra.mrb[46].mxu1 %v8466_v52  ;;  %14288 = vrot.lane.b32.xlu1 %v18374_v47, %s14838_s30  ;;  %v11672_v47 = vld [vmem:[%s20218_s9 + $0x270] sm:$0xff]  ;;  %v8469_v52 = vsel %vm1334_vm7, %v8437_v33, %v13990_v41  ;;  %v14006_v21 = vunpack.i.h.bf16 %v18693_v11 }
 0x7b8   : > { %11630 = vmatprep.mubr.msk.f32.mxu1 %vm790_vm4, %v7987_v62  ;;  %12657 = vmatpush1.bf16.msra.mxu1 %v12656_v55  ;;  %v12662_v25 = vpack.c.bf16 %v11673_v23, %v11672_v47  ;;  %v13986_v55 = vunpack.i.h.bf16 %v18649_v10  ;;  %v8406_v10 = vsel %vm790_vm4, %v7862_v17, %v13981_v60  ;;  %v8987_v62 = vld [vmem:[#allocation4 + $0x1f1] sm:$0xff]  ;;  %v14005_v47 = vunpack.i.l.bf16 %v18693_v11  ;;  %v8988_v41 = vld [vmem:[#allocation4 + $0x209] sm:$0xff] }
 0x7b9   : > { %14293 = vrot.lane.b32.xlu0 %v18383_v24, %s14835_s13  ;;  %v18704_v20 = vpop.permute.xlu1 %14008  ;;  %12658 = vmatprep.subr.bf16.mxu1 %v20380_v39  ;;  %v8467_v24 = vsel %vm1334_vm7, %v8435_v57, %v13975_v35  ;;  %v8954_v57 = vld [vmem:[#allocation4 + $0x1e8] sm:$0xff]  ;;  %v14332_v40 = vpack.i.bf16 %v8987_v62, %v8986_v50 }
 0x7ba   : > { %v18715_v14 = vpop.permute.xlu0 %14013  ;;  %v8438_v61 = vsel %vm1289_vm6, %v8406_v10, %v13986_v55  ;;  %v7865_v55 = vld [vmem:[#allocation4 + $0x126] sm:$0xff]  ;;  %v14011_v33 = vunpack.i.h.bf16 %v18704_v20 }
 0x7bb   : > { %8713 = vmatmul.mubr.f32.gmra.mrb[48].mxu1 %v8467_v24  ;;  %14298 = vrot.lane.b32.xlu1 %v14297_v27, %s14836_s14  ;;  %v7863_v27 = vld [vmem:[#allocation4 + $0x106] sm:$0xff]  ;;  %v8470_v45 = vsel %vm1334_vm7, %v8438_v61, %v13991_v1  ;;  %v8925_v24 = vld [vmem:[#allocation4 + $0x20f] sm:$0xff]  ;;  %v14015_v11 = vunpack.i.l.bf16 %v18715_v14 }
 0x7bc   : > { %11631 = vmatprep.mubr.msk.f32.mxu1 %vm790_vm4, %v7988_v4  ;;  %12660 = vmatpush1.bf16.msra.mxu1 %v12659_v44  ;;  %v14327_v44 = vpack.i.bf16 %v8955_v6, %v8954_v57  ;;  %v8407_v30 = vsel %vm790_vm4, %v7863_v27, %v13995_v12  ;;  %v14337_v59 = vpack.i.bf16 %v8925_v24, %v8924_v31  ;;  %v7993_v10 = vld [vmem:[#allocation4 + $0x12a] sm:$0xff] }
 0x7bd   : > { %14303 = vrot.lane.b32.xlu0 %v18394_v51, %s14838_s30  ;;  %v18725_v48 = vpop.permute.xlu1 %14018  ;;  %12661 = vmatprep.subr.bf16.mxu1 %v20380_v39  ;;  %v7989_v51 = vld [vmem:[#allocation4 + $0xea] sm:$0xff] }
 0x7be   : > { %v18730_v34 = vpop.permute.xlu0 %14023  ;;  %v8928_v6 = vld [vmem:[#allocation4 + $0x247] sm:$0xff] }
 0x7bf   : > { %8718 = vmatmul.mubr.f32.gmra.mrb[50].mxu1 %v8468_v58  ;;  %14308 = vrot.lane.b32.xlu1 %v14307_v9, %s14835_s13  ;;  %v8989_v58 = vld [vmem:[#allocation4 + $0x211] sm:$0xff]  ;;  %v14025_v61 = vunpack.i.l.bf16 %v18730_v34 }
 0x7c0   : > { %11632 = vmatprep.mubr.msk.f32.mxu1 %vm790_vm4, %v7989_v51  ;;  %12663 = vmatpush1.bf16.msra.mxu1 %v12662_v25  ;;  %v7864_v25 = vld [vmem:[#allocation4 + $0x10e] sm:$0xff]  ;;  %v14347_v51 = vpack.i.bf16 %v8989_v58, %v8988_v41 }
 0x7c1   : > { %14313 = vrot.lane.b32.xlu0 %v18405_v0, %s14836_s14  ;;  %v18739_v22 = vpop.permute.xlu1 %14028  ;;  %12664 = vmatprep.subr.bf16.mxu1 %v20380_v39  ;;  %v14000_v0 = vunpack.i.l.bf16 %v18681_v42  ;;  %v14010_v42 = vunpack.i.l.bf16 %v18704_v20  ;;  %v8408_v60 = vsel %vm790_vm4, %v7864_v25, %v13996_v32  ;;  %v14016_v20 = vunpack.i.h.bf16 %v18715_v14  ;;  %v7866_v57 = vld [vmem:[#allocation4 + $0x12e] sm:$0xff]  ;;  %v7867_v25 = vld [vmem:[#allocation4 + $0x146] sm:$0xff] }
 0x7c2   : > { %v18745_v35 = vpop.permute.xlu0 %14033  ;;  %v8440_v63 = vsel %vm1289_vm6, %v8408_v60, %v14001_v2  ;;  %v8960_v14 = vld [vmem:[#allocation4 + $0x248] sm:$0xff]  ;;  %v8411_v41 = vsel %vm790_vm4, %v7867_v25, %v14025_v61  ;;  %v14031_v58 = vunpack.i.h.bf16 %v18739_v22  ;;  %v9948_v25 = vld [vmem:[#allocation4 + $0xb0] sm:$0xff] }
 0x7c3   : > { %8723 = vmatmul.mubr.f32.gmra.mrb[52].mxu1 %v8469_v52  ;;  %14318 = vrot.lane.b32.xlu1 %v14317_v8, %s14838_s30  ;;  %v8439_v4 = vsel %vm1289_vm6, %v8407_v30, %v14000_v0  ;;  %v14020_v8 = vunpack.i.l.bf16 %v18725_v48  ;;  %v8472_v12 = vsel %vm1334_vm7, %v8440_v63, %v14006_v21  ;;  %v8409_v1 = vsel %vm790_vm4, %v7865_v55, %v14010_v42  ;;  %v8959_v52 = vld [vmem:[#allocation4 + $0x230] sm:$0xff] }
 0x7c4   : > { %11633 = vmatprep.mubr.msk.f32.mxu1 %vm790_vm4, %v7990_v7  ;;  %v8471_v43 = vsel %vm1334_vm7, %v8439_v4, %v14005_v47  ;;  %v8929_v0 = vld [vmem:[#allocation4 + $0x24f] sm:$0xff]  ;;  %v8441_v50 = vsel %vm1289_vm6, %v8409_v1, %v14015_v11  ;;  %v8410_v47 = vsel %vm790_vm4, %v7866_v57, %v14011_v33  ;;  %v14026_v21 = vunpack.i.h.bf16 %v18730_v34 }
 0x7c5   : > { %14323 = vrot.lane.b32.xlu0 %v18413_v46, %s14835_s13  ;;  %v18754_v36 = vpop.permute.xlu1 %14038  ;;  %v7991_v46 = vld [vmem:[#allocation4 + $0x10a] sm:$0xff]  ;;  %v8473_v32 = vsel %vm1334_vm7, %v8441_v50, %v14020_v8  ;;  %v7994_v30 = vld [vmem:[#allocation4 + $0x132] sm:$0xff]  ;;  %v14367_v24 = vpack.i.bf16 %v8929_v0, %v8928_v6  ;;  %v8442_v31 = vsel %vm1289_vm6, %v8410_v47, %v14016_v20  ;;  %v14035_v42 = vunpack.i.l.bf16 %v18745_v35 }
 0x7c6   : > { %v18759_v23 = vpop.permute.xlu0 %14043  ;;  %v9914_v11 = vld [vmem:[#allocation4 + $0x8f] sm:$0xff]  ;;  %v14040_v8 = vunpack.i.l.bf16 %v18754_v36 }
 0x7c7   : > { %8728 = vmatmul.mubr.f32.gmra.mrb[54].mxu1 %v8470_v45  ;;  %14328 = vrot.lane.b32.xlu1 %v14327_v44, %s14836_s14  ;;  %v14021_v44 = vunpack.i.h.bf16 %v18725_v48  ;;  %v8961_v45 = vld [vmem:[#allocation4 + $0x250] sm:$0xff]  ;;  %v9945_v57 = vld [vmem:[#allocation4 + $0x88] sm:$0xff]  ;;  %v14045_v61 = vunpack.i.l.bf16 %v18759_v23 }
 0x7c8   : > { %11634 = vmatprep.mubr.msk.f32.mxu1 %vm790_vm4, %v7991_v46  ;;  %v8992_v48 = vld [vmem:[#allocation4 + $0x249] sm:$0xff]  ;;  %v8993_v46 = vld [vmem:[#allocation4 + $0x251] sm:$0xff] }
 0x7c9   : > { %14333 = vrot.lane.b32.xlu0 %v14332_v40, %s14838_s30  ;;  %v18768_v18 = vpop.permute.xlu1 %14048  ;;  %v8474_v60 = vsel %vm1334_vm7, %v8442_v31, %v14021_v44  ;;  %v14377_v63 = vpack.i.bf16 %v8993_v46, %v8992_v48  ;;  %v7868_v33 = vld [vmem:[#allocation4 + $0x14e] sm:$0xff] }
 0x7ca   : > { %v18772_v9 = vpop.permute.xlu0 %14053  ;;  %v7996_v6 = vld [vmem:[#allocation4 + $0x152] sm:$0xff]  ;;  %v9977_v50 = vld [vmem:[#allocation4 + $0x89] sm:$0xff] }
 0x7cb   : > { %8733 = vmatmul.mubr.f32.gmra.mrb[56].mxu1 %v8471_v43  ;;  %14338 = vrot.lane.b32.xlu1 %v14337_v59, %s14835_s13  ;;  %v14372_v59 = vpack.i.bf16 %v8961_v45, %v8960_v14  ;;  %v7869_v14 = vld [vmem:[#allocation4 + $0x166] sm:$0xff]  ;;  %v14041_v45 = vunpack.i.h.bf16 %v18754_v36  ;;  %v9916_v46 = vld [vmem:[#allocation4 + $0xaf] sm:$0xff] }
 0x7cc   : > { %11635 = vmatprep.mubr.msk.f32.mxu1 %vm790_vm4, %v7992_v49  ;;  %v8413_v48 = vsel %vm790_vm4, %v7869_v14, %v14040_v8  ;;  %v9915_v36 = vld [vmem:[#allocation4 + $0xa7] sm:$0xff]  ;;  %v9980_v8 = vld [vmem:[#allocation4 + $0xb1] sm:$0xff] }
 0x7cd   : > { %14343 = vrot.lane.b32.xlu0 %v18432_v37, %s14836_s14  ;;  %v18782_v15 = vpop.permute.xlu1 %14058  ;;  %v8958_v37 = vld [vmem:[#allocation4 + $0x228] sm:$0xff]  ;;  %v9950_v14 = vld [vmem:[#allocation4 + $0xd0] sm:$0xff] }
 0x7ce   : > { %v18786_v17 = vpop.permute.xlu0 %14063  ;;  %v14357_v62 = vpack.i.bf16 %v8959_v52, %v8958_v37  ;;  %v9913_v52 = vld [vmem:[#allocation4 + $0x87] sm:$0xff]  ;;  %v9946_v37 = vld [vmem:[#allocation4 + $0x90] sm:$0xff] }
 0x7cf   : > { %8738 = vmatmul.mubr.f32.gmra.mrb[58].mxu1 %v8472_v12  ;;  %14348 = vrot.lane.b32.xlu1 %v14347_v51, %s14838_s30  ;;  %v14382_v0 = vpack.i.bf16 %v9914_v11, %v9913_v52  ;;  %v14387_v47 = vpack.i.bf16 %v9946_v37, %v9945_v57  ;;  %v7998_v52 = vld [vmem:[#allocation4 + $0x172] sm:$0xff] }
 0x7d0   : > { %11636 = vmatprep.mubr.msk.f32.mxu1 %vm790_vm4, %v7993_v10  ;;  %v8412_v10 = vsel %vm790_vm4, %v7868_v33, %v14026_v21  ;;  %v14046_v21 = vunpack.i.h.bf16 %v18759_v23  ;;  %v9947_v33 = vld [vmem:[#allocation4 + $0xa8] sm:$0xff] }
 0x7d1   : > { %14353 = vrot.lane.b32.xlu0 %v18444_v13, %s14835_s13  ;;  %v18795_v7 = vpop.permute.xlu1 %14068  ;;  %v14030_v13 = vunpack.i.l.bf16 %v18739_v22  ;;  %v14036_v22 = vunpack.i.h.bf16 %v18745_v35  ;;  %v8444_v20 = vsel %vm1289_vm6, %v8412_v10, %v14031_v58  ;;  %v14397_v58 = vpack.i.bf16 %v9916_v46, %v9915_v36  ;;  %v9918_v37 = vld [vmem:[#allocation4 + $0xcf] sm:$0xff] }
 0x7d2   : > { %v18800_v27 = vpop.permute.xlu0 %14073  ;;  %v14402_v10 = vpack.i.bf16 %v9948_v25, %v9947_v33  ;;  %v18884_v46 = vld [vmem:[#allocation4 + $0xd1] sm:$0xff]  ;;  %v14066_v36 = vunpack.i.h.bf16 %v18786_v17 }
 0x7d3   : > { %8743 = vmatmul.mubr.f32.gmra.mrb[60].mxu1 %v8473_v32  ;;  %14358 = vrot.lane.b32.xlu1 %v14357_v62, %s14836_s14  ;;  %v8443_v49 = vsel %vm1289_vm6, %v8411_v41, %v14030_v13  ;;  %v9978_v62 = vld [vmem:[#allocation4 + $0x91] sm:$0xff]  ;;  %v14050_v13 = vunpack.i.l.bf16 %v18768_v18  ;;  %v8445_v41 = vsel %vm1289_vm6, %v8413_v48, %v14045_v61 }
 0x7d4   : > { %11637 = vmatprep.mubr.msk.f32.mxu1 %vm790_vm4, %v7994_v30  ;;  %v18807_v2 = vpop.f32.mrb[156].mxu0  ;;  %v8475_v1 = vsel %vm1334_vm7, %v8443_v49, %v14035_v42  ;;  %v14392_v31 = vpack.i.bf16 %v9978_v62, %v9977_v50  ;;  %v14055_v49 = vunpack.i.l.bf16 %v18772_v9  ;;  %v14056_v50 = vunpack.i.h.bf16 %v18772_v9  ;;  %v18882_v9 = vld [vmem:[#allocation4 + $0xc9] sm:$0xff] }
 0x7d5   : > { %20410 = vst [vmem:[#allocation27_spill] sm:$0xff] %v18807_v2  ;;  %14363 = vrot.lane.b32.xlu0 %v18453_v38, %s14838_s30  ;;  %v18811_v40 = vpop.permute.xlu1 %14078  ;;  %v6667_v4 = vpop.f32.mrb[157].mxu0  ;;  %v7995_v38 = vld [vmem:[#allocation4 + $0x14a] sm:$0xff]  ;;  %v14065_v62 = vunpack.i.l.bf16 %v18786_v17 }
 0x7d6   : > { %v18816_v43 = vpop.permute.xlu0 %14083  ;;  %v7997_v4 = vld [vmem:[#allocation4 + $0x16a] sm:$0xff] }
 0x7d7   : > { %8748 = vmatmul.mubr.f32.gmra.mrb[62].mxu1 %v8474_v60  ;;  %14368 = vrot.lane.b32.xlu1 %v14367_v24, %s14835_s13  ;;  %v8476_v24 = vsel %vm1334_vm7, %v8444_v20, %v14036_v22  ;;  %v9979_v22 = vld [vmem:[#allocation4 + $0xa9] sm:$0xff] }
 0x7d8   : > { %11638 = vmatprep.mubr.msk.f32.mxu1 %vm790_vm4, %v7995_v38  ;;  %v18824_v34 = vpop.f32.mrb[158].mxu0  ;;  %v7870_v38 = vld [vmem:[#allocation4 + $0x16e] sm:$0xff]  ;;  %v7871_v20 = vld [vmem:[#allocation4 + $0x186] sm:$0xff] }
 0x7d9   : > { %20411 = vst [vmem:[#allocation46_spill] sm:$0xff] %v18824_v34  ;;  %14373 = vrot.lane.b32.xlu0 %v14372_v59, %s14836_s14  ;;  %v18827_v51 = vpop.permute.xlu1 %14088  ;;  %v6672_v55 = vpop.f32.mrb[159].mxu0  ;;  %v8414_v23 = vsel %vm790_vm4, %v7870_v38, %v14041_v45  ;;  %v14061_v45 = vunpack.i.h.bf16 %v18782_v15  ;;  %v9920_v38 = vld [vmem:[#allocation4 + $0xef] sm:$0xff] }
 0x7da   : > { %v18831_v12 = vpop.permute.xlu0 %14093  ;;  %v8477_v55 = vsel %vm1334_vm7, %v8445_v41, %v14050_v13  ;;  %v7999_v13 = vld [vmem:[#allocation4 + $0x18a] sm:$0xff] }
 0x7db   : > { %8753 = vmatmul.mubr.f32.gmra.mrb[64].mxu1 %v8475_v1  ;;  %14378 = vrot.lane.b32.xlu1 %v14377_v63, %s14838_s30  ;;  %v14051_v63 = vunpack.i.h.bf16 %v18768_v18  ;;  %v14060_v1 = vunpack.i.l.bf16 %v18782_v15  ;;  %v7872_v15 = vld [vmem:[#allocation4 + $0x18e] sm:$0xff] }
 0x7dc   : > { %11639 = vmatprep.mubr.msk.f32.mxu1 %vm790_vm4, %v7996_v6  ;;  %v18838_v35 = vpop.f32.mrb[160].mxu0  ;;  %v8446_v6 = vsel %vm1289_vm6, %v8414_v23, %v14046_v21  ;;  %v14070_v21 = vunpack.i.l.bf16 %v18795_v7  ;;  %v9952_v33 = vld [vmem:[#allocation4 + $0xf0] sm:$0xff]  ;;  %v9919_v23 = vld [vmem:[#allocation4 + $0xe7] sm:$0xff] }
 0x7dd   : > { %20412 = vst [vmem:[#allocation29_spill] sm:$0xff] %v18838_v35  ;;  %14383 = vrot.lane.b32.xlu0 %v14382_v0, %s14835_s13  ;;  %v18842_v44 = vpop.permute.xlu1 %14098  ;;  %v6677_v32 = vpop.f32.mrb[161].mxu0  ;;  %v14407_v0 = vpack.i.bf16 %v9980_v8, %v9979_v22  ;;  %v8478_v61 = vsel %vm1334_vm7, %v8446_v6, %v14051_v63  ;;  %v14422_v63 = vpack.i.bf16 %v18884_v46, %v18882_v9  ;;  %v14075_v22 = vunpack.i.l.bf16 %v18800_v27  ;;  %v19175_v35 = vld [vmem:[#allocation4 + $0x1e9] sm:$0xff] }
 0x7de   : > { %v18846_v30 = vpop.permute.xlu0 %14103  ;;  %v9917_v32 = vld [vmem:[#allocation4 + $0xc7] sm:$0xff]  ;;  %v14080_v6 = vunpack.i.l.bf16 %v18811_v40 }
 0x7df   : > { %8758 = vmatmul.mubr.f32.gmra.mrb[66].mxu1 %v8476_v24  ;;  %14388 = vrot.lane.b32.xlu1 %v14387_v47, %s14836_s14  ;;  %v8415_v47 = vsel %vm790_vm4, %v7871_v20, %v14055_v49  ;;  %v14412_v24 = vpack.i.bf16 %v9918_v37, %v9917_v32  ;;  %v8000_v49 = vld [vmem:[#allocation4 + $0x192] sm:$0xff]  ;;  %v14071_v37 = vunpack.i.h.bf16 %v18795_v7 }
 0x7e0   : > { %11640 = vmatprep.mubr.msk.f32.mxu1 %vm790_vm4, %v7997_v4  ;;  %v18852_v59 = vpop.f32.mrb[162].mxu0  ;;  %v8447_v48 = vsel %vm1289_vm6, %v8415_v47, %v14060_v1  ;;  %v9949_v4 = vld [vmem:[#allocation4 + $0xc8] sm:$0xff]  ;;  %v18914_v32 = vld [vmem:[#allocation4 + $0xf1] sm:$0xff] }
 0x7e1   : > { %20413 = vst [vmem:[#allocation7_spill] sm:$0xff] %v18852_v59  ;;  %14393 = vrot.lane.b32.xlu0 %v14392_v31, %s14838_s30  ;;  %v18856_v42 = vpop.permute.xlu1 %14108  ;;  %v6682_v60 = vpop.f32.mrb[163].mxu0  ;;  %v14417_v25 = vpack.i.bf16 %v9950_v14, %v9949_v4  ;;  %v8479_v41 = vsel %vm1334_vm7, %v8447_v48, %v14065_v62  ;;  %v8001_v47 = vld [vmem:[#allocation4 + $0x1aa] sm:$0xff] }
 0x7e2   : > { %v18861_v11 = vpop.permute.xlu0 %14113  ;;  %v8869_v59 = vld [vmem:[#allocation4 + $0x8e] sm:$0xff] }
 0x7e3   : > { %8763 = vmatmul.mubr.f32.gmra.mrb[68].mxu1 %v8477_v55  ;;  %14398 = vrot.lane.b32.xlu1 %v14397_v58, %s14835_s13  ;;  %v8416_v58 = vsel %vm790_vm4, %v7872_v15, %v14056_v50  ;;  %v9951_v50 = vld [vmem:[#allocation4 + $0xe8] sm:$0xff] }
 0x7e4   : > { %11641 = vmatprep.mubr.msk.f32.mxu1 %vm790_vm4, %v7998_v52  ;;  %v8448_v55 = vsel %vm1289_vm6, %v8416_v58, %v14061_v45  ;;  %v14427_v52 = vpack.i.bf16 %v9920_v38, %v9919_v23  ;;  %v14432_v14 = vpack.i.bf16 %v9952_v33, %v9951_v50  ;;  %v9922_v45 = vld [vmem:[#allocation4 + $0x10f] sm:$0xff]  ;;  %v14086_v50 = vunpack.i.h.bf16 %v18816_v43 }
 0x7e5   : > { %14403 = vrot.lane.b32.xlu0 %v14402_v10, %s14836_s14  ;;  %v18869_v18 = vpop.permute.xlu1 %14118  ;;  %v7873_v10 = vld [vmem:[#allocation4 + $0x1a6] sm:$0xff]  ;;  %v8480_v20 = vsel %vm1334_vm7, %v8448_v55, %v14066_v36  ;;  %v7874_v15 = vld [vmem:[#allocation4 + $0x1ae] sm:$0xff]  ;;  %v14085_v36 = vunpack.i.l.bf16 %v18816_v43 }
 0x7e6   : > { %v18874_v57 = vpop.permute.xlu0 %14123  ;;  %v8417_v62 = vsel %vm790_vm4, %v7873_v10, %v14070_v21  ;;  %v14081_v21 = vunpack.i.h.bf16 %v18811_v40  ;;  %v8418_v38 = vsel %vm790_vm4, %v7874_v15, %v14071_v37  ;;  %v8002_v55 = vld [vmem:[#allocation4 + $0x1b2] sm:$0xff]  ;;  %v18938_v40 = vld [vmem:[#allocation4 + $0x109] sm:$0xff] }
 0x7e7   : > { %8768 = vmatmul.mubr.f32.gmra.mrb[70].mxu1 %v8478_v61  ;;  %14408 = vrot.lane.b32.xlu1 %v14407_v0, %s14838_s30  ;;  %v18912_v61 = vld [vmem:[#allocation4 + $0xe9] sm:$0xff]  ;;  %v8449_v4 = vsel %vm1289_vm6, %v8417_v62, %v14075_v22  ;;  %v18940_v22 = vld [vmem:[#allocation4 + $0x111] sm:$0xff]  ;;  %v14095_v62 = vunpack.i.l.bf16 %v18831_v12 }
 0x7e8   : > { %11642 = vmatprep.mubr.msk.f32.mxu1 %vm790_vm4, %v7999_v13  ;;  %v14076_v13 = vunpack.i.h.bf16 %v18800_v27  ;;  %v8481_v58 = vsel %vm1334_vm7, %v8449_v4, %v14080_v6  ;;  %v9921_v27 = vld [vmem:[#allocation4 + $0x107] sm:$0xff]  ;;  %v14091_v4 = vunpack.i.h.bf16 %v18827_v51 }
 0x7e9   : > { %14413 = vrot.lane.b32.xlu0 %v14412_v24, %s14835_s13  ;;  %v18887_v31 = vpop.permute.xlu1 %14128  ;;  %v14442_v33 = vpack.i.bf16 %v9922_v45, %v9921_v27  ;;  %v19253_v2 = vld [vmem:[#allocation4 + $0xce] sm:$0xff] }
 0x7ea   : > { %v18891_v60 = vpop.permute.xlu0 %14133  ;;  %v8450_v37 = vsel %vm1289_vm6, %v8418_v38, %v14076_v13  ;;  %v14452_v13 = vpack.i.bf16 %v18940_v22, %v18938_v40  ;;  %v7876_v38 = vld [vmem:[#allocation4 + $0x1ce] sm:$0xff] }
 0x7eb   : > { %8773 = vmatmul.mubr.f32.gmra.mrb[72].mxu1 %v8479_v41  ;;  %14418 = vrot.lane.b32.xlu1 %v14417_v25, %s14836_s14  ;;  %v14437_v25 = vpack.i.bf16 %v18914_v32, %v18912_v61 }
 0x7ec   : > { %11643 = vmatprep.mubr.msk.f32.mxu1 %vm790_vm4, %v8000_v49  ;;  %v18900_v17 = vpop.f32.mrb[164].mxu0  ;;  %v9954_v49 = vld [vmem:[#allocation4 + $0x110] sm:$0xff] }
 0x7ed   : > { %20414 = vst [vmem:[#allocation33_spill] sm:$0xff] %v18900_v17  ;;  %14423 = vrot.lane.b32.xlu0 %v14422_v63, %s14838_s30  ;;  %v18904_v8 = vpop.permute.xlu1 %14138  ;;  %v6687_v1 = vpop.f32.mrb[165].mxu0  ;;  %v14090_v63 = vunpack.i.l.bf16 %v18827_v51 }
 0x7ee   : > { %v18908_v0 = vpop.permute.xlu0 %14143  ;;  %v9953_v1 = vld [vmem:[#allocation4 + $0x108] sm:$0xff] }
 0x7ef   : > { %8778 = vmatmul.mubr.f32.gmra.mrb[74].mxu1 %v8480_v20  ;;  %14428 = vrot.lane.b32.xlu1 %v14427_v52, %s14835_s13  ;;  %v14447_v6 = vpack.i.bf16 %v9954_v49, %v9953_v1  ;;  %v7875_v20 = vld [vmem:[#allocation4 + $0x1c6] sm:$0xff]  ;;  %v14096_v49 = vunpack.i.h.bf16 %v18831_v12 }
 0x7f0   : > { %11644 = vmatprep.mubr.msk.f32.mxu1 %vm790_vm4, %v8001_v47  ;;  %v18918_v7 = vpop.f32.mrb[166].mxu0  ;;  %v8419_v45 = vsel %vm790_vm4, %v7875_v20, %v14085_v36  ;;  %v9955_v1 = vld [vmem:[#allocation4 + $0x128] sm:$0xff]  ;;  %v8004_v20 = vld [vmem:[#allocation4 + $0x1d2] sm:$0xff] }
 0x7f1   : > { %20415 = vst [vmem:[#allocation9_spill] sm:$0xff] %v18918_v7  ;;  %14433 = vrot.lane.b32.xlu0 %v14432_v14, %s14836_s14  ;;  %v18922_v24 = vpop.permute.xlu1 %14148  ;;  %v6692_v48 = vpop.f32.mrb[167].mxu0  ;;  %v8482_v14 = vsel %vm1334_vm7, %v8450_v37, %v14081_v21  ;;  %v8451_v43 = vsel %vm1289_vm6, %v8419_v45, %v14090_v63  ;;  %v9923_v21 = vld [vmem:[#allocation4 + $0x127] sm:$0xff] }
 0x7f2   : > { %v18929_v41 = vpop.permute.xlu0 %14153  ;;  %v9924_v48 = vld [vmem:[#allocation4 + $0x12f] sm:$0xff]  ;;  %v8483_v63 = vsel %vm1334_vm7, %v8451_v43, %v14095_v62  ;;  %v14105_v62 = vunpack.i.l.bf16 %v18846_v30  ;;  %v14110_v43 = vunpack.i.l.bf16 %v18856_v42 }
 0x7f3   : > { %8783 = vmatmul.mubr.f32.gmra.mrb[76].mxu1 %v8481_v58  ;;  %14438 = vrot.lane.b32.xlu1 %v14437_v25, %s14838_s30  ;;  %v8003_v25 = vld [vmem:[#allocation4 + $0x1ca] sm:$0xff]  ;;  %v14457_v27 = vpack.i.bf16 %v9924_v48, %v9923_v21 }
 0x7f4   : > { %11645 = vmatprep.mubr.msk.f32.mxu1 %vm790_vm4, %v8002_v55  ;;  %v18936_v23 = vpop.f32.mrb[168].mxu0  ;;  %v9956_v58 = vld [vmem:[#allocation4 + $0x130] sm:$0xff]  ;;  %v14100_v55 = vunpack.i.l.bf16 %v18842_v44 }
 0x7f5   : > { %20416 = vst [vmem:[#allocation6_spill] sm:$0xff] %v18936_v23  ;;  %14443 = vrot.lane.b32.xlu0 %v14442_v33, %s14835_s13  ;;  %v18943_v52 = vpop.permute.xlu1 %14158  ;;  %v6697_v10 = vpop.f32.mrb[169].mxu0  ;;  %v18969_v37 = vld [vmem:[#allocation4 + $0x129] sm:$0xff] }
 0x7f6   : > { %v18948_v47 = vpop.permute.xlu0 %14163  ;;  %v8420_v10 = vsel %vm790_vm4, %v7876_v38, %v14086_v50  ;;  %v18976_v45 = vld [vmem:[#allocation4 + $0x149] sm:$0xff] }
 0x7f7   : > { %8788 = vmatmul.mubr.f32.gmra.mrb[78].mxu1 %v8482_v14  ;;  %14448 = vrot.lane.b32.xlu1 %v14447_v6, %s14836_s14  ;;  %v18971_v6 = vld [vmem:[#allocation4 + $0x131] sm:$0xff]  ;;  %v14462_v14 = vpack.i.bf16 %v9956_v58, %v9955_v1  ;;  %v8452_v12 = vsel %vm1289_vm6, %v8420_v10, %v14091_v4  ;;  %v14472_v38 = vpack.i.bf16 %v18976_v45, %v18882_v9  ;;  %v14106_v1 = vunpack.i.h.bf16 %v18846_v30 }
 0x7f8   : > { %11646 = vmatprep.mubr.msk.f32.mxu1 %vm790_vm4, %v8003_v25  ;;  %v18958_v15 = vpop.f32.mrb[170].mxu0  ;;  %v14467_v48 = vpack.i.bf16 %v18971_v6, %v18969_v37  ;;  %v7877_v25 = vld [vmem:[#allocation4 + $0x1e6] sm:$0xff]  ;;  %v8484_v4 = vsel %vm1334_vm7, %v8452_v12, %v14096_v49  ;;  %v14111_v9 = vunpack.i.h.bf16 %v18856_v42  ;;  %v19005_v30 = vld [vmem:[#allocation4 + $0x151] sm:$0xff] }
 0x7f9   : > { %20417 = vst [vmem:[#allocation8_spill] sm:$0xff] %v18958_v15  ;;  %14453 = vrot.lane.b32.xlu0 %v14452_v13, %s14838_s30  ;;  %v18961_v36 = vpop.permute.xlu1 %14168  ;;  %v6702_v51 = vpop.f32.mrb[171].mxu0  ;;  %v14101_v13 = vunpack.i.h.bf16 %v18842_v44  ;;  %v8421_v21 = vsel %vm790_vm4, %v7877_v25, %v14100_v55  ;;  %v9925_v44 = vld [vmem:[#allocation4 + $0x147] sm:$0xff]  ;;  %v19071_v15 = vld [vmem:[#allocation4 + $0x191] sm:$0xff] }
 0x7fa   : > { %v18965_v33 = vpop.permute.xlu0 %14173  ;;  %v9926_v51 = vld [vmem:[#allocation4 + $0x14f] sm:$0xff]  ;;  %v8453_v49 = vsel %vm1289_vm6, %v8421_v21, %v14105_v62 }
 0x7fb   : > { %8793 = vmatmul.mubr.f32.gmra.mrb[80].mxu1 %v8483_v63  ;;  %14458 = vrot.lane.b32.xlu1 %v14457_v27, %s14835_s13  ;;  %v8005_v27 = vld [vmem:[#allocation4 + $0x1ea] sm:$0xff]  ;;  %v14477_v55 = vpack.i.bf16 %v9926_v51, %v9925_v44  ;;  %v14116_v44 = vunpack.i.h.bf16 %v18861_v11 }
 0x7fc   : > { %11647 = vmatprep.mubr.msk.f32.mxu1 %vm790_vm4, %v8004_v20  ;;  %v9958_v63 = vld [vmem:[#allocation4 + $0x150] sm:$0xff]  ;;  %v9957_v25 = vld [vmem:[#allocation4 + $0x148] sm:$0xff] }
 0x7fd   : > { %14463 = vrot.lane.b32.xlu0 %v14462_v14, %s14836_s14  ;;  %v18980_v50 = vpop.permute.xlu1 %14178  ;;  %v7878_v20 = vld [vmem:[#allocation4 + $0x1ee] sm:$0xff]  ;;  %v14115_v14 = vunpack.i.l.bf16 %v18861_v11  ;;  %v14482_v62 = vpack.i.bf16 %v9958_v63, %v9957_v25  ;;  %v7879_v51 = vld [vmem:[#allocation4 + $0x206] sm:$0xff]  ;;  %v14125_v63 = vunpack.i.l.bf16 %v18874_v57  ;;  %v14121_v25 = vunpack.i.h.bf16 %v18869_v18 }
 0x7fe   : > { %v18986_v58 = vpop.permute.xlu0 %14183  ;;  %v19010_v21 = vld [vmem:[#allocation4 + $0x169] sm:$0xff] }
 0x7ff   : > { %8798 = vmatmul.mubr.f32.gmra.mrb[82].mxu1 %v8484_v4  ;;  %14468 = vrot.lane.b32.xlu1 %v14467_v48, %s14838_s30  ;;  %v8485_v48 = vsel %vm1334_vm7, %v8453_v49, %v14110_v43  ;;  %v8422_v4 = vsel %vm790_vm4, %v7878_v20, %v14101_v13  ;;  %v14487_v13 = vpack.i.bf16 %v19005_v30, %v18884_v46  ;;  %v9960_v46 = vld [vmem:[#allocation4 + $0x170] sm:$0xff] }
 0x800   : > { %11648 = vmatprep.mubr.msk.f32.mxu1 %vm790_vm4, %v8005_v27  ;;  %v14120_v27 = vunpack.i.l.bf16 %v18869_v18  ;;  %v8454_v43 = vsel %vm1289_vm6, %v8422_v4, %v14106_v1  ;;  %v8423_v20 = vsel %vm790_vm4, %v7879_v51, %v14115_v14  ;;  %v14492_v1 = vpack.i.bf16 %v19010_v21, %v18912_v61  ;;  %v9927_v4 = vld [vmem:[#allocation4 + $0x167] sm:$0xff] }
 0x801   : > { %14473 = vrot.lane.b32.xlu0 %v14472_v38, %s14838_s30  ;;  %v18996_v10 = vpop.permute.xlu1 %14188  ;;  %v8006_v38 = vld [vmem:[#allocation4 + $0x1f2] sm:$0xff]  ;;  %v14126_v18 = vunpack.i.h.bf16 %v18874_v57  ;;  %v19044_v57 = vld [vmem:[#allocation4 + $0x189] sm:$0xff] }
 0x802   : > { %v19001_v12 = vpop.permute.xlu0 %14193  ;;  %v8455_v11 = vsel %vm1289_vm6, %v8423_v20, %v14120_v27  ;;  %v8008_v20 = vld [vmem:[#allocation4 + $0x212] sm:$0xff] }
 0x803   : > { %8803 = vmatmul.mubr.f32.gmra.mrb[84].mxu1 %v8485_v48  ;;  %14478 = vrot.lane.b32.xlu1 %v14477_v55, %s14835_s13  ;;  %v8486_v55 = vsel %vm1334_vm7, %v8454_v43, %v14111_v9  ;;  %v9928_v48 = vld [vmem:[#allocation4 + $0x16f] sm:$0xff]  ;;  %v14130_v43 = vunpack.i.l.bf16 %v18887_v31  ;;  %v8487_v61 = vsel %vm1334_vm7, %v8455_v11, %v14125_v63  ;;  %v7881_v11 = vld [vmem:[#allocation4 + $0x226] sm:$0xff] }
 0x804   : > { %11649 = vmatprep.mubr.msk.f32.mxu1 %vm790_vm4, %v8006_v38  ;;  %v8007_v38 = vld [vmem:[#allocation4 + $0x20a] sm:$0xff]  ;;  %v14497_v14 = vpack.i.bf16 %v9928_v48, %v9927_v4  ;;  %v14140_v4 = vunpack.i.l.bf16 %v18904_v8 }
 0x805   : > { %14483 = vrot.lane.b32.xlu0 %v14482_v62, %s14836_s14  ;;  %v19013_v42 = vpop.permute.xlu1 %14198  ;;  %v7880_v62 = vld [vmem:[#allocation4 + $0x20e] sm:$0xff] }
 0x806   : > { %v19020_v49 = vpop.permute.xlu0 %14203  ;;  %v8424_v27 = vsel %vm790_vm4, %v7880_v62, %v14116_v44  ;;  %v9930_v62 = vld [vmem:[#allocation4 + $0x18f] sm:$0xff] }
 0x807   : > { %8808 = vmatmul.mubr.f32.gmra.mrb[86].mxu1 %v8486_v55  ;;  %14488 = vrot.lane.b32.xlu1 %v14487_v13, %s14838_s30  ;;  %v9959_v13 = vld [vmem:[#allocation4 + $0x168] sm:$0xff]  ;;  %v19039_v55 = vld [vmem:[#allocation4 + $0x171] sm:$0xff]  ;;  %v8456_v48 = vsel %vm1289_vm6, %v8424_v27, %v14121_v25  ;;  %v14512_v27 = vpack.i.bf16 %v19044_v57, %v18938_v40  ;;  %v14141_v40 = vunpack.i.h.bf16 %v18904_v8 }
 0x808   : > { %11650 = vmatprep.mubr.msk.f32.mxu1 %vm790_vm4, %v8007_v38  ;;  %v14502_v38 = vpack.i.bf16 %v9960_v46, %v9959_v13  ;;  %v14507_v44 = vpack.i.bf16 %v19039_v55, %v18914_v32  ;;  %v14131_v46 = vunpack.i.h.bf16 %v18887_v31  ;;  %v8488_v25 = vsel %vm1334_vm7, %v8456_v48, %v14126_v18  ;;  %v8009_v13 = vld [vmem:[#allocation4 + $0x22a] sm:$0xff] }
 0x809   : > { %14493 = vrot.lane.b32.xlu0 %v14492_v1, %s14838_s30  ;;  %v19031_v9 = vpop.permute.xlu1 %14208  ;;  %v14135_v1 = vunpack.i.l.bf16 %v18891_v60  ;;  %v9962_v32 = vld [vmem:[#allocation4 + $0x190] sm:$0xff]  ;;  %v9929_v31 = vld [vmem:[#allocation4 + $0x187] sm:$0xff] }
 0x80a   : > { %v19035_v51 = vpop.permute.xlu0 %14213  ;;  %v7882_v48 = vld [vmem:[#allocation4 + $0x22e] sm:$0xff] }
 0x80b   : > { %8813 = vmatmul.mubr.f32.gmra.mrb[88].mxu1 %v8487_v61  ;;  %14498 = vrot.lane.b32.xlu1 %v14497_v14, %s14835_s13  ;;  %v8425_v14 = vsel %vm790_vm4, %v7881_v11, %v14130_v43  ;;  %v14145_v11 = vunpack.i.l.bf16 %v18908_v0 }
 0x80c   : > { %11651 = vmatprep.mubr.msk.f32.mxu1 %vm790_vm4, %v8008_v20  ;;  %v14136_v20 = vunpack.i.h.bf16 %v18891_v60  ;;  %v8457_v43 = vsel %vm1289_vm6, %v8425_v14, %v14135_v1  ;;  %v14150_v60 = vunpack.i.l.bf16 %v18922_v24  ;;  %v8010_v1 = vld [vmem:[#allocation4 + $0x232] sm:$0xff]  ;;  %v19078_v14 = vld [vmem:[#allocation4 + $0x1a9] sm:$0xff] }
 0x80d   : > { %14503 = vrot.lane.b32.xlu0 %v14502_v38, %s14836_s14  ;;  %v19048_v63 = vpop.permute.xlu1 %14218  ;;  %v14517_v38 = vpack.i.bf16 %v9930_v62, %v9929_v31  ;;  %v11706_v62 = vld [vmem:[%s20218_s9 + $0x280] sm:$0xff]  ;;  %v14146_v31 = vunpack.i.h.bf16 %v18908_v0 }
 0x80f   : > { %v19056_v61 = vpop.permute.xlu0 %14223  ;;  %8818 = vmatmul.mubr.f32.gmra.mrb[90].mxu1 %v8488_v25  ;;  %14508 = vrot.lane.b32.xlu1 %v14507_v44, %s14838_s30  ;;  %v8489_v44 = vsel %vm1334_vm7, %v8457_v43, %v14140_v4  ;;  %v9961_v25 = vld [vmem:[#allocation4 + $0x188] sm:$0xff]  ;;  %v14527_v4 = vpack.i.bf16 %v19071_v15, %v18940_v22  ;;  %v14151_v22 = vunpack.i.h.bf16 %v18922_v24 }
 0x810   : > { %11652 = vmatprep.mubr.msk.f32.mxu1 %vm790_vm4, %v8009_v13  ;;  %v8426_v13 = vsel %vm790_vm4, %v7882_v48, %v14131_v46  ;;  %v14522_v23 = vpack.i.bf16 %v9962_v32, %v9961_v25  ;;  %v11707_v32 = vld [vmem:[%s20218_s9 + $0x288] sm:$0xff]  ;;  %v14532_v25 = vpack.i.bf16 %v19078_v14, %v18969_v37  ;;  %v11708_v37 = vld [vmem:[%s20218_s9 + $0x290] sm:$0xff] }
 0x811   : > { %14513 = vrot.lane.b32.xlu0 %v14512_v27, %s14838_s30  ;;  %v19064_v18 = vpop.permute.xlu1 %14228  ;;  %v8458_v46 = vsel %vm1289_vm6, %v8426_v13, %v14136_v20  ;;  %v14818_v43 = vld [vmem:[#allocation4 + $0x66] sm:$0xff]  ;;  %v9932_v48 = vld [vmem:[#allocation4 + $0x1af] sm:$0xff] }
 0x812   : > { %v8490_v20 = vsel %vm1334_vm7, %v8458_v46, %v14141_v40  ;;  %v8994_v13 = vld [vmem:[#allocation4 + $0x6a] sm:$0xff] }
 0x813   : > { %v19074_v27 = vpop.permute.xlu0 %14233  ;;  %8823 = vmatmul.mubr.f32.gmra.mrb[92].mxu1 %v8489_v44  ;;  %14518 = vrot.lane.b32.xlu1 %v14517_v38, %s14835_s13  ;;  %v14155_v38 = vunpack.i.l.bf16 %v18929_v41  ;;  %v8867_v46 = vld [vmem:[#allocation4 + $0x6e] sm:$0xff] }
 0x814   : > { %11653 = vmatprep.mubr.msk.f32.mxu1 %vm790_vm4, %v8010_v1  ;;  %v9964_v1 = vld [vmem:[#allocation4 + $0x1b0] sm:$0xff] }
 0x815   : > { %14523 = vrot.lane.b32.xlu0 %v14522_v23, %s14836_s14  ;;  %v19081_v8 = vpop.permute.xlu1 %14238  ;;  %v9410_v23 = vsel %vm790_vm4, %v14818_v43, %v14145_v11  ;;  %v12665_v11 = vpack.c.bf16 %v11707_v32, %v11706_v62  ;;  %v9931_v43 = vld [vmem:[#allocation4 + $0x1a7] sm:$0xff]  ;;  %v14160_v62 = vunpack.i.l.bf16 %v18943_v52 }
 0x816   : > { %v9442_v0 = vsel %vm1289_vm6, %v9410_v23, %v14150_v60  ;;  %v14537_v24 = vpack.i.bf16 %v9932_v48, %v9931_v43  ;;  %v14156_v60 = vunpack.i.h.bf16 %v18929_v41  ;;  %v9963_v23 = vld [vmem:[#allocation4 + $0x1a8] sm:$0xff]  ;;  %v8995_v43 = vld [vmem:[#allocation4 + $0x72] sm:$0xff] }
 0x817   : > { %v19097_v44 = vpop.permute.xlu0 %14243  ;;  %8828 = vmatmul.mubr.f32.gmra.mrb[94].mxu1 %v8490_v20  ;;  %14528 = vrot.lane.b32.xlu1 %v14527_v4, %s14838_s30  ;;  %v11709_v4 = vld [vmem:[%s20218_s9 + $0x298] sm:$0xff]  ;;  %v9474_v32 = vsel %vm1334_vm7, %v9442_v0, %v14155_v38  ;;  %v9411_v20 = vsel %vm790_vm4, %v8867_v46, %v14146_v31  ;;  %v19124_v41 = vld [vmem:[#allocation4 + $0x1c9] sm:$0xff]  ;;  %v14165_v0 = vunpack.i.l.bf16 %v18948_v47 }
 0x818   : > { %11674 = vmatprep.mubr.msk.f32.mxu1 %vm790_vm4, %v8994_v13  ;;  %v14542_v13 = vpack.i.bf16 %v9964_v1, %v9963_v23  ;;  %v9443_v7 = vsel %vm1289_vm6, %v9411_v20, %v14151_v22  ;;  %v12668_v38 = vpack.c.bf16 %v11709_v4, %v11708_v37  ;;  %v19132_v46 = vld [vmem:[#allocation4 + $0x86] sm:$0xff]  ;;  %v14170_v37 = vunpack.i.l.bf16 %v18961_v36 }
 0x819   : > { %14533 = vrot.lane.b32.xlu0 %v14532_v25, %s14838_s30  ;;  %v19105_v40 = vpop.permute.xlu1 %14248  ;;  %v19117_v25 = vld [vmem:[#allocation4 + $0x1b1] sm:$0xff]  ;;  %v11710_v22 = vld [vmem:[%s20218_s9 + $0x2a0] sm:$0xff]  ;;  %v9475_v4 = vsel %vm1334_vm7, %v9443_v7, %v14156_v60  ;;  %v14552_v20 = vpack.i.bf16 %v19124_v41, %v18976_v45  ;;  %v14166_v7 = vunpack.i.h.bf16 %v18948_v47  ;;  %v14175_v47 = vunpack.i.l.bf16 %v18965_v33 }
 0x81a   : > { %v14547_v1 = vpack.i.bf16 %v19117_v25, %v18971_v6  ;;  %v9412_v6 = vsel %vm790_vm4, %v19132_v46, %v14160_v62  ;;  %v11712_v45 = vld [vmem:[%s20218_s9 + $0x2b0] sm:$0xff] }
 0x81b   : > { %v19119_v48 = vpop.permute.xlu0 %14253  ;;  %9688 = vmatmul.mubr.f32.vlgmr.msra.gmra.mrb[32].mxu1 %v9474_v32  ;;  %14538 = vrot.lane.b32.xlu1 %v14537_v24, %s14835_s13  ;;  %v14161_v24 = vunpack.i.h.bf16 %v18943_v52  ;;  %v9934_v32 = vld [vmem:[#allocation4 + $0x1cf] sm:$0xff]  ;;  %v9444_v62 = vsel %vm1289_vm6, %v9412_v6, %v14165_v0 }
 0x81c   : > { %12666 = vmatpush1.bf16.msra.mxu1 %v12665_v11  ;;  %11675 = vmatprep.mubr.msk.f32.mxu1 %vm790_vm4, %v8995_v43  ;;  %v11711_v11 = vld [vmem:[%s20218_s9 + $0x2a8] sm:$0xff]  ;;  %v9966_v52 = vld [vmem:[#allocation4 + $0x1d0] sm:$0xff] }
 0x81d   : > { %14543 = vrot.lane.b32.xlu0 %v14542_v13, %s14836_s14  ;;  %v19128_v31 = vpop.permute.xlu1 %14258  ;;  %12667 = vmatprep.subr.bf16.mxu1 %v20380_v39  ;;  %v8996_v13 = vld [vmem:[#allocation4 + $0x8a] sm:$0xff]  ;;  %v12671_v17 = vpack.c.bf16 %v11711_v11, %v11710_v22  ;;  %v9476_v22 = vsel %vm1334_vm7, %v9444_v62, %v14170_v37  ;;  %v9413_v0 = vsel %vm790_vm4, %v8869_v59, %v14161_v24 }
 0x81e   : > { %v9933_v43 = vld [vmem:[#allocation4 + $0x1c7] sm:$0xff]  ;;  %v19168_v6 = vld [vmem:[#allocation4 + $0x1d1] sm:$0xff]  ;;  %v9445_v24 = vsel %vm1289_vm6, %v9413_v0, %v14166_v7  ;;  %v14572_v0 = vpack.i.bf16 %v19175_v35, %v19010_v21 }
 0x81f   : > { %v19146_v23 = vpop.permute.xlu0 %14263  ;;  %9693 = vmatmul.mubr.f32.gmra.mrb[34].mxu1 %v9475_v4  ;;  %14548 = vrot.lane.b32.xlu1 %v14547_v1, %s14838_s30  ;;  %v14557_v4 = vpack.i.bf16 %v9934_v32, %v9933_v43  ;;  %v14171_v1 = vunpack.i.h.bf16 %v18961_v36  ;;  %v9965_v11 = vld [vmem:[#allocation4 + $0x1c8] sm:$0xff]  ;;  %v14180_v32 = vunpack.i.l.bf16 %v18980_v50  ;;  %v8997_v43 = vld [vmem:[#allocation4 + $0x92] sm:$0xff]  ;;  %v14567_v37 = vpack.i.bf16 %v19168_v6, %v19005_v30 }
 0x820   : > { %11676 = vmatprep.mubr.msk.f32.mxu1 %vm790_vm4, %v8996_v13  ;;  %12669 = vmatpush1.bf16.msra.mxu1 %v12668_v38  ;;  %v11713_v38 = vld [vmem:[%s20218_s9 + $0x2b8] sm:$0xff]  ;;  %v14562_v13 = vpack.i.bf16 %v9966_v52, %v9965_v11  ;;  %v8870_v62 = vld [vmem:[#allocation4 + $0xa6] sm:$0xff]  ;;  %v9936_v30 = vld [vmem:[#allocation4 + $0x1ef] sm:$0xff] }
 0x821   : > { %14553 = vrot.lane.b32.xlu0 %v14552_v20, %s14838_s30  ;;  %v19154_v60 = vpop.permute.xlu1 %14268  ;;  %12670 = vmatprep.subr.bf16.mxu1 %v20380_v39  ;;  %v12674_v36 = vpack.c.bf16 %v11713_v38, %v11712_v45  ;;  %v11714_v52 = vld [vmem:[%s20218_s9 + $0x2c0] sm:$0xff]  ;;  %v14185_v45 = vunpack.i.l.bf16 %v18986_v58  ;;  %v9477_v7 = vsel %vm1334_vm7, %v9445_v24, %v14171_v1  ;;  %v9414_v38 = vsel %vm790_vm4, %v8870_v62, %v14175_v47  ;;  %v8871_v62 = vld [vmem:[#allocation4 + $0xae] sm:$0xff] }
 0x822   : > { %v9935_v1 = vld [vmem:[#allocation4 + $0x1e7] sm:$0xff]  ;;  %v11716_v21 = vld [vmem:[%s20218_s9 + $0x2d0] sm:$0xff] }
 0x823   : > { %v19171_v20 = vpop.permute.xlu0 %14273  ;;  %9698 = vmatmul.mubr.f32.gmra.mrb[36].mxu1 %v9476_v22  ;;  %14558 = vrot.lane.b32.xlu1 %v14557_v4, %s14835_s13  ;;  %v14176_v4 = vunpack.i.h.bf16 %v18965_v33  ;;  %v14181_v22 = vunpack.i.h.bf16 %v18980_v50  ;;  %v9446_v33 = vsel %vm1289_vm6, %v9414_v38, %v14180_v32  ;;  %v14577_v24 = vpack.i.bf16 %v9936_v30, %v9935_v1  ;;  %v11717_v32 = vld [vmem:[%s20218_s9 + $0x2d8] sm:$0xff] }
 0x824   : > { %11677 = vmatprep.mubr.msk.f32.mxu1 %vm790_vm4, %v8997_v43  ;;  %12672 = vmatpush1.bf16.msra.mxu1 %v12671_v17  ;;  %v11715_v17 = vld [vmem:[%s20218_s9 + $0x2c8] sm:$0xff]  ;;  %v9968_v43 = vld [vmem:[#allocation4 + $0x1f0] sm:$0xff]  ;;  %v12680_v34 = vpack.c.bf16 %v11717_v32, %v11716_v21 }
 0x825   : > { %14563 = vrot.lane.b32.xlu0 %v14562_v13, %s14836_s14  ;;  %v19178_v59 = vpop.permute.xlu1 %14278  ;;  %12673 = vmatprep.subr.bf16.mxu1 %v20380_v39  ;;  %v8998_v13 = vld [vmem:[#allocation4 + $0xaa] sm:$0xff]  ;;  %v12677_v47 = vpack.c.bf16 %v11715_v17, %v11714_v52  ;;  %v9478_v52 = vsel %vm1334_vm7, %v9446_v33, %v14185_v45  ;;  %v14195_v45 = vunpack.i.l.bf16 %v19001_v12 }
 0x826   : > { %v9967_v17 = vld [vmem:[#allocation4 + $0x1e8] sm:$0xff]  ;;  %v19216_v38 = vld [vmem:[#allocation4 + $0x1f1] sm:$0xff] }
 0x827   : > { %v19195_v11 = vpop.permute.xlu0 %14283  ;;  %9703 = vmatmul.mubr.f32.gmra.mrb[38].mxu1 %v9477_v7  ;;  %14568 = vrot.lane.b32.xlu1 %v14567_v37, %s14838_s30  ;;  %v14186_v37 = vunpack.i.h.bf16 %v18986_v58  ;;  %v9415_v7 = vsel %vm790_vm4, %v8871_v62, %v14176_v4  ;;  %v10001_v58 = vld [vmem:[#allocation4 + $0x209] sm:$0xff]  ;;  %v14587_v33 = vpack.i.bf16 %v19216_v38, %v19039_v55  ;;  %v14200_v62 = vunpack.i.l.bf16 %v19013_v42 }
 0x828   : > { %11678 = vmatprep.mubr.msk.f32.mxu1 %vm790_vm4, %v8998_v13  ;;  %12675 = vmatpush1.bf16.msra.mxu1 %v12674_v36  ;;  %v14190_v36 = vunpack.i.l.bf16 %v18996_v10  ;;  %v8999_v13 = vld [vmem:[#allocation4 + $0xb2] sm:$0xff]  ;;  %v9447_v1 = vsel %vm1289_vm6, %v9415_v7, %v14181_v22  ;;  %v11718_v22 = vld [vmem:[%s20218_s9 + $0x2e0] sm:$0xff]  ;;  %v9000_v7 = vld [vmem:[#allocation4 + $0xca] sm:$0xff] }
 0x829   : > { %14573 = vrot.lane.b32.xlu0 %v14572_v0, %s14838_s30  ;;  %v19203_v50 = vpop.permute.xlu1 %14288  ;;  %12676 = vmatprep.subr.bf16.mxu1 %v20380_v39  ;;  %v14582_v0 = vpack.i.bf16 %v9968_v43, %v9967_v17  ;;  %v19229_v43 = vld [vmem:[#allocation4 + $0xc6] sm:$0xff]  ;;  %v9479_v21 = vsel %vm1334_vm7, %v9447_v1, %v14186_v37  ;;  %v9938_v32 = vld [vmem:[#allocation4 + $0x20f] sm:$0xff]  ;;  %v14592_v17 = vpack.i.bf16 %v10001_v58, %v19044_v57  ;;  %v14196_v37 = vunpack.i.h.bf16 %v19001_v12 }
 0x82a   : > { %v9416_v55 = vsel %vm790_vm4, %v19229_v43, %v14190_v36  ;;  %v11720_v57 = vld [vmem:[%s20218_s9 + $0x2f0] sm:$0xff]  ;;  %v14205_v12 = vunpack.i.l.bf16 %v19020_v49  ;;  %v14201_v58 = vunpack.i.h.bf16 %v19013_v42 }
 0x82b   : > { %v19218_v30 = vpop.permute.xlu0 %14293  ;;  %9708 = vmatmul.mubr.f32.gmra.mrb[40].mxu1 %v9478_v52  ;;  %14578 = vrot.lane.b32.xlu1 %v14577_v24, %s14835_s13  ;;  %v14191_v24 = vunpack.i.h.bf16 %v18996_v10  ;;  %v9937_v10 = vld [vmem:[#allocation4 + $0x207] sm:$0xff]  ;;  %v9448_v1 = vsel %vm1289_vm6, %v9416_v55, %v14195_v45  ;;  %v14210_v55 = vunpack.i.l.bf16 %v19031_v9 }
 0x82c   : > { %11679 = vmatprep.mubr.msk.f32.mxu1 %vm790_vm4, %v8999_v13  ;;  %12678 = vmatpush1.bf16.msra.mxu1 %v12677_v47  ;;  %v11719_v47 = vld [vmem:[%s20218_s9 + $0x2e8] sm:$0xff] }
 0x82d   : > { %14583 = vrot.lane.b32.xlu0 %v14582_v0, %s14836_s14  ;;  %v19225_v4 = vpop.permute.xlu1 %14298  ;;  %12679 = vmatprep.subr.bf16.mxu1 %v20380_v39  ;;  %v9970_v0 = vld [vmem:[#allocation4 + $0x210] sm:$0xff]  ;;  %v12683_v13 = vpack.c.bf16 %v11719_v47, %v11718_v22  ;;  %v9969_v45 = vld [vmem:[#allocation4 + $0x208] sm:$0xff]  ;;  %v9417_v22 = vsel %vm790_vm4, %v19253_v2, %v14191_v24 }
 0x82e   : > { %v10002_v47 = vld [vmem:[#allocation4 + $0x211] sm:$0xff]  ;;  %v10003_v42 = vld [vmem:[#allocation4 + $0x229] sm:$0xff] }
 0x82f   : > { %v19243_v52 = vpop.permute.xlu0 %14303  ;;  %9713 = vmatmul.mubr.f32.gmra.mrb[42].mxu1 %v9479_v21  ;;  %14588 = vrot.lane.b32.xlu1 %v14587_v33, %s14838_s30  ;;  %v14597_v21 = vpack.i.bf16 %v9938_v32, %v9937_v10  ;;  %v9480_v33 = vsel %vm1334_vm7, %v9448_v1, %v14200_v62  ;;  %v14206_v10 = vunpack.i.h.bf16 %v19020_v49  ;;  %v9449_v1 = vsel %vm1289_vm6, %v9417_v22, %v14196_v37  ;;  %v11723_v49 = vld [vmem:[%s20218_s9 + $0x308] sm:$0xff] }
 0x830   : > { %11680 = vmatprep.mubr.msk.f32.mxu1 %vm790_vm4, %v9000_v7  ;;  %12681 = vmatpush1.bf16.msra.mxu1 %v12680_v34  ;;  %v11721_v34 = vld [vmem:[%s20218_s9 + $0x2f8] sm:$0xff]  ;;  %v9481_v37 = vsel %vm1334_vm7, %v9449_v1, %v14201_v58  ;;  %v14612_v22 = vpack.i.bf16 %v10003_v42, %v19078_v14  ;;  %v9939_v58 = vld [vmem:[#allocation4 + $0x227] sm:$0xff] }
 0x831   : > { %14593 = vrot.lane.b32.xlu0 %v14592_v17, %s14838_s30  ;;  %v19250_v36 = vpop.permute.xlu1 %14308  ;;  %12682 = vmatprep.subr.bf16.mxu1 %v20380_v39  ;;  %v14602_v17 = vpack.i.bf16 %v9970_v0, %v9969_v45  ;;  %v19271_v7 = vld [vmem:[#allocation4 + $0xd2] sm:$0xff]  ;;  %v12686_v62 = vpack.c.bf16 %v11721_v34, %v11720_v57  ;;  %v14607_v0 = vpack.i.bf16 %v10002_v47, %v19071_v15  ;;  %v14211_v57 = vunpack.i.h.bf16 %v19031_v9  ;;  %v19299_v47 = vld [vmem:[#allocation4 + $0xea] sm:$0xff] }
 0x832   : > { %v9940_v34 = vld [vmem:[#allocation4 + $0x22f] sm:$0xff] }
 0x833   : > { %v19268_v32 = vpop.permute.xlu0 %14313  ;;  %9718 = vmatmul.mubr.f32.gmra.mrb[44].mxu1 %v9480_v33  ;;  %14598 = vrot.lane.b32.xlu1 %v14597_v21, %s14835_s13  ;;  %v19281_v33 = vld [vmem:[#allocation4 + $0xe6] sm:$0xff]  ;;  %v9972_v9 = vld [vmem:[#allocation4 + $0x230] sm:$0xff]  ;;  %v14617_v42 = vpack.i.bf16 %v9940_v34, %v9939_v58 }
 0x834   : > { %11681 = vmatprep.mubr.msk.f32.mxu1 %vm790_vm4, %v19271_v7  ;;  %12684 = vmatpush1.bf16.msra.mxu1 %v12683_v13  ;;  %v11722_v21 = vld [vmem:[%s20218_s9 + $0x300] sm:$0xff]  ;;  %v14215_v13 = vunpack.i.l.bf16 %v19035_v51  ;;  %v9418_v15 = vsel %vm790_vm4, %v19281_v33, %v14205_v12  ;;  %v19305_v12 = vld [vmem:[#allocation4 + $0xee] sm:$0xff] }
 0x835   : > { %14603 = vrot.lane.b32.xlu0 %v14602_v17, %s14836_s14  ;;  %v19277_v24 = vpop.permute.xlu1 %14318  ;;  %12685 = vmatprep.subr.bf16.mxu1 %v20380_v39  ;;  %v9450_v17 = vsel %vm1289_vm6, %v9418_v15, %v14210_v55  ;;  %20418 = vst [vmem:[#allocation12_spill] sm:$0xff] %v19305_v12  ;;  %v12689_v1 = vpack.c.bf16 %v11723_v49, %v11722_v21  ;;  %v9971_v15 = vld [vmem:[#allocation4 + $0x228] sm:$0xff] }
 0x836   : > { %v9419_v55 = vsel %vm790_vm4, %v19305_v12, %v14206_v10  ;;  %v9482_v49 = vsel %vm1334_vm7, %v9450_v17, %v14215_v13  ;;  %v10004_v10 = vld [vmem:[#allocation4 + $0x231] sm:$0xff]  ;;  %v14622_v3 = vpack.i.bf16 %v9972_v9, %v9971_v15  ;;  %v14221_v12 = vunpack.i.h.bf16 %v19048_v63  ;;  %v9941_v17 = vld [vmem:[#allocation4 + $0x247] sm:$0xff] }
 0x837   : > { %v19295_v45 = vpop.permute.xlu0 %14323  ;;  %9723 = vmatmul.mubr.f32.gmra.mrb[46].mxu1 %v9481_v37  ;;  %14608 = vrot.lane.b32.xlu1 %v14607_v0, %s14838_s30  ;;  %v14216_v37 = vunpack.i.h.bf16 %v19035_v51  ;;  %v11724_v0 = vld [vmem:[%s20218_s9 + $0x310] sm:$0xff]  ;;  %v14220_v51 = vunpack.i.l.bf16 %v19048_v63  ;;  %v9451_v34 = vsel %vm1289_vm6, %v9419_v55, %v14211_v57  ;;  %v14632_v63 = vpack.i.bf16 %v10004_v10, %v19117_v25 }
 0x838   : > { %v14326_v26 = vunpack.i.h.bf16 %v19295_v45  ;;  %11682 = vmatprep.mubr.msk.f32.mxu1 %vm790_vm4, %v19299_v47  ;;  %12687 = vmatpush1.bf16.msra.mxu1 %v12686_v62  ;;  %v11725_v62 = vld [vmem:[%s20218_s9 + $0x318] sm:$0xff]  ;;  %v9974_v57 = vld [vmem:[#allocation4 + $0x250] sm:$0xff]  ;;  %v14226_v10 = vunpack.i.h.bf16 %v19056_v61 }
 0x839   : > { %14613 = vrot.lane.b32.xlu0 %v14612_v22, %s14838_s30  ;;  %v19309_v14 = vpop.permute.xlu1 %14328  ;;  %12688 = vmatprep.subr.bf16.mxu1 %v20380_v39  ;;  %v8891_v22 = vld [vmem:[#allocation4 + $0x1ee] sm:$0xff] }
 0x83a   : > { %v14331_v21 = vunpack.i.h.bf16 %v19309_v14  ;;  %v9435_v28 = vsel %vm790_vm4, %v8891_v22, %v14326_v26  ;;  %v9942_v55 = vld [vmem:[#allocation4 + $0x24f] sm:$0xff]  ;;  %v9483_v26 = vsel %vm1334_vm7, %v9451_v34, %v14216_v37  ;;  %v19341_v22 = vld [vmem:[#allocation4 + $0x106] sm:$0xff]  ;;  %v14627_v37 = vpack.i.bf16 %v10005_v53, %v19124_v41 }
 0x83b   : > { %v19324_v58 = vpop.permute.xlu0 %14333  ;;  %9728 = vmatmul.mubr.f32.gmra.mrb[48].mxu1 %v9482_v49  ;;  %14618 = vrot.lane.b32.xlu1 %v14617_v42, %s14835_s13  ;;  %v12692_v42 = vpack.c.bf16 %v11725_v62, %v11724_v0  ;;  %v14225_v49 = vunpack.i.l.bf16 %v19056_v61  ;;  %v19355_v25 = vld [vmem:[#allocation4 + $0x10a] sm:$0xff]  ;;  %v14637_v62 = vpack.i.bf16 %v9942_v55, %v9941_v17  ;;  %v14231_v17 = vunpack.i.h.bf16 %v19064_v18 }
 0x83c   : > { %v14336_v13 = vunpack.i.h.bf16 %v19324_v58  ;;  %11683 = vmatprep.mubr.msk.f32.mxu1 %vm790_vm4, %v19327_v56  ;;  %v9467_v9 = vsel %vm1289_vm6, %v9435_v28, %v14331_v21  ;;  %12690 = vmatpush1.bf16.msra.mxu1 %v12689_v1  ;;  %v14230_v56 = vunpack.i.l.bf16 %v19064_v18  ;;  %v9420_v1 = vsel %vm790_vm4, %v19341_v22, %v14220_v51  ;;  %v19357_v21 = vld [vmem:[#allocation4 + $0x10e] sm:$0xff] }
 0x83d   : > { %14623 = vrot.lane.b32.xlu0 %v14622_v3, %s14836_s14  ;;  %v19337_v15 = vpop.permute.xlu1 %14338  ;;  %12691 = vmatprep.subr.bf16.mxu1 %v20380_v39  ;;  %v14642_v39 = vpack.i.bf16 %v9974_v57, %v9973_v16  ;;  %v8893_v34 = vld [vmem:[#allocation4 + $0x20e] sm:$0xff]  ;;  %v14236_v16 = vunpack.i.h.bf16 %v19074_v27  ;;  %v14235_v57 = vunpack.i.l.bf16 %v19074_v27  ;;  %v9452_v55 = vsel %vm1289_vm6, %v9420_v1, %v14225_v49 }
 0x83e   : > { %v14341_v28 = vunpack.i.h.bf16 %v19337_v15  ;;  %v19349_v0 = vsel %vm1334_vm7, %v9467_v9, %v14336_v13  ;;  %v9421_v13 = vsel %vm790_vm4, %v19357_v21, %v14221_v12  ;;  %v10007_v53 = vld [vmem:[#allocation4 + $0x269] sm:$0xff]  ;;  %v14240_v9 = vunpack.i.l.bf16 %v19081_v8  ;;  %v19379_v18 = vld [vmem:[#allocation4 + $0x112] sm:$0xff] }
 0x83f   : > { %v19351_v3 = vpop.permute.xlu0 %14343  ;;  %9733 = vmatmul.mubr.f32.gmra.mrb[50].mxu1 %v9483_v26  ;;  %14633 = vrot.lane.b32.xlu1 %v14632_v63, %s14838_s30  ;;  %v9484_v26 = vsel %vm1334_vm7, %v9452_v55, %v14230_v56  ;;  %v10006_v63 = vld [vmem:[#allocation4 + $0x251] sm:$0xff]  ;;  %20420 = vst [vmem:[#allocation10_spill] sm:$0xff] %v19379_v18  ;;  %v9453_v56 = vsel %vm1289_vm6, %v9421_v13, %v14226_v10 }
 0x840   : > { %v14346_v51 = vunpack.i.h.bf16 %v19351_v3  ;;  %11684 = vmatprep.mubr.msk.f32.mxu1 %vm790_vm4, %v19355_v25  ;;  %v9437_v41 = vsel %vm790_vm4, %v8893_v34, %v14341_v28  ;;  %12693 = vmatpush1.bf16.msra.mxu1 %v12692_v42  ;;  %v14241_v28 = vunpack.i.h.bf16 %v19081_v8  ;;  %v19385_v34 = vld [vmem:[#allocation4 + $0x126] sm:$0xff]  ;;  %v14245_v8 = vunpack.i.l.bf16 %v19097_v44  ;;  %v19396_v55 = vld [vmem:[#allocation4 + $0x12e] sm:$0xff] }
 0x841   : > { %14628 = vrot.lane.b32.xlu0 %v14627_v37, %s14838_s30  ;;  %v19370_v61 = vpop.permute.xlu1 %14348  ;;  %v14652_v37 = vpack.i.bf16 %v10007_v53, %v19175_v35  ;;  %v14647_v35 = vpack.i.bf16 %v10006_v63, %v19168_v6  ;;  %v9422_v53 = vsel %vm790_vm4, %v19385_v34, %v14235_v57  ;;  %v19403_v6 = vld [vmem:[#allocation4 + $0x12a] sm:$0xff] }
 0x842   : > { %v14351_v12 = vunpack.i.h.bf16 %v19370_v61  ;;  %v9469_v42 = vsel %vm1289_vm6, %v9437_v41, %v14346_v51  ;;  %v9485_v41 = vsel %vm1334_vm7, %v9453_v56, %v14231_v17 }
 0x843   : > { %v14354_v27 = vpop.permute.xlu0 %14353  ;;  %9738 = vmatmul.mubr.f32.gmra.mrb[52].mxu1 %v9484_v26  ;;  %14638 = vrot.lane.b32.xlu1 %v14637_v62, %s14835_s13  ;;  %v9454_v26 = vsel %vm1289_vm6, %v9422_v53, %v14240_v9  ;;  %v8897_v53 = vld [vmem:[#allocation4 + $0x24e] sm:$0xff] }
 0x844   : > { %v14356_v49 = vunpack.i.h.bf16 %v14354_v27  ;;  %v14355_v1 = vunpack.i.l.bf16 %v14354_v27  ;;  %11685 = vmatprep.mubr.msk.f32.mxu1 %vm790_vm4, %v19379_v18  ;;  %v19388_v51 = vsel %vm1334_vm7, %v9469_v42, %v14351_v12  ;;  %v9423_v12 = vsel %vm790_vm4, %v19396_v55, %v14236_v16  ;;  %v8894_v42 = vld [vmem:[#allocation4 + $0x226] sm:$0xff]  ;;  %v8895_v27 = vld [vmem:[#allocation4 + $0x22e] sm:$0xff] }
 0x845   : > { %14643 = vrot.lane.b32.xlu0 %v14642_v39, %s14836_s14  ;;  %v14359_v62 = vpop.permute.xlu1 %14358  ;;  %v14246_v39 = vunpack.i.h.bf16 %v19097_v44  ;;  %v9455_v57 = vsel %vm1289_vm6, %v9423_v12, %v14241_v28  ;;  %v9943_v16 = vld [vmem:[#allocation4 + $0x267] sm:$0xff]  ;;  %v9486_v28 = vsel %vm1334_vm7, %v9454_v26, %v14245_v8 }
 0x846   : > { %v14361_v10 = vunpack.i.h.bf16 %v14359_v62  ;;  %v14360_v13 = vunpack.i.l.bf16 %v14359_v62  ;;  %v9438_v17 = vsel %vm790_vm4, %v8894_v42, %v14355_v1  ;;  %v9439_v63 = vsel %vm790_vm4, %v8895_v27, %v14356_v49  ;;  %v8896_v1 = vld [vmem:[#allocation4 + $0x246] sm:$0xff] }
 0x847   : > { %v14364_v18 = vpop.permute.xlu0 %14363  ;;  %9743 = vmatmul.mubr.f32.gmra.mrb[54].mxu1 %v9485_v41  ;;  %14648 = vrot.lane.b32.xlu1 %v14647_v35, %s14838_s30  ;;  %v14250_v41 = vunpack.i.l.bf16 %v19105_v40  ;;  %v9487_v8 = vsel %vm1334_vm7, %v9455_v57, %v14246_v39 }
 0x848   : > { %v14366_v9 = vunpack.i.h.bf16 %v14364_v18  ;;  %v14365_v56 = vunpack.i.l.bf16 %v14364_v18  ;;  %11686 = vmatprep.mubr.msk.f32.mxu1 %vm790_vm4, %v19403_v6  ;;  %v9470_v44 = vsel %vm1289_vm6, %v9438_v17, %v14360_v13  ;;  %v9471_v62 = vsel %vm1289_vm6, %v9439_v63, %v14361_v10  ;;  %v9975_v18 = vld [vmem:[#allocation4 + $0x268] sm:$0xff] }
 0x849   : > { %14653 = vrot.lane.b32.xlu0 %v14652_v37, %s14838_s30  ;;  %v14369_v35 = vpop.permute.xlu1 %14368  ;;  %v14251_v10 = vunpack.i.h.bf16 %v19105_v40  ;;  %v19423_v37 = vld [vmem:[#allocation4 + $0x132] sm:$0xff]  ;;  %v19428_v63 = vld [vmem:[#allocation4 + $0x146] sm:$0xff]  ;;  %v14256_v40 = vunpack.i.h.bf16 %v19119_v48 }
 0x84a   : > { %v14371_v49 = vunpack.i.h.bf16 %v14369_v35  ;;  %v14370_v12 = vunpack.i.l.bf16 %v14369_v35  ;;  %v19416_v42 = vsel %vm1334_vm7, %v9470_v44, %v14365_v56  ;;  %v19419_v27 = vsel %vm1334_vm7, %v9471_v62, %v14366_v9  ;;  %20421 = vst [vmem:[#allocation11_spill] sm:$0xff] %v19428_v63 }
 0x84b   : > { %v14374_v13 = vpop.permute.xlu0 %14373  ;;  %9748 = vmatmul.mubr.f32.gmra.mrb[56].mxu1 %v9486_v28  ;;  %10133 = vrot.lane.b32.xlu1 %v9943_v16, %s14835_s13  ;;  %v14255_v44 = vunpack.i.l.bf16 %v19119_v48  ;;  %v14260_v16 = vunpack.i.l.bf16 %v19128_v31  ;;  %v9424_v57 = vsel %vm790_vm4, %v19428_v63, %v14250_v41  ;;  %v19438_v28 = vld [vmem:[#allocation4 + $0x14e] sm:$0xff] }
 0x84c   : > { %v14376_v26 = vunpack.i.h.bf16 %v14374_v13  ;;  %v14375_v17 = vunpack.i.l.bf16 %v14374_v13  ;;  %11687 = vmatprep.mubr.msk.f32.mxu1 %vm790_vm4, %v19423_v37  ;;  %v9440_v9 = vsel %vm790_vm4, %v8896_v1, %v14370_v12  ;;  %v9441_v56 = vsel %vm790_vm4, %v8897_v53, %v14371_v49  ;;  %20422 = vst [vmem:[#allocation16_spill] sm:$0xff] %v19438_v28  ;;  %v9944_v49 = vld [vmem:[#allocation4 + $0x26f] sm:$0xff] }
 0x84d   : > { %10261 = vrot.lane.b32.xlu0 %v9975_v18, %s14836_s14  ;;  %v14379_v39 = vpop.permute.xlu1 %14378  ;;  %v14265_v12 = vunpack.i.l.bf16 %v19146_v23  ;;  %v19445_v18 = vld [vmem:[#allocation4 + $0x14a] sm:$0xff]  ;;  %v9425_v41 = vsel %vm790_vm4, %v19438_v28, %v14251_v10  ;;  %v9456_v63 = vsel %vm1289_vm6, %v9424_v57, %v14255_v44 }
 0x84e   : > { %v14381_v62 = vunpack.i.h.bf16 %v14379_v39  ;;  %v14380_v35 = vunpack.i.l.bf16 %v14379_v39  ;;  %v9472_v1 = vsel %vm1289_vm6, %v9440_v9, %v14375_v17  ;;  %v9473_v53 = vsel %vm1289_vm6, %v9441_v56, %v14376_v26  ;;  %20423 = vst [vmem:[#allocation17_spill] sm:$0xff] %v19445_v18 }
 0x84f   : > { %v14384_v48 = vpop.permute.xlu0 %14383  ;;  %9753 = vmatmul.mubr.f32.gmra.mrb[58].mxu1 %v9487_v8  ;;  %6333 = vrot.lane.b32.xlu1 %v19216_v38, %s14838_s30  ;;  %v9976_v8 = vld [vmem:[#allocation4 + $0x270] sm:$0xff]  ;;  %v14261_v9 = vunpack.i.h.bf16 %v19128_v31  ;;  %v14270_v38 = vunpack.i.l.bf16 %v19154_v60  ;;  %v9488_v28 = vsel %vm1334_vm7, %v9456_v63, %v14260_v16 }
 0x850   : > { %v14386_v13 = vunpack.i.h.bf16 %v14384_v48  ;;  %v14385_v39 = vunpack.i.l.bf16 %v14384_v48  ;;  %11688 = vmatprep.mubr.msk.f32.mxu1 %vm790_vm4, %v19445_v18  ;;  %v19452_v26 = vsel %vm1334_vm7, %v9472_v1, %v14380_v35  ;;  %v19455_v17 = vsel %vm1334_vm7, %v9473_v53, %v14381_v62  ;;  %v19463_v1 = vld [vmem:[#allocation4 + $0x166] sm:$0xff]  ;;  %v9882_v62 = vld [vmem:[#allocation4 + $0x8e] sm:$0xff] }
 0x851   : > { %20424 = vst [vmem:[#allocation18_spill] sm:$0xff] %v19455_v17  ;;  %v14389_v56 = vpop.permute.xlu1 %14388  ;;  %10135 = vrot.lane.b32.xlu0 %v9944_v49, %s14835_s13  ;;  %v9457_v35 = vsel %vm1289_vm6, %v9425_v41, %v14256_v40  ;;  %v10008_v53 = vld [vmem:[#allocation4 + $0x271] sm:$0xff]  ;;  %v9426_v44 = vsel %vm790_vm4, %v19463_v1, %v14265_v12  ;;  %v14275_v49 = vunpack.i.l.bf16 %v19171_v20 }
 0x852   : > { %v14391_v10 = vunpack.i.h.bf16 %v14389_v56  ;;  %v14390_v48 = vunpack.i.l.bf16 %v14389_v56  ;;  %v10425_v31 = vsel %vm790_vm4, %v19132_v46, %v14385_v39  ;;  %v19467_v18 = vld [vmem:[#allocation4 + $0x152] sm:$0xff]  ;;  %v10426_v57 = vsel %vm790_vm4, %v9882_v62, %v14386_v13  ;;  %v19490_v62 = vld [vmem:[#allocation4 + $0x16a] sm:$0xff] }
 0x853   : > { %v14394_v17 = vpop.permute.xlu0 %14393  ;;  %9758 = vmatmul.mubr.f32.gmra.mrb[60].mxu1 %v9488_v28  ;;  %10263 = vrot.lane.b32.xlu1 %v9976_v8, %s14836_s14  ;;  %v14266_v28 = vunpack.i.h.bf16 %v19146_v23  ;;  %v9489_v12 = vsel %vm1334_vm7, %v9457_v35, %v14261_v9  ;;  %v9458_v13 = vsel %vm1289_vm6, %v9426_v44, %v14270_v38  ;;  %v14280_v23 = vunpack.i.l.bf16 %v19178_v59  ;;  %v9883_v9 = vld [vmem:[#allocation4 + $0xa6] sm:$0xff]  ;;  %v9884_v38 = vld [vmem:[#allocation4 + $0xae] sm:$0xff] }
 0x854   : > { %v14396_v63 = vunpack.i.h.bf16 %v14394_v17  ;;  %v14395_v40 = vunpack.i.l.bf16 %v14394_v17  ;;  %v10457_v16 = vsel %vm1289_vm6, %v10425_v31, %v14390_v48  ;;  %11689 = vmatprep.mubr.msk.f32.mxu1 %vm790_vm4, %v19467_v18  ;;  %v10458_v46 = vsel %vm1289_vm6, %v10426_v57, %v14391_v10  ;;  %v19494_v31 = vld [vmem:[#allocation4 + $0x16e] sm:$0xff] }
 0x855   : > { %v14399_v41 = vpop.permute.xlu1 %14398  ;;  %10391 = vrot.lane.b32.xlu0 %v10008_v53, %s14838_s30  ;;  %v14271_v10 = vunpack.i.h.bf16 %v19154_v60  ;;  %v14276_v60 = vunpack.i.h.bf16 %v19171_v20  ;;  %v19508_v20 = vld [vmem:[#allocation4 + $0x172] sm:$0xff]  ;;  %s20080_s30 = scalar_lea.vmem %s20220_s11, %s11792_s28 }
 0x856   : > { %v14401_v39 = vunpack.i.h.bf16 %v14399_v41  ;;  %v14400_v17 = vunpack.i.l.bf16 %v14399_v41  ;;  %v19483_v8 = vsel %vm1334_vm7, %v10457_v16, %v14395_v40  ;;  %v19486_v56 = vsel %vm1334_vm7, %v10458_v46, %v14396_v63  ;;  %20426 = vst [vmem:[#allocation19_spill] sm:$0xff] %v19508_v20 }
 0x857   : > { %20425 = vst [vmem:[#allocation20_spill] sm:$0xff] %v19486_v56  ;;  %v14404_v48 = vpop.permute.xlu0 %14403  ;;  %9763 = vmatmul.mubr.f32.gmra.mrb[62].mxu1 %v9489_v12  ;;  %v9490_v40 = vsel %vm1334_vm7, %v9458_v13, %v14275_v49  ;;  %v9427_v16 = vsel %vm790_vm4, %v19494_v31, %v14266_v28  ;;  %v19502_v12 = vld [vmem:[#allocation4 + $0x186] sm:$0xff] }
 0x858   : > { %v14406_v35 = vunpack.i.h.bf16 %v14404_v48  ;;  %v14405_v53 = vunpack.i.l.bf16 %v14404_v48  ;;  %11690 = vmatprep.mubr.msk.f32.mxu1 %vm790_vm4, %v19490_v62  ;;  %v10427_v44 = vsel %vm790_vm4, %v9883_v9, %v14400_v17  ;;  %v10428_v57 = vsel %vm790_vm4, %v9884_v38, %v14401_v39 }
 0x859   : > { %v14409_v63 = vpop.permute.xlu1 %14408  ;;  %v14285_v17 = vunpack.i.l.bf16 %v19195_v11  ;;  %v14281_v39 = vunpack.i.h.bf16 %v19178_v59  ;;  %v9459_v49 = vsel %vm1289_vm6, %v9427_v16, %v14271_v10  ;;  %v9428_v28 = vsel %vm790_vm4, %v19502_v12, %v14280_v23  ;;  %v9885_v16 = vld [vmem:[#allocation4 + $0xc6] sm:$0xff] }
 0x85a   : > { %v14411_v46 = vunpack.i.h.bf16 %v14409_v63  ;;  %v14410_v41 = vunpack.i.l.bf16 %v14409_v63  ;;  %v10459_v48 = vsel %vm1289_vm6, %v10427_v44, %v14405_v53  ;;  %v10460_v56 = vsel %vm1289_vm6, %v10428_v57, %v14406_v35 }
 0x85b   : > { %v14414_v9 = vpop.permute.xlu0 %14413  ;;  %9768 = vmatmul.mubr.f32.gmra.mrb[64].mxu1 %v9490_v40  ;;  %v14290_v59 = vunpack.i.l.bf16 %v19203_v50  ;;  %v14286_v57 = vunpack.i.h.bf16 %v19195_v11  ;;  %v9491_v23 = vsel %vm1334_vm7, %v9459_v49, %v14276_v60  ;;  %v19524_v40 = vld [vmem:[#allocation4 + $0x18e] sm:$0xff] }
 0x85c   : > { %v14416_v13 = vunpack.i.h.bf16 %v14414_v9  ;;  %v14415_v38 = vunpack.i.l.bf16 %v14414_v9  ;;  %11691 = vmatprep.mubr.msk.f32.mxu1 %vm790_vm4, %v19508_v20  ;;  %v19516_v35 = vsel %vm1334_vm7, %v10459_v48, %v14410_v41  ;;  %v19519_v53 = vsel %vm1334_vm7, %v10460_v56, %v14411_v46  ;;  %v9886_v9 = vld [vmem:[#allocation4 + $0xce] sm:$0xff] }
 0x85d   : > { %20427 = vst [vmem:[#allocation26_spill] sm:$0xff] %v19516_v35  ;;  %20428 = vst [vmem:[#allocation21_spill] sm:$0xff] %v19519_v53  ;;  %v14419_v44 = vpop.permute.xlu1 %14418  ;;  %v19526_v41 = vld [vmem:[#allocation4 + $0x18a] sm:$0xff]  ;;  %v9460_v56 = vsel %vm1289_vm6, %v9428_v28, %v14285_v17  ;;  %v9429_v46 = vsel %vm790_vm4, %v19524_v40, %v14281_v39  ;;  %v14291_v17 = vunpack.i.h.bf16 %v19203_v50 }
 0x85e   : > { %v14421_v10 = vunpack.i.h.bf16 %v14419_v44  ;;  %v14420_v63 = vunpack.i.l.bf16 %v14419_v44  ;;  %v10429_v48 = vsel %vm790_vm4, %v9885_v16, %v14415_v38  ;;  %v10430_v11 = vsel %vm790_vm4, %v9886_v9, %v14416_v13  ;;  %v19548_v9 = vld [vmem:[#allocation4 + $0x192] sm:$0xff] }
 0x85f   : > { %v14424_v20 = vpop.permute.xlu0 %14423  ;;  %9773 = vmatmul.mubr.f32.gmra.mrb[66].mxu1 %v9491_v23  ;;  %v14295_v23 = vunpack.i.l.bf16 %v19218_v30  ;;  %v9492_v39 = vsel %vm1334_vm7, %v9460_v56, %v14290_v59  ;;  %v14296_v16 = vunpack.i.h.bf16 %v19218_v30  ;;  %20431 = vst [vmem:[#allocation23_spill] sm:$0xff] %v19548_v9  ;;  %v9461_v50 = vsel %vm1289_vm6, %v9429_v46, %v14286_v57  ;;  %v9888_v59 = vld [vmem:[#allocation4 + $0xee] sm:$0xff] }
 0x860   : > { %v14426_v44 = vunpack.i.h.bf16 %v14424_v20  ;;  %v14425_v53 = vunpack.i.l.bf16 %v14424_v20  ;;  %11692 = vmatprep.mubr.msk.f32.mxu1 %vm790_vm4, %v19526_v41  ;;  %v10461_v60 = vsel %vm1289_vm6, %v10429_v48, %v14420_v63  ;;  %v10462_v49 = vsel %vm1289_vm6, %v10430_v11, %v14421_v10  ;;  %v9887_v48 = vld [vmem:[#allocation4 + $0xe6] sm:$0xff] }
 0x861   : > { %v14429_v28 = vpop.permute.xlu1 %14428  ;;  %v14300_v63 = vunpack.i.l.bf16 %v19225_v4  ;;  %v9493_v57 = vsel %vm1334_vm7, %v9461_v50, %v14291_v17 }
 0x862   : > { %v14431_v35 = vunpack.i.h.bf16 %v14429_v28  ;;  %v14430_v38 = vunpack.i.l.bf16 %v14429_v28  ;;  %v19541_v13 = vsel %vm1334_vm7, %v10461_v60, %v14425_v53  ;;  %v19544_v20 = vsel %vm1334_vm7, %v10462_v49, %v14426_v44  ;;  %v19553_v53 = vld [vmem:[#allocation4 + $0x1a6] sm:$0xff] }
 0x863   : > { %20429 = vst [vmem:[#allocation28_spill] sm:$0xff] %v19541_v13  ;;  %20430 = vst [vmem:[#allocation22_spill] sm:$0xff] %v19544_v20  ;;  %v14434_v10 = vpop.permute.xlu0 %14433  ;;  %9778 = vmatmul.mubr.f32.gmra.mrb[68].mxu1 %v9492_v39  ;;  %v14305_v60 = vunpack.i.l.bf16 %v19243_v52  ;;  %v14301_v49 = vunpack.i.h.bf16 %v19225_v4  ;;  %v9430_v46 = vsel %vm790_vm4, %v19553_v53, %v14295_v23  ;;  %v19562_v20 = vld [vmem:[#allocation4 + $0x1ae] sm:$0xff] }
 0x864   : > { %v14436_v56 = vunpack.i.h.bf16 %v14434_v10  ;;  %v14435_v11 = vunpack.i.l.bf16 %v14434_v10  ;;  %11693 = vmatprep.mubr.msk.f32.mxu1 %vm790_vm4, %v19548_v9  ;;  %v10431_v44 = vsel %vm790_vm4, %v9887_v48, %v14430_v38  ;;  %v10432_v30 = vsel %vm790_vm4, %v9888_v59, %v14431_v35  ;;  %v19567_v59 = vld [vmem:[#allocation4 + $0x1aa] sm:$0xff] }
 0x865   : > { %v14439_v28 = vpop.permute.xlu1 %14438  ;;  %v14310_v35 = vunpack.i.l.bf16 %v19250_v36  ;;  %20432 = vst [vmem:[#allocation14_spill] sm:$0xff] %v19567_v59  ;;  %v9462_v4 = vsel %vm1289_vm6, %v9430_v46, %v14300_v63  ;;  %v9431_v17 = vsel %vm790_vm4, %v19562_v20, %v14296_v16  ;;  %v14311_v63 = vunpack.i.h.bf16 %v19250_v36  ;;  %v9890_v9 = vld [vmem:[#allocation4 + $0x10e] sm:$0xff] }
 0x866   : > { %v14441_v39 = vunpack.i.h.bf16 %v14439_v28  ;;  %v14440_v10 = vunpack.i.l.bf16 %v14439_v28  ;;  %v10463_v13 = vsel %vm1289_vm6, %v10431_v44, %v14435_v11  ;;  %v10464_v38 = vsel %vm1289_vm6, %v10432_v30, %v14436_v56 }
 0x867   : > { %v14444_v48 = vpop.permute.xlu0 %14443  ;;  %9783 = vmatmul.mubr.f32.gmra.mrb[70].mxu1 %v9493_v57  ;;  %v14306_v44 = vunpack.i.h.bf16 %v19243_v52  ;;  %v9463_v28 = vsel %vm1289_vm6, %v9431_v17, %v14301_v49  ;;  %v9494_v46 = vsel %vm1334_vm7, %v9462_v4, %v14305_v60 }
 0x868   : > { %v14446_v23 = vunpack.i.h.bf16 %v14444_v48  ;;  %v14445_v50 = vunpack.i.l.bf16 %v14444_v48  ;;  %11694 = vmatprep.mubr.msk.f32.mxu1 %vm790_vm4, %v19567_v59  ;;  %v19575_v11 = vsel %vm1334_vm7, %v10463_v13, %v14440_v10  ;;  %v19578_v56 = vsel %vm1334_vm7, %v10464_v38, %v14441_v39  ;;  %v19584_v48 = vld [vmem:[#allocation4 + $0x1c6] sm:$0xff]  ;;  %v19587_v39 = vld [vmem:[#allocation4 + $0x1b2] sm:$0xff] }
 0x869   : > { %20433 = vst [vmem:[#allocation49_spill] sm:$0xff] %v19575_v11  ;;  %20434 = vst [vmem:[#allocation50_spill] sm:$0xff] %v19578_v56  ;;  %v14449_v30 = vpop.permute.xlu1 %14448  ;;  %v9889_v59 = vld [vmem:[#allocation4 + $0x106] sm:$0xff]  ;;  %v14315_v13 = vunpack.i.l.bf16 %v19268_v32  ;;  %v9432_v52 = vsel %vm790_vm4, %v19584_v48, %v14310_v35  ;;  %v9495_v35 = vsel %vm1334_vm7, %v9463_v28, %v14306_v44 }
 0x86a   : > { %v14451_v57 = vunpack.i.h.bf16 %v14449_v30  ;;  %v14450_v16 = vunpack.i.l.bf16 %v14449_v30  ;;  %20435 = vst [vmem:[#allocation51_spill] sm:$0xff] %v19587_v39  ;;  %v10433_v49 = vsel %vm790_vm4, %v9889_v59, %v14445_v50  ;;  %v10434_v36 = vsel %vm790_vm4, %v9890_v9, %v14446_v23  ;;  %v19600_v50 = vld [vmem:[#allocation4 + $0x1ce] sm:$0xff]  ;;  %v9891_v28 = vld [vmem:[#allocation4 + $0x126] sm:$0xff] }
 0x86b   : > { %v14454_v10 = vpop.permute.xlu0 %14453  ;;  %9788 = vmatmul.mubr.f32.gmra.mrb[72].mxu1 %v9494_v46  ;;  %v13640_v30 = vunpack.i.l.bf16 %v18189_v29  ;;  %v14320_v46 = vunpack.i.l.bf16 %v19277_v24  ;;  %v9464_v44 = vsel %vm1289_vm6, %v9432_v52, %v14315_v13  ;;  %v14330_v13 = vunpack.i.l.bf16 %v19309_v14 }
 0x86c   : > { %v14456_v38 = vunpack.i.h.bf16 %v14454_v10  ;;  %v14455_v17 = vunpack.i.l.bf16 %v14454_v10  ;;  %11695 = vmatprep.mubr.msk.f32.mxu1 %vm790_vm4, %v19587_v39  ;;  %v10465_v60 = vsel %vm1289_vm6, %v10433_v49, %v14450_v16  ;;  %v10466_v4 = vsel %vm1289_vm6, %v10434_v36, %v14451_v57  ;;  %v19610_v49 = vld [vmem:[#allocation4 + $0x1ca] sm:$0xff] }
 0x86d   : > { %v14459_v56 = vpop.permute.xlu1 %14458  ;;  %v13645_v16 = vunpack.i.l.bf16 %v18204_v19  ;;  %v14316_v57 = vunpack.i.h.bf16 %v19268_v32  ;;  %20438 = vst [vmem:[#allocation54_spill] sm:$0xff] %v19610_v49  ;;  %v9892_v36 = vld [vmem:[#allocation4 + $0x12e] sm:$0xff] }
 0x86e   : > { %v14461_v11 = vunpack.i.h.bf16 %v14459_v56  ;;  %v14460_v59 = vunpack.i.l.bf16 %v14459_v56  ;;  %v19603_v9 = vsel %vm1334_vm7, %v10465_v60, %v14455_v17  ;;  %v19606_v23 = vsel %vm1334_vm7, %v10466_v4, %v14456_v38 }
 0x86f   : > { %20436 = vst [vmem:[#allocation52_spill] sm:$0xff] %v19603_v9  ;;  %20437 = vst [vmem:[#allocation53_spill] sm:$0xff] %v19606_v23  ;;  %v14464_v10 = vpop.permute.xlu0 %14463  ;;  %9793 = vmatmul.mubr.f32.gmra.mrb[74].mxu1 %v9495_v35  ;;  %v9433_v56 = vsel %vm790_vm4, %v19600_v50, %v14311_v63  ;;  %v14325_v4 = vunpack.i.l.bf16 %v19295_v45  ;;  %v14321_v35 = vunpack.i.h.bf16 %v19277_v24  ;;  %v9496_v63 = vsel %vm1334_vm7, %v9464_v44, %v14320_v46  ;;  %v19633_v46 = vld [vmem:[#allocation4 + $0x1e6] sm:$0xff] }
 0x870   : > { %v14466_v17 = vunpack.i.h.bf16 %v14464_v10  ;;  %v14465_v60 = vunpack.i.l.bf16 %v14464_v10  ;;  %11696 = vmatprep.mubr.msk.f32.mxu1 %vm790_vm4, %v19610_v49  ;;  %v10435_v38 = vsel %vm790_vm4, %v9891_v28, %v14460_v59  ;;  %v10436_v32 = vsel %vm790_vm4, %v9892_v36, %v14461_v11  ;;  %v19626_v11 = vld [vmem:[#allocation4 + $0x1d2] sm:$0xff] }
 0x871   : > { %v14469_v52 = vpop.permute.xlu1 %14468  ;;  %v13641_v49 = vunpack.i.h.bf16 %v18189_v29  ;;  %v6379_v24 = vsel %vm790_vm4, %v19229_v43, %v13640_v30  ;;  %v9465_v14 = vsel %vm1289_vm6, %v9433_v56, %v14316_v57  ;;  %v14335_v28 = vunpack.i.l.bf16 %v19324_v58  ;;  %v19650_v58 = vld [vmem:[#allocation4 + $0x1ea] sm:$0xff] }
 0x872   : > { %v14471_v23 = vunpack.i.h.bf16 %v14469_v52  ;;  %v14470_v9 = vunpack.i.l.bf16 %v14469_v52  ;;  %v10467_v10 = vsel %vm1289_vm6, %v10435_v38, %v14465_v60  ;;  %v10468_v39 = vsel %vm1289_vm6, %v10436_v32, %v14466_v17  ;;  %v9893_v32 = vld [vmem:[#allocation4 + $0x146] sm:$0xff] }
 0x873   : > { %v14474_v59 = vpop.permute.xlu0 %14473  ;;  %9798 = vmatmul.mubr.f32.gmra.mrb[76].mxu1 %v9496_v63  ;;  %v6411_v36 = vsel %vm1289_vm6, %v6379_v24, %v13645_v16  ;;  %v9497_v43 = vsel %vm1334_vm7, %v9465_v14, %v14321_v35  ;;  %v9434_v30 = vsel %vm790_vm4, %v19633_v46, %v14325_v4  ;;  %v13646_v38 = vunpack.i.h.bf16 %v18204_v19  ;;  %v9894_v4 = vld [vmem:[#allocation4 + $0x14e] sm:$0xff] }
 0x874   : > { %v14475_v45 = vunpack.i.l.bf16 %v14474_v59  ;;  %11697 = vmatprep.mubr.msk.f32.mxu1 %vm790_vm4, %v19626_v11  ;;  %v19636_v44 = vsel %vm1334_vm7, %v10467_v10, %v14470_v9  ;;  %v19639_v29 = vsel %vm1334_vm7, %v10468_v39, %v14471_v23  ;;  %v9466_v9 = vsel %vm1289_vm6, %v9434_v30, %v14330_v13  ;;  %v19667_v30 = vld [vmem:[#allocation4 + $0x1f2] sm:$0xff] }
 0x875   : > { %v14479_v17 = vpop.permute.xlu1 %14478  ;;  %v14340_v39 = vunpack.i.l.bf16 %v19337_v15  ;;  %v6380_v16 = vsel %vm790_vm4, %v19253_v2, %v13641_v49  ;;  %v13665_v13 = vunpack.i.l.bf16 %v18216_v5  ;;  %v13670_v63 = vunpack.i.l.bf16 %v18228_v54 }
 0x876   : > { %v6443_v57 = vsel %vm1334_vm7, %v6411_v36, %v14475_v45  ;;  %v14481_v56 = vunpack.i.h.bf16 %v14479_v17  ;;  %v14480_v60 = vunpack.i.l.bf16 %v14479_v17  ;;  %v14476_v10 = vunpack.i.h.bf16 %v14474_v59  ;;  %v19670_v59 = vld [vmem:[#allocation4 + $0x206] sm:$0xff] }
 0x877   : > { %v14484_v23 = vpop.permute.xlu0 %14483  ;;  %6704 = vmatmul.mubr.f32.gmra.mrb[172].mxu0 %v6443_v57  ;;  %9803 = vmatmul.mubr.f32.gmra.mrb[78].mxu1 %v9497_v43  ;;  %v9498_v49 = vsel %vm1334_vm7, %v9466_v9, %v14335_v28  ;;  %v13666_v36 = vunpack.i.h.bf16 %v18216_v5  ;;  %v14345_v17 = vunpack.i.l.bf16 %v19351_v3  ;;  %v6412_v57 = vsel %vm1289_vm6, %v6380_v16, %v13646_v38 }
 0x878   : > { %v14486_v35 = vunpack.i.h.bf16 %v14484_v23  ;;  %v14485_v52 = vunpack.i.l.bf16 %v14484_v23  ;;  %11531 = vmatprep.mubr.msk.f32.mxu0 %vm790_vm4, %v19271_v7  ;;  %11698 = vmatprep.mubr.msk.f32.mxu1 %vm790_vm4, %v19650_v58  ;;  %v10437_v19 = vsel %vm790_vm4, %v9893_v32, %v14480_v60  ;;  %v10438_v15 = vsel %vm790_vm4, %v9894_v4, %v14481_v56 }
 0x879   : > { %v14489_v2 = vpop.permute.xlu1 %14488  ;;  %v9436_v5 = vsel %vm790_vm4, %v19670_v59, %v14340_v39  ;;  %v14350_v9 = vunpack.i.l.bf16 %v19370_v61  ;;  %v6381_v23 = vsel %vm790_vm4, %v19281_v33, %v13665_v13  ;;  %v9895_v13 = vld [vmem:[#allocation4 + $0x166] sm:$0xff] }
 0x87a   : > { %v14491_v24 = vunpack.i.h.bf16 %v14489_v2  ;;  %v14490_v45 = vunpack.i.l.bf16 %v14489_v2  ;;  %v10469_v14 = vsel %vm1289_vm6, %v10437_v19, %v14485_v52  ;;  %v10470_v7 = vsel %vm1289_vm6, %v10438_v15, %v14486_v35  ;;  %v19691_v52 = vld [vmem:[#allocation4 + $0x20a] sm:$0xff] }
 0x87b   : > { %v14494_v43 = vpop.permute.xlu0 %14493  ;;  %9808 = vmatmul.mubr.f32.gmra.mrb[80].mxu1 %v9498_v49  ;;  %v19673_v28 = vsel %vm1334_vm7, %v10469_v14, %v14476_v10  ;;  %v6413_v4 = vsel %vm1289_vm6, %v6381_v23, %v13670_v63  ;;  %v13671_v35 = vunpack.i.h.bf16 %v18228_v54  ;;  %v9468_v19 = vsel %vm1289_vm6, %v9436_v5, %v14345_v17  ;;  %v20439_v15 = vld [vmem:[#allocation12_spill] sm:$0xff]  ;;  %v20440_v63 = vld [vmem:[#allocation25_spill] sm:$0xff] }
 0x87c   : > { %v14495_v56 = vunpack.i.l.bf16 %v14494_v43  ;;  %11699 = vmatprep.mubr.msk.f32.mxu1 %vm790_vm4, %v19667_v30  ;;  %v6444_v60 = vsel %vm1334_vm7, %v6412_v57, %v14490_v45  ;;  %v19681_v3 = vsel %vm1334_vm7, %v10470_v7, %v14491_v24  ;;  %v6382_v33 = vsel %vm790_vm4, %v20439_v15, %v13666_v36  ;;  %v9896_v10 = vld [vmem:[#allocation4 + $0x16e] sm:$0xff] }
 0x87d   : > { %v14499_v38 = vpop.permute.xlu1 %14498  ;;  %6709 = vmatmul.mubr.f32.gmra.mrb[174].mxu0 %v6444_v60  ;;  %v13690_v49 = vunpack.i.l.bf16 %v20440_v63  ;;  %v20441_v24 = vld [vmem:[#allocation36_spill] sm:$0xff]  ;;  %v14496_v14 = vunpack.i.h.bf16 %v14494_v43  ;;  %v9500_v36 = vsel %vm1334_vm7, %v9468_v19, %v14350_v9 }
 0x87e   : > { %v14501_v16 = vunpack.i.h.bf16 %v14499_v38  ;;  %v14500_v32 = vunpack.i.l.bf16 %v14499_v38  ;;  %11532 = vmatprep.mubr.msk.f32.mxu0 %vm790_vm4, %v19299_v47  ;;  %v6445_v61 = vsel %vm1334_vm7, %v6413_v4, %v14495_v56  ;;  %v13695_v45 = vunpack.i.l.bf16 %v20441_v24  ;;  %v20442_v56 = vld [vmem:[#allocation13_spill] sm:$0xff] }
 0x87f   : > { %v14504_v39 = vpop.permute.xlu0 %14503  ;;  %9813 = vmatmul.mubr.f32.gmra.mrb[82].mxu1 %v19349_v0  ;;  %v19708_v23 = vld [vmem:[#allocation4 + $0x212] sm:$0xff]  ;;  %v6383_v19 = vsel %vm790_vm4, %v19341_v22, %v13690_v49 }
 0x880   : > { %v14506_v2 = vunpack.i.h.bf16 %v14504_v39  ;;  %v14505_v47 = vunpack.i.l.bf16 %v14504_v39  ;;  %11700 = vmatprep.mubr.msk.f32.mxu1 %vm790_vm4, %v19691_v52  ;;  %v10439_v54 = vsel %vm790_vm4, %v9895_v13, %v14500_v32  ;;  %v10440_v0 = vsel %vm790_vm4, %v9896_v10, %v14501_v16 }
 0x881   : > { %v14509_v7 = vpop.permute.xlu1 %14508  ;;  %6714 = vmatmul.mubr.f32.gmra.mrb[176].mxu0 %v6445_v61  ;;  %v6414_v16 = vsel %vm1289_vm6, %v6382_v33, %v13671_v35  ;;  %v13691_v39 = vunpack.i.h.bf16 %v20440_v63  ;;  %v6415_v33 = vsel %vm1289_vm6, %v6383_v19, %v13695_v45  ;;  %v13696_v13 = vunpack.i.h.bf16 %v20441_v24  ;;  %v20443_v63 = vld [vmem:[#allocation32_spill] sm:$0xff]  ;;  %v20444_v24 = vld [vmem:[#allocation34_spill] sm:$0xff] }
 0x882   : > { %v14511_v17 = vunpack.i.h.bf16 %v14509_v7  ;;  %v14510_v57 = vunpack.i.l.bf16 %v14509_v7  ;;  %11533 = vmatprep.mubr.msk.f32.mxu0 %vm790_vm4, %v20442_v56  ;;  %v10471_v60 = vsel %vm1289_vm6, %v10439_v54, %v14505_v47  ;;  %v10472_v5 = vsel %vm1289_vm6, %v10440_v0, %v14506_v2  ;;  %v19728_v2 = vld [vmem:[#allocation4 + $0x22a] sm:$0xff] }
 0x883   : > { %v14514_v38 = vpop.permute.xlu0 %14513  ;;  %9818 = vmatmul.mubr.f32.gmra.mrb[84].mxu1 %v9500_v36  ;;  %v19712_v43 = vsel %vm1334_vm7, %v10471_v60, %v14496_v14  ;;  %v13715_v49 = vunpack.i.l.bf16 %v20443_v63  ;;  %v13720_v45 = vunpack.i.l.bf16 %v20444_v24  ;;  %v6384_v7 = vsel %vm790_vm4, %v19357_v21, %v13691_v39 }
 0x884   : > { %v14515_v32 = vunpack.i.l.bf16 %v14514_v38  ;;  %11701 = vmatprep.mubr.msk.f32.mxu1 %vm790_vm4, %v19708_v23  ;;  %v6446_v9 = vsel %vm1334_vm7, %v6414_v16, %v14510_v57  ;;  %v19718_v4 = vsel %vm1334_vm7, %v10472_v5, %v14511_v17  ;;  %v20445_v57 = vld [vmem:[#allocation10_spill] sm:$0xff]  ;;  %v19746_v16 = vld [vmem:[#allocation4 + $0x232] sm:$0xff] }
 0x885   : > { %v14519_v61 = vpop.permute.xlu1 %14518  ;;  %6719 = vmatmul.mubr.f32.gmra.mrb[178].mxu0 %v6446_v9 }
 0x886   : > { %v14521_v35 = vunpack.i.h.bf16 %v14519_v61  ;;  %v14520_v15 = vunpack.i.l.bf16 %v14519_v61  ;;  %11534 = vmatprep.mubr.msk.f32.mxu0 %vm790_vm4, %v19355_v25  ;;  %v6447_v47 = vsel %vm1334_vm7, %v6415_v33, %v14515_v32  ;;  %v13716_v61 = vunpack.i.h.bf16 %v20443_v63 }
 0x887   : > { %v14524_v10 = vpop.permute.xlu0 %14523  ;;  %9823 = vmatmul.mubr.f32.gmra.mrb[86].mxu1 %v19388_v51  ;;  %v14516_v51 = vunpack.i.h.bf16 %v14514_v38  ;;  %v6416_v38 = vsel %vm1289_vm6, %v6384_v7, %v13696_v13 }
 0x888   : > { %v14526_v54 = vunpack.i.h.bf16 %v14524_v10  ;;  %v14525_v0 = vunpack.i.l.bf16 %v14524_v10  ;;  %11702 = vmatprep.mubr.msk.f32.mxu1 %vm790_vm4, %v19728_v2  ;;  %v10441_v22 = vsel %vm790_vm4, %v19502_v12, %v14520_v15  ;;  %v10442_v25 = vsel %vm790_vm4, %v19524_v40, %v14521_v35  ;;  %v19761_v35 = vld [vmem:[#allocation4 + $0x24a] sm:$0xff] }
 0x889   : > { %v14529_v14 = vpop.permute.xlu1 %14528  ;;  %6724 = vmatmul.mubr.f32.gmra.mrb[180].mxu0 %v6447_v47  ;;  %v13721_v10 = vunpack.i.h.bf16 %v20444_v24 }
 0x88a   : > { %v14531_v36 = vunpack.i.h.bf16 %v14529_v14  ;;  %v14530_v17 = vunpack.i.l.bf16 %v14529_v14  ;;  %11535 = vmatprep.mubr.msk.f32.mxu0 %vm790_vm4, %v20445_v57  ;;  %v10473_v56 = vsel %vm1289_vm6, %v10441_v22, %v14525_v0  ;;  %v10474_v60 = vsel %vm1289_vm6, %v10442_v25, %v14526_v54  ;;  %v20446_v25 = vld [vmem:[#allocation41_spill] sm:$0xff] }
 0x88b   : > { %v14534_v5 = vpop.permute.xlu0 %14533  ;;  %9828 = vmatmul.mubr.f32.gmra.mrb[88].mxu1 %v19416_v42  ;;  %v19750_v32 = vsel %vm1334_vm7, %v10473_v56, %v14516_v51  ;;  %v6385_v42 = vsel %vm790_vm4, %v19385_v34, %v13715_v49  ;;  %v13740_v63 = vunpack.i.l.bf16 %v20446_v25  ;;  %v20447_v49 = vld [vmem:[#allocation37_spill] sm:$0xff] }
 0x88c   : > { %v14535_v21 = vunpack.i.l.bf16 %v14534_v5  ;;  %11703 = vmatprep.mubr.msk.f32.mxu1 %vm790_vm4, %v19746_v16  ;;  %v6448_v9 = vsel %vm1334_vm7, %v6416_v38, %v14530_v17  ;;  %v19756_v39 = vsel %vm1334_vm7, %v10474_v60, %v14531_v36  ;;  %v6417_v13 = vsel %vm1289_vm6, %v6385_v42, %v13720_v45  ;;  %v19779_v14 = vld [vmem:[#allocation4 + $0x252] sm:$0xff] }
 0x88d   : > { %v14539_v19 = vpop.permute.xlu1 %14538  ;;  %6729 = vmatmul.mubr.f32.gmra.mrb[182].mxu0 %v6448_v9  ;;  %v13745_v24 = vunpack.i.l.bf16 %v20447_v49  ;;  %v14536_v45 = vunpack.i.h.bf16 %v14534_v5 }
 0x88e   : > { %v14541_v15 = vunpack.i.h.bf16 %v14539_v19  ;;  %v14540_v33 = vunpack.i.l.bf16 %v14539_v19  ;;  %11536 = vmatprep.mubr.msk.f32.mxu0 %vm790_vm4, %v19403_v6  ;;  %v6449_v54 = vsel %vm1334_vm7, %v6417_v13, %v14535_v21  ;;  %v13741_v21 = vunpack.i.h.bf16 %v20446_v25 }
 0x88f   : > { %v14544_v47 = vpop.permute.xlu0 %14543  ;;  %9833 = vmatmul.mubr.f32.gmra.mrb[90].mxu1 %v19419_v27  ;;  %v6386_v27 = vsel %vm790_vm4, %v19396_v55, %v13716_v61  ;;  %v20448_v61 = vld [vmem:[#allocation11_spill] sm:$0xff]  ;;  %v13746_v13 = vunpack.i.h.bf16 %v20447_v49 }
 0x890   : > { %v14546_v0 = vunpack.i.h.bf16 %v14544_v47  ;;  %v14545_v22 = vunpack.i.l.bf16 %v14544_v47  ;;  %11704 = vmatprep.mubr.msk.f32.mxu1 %vm790_vm4, %v19761_v35  ;;  %v10443_v34 = vsel %vm790_vm4, %v19553_v53, %v14540_v33  ;;  %v10444_v6 = vsel %vm790_vm4, %v19562_v20, %v14541_v15  ;;  %v20449_v15 = vld [vmem:[#allocation17_spill] sm:$0xff]  ;;  %v20450_v47 = vld [vmem:[#allocation18_spill] sm:$0xff] }
 0x891   : > { %v14549_v51 = vpop.permute.xlu1 %14548  ;;  %6734 = vmatmul.mubr.f32.gmra.mrb[184].mxu0 %v6449_v54  ;;  %v6418_v60 = vsel %vm1289_vm6, %v6386_v27, %v13721_v10  ;;  %v10009_v54 = vld [vmem:[#allocation4 + $0x8a] sm:$0xff] }
 0x892   : > { %v14551_v7 = vunpack.i.h.bf16 %v14549_v51  ;;  %v14550_v36 = vunpack.i.l.bf16 %v14549_v51  ;;  %11537 = vmatprep.mubr.msk.f32.mxu0 %vm790_vm4, %v19423_v37  ;;  %v10475_v17 = vsel %vm1289_vm6, %v10443_v34, %v14545_v22  ;;  %v10476_v57 = vsel %vm1289_vm6, %v10444_v6, %v14546_v0 }
 0x893   : > { %v14554_v56 = vpop.permute.xlu0 %14553  ;;  %9838 = vmatmul.mubr.f32.gmra.mrb[92].mxu1 %v19452_v26  ;;  %v19788_v5 = vsel %vm1334_vm7, %v10475_v17, %v14536_v45  ;;  %v6387_v26 = vsel %vm790_vm4, %v20448_v61, %v13740_v63  ;;  %v20451_v63 = vld [vmem:[#allocation42_spill] sm:$0xff] }
 0x894   : > { %v14555_v55 = vunpack.i.l.bf16 %v14554_v56  ;;  %v6450_v38 = vsel %vm1334_vm7, %v6418_v60, %v14550_v36  ;;  %11705 = vmatprep.mubr.msk.f32.mxu1 %vm790_vm4, %v19779_v14  ;;  %v19794_v37 = vsel %vm1334_vm7, %v10476_v57, %v14551_v7  ;;  %v6419_v33 = vsel %vm1289_vm6, %v6387_v26, %v13745_v24  ;;  %v20452_v45 = vld [vmem:[#allocation38_spill] sm:$0xff]  ;;  %v20453_v7 = vld [vmem:[#allocation16_spill] sm:$0xff] }
 0x895   : > { %v14559_v9 = vpop.permute.xlu1 %14558  ;;  %6739 = vmatmul.mubr.f32.gmra.mrb[186].mxu0 %v6450_v38  ;;  %v13765_v24 = vunpack.i.l.bf16 %v20451_v63  ;;  %v13770_v49 = vunpack.i.l.bf16 %v20452_v45  ;;  %v14556_v51 = vunpack.i.h.bf16 %v14554_v56  ;;  %v6388_v36 = vsel %vm790_vm4, %v20453_v7, %v13741_v21 }
 0x896   : > { %v14561_v19 = vunpack.i.h.bf16 %v14559_v9  ;;  %v14560_v42 = vunpack.i.l.bf16 %v14559_v9  ;;  %11538 = vmatprep.mubr.msk.f32.mxu0 %vm790_vm4, %v20449_v15  ;;  %v6451_v0 = vsel %vm1334_vm7, %v6419_v33, %v14555_v55  ;;  %v10010_v9 = vld [vmem:[#allocation4 + $0x92] sm:$0xff]  ;;  %v6420_v56 = vsel %vm1289_vm6, %v6388_v36, %v13746_v13 }
 0x897   : > { %v14564_v10 = vpop.permute.xlu0 %14563  ;;  %9843 = vmatmul.mubr.f32.gmra.mrb[94].mxu1 %v20450_v47 }
 0x898   : > { %v14566_v22 = vunpack.i.h.bf16 %v14564_v10  ;;  %v14565_v34 = vunpack.i.l.bf16 %v14564_v10  ;;  %11726 = vmatprep.mubr.msk.f32.mxu1 %vm790_vm4, %v10009_v54  ;;  %v10445_v6 = vsel %vm790_vm4, %v19584_v48, %v14560_v42  ;;  %v10446_v25 = vsel %vm790_vm4, %v19600_v50, %v14561_v19  ;;  %v20454_v54 = vld [vmem:[#allocation20_spill] sm:$0xff] }
 0x899   : > { %v14569_v27 = vpop.permute.xlu1 %14568  ;;  %6744 = vmatmul.mubr.f32.gmra.mrb[188].mxu0 %v6451_v0  ;;  %v13766_v19 = vunpack.i.h.bf16 %v20451_v63  ;;  %v13771_v10 = vunpack.i.h.bf16 %v20452_v45  ;;  %v10011_v0 = vld [vmem:[#allocation4 + $0xaa] sm:$0xff] }
 0x89a   : > { %v14571_v17 = vunpack.i.h.bf16 %v14569_v27  ;;  %v14570_v57 = vunpack.i.l.bf16 %v14569_v27  ;;  %11539 = vmatprep.mubr.msk.f32.mxu0 %vm790_vm4, %v19467_v18  ;;  %v10477_v60 = vsel %vm1289_vm6, %v10445_v6, %v14565_v34  ;;  %v10478_v55 = vsel %vm1289_vm6, %v10446_v25, %v14566_v22  ;;  %v19840_v25 = vld [vmem:[#allocation4 + $0x1ee] sm:$0xff] }
 0x89b   : > { %v14574_v38 = vpop.permute.xlu0 %14573  ;;  %10703 = vmatmul.mubr.f32.vlgmr.msra.gmra.mrb[32].mxu1 %v19483_v8  ;;  %v19821_v61 = vsel %vm1334_vm7, %v10477_v60, %v14556_v51  ;;  %v6389_v8 = vsel %vm790_vm4, %v19463_v1, %v13765_v24  ;;  %v20455_v63 = vld [vmem:[#allocation39_spill] sm:$0xff]  ;;  %v20456_v45 = vld [vmem:[#allocation24_spill] sm:$0xff]  ;;  %v6390_v7 = vsel %vm790_vm4, %v19494_v31, %v13766_v19 }
 0x89c   : > { %v14575_v26 = vunpack.i.l.bf16 %v14574_v38  ;;  %11727 = vmatprep.mubr.msk.f32.mxu1 %vm790_vm4, %v10010_v9  ;;  %v6452_v21 = vsel %vm1334_vm7, %v6420_v56, %v14570_v57  ;;  %v19826_v18 = vsel %vm1334_vm7, %v10478_v55, %v14571_v17  ;;  %v6421_v13 = vsel %vm1289_vm6, %v6389_v8, %v13770_v49  ;;  %v20457_v57 = vld [vmem:[#allocation19_spill] sm:$0xff]  ;;  %v20458_v56 = vld [vmem:[#allocation26_spill] sm:$0xff] }
 0x89d   : > { %v14579_v42 = vpop.permute.xlu1 %14578  ;;  %6749 = vmatmul.mubr.f32.gmra.mrb[190].mxu0 %v6452_v21  ;;  %v13790_v24 = vunpack.i.l.bf16 %v20455_v63  ;;  %v13795_v49 = vunpack.i.l.bf16 %v20456_v45  ;;  %v14576_v51 = vunpack.i.h.bf16 %v14574_v38  ;;  %v6422_v38 = vsel %vm1289_vm6, %v6390_v7, %v13771_v10 }
 0x89e   : > { %v14581_v15 = vunpack.i.h.bf16 %v14579_v42  ;;  %v14580_v33 = vunpack.i.l.bf16 %v14579_v42  ;;  %11540 = vmatprep.mubr.msk.f32.mxu0 %vm790_vm4, %v19490_v62  ;;  %v6453_v22 = vsel %vm1334_vm7, %v6421_v13, %v14575_v26  ;;  %v10012_v26 = vld [vmem:[#allocation4 + $0xb2] sm:$0xff]  ;;  %v13791_v8 = vunpack.i.h.bf16 %v20455_v63 }
 0x89f   : > { %v14584_v47 = vpop.permute.xlu0 %14583  ;;  %10708 = vmatmul.mubr.f32.gmra.mrb[34].mxu1 %v20454_v54  ;;  %v13796_v54 = vunpack.i.h.bf16 %v20456_v45  ;;  %v14820_v63 = vld [vmem:[#allocation4 + $0x20e] sm:$0xff] }
 0x8a0   : > { %v14586_v34 = vunpack.i.h.bf16 %v14584_v47  ;;  %v14585_v6 = vunpack.i.l.bf16 %v14584_v47  ;;  %11728 = vmatprep.mubr.msk.f32.mxu1 %vm790_vm4, %v10011_v0  ;;  %v10447_v1 = vsel %vm790_vm4, %v19633_v46, %v14580_v33  ;;  %v10448_v62 = vsel %vm790_vm4, %v19840_v25, %v14581_v15 }
 0x8a1   : > { %v14589_v27 = vpop.permute.xlu1 %14588  ;;  %6754 = vmatmul.mubr.f32.gmra.mrb[192].mxu0 %v6453_v22  ;;  %v6391_v33 = vsel %vm790_vm4, %v19502_v12, %v13790_v24  ;;  %v20459_v22 = vld [vmem:[#allocation21_spill] sm:$0xff]  ;;  %v20460_v24 = vld [vmem:[#allocation40_spill] sm:$0xff] }
 0x8a2   : > { %v14591_v36 = vunpack.i.h.bf16 %v14589_v27  ;;  %v14590_v17 = vunpack.i.l.bf16 %v14589_v27  ;;  %11541 = vmatprep.mubr.msk.f32.mxu0 %vm790_vm4, %v20457_v57  ;;  %v10479_v60 = vsel %vm1289_vm6, %v10447_v1, %v14585_v6  ;;  %v10480_v55 = vsel %vm1289_vm6, %v10448_v62, %v14586_v34  ;;  %v10013_v34 = vld [vmem:[#allocation4 + $0xca] sm:$0xff] }
 0x8a3   : > { %v14594_v9 = vpop.permute.xlu0 %14593  ;;  %10713 = vmatmul.mubr.f32.gmra.mrb[36].mxu1 %v20458_v56  ;;  %v19855_v21 = vsel %vm1334_vm7, %v10479_v60, %v14576_v51  ;;  %v6423_v47 = vsel %vm1289_vm6, %v6391_v33, %v13795_v49  ;;  %v13815_v49 = vunpack.i.l.bf16 %v20460_v24  ;;  %v20461_v51 = vld [vmem:[#allocation47_spill] sm:$0xff] }
 0x8a4   : > { %v14595_v42 = vunpack.i.l.bf16 %v14594_v9  ;;  %11729 = vmatprep.mubr.msk.f32.mxu1 %vm790_vm4, %v10012_v26  ;;  %v6454_v31 = vsel %vm1334_vm7, %v6422_v38, %v14590_v17  ;;  %v19860_v19 = vsel %vm1334_vm7, %v10480_v55, %v14591_v36  ;;  %v13820_v45 = vunpack.i.l.bf16 %v20461_v51  ;;  %v20462_v60 = vld [vmem:[#allocation23_spill] sm:$0xff]  ;;  %v20463_v26 = vld [vmem:[#allocation28_spill] sm:$0xff] }
 0x8a5   : > { %v14599_v15 = vpop.permute.xlu1 %14598  ;;  %6759 = vmatmul.mubr.f32.gmra.mrb[194].mxu0 %v6454_v31  ;;  %v14596_v27 = vunpack.i.h.bf16 %v14594_v9  ;;  %v6392_v36 = vsel %vm790_vm4, %v19524_v40, %v13791_v8  ;;  %v10014_v38 = vld [vmem:[#allocation4 + $0xd2] sm:$0xff] }
 0x8a6   : > { %v14601_v13 = vunpack.i.h.bf16 %v14599_v15  ;;  %v14600_v10 = vunpack.i.l.bf16 %v14599_v15  ;;  %11542 = vmatprep.mubr.msk.f32.mxu0 %vm790_vm4, %v19526_v41  ;;  %v6455_v6 = vsel %vm1334_vm7, %v6423_v47, %v14595_v42  ;;  %v6424_v9 = vsel %vm1289_vm6, %v6392_v36, %v13796_v54  ;;  %v20464_v54 = vld [vmem:[#allocation14_spill] sm:$0xff] }
 0x8a7   : > { %v14604_v0 = vpop.permute.xlu0 %14603  ;;  %10718 = vmatmul.mubr.f32.gmra.mrb[38].mxu1 %v20459_v22  ;;  %v13816_v15 = vunpack.i.h.bf16 %v20460_v24  ;;  %v13821_v22 = vunpack.i.h.bf16 %v20461_v51  ;;  %v14822_v24 = vld [vmem:[#allocation4 + $0x22e] sm:$0xff] }
 0x8a8   : > { %v14606_v1 = vunpack.i.h.bf16 %v14604_v0  ;;  %v14605_v62 = vunpack.i.l.bf16 %v14604_v0  ;;  %11730 = vmatprep.mubr.msk.f32.mxu1 %vm790_vm4, %v10013_v34  ;;  %v10449_v12 = vsel %vm790_vm4, %v19670_v59, %v14600_v10  ;;  %v10450_v41 = vsel %vm790_vm4, %v14820_v63, %v14601_v13 }
 0x8a9   : > { %v14609_v7 = vpop.permute.xlu1 %14608  ;;  %6764 = vmatmul.mubr.f32.gmra.mrb[196].mxu0 %v6455_v6  ;;  %v6393_v13 = vsel %vm790_vm4, %v19553_v53, %v13815_v49  ;;  %v20465_v6 = vld [vmem:[#allocation22_spill] sm:$0xff] }
 0x8aa   : > { %v14611_v17 = vunpack.i.h.bf16 %v14609_v7  ;;  %v14610_v57 = vunpack.i.l.bf16 %v14609_v7  ;;  %11543 = vmatprep.mubr.msk.f32.mxu0 %vm790_vm4, %v20462_v60  ;;  %v10481_v59 = vsel %vm1289_vm6, %v10449_v12, %v14605_v62  ;;  %v10482_v55 = vsel %vm1289_vm6, %v10450_v41, %v14606_v1  ;;  %v10015_v1 = vld [vmem:[#allocation4 + $0xea] sm:$0xff] }
 0x8ab   : > { %v14614_v56 = vpop.permute.xlu0 %14613  ;;  %10723 = vmatmul.mubr.f32.gmra.mrb[40].mxu1 %v20463_v26  ;;  %v19886_v42 = vsel %vm1334_vm7, %v10481_v59, %v14596_v27  ;;  %v6425_v0 = vsel %vm1289_vm6, %v6393_v13, %v13820_v45  ;;  %v14821_v53 = vld [vmem:[#allocation4 + $0x226] sm:$0xff]  ;;  %v20467_v7 = vld [vmem:[#allocation48_spill] sm:$0xff] }
 0x8ac   : > { %v14615_v31 = vunpack.i.l.bf16 %v14614_v56  ;;  %11731 = vmatprep.mubr.msk.f32.mxu1 %vm790_vm4, %v10014_v38  ;;  %v6456_v40 = vsel %vm1334_vm7, %v6424_v9, %v14610_v57  ;;  %v19891_v8 = vsel %vm1334_vm7, %v10482_v55, %v14611_v17  ;;  %v20466_v27 = vld [vmem:[#allocation43_spill] sm:$0xff]  ;;  %v13845_v51 = vunpack.i.l.bf16 %v20467_v7 }
 0x8ad   : > { %v14619_v33 = vpop.permute.xlu1 %14618  ;;  %6769 = vmatmul.mubr.f32.gmra.mrb[198].mxu0 %v6456_v40  ;;  %v13840_v45 = vunpack.i.l.bf16 %v20466_v27  ;;  %v14616_v36 = vunpack.i.h.bf16 %v14614_v56  ;;  %v6394_v57 = vsel %vm790_vm4, %v19562_v20, %v13816_v15  ;;  %v20468_v26 = vld [vmem:[#allocation51_spill] sm:$0xff]  ;;  %v20469_v40 = vld [vmem:[#allocation49_spill] sm:$0xff] }
 0x8ae   : > { %v14621_v10 = vunpack.i.h.bf16 %v14619_v33  ;;  %v14620_v47 = vunpack.i.l.bf16 %v14619_v33  ;;  %11544 = vmatprep.mubr.msk.f32.mxu0 %vm790_vm4, %v20464_v54  ;;  %v6457_v62 = vsel %vm1334_vm7, %v6425_v0, %v14615_v31  ;;  %v10016_v33 = vld [vmem:[#allocation4 + $0xf2] sm:$0xff]  ;;  %v6426_v56 = vsel %vm1289_vm6, %v6394_v57, %v13821_v22 }
 0x8af   : > { %v14624_v34 = vpop.permute.xlu0 %14623  ;;  %10728 = vmatmul.mubr.f32.gmra.mrb[42].mxu1 %v20465_v6  ;;  %v20472_v57 = vld [vmem:[#allocation44_spill] sm:$0xff] }
 0x8b0   : > { %v14626_v12 = vunpack.i.h.bf16 %v14624_v34  ;;  %v14625_v63 = vunpack.i.l.bf16 %v14624_v34  ;;  %11732 = vmatprep.mubr.msk.f32.mxu1 %vm790_vm4, %v10015_v1  ;;  %v10451_v41 = vsel %vm790_vm4, %v14821_v53, %v14620_v47  ;;  %v10452_v49 = vsel %vm790_vm4, %v14822_v24, %v14621_v10  ;;  %v20470_v1 = vld [vmem:[#allocation54_spill] sm:$0xff] }
 0x8b1   : > { %v14634_v17 = vpop.permute.xlu1 %14633  ;;  %6774 = vmatmul.mubr.f32.gmra.mrb[200].mxu0 %v6457_v62  ;;  %v13841_v47 = vunpack.i.h.bf16 %v20466_v27  ;;  %v6395_v34 = vsel %vm790_vm4, %v19584_v48, %v13840_v45  ;;  %v20471_v53 = vld [vmem:[#allocation50_spill] sm:$0xff] }
 0x8b2   : > { %v14636_v59 = vunpack.i.h.bf16 %v14634_v17  ;;  %v14635_v55 = vunpack.i.l.bf16 %v14634_v17  ;;  %11545 = vmatprep.mubr.msk.f32.mxu0 %vm790_vm4, %v20468_v26  ;;  %v10483_v38 = vsel %vm1289_vm6, %v10451_v41, %v14625_v63  ;;  %v10484_v9 = vsel %vm1289_vm6, %v10452_v49, %v14626_v12  ;;  %v10017_v41 = vld [vmem:[#allocation4 + $0x10a] sm:$0xff] }
 0x8b3   : > { %v14629_v31 = vpop.permute.xlu0 %14628  ;;  %10733 = vmatmul.mubr.f32.gmra.mrb[44].mxu1 %v20469_v40  ;;  %v19916_v13 = vsel %vm1334_vm7, %v10483_v38, %v14616_v36  ;;  %v6427_v62 = vsel %vm1289_vm6, %v6395_v34, %v13845_v51  ;;  %v13846_v12 = vunpack.i.h.bf16 %v20467_v7  ;;  %v14823_v48 = vld [vmem:[#allocation4 + $0x246] sm:$0xff]  ;;  %v14824_v36 = vld [vmem:[#allocation4 + $0x24e] sm:$0xff]  ;;  %v13865_v51 = vunpack.i.l.bf16 %v20472_v57 }
 0x8b4   : > { %v14630_v10 = vunpack.i.l.bf16 %v14629_v31  ;;  %11733 = vmatprep.mubr.msk.f32.mxu1 %vm790_vm4, %v10016_v33  ;;  %v6458_v20 = vsel %vm1334_vm7, %v6426_v56, %v14635_v55  ;;  %v19921_v15 = vsel %vm1334_vm7, %v10484_v9, %v14636_v59  ;;  %v14631_v59 = vunpack.i.h.bf16 %v14629_v31  ;;  %v20473_v56 = vld [vmem:[#allocation45_spill] sm:$0xff]  ;;  %v9911_v34 = vld [vmem:[#allocation4 + $0x266] sm:$0xff] }
 0x8b5   : > { %v14639_v0 = vpop.permute.xlu1 %14638  ;;  %6779 = vmatmul.mubr.f32.gmra.mrb[202].mxu0 %v6458_v20  ;;  %v6396_v55 = vsel %vm790_vm4, %v19600_v50, %v13841_v47  ;;  %v10018_v31 = vld [vmem:[#allocation4 + $0x112] sm:$0xff] }
 0x8b6   : > { %v14641_v6 = vunpack.i.h.bf16 %v14639_v0  ;;  %v14640_v22 = vunpack.i.l.bf16 %v14639_v0  ;;  %11546 = vmatprep.mubr.msk.f32.mxu0 %vm790_vm4, %v20470_v1  ;;  %v6459_v24 = vsel %vm1334_vm7, %v6427_v62, %v14630_v10  ;;  %v13870_v10 = vunpack.i.l.bf16 %v20473_v56  ;;  %v20474_v0 = vld [vmem:[#allocation52_spill] sm:$0xff] }
 0x8b7   : > { %v14644_v63 = vpop.permute.xlu0 %14643  ;;  %10738 = vmatmul.mubr.f32.gmra.mrb[46].mxu1 %v20471_v53  ;;  %v13866_v53 = vunpack.i.h.bf16 %v20472_v57 }
 0x8b8   : > { %v14646_v49 = vunpack.i.h.bf16 %v14644_v63  ;;  %v14645_v27 = vunpack.i.l.bf16 %v14644_v63  ;;  %11734 = vmatprep.mubr.msk.f32.mxu1 %vm790_vm4, %v10017_v41  ;;  %v10453_v45 = vsel %vm790_vm4, %v14823_v48, %v14640_v22  ;;  %v10454_v17 = vsel %vm790_vm4, %v14824_v36, %v14641_v6  ;;  %v20475_v48 = vld [vmem:[#allocation53_spill] sm:$0xff] }
 0x8b9   : > { %v14649_v7 = vpop.permute.xlu1 %14648  ;;  %6784 = vmatmul.mubr.f32.gmra.mrb[204].mxu0 %v6459_v24  ;;  %v6428_v6 = vsel %vm1289_vm6, %v6396_v55, %v13846_v12  ;;  %v6397_v12 = vsel %vm790_vm4, %v19633_v46, %v13865_v51  ;;  %v13871_v24 = vunpack.i.h.bf16 %v20473_v56  ;;  %v6398_v46 = vsel %vm790_vm4, %v19840_v25, %v13866_v53  ;;  %v10020_v51 = vld [vmem:[#allocation4 + $0x132] sm:$0xff]  ;;  %v20478_v53 = vld [vmem:[#allocation31_spill] sm:$0xff] }
 0x8ba   : > { %v14651_v38 = vunpack.i.h.bf16 %v14649_v7  ;;  %v14650_v9 = vunpack.i.l.bf16 %v14649_v7  ;;  %11547 = vmatprep.mubr.msk.f32.mxu0 %vm790_vm4, %v19626_v11  ;;  %v10485_v40 = vsel %vm1289_vm6, %v10453_v45, %v14645_v27  ;;  %v10486_v33 = vsel %vm1289_vm6, %v10454_v17, %v14646_v49  ;;  %v10019_v45 = vld [vmem:[#allocation4 + $0x12a] sm:$0xff]  ;;  %v10024_v25 = vld [vmem:[#allocation4 + $0x172] sm:$0xff] }
 0x8bb   : > { %v14654_v20 = vpop.permute.xlu0 %14653  ;;  %10743 = vmatmul.mubr.f32.gmra.mrb[48].mxu1 %v20474_v0  ;;  %v19946_v50 = vsel %vm1334_vm7, %v10485_v40, %v14631_v59  ;;  %v6429_v36 = vsel %vm1289_vm6, %v6397_v12, %v13870_v10  ;;  %v6430_v55 = vsel %vm1289_vm6, %v6398_v46, %v13871_v24  ;;  %v10022_v40 = vld [vmem:[#allocation4 + $0x152] sm:$0xff] }
 0x8bc   : > { %v14655_v47 = vunpack.i.l.bf16 %v14654_v20  ;;  %11735 = vmatprep.mubr.msk.f32.mxu1 %vm790_vm4, %v10018_v31  ;;  %v6460_v22 = vsel %vm1334_vm7, %v6428_v6, %v14650_v9  ;;  %v19951_v62 = vsel %vm1334_vm7, %v10486_v33, %v14651_v38  ;;  %v14656_v49 = vunpack.i.h.bf16 %v14654_v20  ;;  %v10021_v9 = vld [vmem:[#allocation4 + $0x14a] sm:$0xff]  ;;  %v20477_v31 = vld [vmem:[#allocation30_spill] sm:$0xff] }
 0x8bd   : > { %v10134_v63 = vpop.permute.xlu1 %10133  ;;  %6789 = vmatmul.mubr.f32.gmra.mrb[206].mxu0 %v6460_v22 }
 0x8be   : > { %v10455_v41 = vsel %vm790_vm4, %v9911_v34, %v10134_v63  ;;  %11548 = vmatprep.mubr.msk.f32.mxu0 %vm790_vm4, %v19650_v58  ;;  %v6461_v57 = vsel %vm1334_vm7, %v6429_v36, %v14655_v47  ;;  %v20479_v36 = vld [vmem:[#allocation15_spill] sm:$0xff] }
 0x8bf   : > { %v10262_v27 = vpop.permute.xlu0 %10261  ;;  %10748 = vmatmul.mubr.f32.gmra.mrb[50].mxu1 %v20475_v48 }
 0x8c0   : > { %v10487_v17 = vsel %vm1289_vm6, %v10455_v41, %v10262_v27  ;;  %11736 = vmatprep.mubr.msk.f32.mxu1 %vm790_vm4, %v10019_v45 }
 0x8c1   : > { %v6334_v59 = vpop.permute.xlu1 %6333  ;;  %6794 = vmatmul.mubr.f32.gmra.mrb[208].mxu0 %v6461_v57  ;;  %v10519_v7 = vsel %vm1334_vm7, %v10487_v17, %v14656_v49 }
 0x8c2   : > { %11549 = vmatprep.mubr.msk.f32.mxu0 %vm790_vm4, %v19667_v30  ;;  %v6462_v38 = vsel %vm1334_vm7, %v6430_v55, %v6334_v59 }
 0x8c3   : > { %10753 = vmatmul.mubr.f32.gmra.mrb[52].mxu1 %v19636_v44  ;;  %v10023_v44 = vld [vmem:[#allocation4 + $0x16a] sm:$0xff] }
 0x8c4   : > { %11737 = vmatprep.mubr.msk.f32.mxu1 %vm790_vm4, %v10020_v51 }
 0x8c5   : > { %6799 = vmatmul.mubr.f32.gmra.mrb[210].mxu0 %v6462_v38 }
 0x8c7   : > { %10758 = vmatmul.mubr.f32.gmra.mrb[54].mxu1 %v19639_v29  ;;  %v10025_v29 = vld [vmem:[#allocation4 + $0x18a] sm:$0xff] }
 0x8c8   : > { %11738 = vmatprep.mubr.msk.f32.mxu1 %vm790_vm4, %v10021_v9  ;;  %v20480_v9 = vld [vmem:[#allocation27_spill] sm:$0xff] }
 0x8cb   : > { %10763 = vmatmul.mubr.f32.gmra.mrb[56].mxu1 %v19673_v28 }
 0x8cc   : > { %11739 = vmatprep.mubr.msk.f32.mxu1 %vm790_vm4, %v10022_v40 }
 0x8cf   : > { %10768 = vmatmul.mubr.f32.gmra.mrb[58].mxu1 %v19681_v3  ;;  %v10264_v3 = vpop.permute.xlu1 %10263 }
 0x8d0   : > { %11740 = vmatprep.mubr.msk.f32.mxu1 %vm790_vm4, %v10023_v44 }
 0x8d3   : > { %10773 = vmatmul.mubr.f32.gmra.mrb[60].mxu1 %v19712_v43 }
 0x8d4   : > { %11741 = vmatprep.mubr.msk.f32.mxu1 %vm790_vm4, %v10024_v25 }
 0x8d7   : > { %10778 = vmatmul.mubr.f32.gmra.mrb[62].mxu1 %v19718_v4 }
 0x8d8   : > { %11742 = vmatprep.mubr.msk.f32.mxu1 %vm790_vm4, %v10025_v29 }
 0x8db   : > { %10783 = vmatmul.mubr.f32.gmra.mrb[64].mxu1 %v19750_v32 }
 0x8dc   : > { %11743 = vmatprep.mubr.msk.f32.mxu1 %vm790_vm4, %v20462_v60 }
 0x8df   : > { %10788 = vmatmul.mubr.f32.gmra.mrb[66].mxu1 %v19756_v39 }
 0x8e0   : > { %11744 = vmatprep.mubr.msk.f32.mxu1 %vm790_vm4, %v20464_v54 }
 0x8e3   : > { %10793 = vmatmul.mubr.f32.gmra.mrb[68].mxu1 %v19788_v5 }
 0x8e4   : > { %11745 = vmatprep.mubr.msk.f32.mxu1 %vm790_vm4, %v20468_v26  ;;  %v20045_v26 = vld [vmem:[#allocation5] ss:$0 sm:$0xff] }
 0x8e5   : > { %v6805_v34 = vadd.f32 %v20045_v26, %v20477_v31  ;;  %v6806_v41 = vadd.f32 %v20045_v26, %v20478_v53  ;;  %v6807_v17 = vadd.f32 %v20045_v26, %v20479_v36  ;;  %v6808_v40 = vadd.f32 %v20045_v26, %v20480_v9 }
 0x8e7   : > { %10798 = vmatmul.mubr.f32.gmra.mrb[70].mxu1 %v19794_v37 }
 0x8e8   : > { %11746 = vmatprep.mubr.msk.f32.mxu1 %vm790_vm4, %v20470_v1 }
 0x8eb   : > { %10803 = vmatmul.mubr.f32.gmra.mrb[72].mxu1 %v19821_v61 }
 0x8ec   : > { %11747 = vmatprep.mubr.msk.f32.mxu1 %vm790_vm4, %v19626_v11  ;;  %v9912_v11 = vld [vmem:[#allocation4 + $0x26e] sm:$0xff] }
 0x8ef   : > { %10808 = vmatmul.mubr.f32.gmra.mrb[74].mxu1 %v19826_v18 }
 0x8f0   : > { %11748 = vmatprep.mubr.msk.f32.mxu1 %vm790_vm4, %v19650_v58  ;;  %v10136_v58 = vpop.permute.xlu0 %10135 }
 0x8f1   : > { %v10456_v28 = vsel %vm790_vm4, %v9912_v11, %v10136_v58 }
 0x8f3   : > { %10813 = vmatmul.mubr.f32.gmra.mrb[76].mxu1 %v19855_v21 }
 0x8f4   : > { %11749 = vmatprep.mubr.msk.f32.mxu1 %vm790_vm4, %v19667_v30  ;;  %v10039_v30 = vld [vmem:[#allocation4 + $0x26a] sm:$0xff]  ;;  %v10392_v43 = vpop.permute.xlu0 %10391 }
 0x8f7   : > { %10818 = vmatmul.mubr.f32.gmra.mrb[78].mxu1 %v19860_v19 }
 0x8f8   : > { %11750 = vmatprep.mubr.msk.f32.mxu1 %vm790_vm4, %v19691_v52  ;;  %v10040_v52 = vld [vmem:[#allocation4 + $0x272] sm:$0xff] }
 0x8fb   : > { %10823 = vmatmul.mubr.f32.gmra.mrb[80].mxu1 %v19886_v42 }
 0x8fc   : > { %11751 = vmatprep.mubr.msk.f32.mxu1 %vm790_vm4, %v19708_v23  ;;  %v10488_v23 = vsel %vm1289_vm6, %v10456_v28, %v10264_v3 }
 0x8fd   : > { %v10520_v4 = vsel %vm1334_vm7, %v10488_v23, %v10392_v43 }
 0x8ff   : > { %10828 = vmatmul.mubr.f32.gmra.mrb[82].mxu1 %v19891_v8 }
 0x900   : > { %11752 = vmatprep.mubr.msk.f32.mxu1 %vm790_vm4, %v19728_v2 }
 0x903   : > { %10833 = vmatmul.mubr.f32.gmra.mrb[84].mxu1 %v19916_v13 }
 0x904   : > { %11753 = vmatprep.mubr.msk.f32.mxu1 %vm790_vm4, %v19746_v16 }
 0x907   : > { %10838 = vmatmul.mubr.f32.gmra.mrb[86].mxu1 %v19921_v15  ;;  %v20476_v15 = vld [vmem:[#allocation35_spill] sm:$0xff] }
 0x908   : > { %11754 = vmatprep.mubr.msk.f32.mxu1 %vm790_vm4, %v19761_v35  ;;  %v6804_v1 = vadd.f32 %v20045_v26, %v20476_v15 }
 0x90b   : > { %10843 = vmatmul.mubr.f32.gmra.mrb[88].mxu1 %v19946_v50 }
 0x90c   : > { %11755 = vmatprep.mubr.msk.f32.mxu1 %vm790_vm4, %v19779_v14 }
 0x90f   : > { %10848 = vmatmul.mubr.f32.gmra.mrb[90].mxu1 %v19951_v62 }
 0x910   : > { %11756 = vmatprep.mubr.msk.f32.mxu1 %vm790_vm4, %v10039_v30 }
 0x913   : > { %10853 = vmatmul.mubr.f32.gmra.mrb[92].mxu1 %v10519_v7 }
 0x914   : > { %11757 = vmatprep.mubr.msk.f32.mxu1 %vm790_vm4, %v10040_v52  ;;  %v20481_v52 = vld [vmem:[#allocation46_spill] sm:$0xff] }
 0x915   : > { %v6809_v23 = vadd.f32 %v20045_v26, %v20481_v52 }
 0x917   : > { %10858 = vmatmul.mubr.f32.gmra.mrb[94].mxu1 %v10520_v4 }
 0x94a   : > { %v20029_v2 = vpop.f32.mrb[172].mxu0 }
 0x94b   : > { %v6707_v16 = vpop.f32.mrb[173].mxu0 }
 0x950   : > { %v20031_v32 = vpop.f32.mrb[174].mxu0 }
 0x951   : > { %v6712_v39 = vpop.f32.mrb[175].mxu0 }
 0x954   : > { %v20033_v35 = vpop.f32.mrb[176].mxu0 }
 0x955   : > { %v6717_v14 = vpop.f32.mrb[177].mxu0 }
 0x958   : > { %v20035_v5 = vpop.f32.mrb[178].mxu0 }
 0x959   : > { %v6722_v37 = vpop.f32.mrb[179].mxu0 }
 0x95c   : > { %v20037_v61 = vpop.f32.mrb[180].mxu0 }
 0x95d   : > { %v6727_v18 = vpop.f32.mrb[181].mxu0 }
 0x960   : > { %v20039_v21 = vpop.f32.mrb[182].mxu0 }
 0x961   : > { %v6732_v19 = vpop.f32.mrb[183].mxu0 }
 0x964   : > { %v20041_v60 = vpop.f32.mrb[184].mxu0 }
 0x965   : > { %v6737_v42 = vpop.f32.mrb[185].mxu0 }
 0x966   : > { %v20482_v42 = vld [vmem:[#allocation29_spill] sm:$0xff] }
 0x968   : > { %v20043_v8 = vpop.f32.mrb[186].mxu0 }
 0x969   : > { %v6742_v54 = vpop.f32.mrb[187].mxu0 }
 0x96a   : > { %v6810_v54 = vadd.f32 %v20045_v26, %v20482_v42 }
 0x96c   : > { %v20047_v13 = vpop.f32.mrb[188].mxu0 }
 0x96d   : > { %v6747_v33 = vpop.f32.mrb[189].mxu0 }
 0x96e   : > { %v10704_v56 = vpop.f32.mrb[32].mxu1 }
 0x96f   : > { %v12791_v10 = vadd.f32 %v10704_v56, %v6804_v1  ;;  %v10706_v20 = vpop.f32.mrb[33].mxu1 }
 0x970   : > { %v20051_v0 = vpop.f32.mrb[190].mxu0 }
 0x971   : > { %v11758_v6 = vmul.f32 -1.442695, %v12791_v10  ;;  %v6752_v50 = vpop.f32.mrb[191].mxu0 }
 0x972   : > { %v10709_v47 = vpop.f32.mrb[34].mxu1 }
 0x973   : > { %14657 = vpow2.f32 %v11758_v6  ;;  %v12793_v22 = vadd.f32 %v10709_v47, %v6805_v34  ;;  %v10711_v62 = vpop.f32.mrb[35].mxu1  ;;  %v20483_v6 = vld [vmem:[#allocation7_spill] sm:$0xff] }
 0x974   : > { %v20055_v63 = vpop.f32.mrb[192].mxu0  ;;  %v6811_v50 = vadd.f32 %v20045_v26, %v20483_v6 }
 0x975   : > { %v11759_v12 = vmul.f32 -1.442695, %v12793_v22  ;;  %v6757_v24 = vpop.f32.mrb[193].mxu0 }
 0x976   : > { %v10714_v49 = vpop.f32.mrb[36].mxu1 }
 0x977   : > { %14659 = vpow2.f32 %v11759_v12  ;;  %v12795_v27 = vadd.f32 %v10714_v49, %v6806_v41  ;;  %v10716_v48 = vpop.f32.mrb[37].mxu1 }
 0x978   : > { %v20059_v45 = vpop.f32.mrb[194].mxu0  ;;  %v20484_v48 = vld [vmem:[#allocation33_spill] sm:$0xff] }
 0x979   : > { %v11760_v57 = vmul.f32 -1.442695, %v12795_v27  ;;  %v6762_v59 = vpop.f32.mrb[195].mxu0  ;;  %v6812_v36 = vadd.f32 %v20045_v26, %v20484_v48 }
 0x97a   : > { %v10719_v7 = vpop.f32.mrb[38].mxu1 }
 0x97b   : > { %14661 = vpow2.f32 %v11760_v57  ;;  %v12797_v46 = vadd.f32 %v10719_v7, %v6807_v17  ;;  %v10721_v51 = vpop.f32.mrb[39].mxu1 }
 0x97c   : > { %v20063_v55 = vpop.f32.mrb[196].mxu0 }
 0x97d   : > { %v14658_v38 = vpop.eup %14657  ;;  %v11761_v44 = vmul.f32 -1.442695, %v12797_v46  ;;  %v6767_v25 = vpop.f32.mrb[197].mxu0 }
 0x97e   : > { %v10991_v29 = vadd.f32 1.0, %v14658_v38  ;;  %v10724_v11 = vpop.f32.mrb[40].mxu1 }
 0x97f   : > { %14663 = vpow2.f32 %v11761_v44  ;;  %v12799_v58 = vadd.f32 %v10724_v11, %v6808_v40  ;;  %v10726_v30 = vpop.f32.mrb[41].mxu1  ;;  %v20485_v44 = vld [vmem:[#allocation9_spill] sm:$0xff] }
 0x980   : > { %14665 = vrcp.f32 %v10991_v29  ;;  %v20067_v28 = vpop.f32.mrb[198].mxu0  ;;  %v6813_v25 = vadd.f32 %v20045_v26, %v20485_v44 }
 0x981   : > { %v14660_v3 = vpop.eup %14659  ;;  %v11762_v43 = vmul.f32 -1.442695, %v12799_v58  ;;  %v6772_v4 = vpop.f32.mrb[199].mxu0 }
 0x982   : > { %v10992_v16 = vadd.f32 1.0, %v14660_v3  ;;  %v10729_v39 = vpop.f32.mrb[42].mxu1 }
 0x983   : > { %14667 = vpow2.f32 %v11762_v43  ;;  %v12801_v14 = vadd.f32 %v10729_v39, %v6809_v23  ;;  %v10731_v37 = vpop.f32.mrb[43].mxu1 }
 0x984   : > { %14669 = vrcp.f32 %v10992_v16  ;;  %v20071_v18 = vpop.f32.mrb[200].mxu0  ;;  %v20486_v16 = vld [vmem:[#allocation6_spill] sm:$0xff] }
 0x985   : > { %v14662_v19 = vpop.eup %14661  ;;  %v11763_v15 = vmul.f32 -1.442695, %v12801_v14  ;;  %v6777_v1 = vpop.f32.mrb[201].mxu0  ;;  %v6814_v39 = vadd.f32 %v20045_v26, %v20486_v16 }
 0x986   : > { %v10993_v33 = vadd.f32 1.0, %v14662_v19  ;;  %v10734_v56 = vpop.f32.mrb[44].mxu1 }
 0x987   : > { %14671 = vpow2.f32 %v11763_v15  ;;  %v12803_v10 = vadd.f32 %v10734_v56, %v6810_v54  ;;  %v10736_v20 = vpop.f32.mrb[45].mxu1 }
 0x988   : > { %14673 = vrcp.f32 %v10993_v33  ;;  %v20082_v31 = vpop.f32.mrb[202].mxu0 }
 0x989   : > { %v14664_v34 = vpop.eup %14663  ;;  %v11764_v47 = vmul.f32 -1.442695, %v12803_v10  ;;  %v6782_v22 = vpop.f32.mrb[203].mxu0  ;;  %v20487_v10 = vld [vmem:[#allocation8_spill] sm:$0xff] }
 0x98a   : > { %v14666_v62 = vpop.eup %14665  ;;  %v10994_v53 = vadd.f32 1.0, %v14664_v34  ;;  %v10739_v41 = vpop.f32.mrb[46].mxu1  ;;  %v6815_v20 = vadd.f32 %v20045_v26, %v20487_v10 }
 0x98b   : > { %11088 = vst.msk [vmem:[%s20080_s30] sm:$0xff] %vm11087_vm10, %v14666_v62  ;;  %14675 = vpow2.f32 %v11764_v47  ;;  %v12805_v12 = vadd.f32 %v10739_v41, %v6811_v50  ;;  %v10741_v24 = vpop.f32.mrb[47].mxu1 }
 0x98c   : > { %14677 = vrcp.f32 %v10994_v53  ;;  %v20088_v49 = vpop.f32.mrb[204].mxu0 }
 0x98d   : > { %v14668_v27 = vpop.eup %14667  ;;  %v11765_v17 = vmul.f32 -1.442695, %v12805_v12  ;;  %v6787_v57 = vpop.f32.mrb[205].mxu0  ;;  %v6816_v12 = vadd.f32 %v20045_v26, %v20029_v2 }
 0x98e   : > { %v14670_v59 = vpop.eup %14669  ;;  %v10995_v7 = vadd.f32 1.0, %v14668_v27  ;;  %v10744_v46 = vpop.f32.mrb[48].mxu1 }
 0x98f   : > { %11089 = vst.msk [vmem:[%s20080_s30 + $0x8] sm:$0xff] %vm11087_vm10, %v14670_v59  ;;  %14679 = vpow2.f32 %v11765_v17  ;;  %v12807_v51 = vadd.f32 %v10744_v46, %v6812_v36  ;;  %v10746_v38 = vpop.f32.mrb[49].mxu1 }
 0x990   : > { %14681 = vrcp.f32 %v10995_v7  ;;  %v20094_v9 = vpop.f32.mrb[206].mxu0  ;;  %v6817_v7 = vadd.f32 %v20045_v26, %v20031_v32 }
 0x991   : > { %v14672_v40 = vpop.eup %14671  ;;  %v11766_v29 = vmul.f32 -1.442695, %v12807_v51  ;;  %v6792_v11 = vpop.f32.mrb[207].mxu0 }
 0x992   : > { %v14674_v58 = vpop.eup %14673  ;;  %v10996_v30 = vadd.f32 1.0, %v14672_v40  ;;  %v10749_v3 = vpop.f32.mrb[50].mxu1 }
 0x993   : > { %11090 = vst.msk [vmem:[%s20080_s30 + $0x10] sm:$0xff] %vm11087_vm10, %v14674_v58  ;;  %14683 = vpow2.f32 %v11766_v29  ;;  %v12809_v52 = vadd.f32 %v10749_v3, %v6813_v25  ;;  %v10751_v23 = vpop.f32.mrb[51].mxu1  ;;  %v6818_v29 = vadd.f32 %v20045_v26, %v20033_v35 }
 0x994   : > { %14685 = vrcp.f32 %v10996_v30  ;;  %v20100_v43 = vpop.f32.mrb[208].mxu0 }
 0x995   : > { %v14676_v4 = vpop.eup %14675  ;;  %v11767_v14 = vmul.f32 -1.442695, %v12809_v52  ;;  %v6797_v37 = vpop.f32.mrb[209].mxu0 }
 0x996   : > { %v14678_v19 = vpop.eup %14677  ;;  %v10997_v42 = vadd.f32 1.0, %v14676_v4  ;;  %v10754_v54 = vpop.f32.mrb[52].mxu1  ;;  %v6819_v4 = vadd.f32 %v20045_v26, %v20035_v5 }
 0x997   : > { %11091 = vst.msk [vmem:[%s20080_s30 + $0x18] sm:$0xff] %vm11087_vm10, %v14678_v19  ;;  %14687 = vpow2.f32 %v11767_v14  ;;  %v12811_v15 = vadd.f32 %v10754_v54, %v6814_v39  ;;  %v10756_v1 = vpop.f32.mrb[53].mxu1  ;;  %v6820_v54 = vadd.f32 %v20045_v26, %v20037_v61 }
 0x998   : > { %14689 = vrcp.f32 %v10997_v42  ;;  %v20106_v33 = vpop.f32.mrb[210].mxu0 }
 0x999   : > { %v14680_v56 = vpop.eup %14679  ;;  %v11768_v34 = vmul.f32 -1.442695, %v12811_v15  ;;  %v6802_v6 = vpop.f32.mrb[211].mxu0 }
 0x99a   : > { %v14682_v50 = vpop.eup %14681  ;;  %v10998_v47 = vadd.f32 1.0, %v14680_v56  ;;  %v10759_v22 = vpop.f32.mrb[54].mxu1  ;;  %v6821_v6 = vadd.f32 %v20045_v26, %v20039_v21 }
 0x99b   : > { %11092 = vst.msk [vmem:[%s20080_s30 + $0x20] sm:$0xff] %vm11087_vm10, %v14682_v50  ;;  %14691 = vpow2.f32 %v11768_v34  ;;  %v12813_v62 = vadd.f32 %v10759_v22, %v6815_v20  ;;  %v10761_v53 = vpop.f32.mrb[55].mxu1 }
 0x99c   : > { %14693 = vrcp.f32 %v10998_v47 }
 0x99d   : > { %v14684_v41 = vpop.eup %14683  ;;  %v11769_v24 = vmul.f32 -1.442695, %v12813_v62 }
 0x99e   : > { %v14686_v27 = vpop.eup %14685  ;;  %v10999_v48 = vadd.f32 1.0, %v14684_v41  ;;  %v10764_v36 = vpop.f32.mrb[56].mxu1 }
 0x99f   : > { %11093 = vst.msk [vmem:[%s20080_s30 + $0x28] sm:$0xff] %vm11087_vm10, %v14686_v27  ;;  %14695 = vpow2.f32 %v11769_v24  ;;  %v12815_v17 = vadd.f32 %v10764_v36, %v6816_v12  ;;  %v10766_v57 = vpop.f32.mrb[57].mxu1  ;;  %v6822_v12 = vadd.f32 %v20045_v26, %v20041_v60 }
 0x9a0   : > { %14697 = vrcp.f32 %v10999_v48 }
 0x9a1   : > { %v14688_v59 = vpop.eup %14687  ;;  %v11770_v46 = vmul.f32 -1.442695, %v12815_v17 }
 0x9a2   : > { %v14690_v51 = vpop.eup %14689  ;;  %v11000_v38 = vadd.f32 1.0, %v14688_v59  ;;  %v10769_v2 = vpop.f32.mrb[58].mxu1  ;;  %v6823_v59 = vadd.f32 %v20045_v26, %v20043_v8 }
 0x9a3   : > { %11094 = vst.msk [vmem:[%s20080_s30 + $0x30] sm:$0xff] %vm11087_vm10, %v14690_v51  ;;  %14699 = vpow2.f32 %v11770_v46  ;;  %v12817_v40 = vadd.f32 %v10769_v2, %v6817_v7  ;;  %v10771_v44 = vpop.f32.mrb[59].mxu1 }
 0x9a4   : > { %14701 = vrcp.f32 %v11000_v38  ;;  %v6824_v44 = vadd.f32 %v20045_v26, %v20047_v13 }
 0x9a5   : > { %v14692_v25 = vpop.eup %14691  ;;  %v11771_v11 = vmul.f32 -1.442695, %v12817_v40 }
 0x9a6   : > { %v14694_v58 = vpop.eup %14693  ;;  %v11001_v30 = vadd.f32 1.0, %v14692_v25  ;;  %v10774_v32 = vpop.f32.mrb[60].mxu1 }
 0x9a7   : > { %11095 = vst.msk [vmem:[%s20080_s30 + $0x38] sm:$0xff] %vm11087_vm10, %v14694_v58  ;;  %14703 = vpow2.f32 %v11771_v11  ;;  %v12819_v3 = vadd.f32 %v10774_v32, %v6818_v29  ;;  %v10776_v52 = vpop.f32.mrb[61].mxu1 }
 0x9a8   : > { %14705 = vrcp.f32 %v11001_v30 }
 0x9a9   : > { %v14696_v23 = vpop.eup %14695  ;;  %v11772_v16 = vmul.f32 -1.442695, %v12819_v3  ;;  %v6825_v3 = vadd.f32 %v20045_v26, %v20051_v0 }
 0x9aa   : > { %v14698_v39 = vpop.eup %14697  ;;  %v11002_v14 = vadd.f32 1.0, %v14696_v23  ;;  %v10779_v35 = vpop.f32.mrb[62].mxu1 }
 0x9ab   : > { %11096 = vst.msk [vmem:[%s20080_s30 + $0x40] sm:$0xff] %vm11087_vm10, %v14698_v39  ;;  %14707 = vpow2.f32 %v11772_v16  ;;  %v12821_v37 = vadd.f32 %v10779_v35, %v6819_v4  ;;  %v10781_v19 = vpop.f32.mrb[63].mxu1  ;;  %v6826_v35 = vadd.f32 %v20045_v26, %v20055_v63 }
 0x9ac   : > { %14709 = vrcp.f32 %v11002_v14 }
 0x9ad   : > { %v14700_v42 = vpop.eup %14699  ;;  %v11773_v15 = vmul.f32 -1.442695, %v12821_v37 }
 0x9ae   : > { %v14702_v1 = vpop.eup %14701  ;;  %v11003_v56 = vadd.f32 1.0, %v14700_v42  ;;  %v10784_v5 = vpop.f32.mrb[64].mxu1 }
 0x9af   : > { %11097 = vst.msk [vmem:[%s20080_s30 + $0x48] sm:$0xff] %vm11087_vm10, %v14702_v1  ;;  %14711 = vpow2.f32 %v11773_v15  ;;  %v12823_v10 = vadd.f32 %v10784_v5, %v6820_v54  ;;  %v10786_v20 = vpop.f32.mrb[65].mxu1 }
 0x9b0   : > { %14713 = vrcp.f32 %v11003_v56  ;;  %v6827_v56 = vadd.f32 %v20045_v26, %v20059_v45 }
 0x9b1   : > { %v14704_v34 = vpop.eup %14703  ;;  %v11774_v50 = vmul.f32 -1.442695, %v12823_v10 }
 0x9b2   : > { %v14706_v47 = vpop.eup %14705  ;;  %v11004_v22 = vadd.f32 1.0, %v14704_v34  ;;  %v10789_v61 = vpop.f32.mrb[66].mxu1 }
 0x9b3   : > { %11098 = vst.msk [vmem:[%s20080_s30 + $0x50] sm:$0xff] %vm11087_vm10, %v14706_v47  ;;  %14715 = vpow2.f32 %v11774_v50  ;;  %v12825_v62 = vadd.f32 %v10789_v61, %v6821_v6  ;;  %v10791_v53 = vpop.f32.mrb[67].mxu1  ;;  %v6828_v47 = vadd.f32 %v20045_v26, %v20063_v55 }
 0x9b4   : > { %14717 = vrcp.f32 %v11004_v22 }
 0x9b5   : > { %v14708_v41 = vpop.eup %14707  ;;  %v11775_v24 = vmul.f32 -1.442695, %v12825_v62 }
 0x9b6   : > { %v14710_v27 = vpop.eup %14709  ;;  %v11005_v48 = vadd.f32 1.0, %v14708_v41  ;;  %v10794_v21 = vpop.f32.mrb[68].mxu1 }
 0x9b7   : > { %11099 = vst.msk [vmem:[%s20080_s30 + $0x58] sm:$0xff] %vm11087_vm10, %v14710_v27  ;;  %14719 = vpow2.f32 %v11775_v24  ;;  %v12827_v36 = vadd.f32 %v10794_v21, %v6822_v12  ;;  %v10796_v17 = vpop.f32.mrb[69].mxu1  ;;  %v6829_v24 = vadd.f32 %v20045_v26, %v20067_v28 }
 0x9b8   : > { %14721 = vrcp.f32 %v11005_v48 }
 0x9b9   : > { %v14712_v57 = vpop.eup %14711  ;;  %v11776_v7 = vmul.f32 -1.442695, %v12827_v36 }
 0x9ba   : > { %v14714_v46 = vpop.eup %14713  ;;  %v11006_v51 = vadd.f32 1.0, %v14712_v57  ;;  %v10799_v60 = vpop.f32.mrb[70].mxu1 }
 0x9bb   : > { %11100 = vst.msk [vmem:[%s20080_s30 + $0x60] sm:$0xff] %vm11087_vm10, %v14714_v46  ;;  %14723 = vpow2.f32 %v11776_v7  ;;  %v12829_v38 = vadd.f32 %v10799_v60, %v6823_v59  ;;  %v10801_v2 = vpop.f32.mrb[71].mxu1  ;;  %v6830_v59 = vadd.f32 %v20045_v26, %v20071_v18 }
 0x9bc   : > { %14725 = vrcp.f32 %v11006_v51 }
 0x9bd   : > { %v14716_v40 = vpop.eup %14715  ;;  %v11777_v25 = vmul.f32 -1.442695, %v12829_v38 }
 0x9be   : > { %v14718_v29 = vpop.eup %14717  ;;  %v11007_v11 = vadd.f32 1.0, %v14716_v40  ;;  %v10804_v8 = vpop.f32.mrb[72].mxu1  ;;  %v6831_v40 = vadd.f32 %v20045_v26, %v20082_v31 }
 0x9bf   : > { %11101 = vst.msk [vmem:[%s20080_s30 + $0x68] sm:$0xff] %vm11087_vm10, %v14718_v29  ;;  %14727 = vpow2.f32 %v11777_v25  ;;  %v12831_v58 = vadd.f32 %v10804_v8, %v6824_v44  ;;  %v10806_v30 = vpop.f32.mrb[73].mxu1 }
 0x9c0   : > { %14729 = vrcp.f32 %v11007_v11  ;;  %v6832_v30 = vadd.f32 %v20045_v26, %v20088_v49 }
 0x9c1   : > { %v14720_v32 = vpop.eup %14719  ;;  %v11778_v52 = vmul.f32 -1.442695, %v12831_v58 }
 0x9c2   : > { %v14722_v23 = vpop.eup %14721  ;;  %v11008_v4 = vadd.f32 1.0, %v14720_v32  ;;  %v10809_v13 = vpop.f32.mrb[74].mxu1 }
 0x9c3   : > { %11102 = vst.msk [vmem:[%s20080_s30 + $0x70] sm:$0xff] %vm11087_vm10, %v14722_v23  ;;  %14731 = vpow2.f32 %v11778_v52  ;;  %v12833_v16 = vadd.f32 %v10809_v13, %v6825_v3  ;;  %v10811_v39 = vpop.f32.mrb[75].mxu1 }
 0x9c4   : > { %14733 = vrcp.f32 %v11008_v4 }
 0x9c5   : > { %v14724_v14 = vpop.eup %14723  ;;  %v11779_v37 = vmul.f32 -1.442695, %v12833_v16  ;;  %v6833_v16 = vadd.f32 %v20045_v26, %v20094_v9 }
 0x9c6   : > { %v14726_v19 = vpop.eup %14725  ;;  %v11009_v42 = vadd.f32 1.0, %v14724_v14  ;;  %v10814_v0 = vpop.f32.mrb[76].mxu1 }
 0x9c7   : > { %11103 = vst.msk [vmem:[%s20080_s30 + $0x78] sm:$0xff] %vm11087_vm10, %v14726_v19  ;;  %14735 = vpow2.f32 %v11779_v37  ;;  %v12835_v54 = vadd.f32 %v10814_v0, %v6826_v35  ;;  %v10816_v15 = vpop.f32.mrb[77].mxu1  ;;  %v6834_v0 = vadd.f32 %v20045_v26, %v20100_v43 }
 0x9c8   : > { %14737 = vrcp.f32 %v11009_v42 }
 0x9c9   : > { %v14728_v1 = vpop.eup %14727  ;;  %v11780_v5 = vmul.f32 -1.442695, %v12835_v54 }
 0x9ca   : > { %v14730_v10 = vpop.eup %14729  ;;  %v11010_v20 = vadd.f32 1.0, %v14728_v1  ;;  %v10819_v63 = vpop.f32.mrb[78].mxu1 }
 0x9cb   : > { %11104 = vst.msk [vmem:[%s20080_s30 + $0x80] sm:$0xff] %vm11087_vm10, %v14730_v10  ;;  %14739 = vpow2.f32 %v11780_v5  ;;  %v12837_v34 = vadd.f32 %v10819_v63, %v6827_v56  ;;  %v10821_v6 = vpop.f32.mrb[79].mxu1 }
 0x9cc   : > { %14741 = vrcp.f32 %v11010_v20  ;;  %v6835_v20 = vadd.f32 %v20045_v26, %v20106_v33 }
 0x9cd   : > { %v14732_v50 = vpop.eup %14731  ;;  %v11781_v22 = vmul.f32 -1.442695, %v12837_v34 }
 0x9ce   : > { %v14734_v61 = vpop.eup %14733  ;;  %v11011_v62 = vadd.f32 1.0, %v14732_v50  ;;  %v10824_v45 = vpop.f32.mrb[80].mxu1 }
 0x9cf   : > { %11105 = vst.msk [vmem:[%s20080_s30 + $0x88] sm:$0xff] %vm11087_vm10, %v14734_v61  ;;  %14743 = vpow2.f32 %v11781_v22  ;;  %v12839_v53 = vadd.f32 %v10824_v45, %v6828_v47  ;;  %v10826_v41 = vpop.f32.mrb[81].mxu1 }
 0x9d0   : > { %14745 = vrcp.f32 %v11011_v62 }
 0x9d1   : > { %v14736_v12 = vpop.eup %14735  ;;  %v11782_v27 = vmul.f32 -1.442695, %v12839_v53 }
 0x9d2   : > { %v14738_v48 = vpop.eup %14737  ;;  %v11012_v21 = vadd.f32 1.0, %v14736_v12  ;;  %v10829_v55 = vpop.f32.mrb[82].mxu1 }
 0x9d3   : > { %11106 = vst.msk [vmem:[%s20080_s30 + $0x90] sm:$0xff] %vm11087_vm10, %v14738_v48  ;;  %14747 = vpow2.f32 %v11782_v27  ;;  %v12841_v36 = vadd.f32 %v10829_v55, %v6829_v24  ;;  %v10831_v17 = vpop.f32.mrb[83].mxu1 }
 0x9d4   : > { %14749 = vrcp.f32 %v11012_v21 }
 0x9d5   : > { %v14740_v57 = vpop.eup %14739  ;;  %v11783_v7 = vmul.f32 -1.442695, %v12841_v36 }
 0x9d6   : > { %v14742_v46 = vpop.eup %14741  ;;  %v11013_v51 = vadd.f32 1.0, %v14740_v57  ;;  %v10834_v28 = vpop.f32.mrb[84].mxu1 }
 0x9d7   : > { %11107 = vst.msk [vmem:[%s20080_s30 + $0x98] sm:$0xff] %vm11087_vm10, %v14742_v46  ;;  %14751 = vpow2.f32 %v11783_v7  ;;  %v12843_v60 = vadd.f32 %v10834_v28, %v6830_v59  ;;  %v10836_v38 = vpop.f32.mrb[85].mxu1 }
 0x9d8   : > { %14753 = vrcp.f32 %v11013_v51 }
 0x9d9   : > { %v14744_v2 = vpop.eup %14743  ;;  %v11784_v44 = vmul.f32 -1.442695, %v12843_v60 }
 0x9da   : > { %v14746_v25 = vpop.eup %14745  ;;  %v11014_v29 = vadd.f32 1.0, %v14744_v2  ;;  %v10839_v18 = vpop.f32.mrb[86].mxu1 }
 0x9db   : > { %11108 = vst.msk [vmem:[%s20080_s30 + $0xa0] sm:$0xff] %vm11087_vm10, %v14746_v25  ;;  %14755 = vpow2.f32 %v11784_v44  ;;  %v12845_v11 = vadd.f32 %v10839_v18, %v6831_v40  ;;  %v10841_v8 = vpop.f32.mrb[87].mxu1 }
 0x9dc   : > { %14757 = vrcp.f32 %v11014_v29 }
 0x9dd   : > { %v14748_v58 = vpop.eup %14747  ;;  %v11785_v32 = vmul.f32 -1.442695, %v12845_v11 }
 0x9de   : > { %v14750_v3 = vpop.eup %14749  ;;  %v11015_v52 = vadd.f32 1.0, %v14748_v58  ;;  %v10844_v31 = vpop.f32.mrb[88].mxu1 }
 0x9df   : > { %11109 = vst.msk [vmem:[%s20080_s30 + $0xa8] sm:$0xff] %vm11087_vm10, %v14750_v3  ;;  %14759 = vpow2.f32 %v11785_v32  ;;  %v12847_v23 = vadd.f32 %v10844_v31, %v6832_v30  ;;  %v10846_v4 = vpop.f32.mrb[89].mxu1 }
 0x9e0   : > { %14761 = vrcp.f32 %v11015_v52 }
 0x9e1   : > { %v14752_v13 = vpop.eup %14751  ;;  %v11786_v39 = vmul.f32 -1.442695, %v12847_v23 }
 0x9e2   : > { %v14754_v14 = vpop.eup %14753  ;;  %v11016_v35 = vadd.f32 1.0, %v14752_v13  ;;  %v10849_v49 = vpop.f32.mrb[90].mxu1 }
 0x9e3   : > { %11110 = vst.msk [vmem:[%s20080_s30 + $0xb0] sm:$0xff] %vm11087_vm10, %v14754_v14  ;;  %14763 = vpow2.f32 %v11786_v39  ;;  %v12849_v37 = vadd.f32 %v10849_v49, %v6833_v16  ;;  %v10851_v19 = vpop.f32.mrb[91].mxu1 }
 0x9e4   : > { %14765 = vrcp.f32 %v11016_v35 }
 0x9e5   : > { %v14756_v42 = vpop.eup %14755  ;;  %v11787_v54 = vmul.f32 -1.442695, %v12849_v37 }
 0x9e6   : > { %v14758_v15 = vpop.eup %14757  ;;  %v11017_v1 = vadd.f32 1.0, %v14756_v42  ;;  %v10854_v9 = vpop.f32.mrb[92].mxu1 }
 0x9e7   : > { %11111 = vst.msk [vmem:[%s20080_s30 + $0xb8] sm:$0xff] %vm11087_vm10, %v14758_v15  ;;  %14767 = vpow2.f32 %v11787_v54  ;;  %v12851_v56 = vadd.f32 %v10854_v9, %v6834_v0  ;;  %v10856_v5 = vpop.f32.mrb[93].mxu1 }
 0x9e8   : > { %14769 = vrcp.f32 %v11017_v1 }
 0x9e9   : > { %v14760_v10 = vpop.eup %14759  ;;  %v11788_v63 = vmul.f32 -1.442695, %v12851_v56 }
 0x9ea   : > { %v14762_v34 = vpop.eup %14761  ;;  %v11018_v6 = vadd.f32 1.0, %v14760_v10  ;;  %v10859_v43 = vpop.f32.mrb[94].mxu1 }
 0x9eb   : > { %11112 = vst.msk [vmem:[%s20080_s30 + $0xc0] sm:$0xff] %vm11087_vm10, %v14762_v34  ;;  %14771 = vpow2.f32 %v11788_v63  ;;  %v12853_v50 = vadd.f32 %v10859_v43, %v6835_v20  ;;  %v10861_v47 = vpop.f32.mrb[95].mxu1 }
 0x9ec   : > { %14773 = vrcp.f32 %v11018_v6 }
 0x9ed   : > { %v14764_v22 = vpop.eup %14763  ;;  %v11789_v61 = vmul.f32 -1.442695, %v12853_v50 }
 0x9ee   : > { %v14766_v62 = vpop.eup %14765  ;;  %v11019_v45 = vadd.f32 1.0, %v14764_v22 }
 0x9ef   : > { %11113 = vst.msk [vmem:[%s20080_s30 + $0xc8] sm:$0xff] %vm11087_vm10, %v14766_v62  ;;  %14775 = vpow2.f32 %v11789_v61 }
 0x9f0   : > { %14777 = vrcp.f32 %v11019_v45 }
 0x9f1   : > { %v14768_v26 = vpop.eup %14767 }
 0x9f2   : > { %v14770_v33 = vpop.eup %14769  ;;  %v11020_v53 = vadd.f32 1.0, %v14768_v26 }
 0x9f3   : > { %11114 = vst.msk [vmem:[%s20080_s30 + $0xd0] sm:$0xff] %vm11087_vm10, %v14770_v33 }
 0x9f4   : > { %14779 = vrcp.f32 %v11020_v53 }
 0x9f5   : > { %v14772_v41 = vpop.eup %14771 }
 0x9f6   : > { %v14774_v12 = vpop.eup %14773  ;;  %v11021_v24 = vadd.f32 1.0, %v14772_v41 }
 0x9f7   : > { %11115 = vst.msk [vmem:[%s20080_s30 + $0xd8] sm:$0xff] %vm11087_vm10, %v14774_v12 }
 0x9f8   : > { %14781 = vrcp.f32 %v11021_v24 }
 0x9f9   : > { %v14776_v27 = vpop.eup %14775 }
 0x9fa   : > { %v14778_v48 = vpop.eup %14777  ;;  %v11022_v21 = vadd.f32 1.0, %v14776_v27 }
 0x9fb   : > { %11116 = vst.msk [vmem:[%s20080_s30 + $0xe0] sm:$0xff] %vm11087_vm10, %v14778_v48 }
 0x9fc   : > { %14783 = vrcp.f32 %v11022_v21 }
 0x9fe   : > { %v14780_v55 = vpop.eup %14779 }
 0x9ff   : > { %11117 = vst.msk [vmem:[%s20080_s30 + $0xe8] sm:$0xff] %vm11087_vm10, %v14780_v55 }
 0xa02   : > { %v14782_v36 = vpop.eup %14781 }
 0xa03   : > { %11118 = vst.msk [vmem:[%s20080_s30 + $0xf0] sm:$0xff] %vm11087_vm10, %v14782_v36 }
 0xa06   : > { %v14784_v17 = vpop.eup %14783 }
 0xa07   : > { %11119 = vst.msk [vmem:[%s20080_s30 + $0xf8] sm:$0xff] %vm11087_vm10, %v14784_v17 }
 0xa08 PF: > { %s23_s19 = sadd.s32 1, %s14831_s19  }
 0xa09   : > { %p20_p4 = scmp.ge.s32.totalorder %s23_s19, 4  }
 0xa0b   :  { %22 = sbr.rel (!%p20_p4) target bundleno = 3 (0x3), region = 110 }

</bundles_post_ra>
